<compile_context>
chip_gen: v5e
topology: v5e:2x2
jax: 0.10.0
libtpu: 0.0.40
codegen_flags: <defaults>
</compile_context>

<pallas_src>
import functools

import numpy as np
import jax
import jax.numpy as jnp
from jax.experimental import pallas as pl
from jax.experimental.pallas import tpu as pltpu


# ------------------------------ small helpers ------------------------------

def _round_up(x, m):
    return (x + m - 1) // m * m


def _tile(dim, pref=256):
    """Pick a tile size (full dim if small, else `pref`) and the padded extent."""
    if dim <= pref:
        return dim, dim
    return pref, _round_up(dim, pref)


def _seq_tile(t, pref=256):
    if t <= pref:
        return t
    for cand in (pref, 128, 64, 32, 16, 8):
        if t % cand == 0:
            return cand
    return t


_GM_CACHE = {}


def _group_matrix(c, g):
    """(C, C) f32 matrix A with A[c, c'] = 1 iff same GroupNorm group."""
    key = (c, g)
    if key not in _GM_CACHE:
        cg = c // g
        idx = np.arange(c) // cg
        _GM_CACHE[key] = jnp.asarray((idx[:, None] == idx[None, :]).astype(np.float32))
    return _GM_CACHE[key]


# ----------------------------- tiled GEMM kernel -----------------------------

def _mm_kernel(a_ref, b_ref, *rest, has_bias, has_res):
    extras = list(rest)
    bias_ref = extras.pop(0) if has_bias else None
    res_ref = extras.pop(0) if has_res else None
    o_ref, acc_ref = extras
    k = pl.program_id(2)

    @pl.when(k == 0)
    def _():
        acc_ref[...] = jnp.zeros_like(acc_ref)

    acc_ref[...] += jnp.dot(a_ref[...], b_ref[...],
                            preferred_element_type=jnp.float32)

    @pl.when(k == pl.num_programs(2) - 1)
    def _():
        acc = acc_ref[...]
        if has_bias:
            acc = acc + bias_ref[...]
        if has_res:
            acc = acc + res_ref[...].astype(jnp.float32)
        o_ref[...] = acc.astype(o_ref.dtype)


def matmul(a, b, bias=None, residual=None, out_dtype=jnp.bfloat16):
    """a: (M, K), b: (K, N) contraction-major, bias: (N,), residual: (M, N)."""
    M, K = a.shape
    N = b.shape[1]
    tm, Mp = _tile(M)
    tk, Kp = _tile(K)
    tn, Np = _tile(N)

    a = a.astype(jnp.bfloat16)
    b = b.astype(jnp.bfloat16)
    if (Mp, Kp) != (M, K):
        a = jnp.pad(a, ((0, Mp - M), (0, Kp - K)))
    if (Kp, Np) != (K, N):
        b = jnp.pad(b, ((0, Kp - K), (0, Np - N)))

    has_bias = bias is not None
    has_res = residual is not None
    in_specs = [pl.BlockSpec((tm, tk), lambda i, j, k: (i, k)),
                pl.BlockSpec((tk, tn), lambda i, j, k: (k, j))]
    args = [a, b]
    if has_bias:
        b2 = bias.reshape(1, N).astype(jnp.float32)
        if Np != N:
            b2 = jnp.pad(b2, ((0, 0), (0, Np - N)))
        in_specs.append(pl.BlockSpec((1, tn), lambda i, j, k: (0, j)))
        args.append(b2)
    if has_res:
        r = residual
        if (Mp, Np) != (M, N):
            r = jnp.pad(r, ((0, Mp - M), (0, Np - N)))
        in_specs.append(pl.BlockSpec((tm, tn), lambda i, j, k: (i, j)))
        args.append(r)

    out = pl.pallas_call(
        functools.partial(_mm_kernel, has_bias=has_bias, has_res=has_res),
        out_shape=jax.ShapeDtypeStruct((Mp, Np), out_dtype),
        grid=(Mp // tm, Np // tn, Kp // tk),
        in_specs=in_specs,
        out_specs=pl.BlockSpec((tm, tn), lambda i, j, k: (i, j)),
        scratch_shapes=[pltpu.VMEM((tm, tn), jnp.float32)],
        compiler_params=pltpu.CompilerParams(
            dimension_semantics=("parallel", "parallel", "arbitrary")),
    )(*args)
    return out[:M, :N]


# --------------------- fused LayerNorm + GEMM (QKV proj) ---------------------

def _ln_mm_kernel(x_ref, w_ref, g_ref, b_ref, o_ref, *, eps):
    x = x_ref[...].astype(jnp.float32)                     # (tm, C)
    mean = jnp.mean(x, axis=-1, keepdims=True)
    var = jnp.mean((x - mean) ** 2, axis=-1, keepdims=True)
    xn = ((x - mean) * jax.lax.rsqrt(var + eps) * g_ref[...] + b_ref[...]
          ).astype(jnp.bfloat16)
    o_ref[...] = jnp.dot(xn, w_ref[...],
                         preferred_element_type=jnp.float32).astype(o_ref.dtype)


def layernorm_matmul(x2, gamma, beta, wT, eps=1e-5, out_dtype=jnp.bfloat16):
    """LayerNorm over C fused into x2 @ wT. Requires C to fit one K tile."""
    M, C = x2.shape
    N = wT.shape[1]
    tm, Mp = _tile(M)
    tn, Np = _tile(N)

    xp = x2.astype(jnp.bfloat16)
    if Mp != M:
        xp = jnp.pad(xp, ((0, Mp - M), (0, 0)))
    wp = wT.astype(jnp.bfloat16)
    if Np != N:
        wp = jnp.pad(wp, ((0, 0), (0, Np - N)))

    out = pl.pallas_call(
        functools.partial(_ln_mm_kernel, eps=eps),
        out_shape=jax.ShapeDtypeStruct((Mp, Np), out_dtype),
        grid=(Mp // tm, Np // tn),
        in_specs=[pl.BlockSpec((tm, C), lambda i, j: (i, 0)),
                  pl.BlockSpec((C, tn), lambda i, j: (0, j)),
                  pl.BlockSpec((1, C), lambda i, j: (0, 0)),
                  pl.BlockSpec((1, C), lambda i, j: (0, 0))],
        out_specs=pl.BlockSpec((tm, tn), lambda i, j: (i, j)),
        compiler_params=pltpu.CompilerParams(
            dimension_semantics=("parallel", "parallel")),
    )(xp, wp, gamma.reshape(1, C).astype(jnp.float32),
      beta.reshape(1, C).astype(jnp.float32))
    return out[:M, :N]


# -------------------------- 3x3 conv (streamed taps) --------------------------

def _conv3x3_kernel(x_ref, w_ref, bias_ref, o_ref, acc_ref, *, wp2, n_rows):
    # x_ref : (1, Rp, tc)  flat padded rows, bf16
    # w_ref : (9, tc, tn)  per-tap weight slices, bf16
    # bias  : (1, tn)      f32
    # o_ref : (1, n_rows, tn)
    # acc   : (n_rows, tn) f32
    k = pl.program_id(2)

    @pl.when(k == 0)
    def _():
        acc_ref[...] = jnp.zeros_like(acc_ref)

    part = None
    for kh in range(3):
        for kw in range(3):
            off = kh * wp2 + kw                       # static row shift for this tap
            a = x_ref[0, pl.ds(off, n_rows), :]       # (n_rows, tc)
            d = jnp.dot(a, w_ref[kh * 3 + kw], preferred_element_type=jnp.float32)
            part = d if part is None else part + d
    acc_ref[...] += part

    @pl.when(k == pl.num_programs(2) - 1)
    def _():
        o_ref[0] = (acc_ref[...] + bias_ref[...]).astype(o_ref.dtype)


def conv2d_3x3(x, w9, bias, out_dtype=jnp.bfloat16):
    """NHWC 3x3 conv, stride 1, pad 1. w9: (9, Cin, Cout), bias: (Cout,)."""
    B, H, W, C = x.shape
    Cout = w9.shape[-1]
    wp2 = W + 2
    n_rows = H * wp2                         # output rows in padded-row layout
    rp = (H + 2) * wp2 + 8                   # +8 slack so tap shifts never read OOB

    tc, Cp = _tile(C)
    tn, Np = _tile(Cout)

    xp = jnp.pad(x.astype(jnp.bfloat16), ((0, 0), (1, 1), (1, 1), (0, 0)))
    xf = xp.reshape(B, (H + 2) * wp2, C)
    xf = jnp.pad(xf, ((0, 0), (0, rp - (H + 2) * wp2), (0, Cp - C)))

    w9p = jnp.pad(w9.astype(jnp.bfloat16), ((0, 0), (0, Cp - C), (0, Np - Cout)))
    b2 = jnp.pad(bias.astype(jnp.float32).reshape(1, Cout), ((0, 0), (0, Np - Cout)))

    # TODO(synk): add spatial (row-band + halo) tiling for very large H*W so the
    # per-image slab / accumulator stays within VMEM at production resolutions.
    out = pl.pallas_call(
        functools.partial(_conv3x3_kernel, wp2=wp2, n_rows=n_rows),
        out_shape=jax.ShapeDtypeStruct((B, n_rows, Np), out_dtype),
        grid=(B, Np // tn, Cp // tc),
        in_specs=[pl.BlockSpec((1, rp, tc), lambda b, j, k: (b, 0, k)),
                  pl.BlockSpec((9, tc, tn), lambda b, j, k: (0, k, j)),
                  pl.BlockSpec((1, tn), lambda b, j, k: (0, j))],
        out_specs=pl.BlockSpec((1, n_rows, tn), lambda b, j, k: (b, 0, j)),
        scratch_shapes=[pltpu.VMEM((n_rows, tn), jnp.float32)],
        compiler_params=pltpu.CompilerParams(
            dimension_semantics=("parallel", "parallel", "arbitrary")),
    )(xf, w9p, b2)

    out = out.reshape(B, H, wp2, Np)[:, :, :W, :Cout]
    return out


def conv2d_1x1(x, wT, bias, residual=None, out_dtype=jnp.bfloat16):
    """NHWC 1x1 conv. wT: (Cin, Cout) pre-transposed; optional fused residual add."""
    B, H, W, C = x.shape
    Cout = wT.shape[1]
    res2 = None if residual is None else residual.reshape(B * H * W, Cout)
    out = matmul(x.reshape(B * H * W, C), wT, bias, residual=res2, out_dtype=out_dtype)
    return out.reshape(B, H, W, Cout)


# ------------------------------ fused GroupNorm ------------------------------

def _groupnorm_swish_kernel(x_ref, g_ref, b_ref, gm_ref, o_ref, *, eps, inv_count):
    x = x_ref[0].astype(jnp.float32)                         # (HW, C)
    s = jnp.sum(x, axis=0, keepdims=True)                    # (1, C) per-channel sums
    ss = jnp.sum(x * x, axis=0, keepdims=True)
    # group-aggregate + broadcast back to channels with one tiny (1,C)x(C,C) matmul
    gs = jnp.dot(s, gm_ref[...], preferred_element_type=jnp.float32)
    gss = jnp.dot(ss, gm_ref[...], preferred_element_type=jnp.float32)
    mean = gs * inv_count
    var = jnp.maximum(gss * inv_count - mean * mean, 0.0)
    y = (x - mean) * jax.lax.rsqrt(var + eps) * g_ref[...] + b_ref[...]
    y = y * jax.nn.sigmoid(y)                                # fused nonlinearity(x)
    o_ref[0] = y.astype(o_ref.dtype)


def groupnorm_swish(x, gamma, beta, eps=1e-6):
    """torch GroupNorm(num_groups=C if C<=32 else 32, eps=1e-6) fused with x*sigmoid(x)."""
    B, H, W, C = x.shape
    G = C if C <= 32 else 32
    Cg = C // G
    HW = H * W
    gm = _group_matrix(C, G)
    inv_count = 1.0 / float(Cg * HW)

    out = pl.pallas_call(
        functools.partial(_groupnorm_swish_kernel, eps=eps, inv_count=inv_count),
        out_shape=jax.ShapeDtypeStruct((B, HW, C), jnp.bfloat16),
        grid=(B,),
        in_specs=[pl.BlockSpec((1, HW, C), lambda b: (b, 0, 0)),
                  pl.BlockSpec((1, C), lambda b: (0, 0)),
                  pl.BlockSpec((1, C), lambda b: (0, 0)),
                  pl.BlockSpec((C, C), lambda b: (0, 0))],
        out_specs=pl.BlockSpec((1, HW, C), lambda b: (b, 0, 0)),
        compiler_params=pltpu.CompilerParams(dimension_semantics=("parallel",)),
    )(x.reshape(B, HW, C),
      gamma.reshape(1, C).astype(jnp.float32),
      beta.reshape(1, C).astype(jnp.float32),
      gm)
    return out.reshape(B, H, W, C)


# --------------------------------- LayerNorm ---------------------------------

def _layernorm_kernel(x_ref, g_ref, b_ref, o_ref, *, eps):
    x = x_ref[...].astype(jnp.float32)
    mean = jnp.mean(x, axis=-1, keepdims=True)
    var = jnp.mean((x - mean) ** 2, axis=-1, keepdims=True)
    y = (x - mean) * jax.lax.rsqrt(var + eps) * g_ref[...] + b_ref[...]
    o_ref[...] = y.astype(o_ref.dtype)


def layernorm(x2, gamma, beta, eps=1e-5):
    """x2: (M, C) -> (M, C) bf16, normalized over C (torch nn.LayerNorm default eps)."""
    M, C = x2.shape
    tm, Mp = _tile(M)
    xp = x2 if Mp == M else jnp.pad(x2, ((0, Mp - M), (0, 0)))
    out = pl.pallas_call(
        functools.partial(_layernorm_kernel, eps=eps),
        out_shape=jax.ShapeDtypeStruct((Mp, C), jnp.bfloat16),
        grid=(Mp // tm,),
        in_specs=[pl.BlockSpec((tm, C), lambda i: (i, 0)),
                  pl.BlockSpec((1, C), lambda i: (0, 0)),
                  pl.BlockSpec((1, C), lambda i: (0, 0))],
        out_specs=pl.BlockSpec((tm, C), lambda i: (i, 0)),
        compiler_params=pltpu.CompilerParams(dimension_semantics=("parallel",)),
    )(xp, gamma.reshape(1, C).astype(jnp.float32),
      beta.reshape(1, C).astype(jnp.float32))
    return out[:M]


# ------------------------------ flash attention ------------------------------

def _flash_attn_kernel(q_ref, k_ref, v_ref, o_ref, m_sc, l_sc, acc_sc, *, scale):
    kv = pl.program_id(2)

    @pl.when(kv == 0)
    def _():
        m_sc[...] = jnp.full_like(m_sc, -jnp.inf)
        l_sc[...] = jnp.zeros_like(l_sc)
        acc_sc[...] = jnp.zeros_like(acc_sc)

    q = q_ref[0]                                   # (tq, C) bf16
    k = k_ref[0]                                   # (tk, C) bf16
    v = v_ref[0]
    s = jax.lax.dot_general(q, k, (((1,), (1,)), ((), ())),
                            preferred_element_type=jnp.float32) * scale
    m_new = jnp.maximum(m_sc[...], jnp.max(s, axis=-1, keepdims=True))
    alpha = jnp.exp(m_sc[...] - m_new)
    p = jnp.exp(s - m_new)
    l_sc[...] = alpha * l_sc[...] + jnp.sum(p, axis=-1, keepdims=True)
    acc_sc[...] = alpha * acc_sc[...] + jnp.dot(p.astype(v.dtype), v,
                                                preferred_element_type=jnp.float32)
    m_sc[...] = m_new

    @pl.when(kv == pl.num_programs(2) - 1)
    def _():
        o_ref[0] = (acc_sc[...] * pl.reciprocal(l_sc[...], approx=True)
                    ).astype(o_ref.dtype)


def flash_attention(q, k, v, scale):
    B, T, C = q.shape
    tq = _seq_tile(T)
    tk = _seq_tile(T)
    qspec = pl.BlockSpec((1, tq, C), lambda b, i, j: (b, i, 0))
    kvspec = pl.BlockSpec((1, tk, C), lambda b, i, j: (b, j, 0))
    return pl.pallas_call(
        functools.partial(_flash_attn_kernel, scale=scale),
        out_shape=jax.ShapeDtypeStruct((B, T, C), jnp.bfloat16),
        grid=(B, T // tq, T // tk),
        in_specs=[qspec, kvspec, kvspec],
        out_specs=pl.BlockSpec((1, tq, C), lambda b, i, j: (b, i, 0)),
        scratch_shapes=[pltpu.VMEM((tq, 1), jnp.float32),
                        pltpu.VMEM((tq, 1), jnp.float32),
                        pltpu.VMEM((tq, C), jnp.float32)],
        compiler_params=pltpu.CompilerParams(
            dimension_semantics=("parallel", "parallel", "arbitrary")),
    )(q, k, v)


# --------------------------- module-level forwards ---------------------------

def resnet_block(x, p):
    h = groupnorm_swish(x, p['norm1_g'], p['norm1_b'])
    h = conv2d_3x3(h, p['conv1']['w9'], p['conv1']['b'])
    h = groupnorm_swish(h, p['norm2_g'], p['norm2_b'])
    # dropout -> identity at inference
    h = conv2d_3x3(h, p['conv2']['w9'], p['conv2']['b'])
    if 'nin' in p:
        # 1x1 shortcut with the residual add fused into the GEMM epilogue.
        return conv2d_1x1(x, p['nin']['wT'], p['nin']['b'], residual=h)
    return x + h


def attn_block(x, p):
    B, H, W, C = x.shape
    res2 = x.reshape(B * H * W, C)
    if C <= 256:
        # LayerNorm fused into the QKV GEMM (C fits one K tile).
        qkv = layernorm_matmul(res2, p['ln_g'], p['ln_b'], p['qkv_wT'])
    else:
        xn = layernorm(res2, p['ln_g'], p['ln_b'])
        qkv = matmul(xn, p['qkv_wT'], None)
    qkv = qkv.reshape(B, H * W, 3 * C)
    q = qkv[..., 0:C]
    k = qkv[..., C:2 * C]
    v = qkv[..., 2 * C:3 * C]
    o = flash_attention(q, k, v, scale=float(C) ** -0.5)
    # proj_out with the residual add fused into the GEMM epilogue.
    o = matmul(o.reshape(B * H * W, C), p['proj_wT'], None, residual=res2)
    return o.reshape(B, H, W, C)


def upsample(x, p):
    # F.interpolate(size=(4*H, W), mode='nearest') == repeat H by 4.
    # TODO(synk): fold the 4x row repeat into the conv's row gather to avoid
    # materializing the 4x-larger activation in HBM.
    x = jnp.repeat(x, 4, axis=1)
    return conv2d_3x3(x, p['w9'], p['b'])


def decoder_forward(params, z, cfg):
    num_resolutions = len(cfg['ch_mult'])
    h = jnp.transpose(z, (0, 2, 3, 1))          # NCHW -> NHWC once, at entry
    h = conv2d_3x3(h, params['conv_in']['w9'], params['conv_in']['b'])
    h = resnet_block(h, params['mid_block_1'])
    h = attn_block(h, params['mid_attn_1'])
    h = resnet_block(h, params['mid_block_2'])
    for i_level in reversed(range(num_resolutions)):
        lvl = params['up'][i_level]
        for i_block in range(cfg['num_res_blocks'][i_level] + 1):
            h = resnet_block(h, lvl['block'][i_block])
            if len(lvl['attn']) > 0:
                h = attn_block(h, lvl['attn'][i_block])
        if i_level != 0:
            h = upsample(h, lvl['upsample'])
    h = groupnorm_swish(h, params['norm_out_g'], params['norm_out_b'])
    h = conv2d_3x3(h, params['conv_out']['w9'], params['conv_out']['b'],
                   out_dtype=jnp.float32)
    return jnp.transpose(h, (0, 3, 1, 2))       # back to NCHW


# ------------------------------ parameter init ------------------------------

class ParamGen:
    def __init__(self, key):
        self.key = key
        self.i = 0

    def normal(self, shape, scale=0.05):
        self.i += 1
        k = jax.random.fold_in(self.key, self.i)
        return (scale * jax.random.normal(k, shape)).astype(jnp.float32)


def conv3_p(pg, cin, cout):
    # Weights stored in kernel layout (tap, cin, cout), bf16; bias f32.
    w = pg.normal((3, 3, cin, cout)).reshape(9, cin, cout)
    return {'w9': w.astype(jnp.bfloat16), 'b': pg.normal((cout,))}


def resblock_p(pg, cin, cout):
    p = {'norm1_g': jnp.ones((cin,), jnp.float32), 'norm1_b': jnp.zeros((cin,), jnp.float32),
         'norm2_g': jnp.ones((cout,), jnp.float32), 'norm2_b': jnp.zeros((cout,), jnp.float32),
         'conv1': conv3_p(pg, cin, cout),
         'conv2': conv3_p(pg, cout, cout)}
    if cin != cout:
        p['nin'] = {'wT': pg.normal((cin, cout)).astype(jnp.bfloat16),
                    'b': pg.normal((cout,))}
    return p


def attn_p(pg, c):
    return {'ln_g': jnp.ones((c,), jnp.float32), 'ln_b': jnp.zeros((c,), jnp.float32),
            'qkv_wT': pg.normal((c, 3 * c)).astype(jnp.bfloat16),   # pre-transposed
            'proj_wT': pg.normal((c, c)).astype(jnp.bfloat16)}


def build_decoder_params(pg, *, ch, ch_mult, num_res_blocks, attn_resolutions,
                         in_channels, resolution, z_channels):
    num_resolutions = len(ch_mult)
    block_in = ch * ch_mult[num_resolutions - 1]
    curr_res = resolution // 2 ** (num_resolutions - 1)
    params = {'conv_in': conv3_p(pg, z_channels, block_in),
              'mid_block_1': resblock_p(pg, block_in, block_in),
              'mid_attn_1': attn_p(pg, block_in),
              'mid_block_2': resblock_p(pg, block_in, block_in)}
    up = [None] * num_resolutions
    for i_level in reversed(range(num_resolutions)):
        block, attn = [], []
        block_out = ch * ch_mult[i_level]
        for _ in range(num_res_blocks[i_level] + 1):
            block.append(resblock_p(pg, block_in, block_out))
            block_in = block_out
            if curr_res in attn_resolutions:
                attn.append(attn_p(pg, block_in))
        lvl = {'block': block, 'attn': attn}
        if i_level != 0:
            lvl['upsample'] = conv3_p(pg, block_in, block_in)
            curr_res *= 2
        up[i_level] = lvl
    params['up'] = up
    params['norm_out_g'] = jnp.ones((block_in,), jnp.float32)
    params['norm_out_b'] = jnp.zeros((block_in,), jnp.float32)
    params['conv_out'] = conv3_p(pg, block_in, in_channels)
    return params


# ------------------------------------ main ------------------------------------

if __name__ == "__main__":
    cfg = dict(ch=8, ch_mult=(1, 2), num_res_blocks=(1, 1), attn_resolutions=(),
               in_channels=4, resolution=16, z_channels=16)
    key = jax.random.PRNGKey(0)
    pg = ParamGen(key)
    params = build_decoder_params(pg, **cfg)

    B, H, W = 2, 4, 4
    z = jax.random.normal(jax.random.fold_in(key, 12345),
                          (B, cfg['z_channels'], H, W), jnp.float32)

    fwd = jax.jit(lambda p, x: decoder_forward(p, x, cfg))
    out = jax.block_until_ready(fwd(params, z))

    # one 4x nearest upsample on H (level 1 -> 0), W unchanged; final channels = in_channels
    assert out.shape == (B, cfg['in_channels'], H * 4, W), out.shape
    assert out.dtype == jnp.float32
    assert bool(jnp.all(jnp.isfinite(out)))
    print("KERNEL_OK")
</pallas_src>

<mosaic_0001>
module attributes {stable_mosaic.version = 11 : i64} {
  func.func @_ln_mm_kernel(%arg0: i32, %arg1: i32, %arg2: memref<32x16xbf16, #tpu.memory_space<vmem>>, %arg3: memref<16x48xbf16, #tpu.memory_space<vmem>>, %arg4: memref<1x16xf32, #tpu.memory_space<vmem>>, %arg5: memref<1x16xf32, #tpu.memory_space<vmem>>, %arg6: memref<32x48xbf16, #tpu.memory_space<vmem>>) attributes {dimension_semantics = [#tpu.dimension_semantics<parallel>, #tpu.dimension_semantics<parallel>], iteration_bounds = array<i64: 1, 1>, scalar_prefetch = 0 : i64, scratch_operands = 0 : i64, tpu.core_type = #tpu.core_type<tc>, window_params = [{transform_indices = @transform_0, window_bounds = array<i64: 32, 16>}, {transform_indices = @transform_1, window_bounds = array<i64: 16, 48>}, {pipeline_mode = #tpu.pipeline_mode<synchronous>, transform_indices = @transform_2, window_bounds = array<i64: 1, 16>}, {pipeline_mode = #tpu.pipeline_mode<synchronous>, transform_indices = @transform_3, window_bounds = array<i64: 1, 16>}, {transform_indices = @transform_4, window_bounds = array<i64: 32, 48>}]} {
    %c0 = arith.constant 0 : index
    %c0_0 = arith.constant 0 : index
    %0 = vector.load %arg2[%c0, %c0_0] : memref<32x16xbf16, #tpu.memory_space<vmem>>, vector<32x16xbf16>
    %1 = arith.extf %0 : vector<32x16xbf16> to vector<32x16xf32>
    %cst = arith.constant dense<0.000000e+00> : vector<32xf32>
    %2 = vector.multi_reduction <add>, %1, %cst [1] : vector<32x16xf32> to vector<32xf32>
    %3 = vector.shape_cast %2 : vector<32xf32> to vector<32x1xf32>
    %cst_1 = arith.constant 1.600000e+01 : f32
    %4 = vector.broadcast %cst_1 : f32 to vector<32x1xf32>
    %5 = arith.divf %3, %4 : vector<32x1xf32>
    %6 = vector.broadcast %5 : vector<32x1xf32> to vector<32x16xf32>
    %7 = arith.subf %1, %6 : vector<32x16xf32>
    %8 = arith.mulf %7, %7 : vector<32x16xf32>
    %cst_2 = arith.constant dense<0.000000e+00> : vector<32xf32>
    %9 = vector.multi_reduction <add>, %8, %cst_2 [1] : vector<32x16xf32> to vector<32xf32>
    %10 = vector.shape_cast %9 : vector<32xf32> to vector<32x1xf32>
    %cst_3 = arith.constant 1.600000e+01 : f32
    %11 = vector.broadcast %cst_3 : f32 to vector<32x1xf32>
    %12 = arith.divf %10, %11 : vector<32x1xf32>
    %13 = vector.broadcast %5 : vector<32x1xf32> to vector<32x16xf32>
    %14 = arith.subf %1, %13 : vector<32x16xf32>
    %cst_4 = arith.constant 9.99999974E-6 : f32
    %15 = vector.broadcast %cst_4 : f32 to vector<32x1xf32>
    %16 = arith.addf %12, %15 : vector<32x1xf32>
    %17 = math.rsqrt %16 : vector<32x1xf32>
    %18 = vector.broadcast %17 : vector<32x1xf32> to vector<32x16xf32>
    %19 = arith.mulf %14, %18 : vector<32x16xf32>
    %c0_5 = arith.constant 0 : index
    %c0_6 = arith.constant 0 : index
    %20 = vector.load %arg4[%c0_5, %c0_6] : memref<1x16xf32, #tpu.memory_space<vmem>>, vector<1x16xf32>
    %21 = vector.broadcast %20 : vector<1x16xf32> to vector<32x16xf32>
    %22 = arith.mulf %19, %21 : vector<32x16xf32>
    %c0_7 = arith.constant 0 : index
    %c0_8 = arith.constant 0 : index
    %23 = vector.load %arg5[%c0_7, %c0_8] : memref<1x16xf32, #tpu.memory_space<vmem>>, vector<1x16xf32>
    %24 = vector.broadcast %23 : vector<1x16xf32> to vector<32x16xf32>
    %25 = arith.addf %22, %24 : vector<32x16xf32>
    %26 = arith.truncf %25 : vector<32x16xf32> to vector<32x16xbf16>
    %c0_9 = arith.constant 0 : index
    %c0_10 = arith.constant 0 : index
    %27 = vector.load %arg3[%c0_9, %c0_10] : memref<16x48xbf16, #tpu.memory_space<vmem>>, vector<16x48xbf16>
    %cst_11 = arith.constant dense<0.000000e+00> : vector<32x48xf32>
    %28 = tpu.matmul %26, %27, %cst_11 {dimension_numbers = #tpu.dot_dimension_numbers<[1], [0], [0], [1], [0, 0, 1, 1], [], []>} : vector<32x16xbf16>, vector<16x48xbf16>, vector<32x48xf32> -> vector<32x48xf32>
    %29 = arith.truncf %28 : vector<32x48xf32> to vector<32x48xbf16>
    %c0_12 = arith.constant 0 : index
    %c0_13 = arith.constant 0 : index
    %30 = vector.load %arg6[%c0_12, %c0_13] : memref<32x48xbf16, #tpu.memory_space<vmem>>, vector<32x48xbf16>
    tpu.vector_store %arg6[%c0_12, %c0_13], %29 {strides = array<i32>} : memref<32x48xbf16, #tpu.memory_space<vmem>>, vector<32x48xbf16>,
    return
  }
  func.func @transform_0(%arg0: i32, %arg1: i32) -> (i32, i32) {
    %c0_i32 = arith.constant 0 : i32
    %c0_i32_0 = arith.constant 0 : i32
    return %arg0, %c0_i32 : i32, i32
  }
  func.func @transform_1(%arg0: i32, %arg1: i32) -> (i32, i32) {
    %c0_i32 = arith.constant 0 : i32
    %c0_i32_0 = arith.constant 0 : i32
    return %c0_i32, %arg1 : i32, i32
  }
  func.func @transform_2(%arg0: i32, %arg1: i32) -> (i32, i32) {
    %c0_i32 = arith.constant 0 : i32
    %c0_i32_0 = arith.constant 0 : i32
    %c0_i32_1 = arith.constant 0 : i32
    return %c0_i32, %c0_i32_0 : i32, i32
  }
  func.func @transform_3(%arg0: i32, %arg1: i32) -> (i32, i32) {
    %c0_i32 = arith.constant 0 : i32
    %c0_i32_0 = arith.constant 0 : i32
    %c0_i32_1 = arith.constant 0 : i32
    return %c0_i32, %c0_i32_0 : i32, i32
  }
  func.func @transform_4(%arg0: i32, %arg1: i32) -> (i32, i32) {
    %c0_i32 = arith.constant 0 : i32
    return %arg0, %arg1 : i32, i32
  }
}

module attributes {stable_mosaic.version = 11 : i64} {
  func.func @_groupnorm_swish_kernel(%arg0: i32, %arg1: memref<1x16x16xbf16, #tpu.memory_space<vmem>>, %arg2: memref<1x16xf32, #tpu.memory_space<vmem>>, %arg3: memref<1x16xf32, #tpu.memory_space<vmem>>, %arg4: memref<16x16xf32, #tpu.memory_space<vmem>>, %arg5: memref<1x16x16xbf16, #tpu.memory_space<vmem>>) attributes {dimension_semantics = [#tpu.dimension_semantics<parallel>], iteration_bounds = array<i64: 2>, scalar_prefetch = 0 : i64, scratch_operands = 0 : i64, tpu.core_type = #tpu.core_type<tc>, window_params = [{transform_indices = @transform_0, window_bounds = array<i64: 1, 16, 16>}, {pipeline_mode = #tpu.pipeline_mode<synchronous>, transform_indices = @transform_1, window_bounds = array<i64: 1, 16>}, {pipeline_mode = #tpu.pipeline_mode<synchronous>, transform_indices = @transform_2, window_bounds = array<i64: 1, 16>}, {pipeline_mode = #tpu.pipeline_mode<synchronous>, transform_indices = @transform_3, window_bounds = array<i64: 16, 16>}, {transform_indices = @transform_4, window_bounds = array<i64: 1, 16, 16>}]} {
    %c0 = arith.constant 0 : index
    %c0_0 = arith.constant 0 : index
    %c0_1 = arith.constant 0 : index
    %0 = vector.load %arg1[%c0, %c0_0, %c0_1] : memref<1x16x16xbf16, #tpu.memory_space<vmem>>, vector<1x16x16xbf16>
    %1 = vector.shape_cast %0 : vector<1x16x16xbf16> to vector<16x16xbf16>
    %2 = arith.extf %1 : vector<16x16xbf16> to vector<16x16xf32>
    %cst = arith.constant dense<0.000000e+00> : vector<16xf32>
    %3 = vector.multi_reduction <add>, %2, %cst [0] : vector<16x16xf32> to vector<16xf32>
    %4 = vector.shape_cast %3 : vector<16xf32> to vector<1x16xf32>
    %5 = arith.mulf %2, %2 : vector<16x16xf32>
    %cst_2 = arith.constant dense<0.000000e+00> : vector<16xf32>
    %6 = vector.multi_reduction <add>, %5, %cst_2 [0] : vector<16x16xf32> to vector<16xf32>
    %7 = vector.shape_cast %6 : vector<16xf32> to vector<1x16xf32>
    %c0_3 = arith.constant 0 : index
    %c0_4 = arith.constant 0 : index
    %8 = vector.load %arg4[%c0_3, %c0_4] : memref<16x16xf32, #tpu.memory_space<vmem>>, vector<16x16xf32>
    %cst_5 = arith.constant dense<0.000000e+00> : vector<1x16xf32>
    %9 = tpu.matmul %4, %8, %cst_5 {dimension_numbers = #tpu.dot_dimension_numbers<[1], [0], [0], [1], [0, 0, 1, 1], [], []>} : vector<1x16xf32>, vector<16x16xf32>, vector<1x16xf32> -> vector<1x16xf32>
    %c0_6 = arith.constant 0 : index
    %c0_7 = arith.constant 0 : index
    %10 = vector.load %arg4[%c0_6, %c0_7] : memref<16x16xf32, #tpu.memory_space<vmem>>, vector<16x16xf32>
    %cst_8 = arith.constant dense<0.000000e+00> : vector<1x16xf32>
    %11 = tpu.matmul %7, %10, %cst_8 {dimension_numbers = #tpu.dot_dimension_numbers<[1], [0], [0], [1], [0, 0, 1, 1], [], []>} : vector<1x16xf32>, vector<16x16xf32>, vector<1x16xf32> -> vector<1x16xf32>
    %cst_9 = arith.constant 6.250000e-02 : f32
    %12 = vector.broadcast %cst_9 : f32 to vector<1x16xf32>
    %13 = arith.mulf %9, %12 : vector<1x16xf32>
    %cst_10 = arith.constant 6.250000e-02 : f32
    %14 = vector.broadcast %cst_10 : f32 to vector<1x16xf32>
    %15 = arith.mulf %11, %14 : vector<1x16xf32>
    %16 = arith.mulf %13, %13 : vector<1x16xf32>
    %17 = arith.subf %15, %16 : vector<1x16xf32>
    %cst_11 = arith.constant 0.000000e+00 : f32
    %18 = vector.broadcast %cst_11 : f32 to vector<1x16xf32>
    %19 = arith.maximumf %17, %18 : vector<1x16xf32>
    %20 = vector.broadcast %13 : vector<1x16xf32> to vector<16x16xf32>
    %21 = arith.subf %2, %20 : vector<16x16xf32>
    %cst_12 = arith.constant 9.99999997E-7 : f32
    %22 = vector.broadcast %cst_12 : f32 to vector<1x16xf32>
    %23 = arith.addf %19, %22 : vector<1x16xf32>
    %24 = math.rsqrt %23 : vector<1x16xf32>
    %25 = vector.broadcast %24 : vector<1x16xf32> to vector<16x16xf32>
    %26 = arith.mulf %21, %25 : vector<16x16xf32>
    %c0_13 = arith.constant 0 : index
    %c0_14 = arith.constant 0 : index
    %27 = vector.load %arg2[%c0_13, %c0_14] : memref<1x16xf32, #tpu.memory_space<vmem>>, vector<1x16xf32>
    %28 = vector.broadcast %27 : vector<1x16xf32> to vector<16x16xf32>
    %29 = arith.mulf %26, %28 : vector<16x16xf32>
    %c0_15 = arith.constant 0 : index
    %c0_16 = arith.constant 0 : index
    %30 = vector.load %arg3[%c0_15, %c0_16] : memref<1x16xf32, #tpu.memory_space<vmem>>, vector<1x16xf32>
    %31 = vector.broadcast %30 : vector<1x16xf32> to vector<16x16xf32>
    %32 = arith.addf %29, %31 : vector<16x16xf32>
    %33 = arith.negf %32 : vector<16x16xf32>
    %34 = math.exp %33 : vector<16x16xf32>
    %cst_17 = arith.constant 1.000000e+00 : f32
    %35 = vector.broadcast %cst_17 : f32 to vector<16x16xf32>
    %36 = arith.addf %35, %34 : vector<16x16xf32>
    %37 = arith.divf %35, %36 : vector<16x16xf32>
    %38 = arith.mulf %32, %37 : vector<16x16xf32>
    %39 = arith.truncf %38 : vector<16x16xf32> to vector<16x16xbf16>
    %c0_18 = arith.constant 0 : index
    %c0_19 = arith.constant 0 : index
    %c0_20 = arith.constant 0 : index
    %40 = vector.load %arg5[%c0_18, %c0_19, %c0_20] : memref<1x16x16xbf16, #tpu.memory_space<vmem>>, vector<1x16x16xbf16>
    %41 = vector.shape_cast %40 : vector<1x16x16xbf16> to vector<16x16xbf16>
    %42 = vector.shape_cast %39 : vector<16x16xbf16> to vector<1x16x16xbf16>
    tpu.vector_store %arg5[%c0_18, %c0_19, %c0_20], %42 {strides = array<i32>} : memref<1x16x16xbf16, #tpu.memory_space<vmem>>, vector<1x16x16xbf16>,
    return
  }
  func.func @transform_0(%arg0: i32) -> (i32, i32, i32) {
    %c0_i32 = arith.constant 0 : i32
    %c0_i32_0 = arith.constant 0 : i32
    %c0_i32_1 = arith.constant 0 : i32
    return %arg0, %c0_i32, %c0_i32_0 : i32, i32, i32
  }
  func.func @transform_1(%arg0: i32) -> (i32, i32) {
    %c0_i32 = arith.constant 0 : i32
    %c0_i32_0 = arith.constant 0 : i32
    %c0_i32_1 = arith.constant 0 : i32
    return %c0_i32, %c0_i32_0 : i32, i32
  }
  func.func @transform_2(%arg0: i32) -> (i32, i32) {
    %c0_i32 = arith.constant 0 : i32
    %c0_i32_0 = arith.constant 0 : i32
    %c0_i32_1 = arith.constant 0 : i32
    return %c0_i32, %c0_i32_0 : i32, i32
  }
  func.func @transform_3(%arg0: i32) -> (i32, i32) {
    %c0_i32 = arith.constant 0 : i32
    %c0_i32_0 = arith.constant 0 : i32
    %c0_i32_1 = arith.constant 0 : i32
    return %c0_i32, %c0_i32_0 : i32, i32
  }
  func.func @transform_4(%arg0: i32) -> (i32, i32, i32) {
    %c0_i32 = arith.constant 0 : i32
    %c0_i32_0 = arith.constant 0 : i32
    %c0_i32_1 = arith.constant 0 : i32
    return %arg0, %c0_i32, %c0_i32_0 : i32, i32, i32
  }
}

module attributes {stable_mosaic.version = 11 : i64} {
  func.func @_conv3x3_kernel(%arg0: i32, %arg1: i32, %arg2: i32, %arg3: memref<1x44x16xbf16, #tpu.memory_space<vmem>>, %arg4: memref<9x16x16xbf16, #tpu.memory_space<vmem>>, %arg5: memref<1x16xf32, #tpu.memory_space<vmem>>, %arg6: memref<1x24x16xbf16, #tpu.memory_space<vmem>>, %arg7: memref<24x16xf32, #tpu.memory_space<vmem>>) attributes {dimension_semantics = [#tpu.dimension_semantics<parallel>, #tpu.dimension_semantics<parallel>, #tpu.dimension_semantics<arbitrary>], iteration_bounds = array<i64: 2, 1, 1>, scalar_prefetch = 0 : i64, scratch_operands = 1 : i64, tpu.core_type = #tpu.core_type<tc>, window_params = [{transform_indices = @transform_0, window_bounds = array<i64: 1, 44, 16>}, {transform_indices = @transform_1, window_bounds = array<i64: 9, 16, 16>}, {transform_indices = @transform_2, window_bounds = array<i64: 1, 16>}, {transform_indices = @transform_3, window_bounds = array<i64: 1, 24, 16>}]} {
    %c0_i32 = arith.constant 0 : i32
    %0 = arith.cmpi eq, %arg2, %c0_i32 : i32
    %1 = arith.extui %0 : i1 to i32
    %c0_i32_0 = arith.constant 0 : i32
    %2 = arith.cmpi ne, %1, %c0_i32_0 : i32
    scf.if %2 {
      %cst_57 = arith.constant 0.000000e+00 : f32
      %62 = vector.broadcast %cst_57 : f32 to vector<24x16xf32>
      %c0_58 = arith.constant 0 : index
      %c0_59 = arith.constant 0 : index
      %63 = vector.load %arg7[%c0_58, %c0_59] : memref<24x16xf32, #tpu.memory_space<vmem>>, vector<24x16xf32>
      tpu.vector_store %arg7[%c0_58, %c0_59], %62 {strides = array<i32>} : memref<24x16xf32, #tpu.memory_space<vmem>>, vector<24x16xf32>,
    } else {
    }
    %c0 = arith.constant 0 : index
    %c0_1 = arith.constant 0 : index
    %c0_2 = arith.constant 0 : index
    %3 = vector.load %arg3[%c0, %c0_1, %c0_2] : memref<1x44x16xbf16, #tpu.memory_space<vmem>>, vector<1x24x16xbf16>
    %4 = vector.shape_cast %3 : vector<1x24x16xbf16> to vector<24x16xbf16>
    %c0_3 = arith.constant 0 : index
    %c0_4 = arith.constant 0 : index
    %c0_5 = arith.constant 0 : index
    %5 = vector.load %arg4[%c0_3, %c0_4, %c0_5] : memref<9x16x16xbf16, #tpu.memory_space<vmem>>, vector<1x16x16xbf16>
    %6 = vector.shape_cast %5 : vector<1x16x16xbf16> to vector<16x16xbf16>
    %cst = arith.constant dense<0.000000e+00> : vector<24x16xf32>
    %7 = tpu.matmul %4, %6, %cst {dimension_numbers = #tpu.dot_dimension_numbers<[1], [0], [0], [1], [0, 0, 1, 1], [], []>} : vector<24x16xbf16>, vector<16x16xbf16>, vector<24x16xf32> -> vector<24x16xf32>
    %c0_6 = arith.constant 0 : index
    %c1 = arith.constant 1 : index
    %c0_7 = arith.constant 0 : index
    %8 = vector.load %arg3[%c0_6, %c1, %c0_7] : memref<1x44x16xbf16, #tpu.memory_space<vmem>>, vector<1x24x16xbf16>
    %9 = vector.shape_cast %8 : vector<1x24x16xbf16> to vector<24x16xbf16>
    %c1_8 = arith.constant 1 : index
    %c0_9 = arith.constant 0 : index
    %c0_10 = arith.constant 0 : index
    %10 = vector.load %arg4[%c1_8, %c0_9, %c0_10] : memref<9x16x16xbf16, #tpu.memory_space<vmem>>, vector<1x16x16xbf16>
    %11 = vector.shape_cast %10 : vector<1x16x16xbf16> to vector<16x16xbf16>
    %cst_11 = arith.constant dense<0.000000e+00> : vector<24x16xf32>
    %12 = tpu.matmul %9, %11, %cst_11 {dimension_numbers = #tpu.dot_dimension_numbers<[1], [0], [0], [1], [0, 0, 1, 1], [], []>} : vector<24x16xbf16>, vector<16x16xbf16>, vector<24x16xf32> -> vector<24x16xf32>
    %13 = arith.addf %7, %12 : vector<24x16xf32>
    %c0_12 = arith.constant 0 : index
    %c2 = arith.constant 2 : index
    %c0_13 = arith.constant 0 : index
    %14 = vector.load %arg3[%c0_12, %c2, %c0_13] : memref<1x44x16xbf16, #tpu.memory_space<vmem>>, vector<1x24x16xbf16>
    %15 = vector.shape_cast %14 : vector<1x24x16xbf16> to vector<24x16xbf16>
    %c2_14 = arith.constant 2 : index
    %c0_15 = arith.constant 0 : index
    %c0_16 = arith.constant 0 : index
    %16 = vector.load %arg4[%c2_14, %c0_15, %c0_16] : memref<9x16x16xbf16, #tpu.memory_space<vmem>>, vector<1x16x16xbf16>
    %17 = vector.shape_cast %16 : vector<1x16x16xbf16> to vector<16x16xbf16>
    %cst_17 = arith.constant dense<0.000000e+00> : vector<24x16xf32>
    %18 = tpu.matmul %15, %17, %cst_17 {dimension_numbers = #tpu.dot_dimension_numbers<[1], [0], [0], [1], [0, 0, 1, 1], [], []>} : vector<24x16xbf16>, vector<16x16xbf16>, vector<24x16xf32> -> vector<24x16xf32>
    %19 = arith.addf %13, %18 : vector<24x16xf32>
    %c0_18 = arith.constant 0 : index
    %c6 = arith.constant 6 : index
    %c0_19 = arith.constant 0 : index
    %20 = vector.load %arg3[%c0_18, %c6, %c0_19] : memref<1x44x16xbf16, #tpu.memory_space<vmem>>, vector<1x24x16xbf16>
    %21 = vector.shape_cast %20 : vector<1x24x16xbf16> to vector<24x16xbf16>
    %c3 = arith.constant 3 : index
    %c0_20 = arith.constant 0 : index
    %c0_21 = arith.constant 0 : index
    %22 = vector.load %arg4[%c3, %c0_20, %c0_21] : memref<9x16x16xbf16, #tpu.memory_space<vmem>>, vector<1x16x16xbf16>
    %23 = vector.shape_cast %22 : vector<1x16x16xbf16> to vector<16x16xbf16>
    %cst_22 = arith.constant dense<0.000000e+00> : vector<24x16xf32>
    %24 = tpu.matmul %21, %23, %cst_22 {dimension_numbers = #tpu.dot_dimension_numbers<[1], [0], [0], [1], [0, 0, 1, 1], [], []>} : vector<24x16xbf16>, vector<16x16xbf16>, vector<24x16xf32> -> vector<24x16xf32>
    %25 = arith.addf %19, %24 : vector<24x16xf32>
    %c0_23 = arith.constant 0 : index
    %c7 = arith.constant 7 : index
    %c0_24 = arith.constant 0 : index
    %26 = vector.load %arg3[%c0_23, %c7, %c0_24] : memref<1x44x16xbf16, #tpu.memory_space<vmem>>, vector<1x24x16xbf16>
    %27 = vector.shape_cast %26 : vector<1x24x16xbf16> to vector<24x16xbf16>
    %c4 = arith.constant 4 : index
    %c0_25 = arith.constant 0 : index
    %c0_26 = arith.constant 0 : index
    %28 = vector.load %arg4[%c4, %c0_25, %c0_26] : memref<9x16x16xbf16, #tpu.memory_space<vmem>>, vector<1x16x16xbf16>
    %29 = vector.shape_cast %28 : vector<1x16x16xbf16> to vector<16x16xbf16>
    %cst_27 = arith.constant dense<0.000000e+00> : vector<24x16xf32>
    %30 = tpu.matmul %27, %29, %cst_27 {dimension_numbers = #tpu.dot_dimension_numbers<[1], [0], [0], [1], [0, 0, 1, 1], [], []>} : vector<24x16xbf16>, vector<16x16xbf16>, vector<24x16xf32> -> vector<24x16xf32>
    %31 = arith.addf %25, %30 : vector<24x16xf32>
    %c0_28 = arith.constant 0 : index
    %c8 = arith.constant 8 : index
    %c0_29 = arith.constant 0 : index
    %32 = vector.load %arg3[%c0_28, %c8, %c0_29] : memref<1x44x16xbf16, #tpu.memory_space<vmem>>, vector<1x24x16xbf16>
    %33 = vector.shape_cast %32 : vector<1x24x16xbf16> to vector<24x16xbf16>
    %c5 = arith.constant 5 : index
    %c0_30 = arith.constant 0 : index
    %c0_31 = arith.constant 0 : index
    %34 = vector.load %arg4[%c5, %c0_30, %c0_31] : memref<9x16x16xbf16, #tpu.memory_space<vmem>>, vector<1x16x16xbf16>
    %35 = vector.shape_cast %34 : vector<1x16x16xbf16> to vector<16x16xbf16>
    %cst_32 = arith.constant dense<0.000000e+00> : vector<24x16xf32>
    %36 = tpu.matmul %33, %35, %cst_32 {dimension_numbers = #tpu.dot_dimension_numbers<[1], [0], [0], [1], [0, 0, 1, 1], [], []>} : vector<24x16xbf16>, vector<16x16xbf16>, vector<24x16xf32> -> vector<24x16xf32>
    %37 = arith.addf %31, %36 : vector<24x16xf32>
    %c0_33 = arith.constant 0 : index
    %c12 = arith.constant 12 : index
    %c0_34 = arith.constant 0 : index
    %38 = vector.load %arg3[%c0_33, %c12, %c0_34] : memref<1x44x16xbf16, #tpu.memory_space<vmem>>, vector<1x24x16xbf16>
    %39 = vector.shape_cast %38 : vector<1x24x16xbf16> to vector<24x16xbf16>
    %c6_35 = arith.constant 6 : index
    %c0_36 = arith.constant 0 : index
    %c0_37 = arith.constant 0 : index
    %40 = vector.load %arg4[%c6_35, %c0_36, %c0_37] : memref<9x16x16xbf16, #tpu.memory_space<vmem>>, vector<1x16x16xbf16>
    %41 = vector.shape_cast %40 : vector<1x16x16xbf16> to vector<16x16xbf16>
    %cst_38 = arith.constant dense<0.000000e+00> : vector<24x16xf32>
    %42 = tpu.matmul %39, %41, %cst_38 {dimension_numbers = #tpu.dot_dimension_numbers<[1], [0], [0], [1], [0, 0, 1, 1], [], []>} : vector<24x16xbf16>, vector<16x16xbf16>, vector<24x16xf32> -> vector<24x16xf32>
    %43 = arith.addf %37, %42 : vector<24x16xf32>
    %c0_39 = arith.constant 0 : index
    %c13 = arith.constant 13 : index
    %c0_40 = arith.constant 0 : index
    %44 = vector.load %arg3[%c0_39, %c13, %c0_40] : memref<1x44x16xbf16, #tpu.memory_space<vmem>>, vector<1x24x16xbf16>
    %45 = vector.shape_cast %44 : vector<1x24x16xbf16> to vector<24x16xbf16>
    %c7_41 = arith.constant 7 : index
    %c0_42 = arith.constant 0 : index
    %c0_43 = arith.constant 0 : index
    %46 = vector.load %arg4[%c7_41, %c0_42, %c0_43] : memref<9x16x16xbf16, #tpu.memory_space<vmem>>, vector<1x16x16xbf16>
    %47 = vector.shape_cast %46 : vector<1x16x16xbf16> to vector<16x16xbf16>
    %cst_44 = arith.constant dense<0.000000e+00> : vector<24x16xf32>
    %48 = tpu.matmul %45, %47, %cst_44 {dimension_numbers = #tpu.dot_dimension_numbers<[1], [0], [0], [1], [0, 0, 1, 1], [], []>} : vector<24x16xbf16>, vector<16x16xbf16>, vector<24x16xf32> -> vector<24x16xf32>
    %49 = arith.addf %43, %48 : vector<24x16xf32>
    %c0_45 = arith.constant 0 : index
    %c14 = arith.constant 14 : index
    %c0_46 = arith.constant 0 : index
    %50 = vector.load %arg3[%c0_45, %c14, %c0_46] : memref<1x44x16xbf16, #tpu.memory_space<vmem>>, vector<1x24x16xbf16>
    %51 = vector.shape_cast %50 : vector<1x24x16xbf16> to vector<24x16xbf16>
    %c8_47 = arith.constant 8 : index
    %c0_48 = arith.constant 0 : index
    %c0_49 = arith.constant 0 : index
    %52 = vector.load %arg4[%c8_47, %c0_48, %c0_49] : memref<9x16x16xbf16, #tpu.memory_space<vmem>>, vector<1x16x16xbf16>
    %53 = vector.shape_cast %52 : vector<1x16x16xbf16> to vector<16x16xbf16>
    %cst_50 = arith.constant dense<0.000000e+00> : vector<24x16xf32>
    %54 = tpu.matmul %51, %53, %cst_50 {dimension_numbers = #tpu.dot_dimension_numbers<[1], [0], [0], [1], [0, 0, 1, 1], [], []>} : vector<24x16xbf16>, vector<16x16xbf16>, vector<24x16xf32> -> vector<24x16xf32>
    %55 = arith.addf %49, %54 : vector<24x16xf32>
    %c0_51 = arith.constant 0 : index
    %c0_52 = arith.constant 0 : index
    %56 = vector.load %arg7[%c0_51, %c0_52] : memref<24x16xf32, #tpu.memory_space<vmem>>, vector<24x16xf32>
    %57 = arith.addf %56, %55 : vector<24x16xf32>
    %c0_53 = arith.constant 0 : index
    %c0_54 = arith.constant 0 : index
    %58 = vector.load %arg7[%c0_53, %c0_54] : memref<24x16xf32, #tpu.memory_space<vmem>>, vector<24x16xf32>
    tpu.vector_store %arg7[%c0_53, %c0_54], %57 {strides = array<i32>} : memref<24x16xf32, #tpu.memory_space<vmem>>, vector<24x16xf32>,
    %c0_i32_55 = arith.constant 0 : i32
    %59 = arith.cmpi eq, %arg2, %c0_i32_55 : i32
    %60 = arith.extui %59 : i1 to i32
    %c0_i32_56 = arith.constant 0 : i32
    %61 = arith.cmpi ne, %60, %c0_i32_56 : i32
    scf.if %61 {
      %c0_57 = arith.constant 0 : index
      %c0_58 = arith.constant 0 : index
      %62 = vector.load %arg7[%c0_57, %c0_58] : memref<24x16xf32, #tpu.memory_space<vmem>>, vector<24x16xf32>
      %c0_59 = arith.constant 0 : index
      %c0_60 = arith.constant 0 : index
      %63 = vector.load %arg5[%c0_59, %c0_60] : memref<1x16xf32, #tpu.memory_space<vmem>>, vector<1x16xf32>
      %64 = vector.broadcast %63 : vector<1x16xf32> to vector<24x16xf32>
      %65 = arith.addf %62, %64 : vector<24x16xf32>
      %66 = arith.truncf %65 : vector<24x16xf32> to vector<24x16xbf16>
      %c0_61 = arith.constant 0 : index
      %c0_62 = arith.constant 0 : index
      %c0_63 = arith.constant 0 : index
      %67 = vector.load %arg6[%c0_61, %c0_62, %c0_63] : memref<1x24x16xbf16, #tpu.memory_space<vmem>>, vector<1x24x16xbf16>
      %68 = vector.shape_cast %67 : vector<1x24x16xbf16> to vector<24x16xbf16>
      %69 = vector.shape_cast %66 : vector<24x16xbf16> to vector<1x24x16xbf16>
      tpu.vector_store %arg6[%c0_61, %c0_62, %c0_63], %69 {strides = array<i32>} : memref<1x24x16xbf16, #tpu.memory_space<vmem>>, vector<1x24x16xbf16>,
    } else {
    }
    return
  }
  func.func @transform_0(%arg0: i32, %arg1: i32, %arg2: i32) -> (i32, i32, i32) {
    %c0_i32 = arith.constant 0 : i32
    %c0_i32_0 = arith.constant 0 : i32
    return %arg0, %c0_i32, %arg2 : i32, i32, i32
  }
  func.func @transform_1(%arg0: i32, %arg1: i32, %arg2: i32) -> (i32, i32, i32) {
    %c0_i32 = arith.constant 0 : i32
    %c0_i32_0 = arith.constant 0 : i32
    return %c0_i32, %arg2, %arg1 : i32, i32, i32
  }
  func.func @transform_2(%arg0: i32, %arg1: i32, %arg2: i32) -> (i32, i32) {
    %c0_i32 = arith.constant 0 : i32
    %c0_i32_0 = arith.constant 0 : i32
    return %c0_i32, %arg1 : i32, i32
  }
  func.func @transform_3(%arg0: i32, %arg1: i32, %arg2: i32) -> (i32, i32, i32) {
    %c0_i32 = arith.constant 0 : i32
    %c0_i32_0 = arith.constant 0 : i32
    return %arg0, %c0_i32, %arg1 : i32, i32, i32
  }
}

module attributes {stable_mosaic.version = 11 : i64} {
  func.func @_flash_attn_kernel(%arg0: i32, %arg1: i32, %arg2: i32, %arg3: memref<1x16x16xbf16, #tpu.memory_space<vmem>>, %arg4: memref<1x16x16xbf16, #tpu.memory_space<vmem>>, %arg5: memref<1x16x16xbf16, #tpu.memory_space<vmem>>, %arg6: memref<1x16x16xbf16, #tpu.memory_space<vmem>>, %arg7: memref<16x1xf32, #tpu.memory_space<vmem>>, %arg8: memref<16x1xf32, #tpu.memory_space<vmem>>, %arg9: memref<16x16xf32, #tpu.memory_space<vmem>>) attributes {dimension_semantics = [#tpu.dimension_semantics<parallel>, #tpu.dimension_semantics<parallel>, #tpu.dimension_semantics<arbitrary>], iteration_bounds = array<i64: 2, 1, 1>, scalar_prefetch = 0 : i64, scratch_operands = 3 : i64, tpu.core_type = #tpu.core_type<tc>, window_params = [{transform_indices = @transform_0, window_bounds = array<i64: 1, 16, 16>}, {transform_indices = @transform_1, window_bounds = array<i64: 1, 16, 16>}, {transform_indices = @transform_2, window_bounds = array<i64: 1, 16, 16>}, {transform_indices = @transform_3, window_bounds = array<i64: 1, 16, 16>}]} {
    %c0_i32 = arith.constant 0 : i32
    %0 = arith.cmpi eq, %arg2, %c0_i32 : i32
    %1 = arith.extui %0 : i1 to i32
    %c0_i32_0 = arith.constant 0 : i32
    %2 = arith.cmpi ne, %1, %c0_i32_0 : i32
    scf.if %2 {
      %cst_29 = arith.constant 0xFF800000 : f32
      %39 = vector.broadcast %cst_29 : f32 to vector<16x1xf32>
      %c0_30 = arith.constant 0 : index
      %c0_31 = arith.constant 0 : index
      %40 = vector.load %arg7[%c0_30, %c0_31] : memref<16x1xf32, #tpu.memory_space<vmem>>, vector<16x1xf32>
      tpu.vector_store %arg7[%c0_30, %c0_31], %39 {strides = array<i32>} : memref<16x1xf32, #tpu.memory_space<vmem>>, vector<16x1xf32>,
      %cst_32 = arith.constant 0.000000e+00 : f32
      %41 = vector.broadcast %cst_32 : f32 to vector<16x1xf32>
      %c0_33 = arith.constant 0 : index
      %c0_34 = arith.constant 0 : index
      %42 = vector.load %arg8[%c0_33, %c0_34] : memref<16x1xf32, #tpu.memory_space<vmem>>, vector<16x1xf32>
      tpu.vector_store %arg8[%c0_33, %c0_34], %41 {strides = array<i32>} : memref<16x1xf32, #tpu.memory_space<vmem>>, vector<16x1xf32>,
      %cst_35 = arith.constant 0.000000e+00 : f32
      %43 = vector.broadcast %cst_35 : f32 to vector<16x16xf32>
      %c0_36 = arith.constant 0 : index
      %c0_37 = arith.constant 0 : index
      %44 = vector.load %arg9[%c0_36, %c0_37] : memref<16x16xf32, #tpu.memory_space<vmem>>, vector<16x16xf32>
      tpu.vector_store %arg9[%c0_36, %c0_37], %43 {strides = array<i32>} : memref<16x16xf32, #tpu.memory_space<vmem>>, vector<16x16xf32>,
    } else {
    }
    %c0 = arith.constant 0 : index
    %c0_1 = arith.constant 0 : index
    %c0_2 = arith.constant 0 : index
    %3 = vector.load %arg3[%c0, %c0_1, %c0_2] : memref<1x16x16xbf16, #tpu.memory_space<vmem>>, vector<1x16x16xbf16>
    %4 = vector.shape_cast %3 : vector<1x16x16xbf16> to vector<16x16xbf16>
    %c0_3 = arith.constant 0 : index
    %c0_4 = arith.constant 0 : index
    %c0_5 = arith.constant 0 : index
    %5 = vector.load %arg4[%c0_3, %c0_4, %c0_5] : memref<1x16x16xbf16, #tpu.memory_space<vmem>>, vector<1x16x16xbf16>
    %6 = vector.shape_cast %5 : vector<1x16x16xbf16> to vector<16x16xbf16>
    %c0_6 = arith.constant 0 : index
    %c0_7 = arith.constant 0 : index
    %c0_8 = arith.constant 0 : index
    %7 = vector.load %arg5[%c0_6, %c0_7, %c0_8] : memref<1x16x16xbf16, #tpu.memory_space<vmem>>, vector<1x16x16xbf16>
    %8 = vector.shape_cast %7 : vector<1x16x16xbf16> to vector<16x16xbf16>
    %cst = arith.constant dense<0.000000e+00> : vector<16x16xf32>
    %9 = tpu.matmul %4, %6, %cst {dimension_numbers = #tpu.dot_dimension_numbers<[1], [1], [0], [0], [0, 0, 1, 0], [], []>} : vector<16x16xbf16>, vector<16x16xbf16>, vector<16x16xf32> -> vector<16x16xf32>
    %cst_9 = arith.constant 2.500000e-01 : f32
    %10 = vector.broadcast %cst_9 : f32 to vector<16x16xf32>
    %11 = arith.mulf %9, %10 : vector<16x16xf32>
    %c0_10 = arith.constant 0 : index
    %c0_11 = arith.constant 0 : index
    %12 = vector.load %arg7[%c0_10, %c0_11] : memref<16x1xf32, #tpu.memory_space<vmem>>, vector<16x1xf32>
    %cst_12 = arith.constant dense<0xFF800000> : vector<16xf32>
    %13 = vector.multi_reduction <maximumf>, %11, %cst_12 [1] : vector<16x16xf32> to vector<16xf32>
    %14 = vector.shape_cast %13 : vector<16xf32> to vector<16x1xf32>
    %15 = arith.maximumf %12, %14 : vector<16x1xf32>
    %c0_13 = arith.constant 0 : index
    %c0_14 = arith.constant 0 : index
    %16 = vector.load %arg7[%c0_13, %c0_14] : memref<16x1xf32, #tpu.memory_space<vmem>>, vector<16x1xf32>
    %17 = arith.subf %16, %15 : vector<16x1xf32>
    %18 = math.exp %17 : vector<16x1xf32>
    %19 = vector.broadcast %15 : vector<16x1xf32> to vector<16x16xf32>
    %20 = arith.subf %11, %19 : vector<16x16xf32>
    %21 = math.exp %20 : vector<16x16xf32>
    %c0_15 = arith.constant 0 : index
    %c0_16 = arith.constant 0 : index
    %22 = vector.load %arg8[%c0_15, %c0_16] : memref<16x1xf32, #tpu.memory_space<vmem>>, vector<16x1xf32>
    %23 = arith.mulf %18, %22 : vector<16x1xf32>
    %cst_17 = arith.constant dense<0.000000e+00> : vector<16xf32>
    %24 = vector.multi_reduction <add>, %21, %cst_17 [1] : vector<16x16xf32> to vector<16xf32>
    %25 = vector.shape_cast %24 : vector<16xf32> to vector<16x1xf32>
    %26 = arith.addf %23, %25 : vector<16x1xf32>
    %c0_18 = arith.constant 0 : index
    %c0_19 = arith.constant 0 : index
    %27 = vector.load %arg8[%c0_18, %c0_19] : memref<16x1xf32, #tpu.memory_space<vmem>>, vector<16x1xf32>
    tpu.vector_store %arg8[%c0_18, %c0_19], %26 {strides = array<i32>} : memref<16x1xf32, #tpu.memory_space<vmem>>, vector<16x1xf32>,
    %c0_20 = arith.constant 0 : index
    %c0_21 = arith.constant 0 : index
    %28 = vector.load %arg9[%c0_20, %c0_21] : memref<16x16xf32, #tpu.memory_space<vmem>>, vector<16x16xf32>
    %29 = vector.broadcast %18 : vector<16x1xf32> to vector<16x16xf32>
    %30 = arith.mulf %29, %28 : vector<16x16xf32>
    %31 = arith.truncf %21 : vector<16x16xf32> to vector<16x16xbf16>
    %cst_22 = arith.constant dense<0.000000e+00> : vector<16x16xf32>
    %32 = tpu.matmul %31, %8, %cst_22 {dimension_numbers = #tpu.dot_dimension_numbers<[1], [0], [0], [1], [0, 0, 1, 1], [], []>} : vector<16x16xbf16>, vector<16x16xbf16>, vector<16x16xf32> -> vector<16x16xf32>
    %33 = arith.addf %30, %32 : vector<16x16xf32>
    %c0_23 = arith.constant 0 : index
    %c0_24 = arith.constant 0 : index
    %34 = vector.load %arg9[%c0_23, %c0_24] : memref<16x16xf32, #tpu.memory_space<vmem>>, vector<16x16xf32>
    tpu.vector_store %arg9[%c0_23, %c0_24], %33 {strides = array<i32>} : memref<16x16xf32, #tpu.memory_space<vmem>>, vector<16x16xf32>,
    %c0_25 = arith.constant 0 : index
    %c0_26 = arith.constant 0 : index
    %35 = vector.load %arg7[%c0_25, %c0_26] : memref<16x1xf32, #tpu.memory_space<vmem>>, vector<16x1xf32>
    tpu.vector_store %arg7[%c0_25, %c0_26], %15 {strides = array<i32>} : memref<16x1xf32, #tpu.memory_space<vmem>>, vector<16x1xf32>,
    %c0_i32_27 = arith.constant 0 : i32
    %36 = arith.cmpi eq, %arg2, %c0_i32_27 : i32
    %37 = arith.extui %36 : i1 to i32
    %c0_i32_28 = arith.constant 0 : i32
    %38 = arith.cmpi ne, %37, %c0_i32_28 : i32
    scf.if %38 {
      %c0_29 = arith.constant 0 : index
      %c0_30 = arith.constant 0 : index
      %39 = vector.load %arg9[%c0_29, %c0_30] : memref<16x16xf32, #tpu.memory_space<vmem>>, vector<16x16xf32>
      %c0_31 = arith.constant 0 : index
      %c0_32 = arith.constant 0 : index
      %40 = vector.load %arg8[%c0_31, %c0_32] : memref<16x1xf32, #tpu.memory_space<vmem>>, vector<16x1xf32>
      %41 = tpu.reciprocal %40 {approx = true} : vector<16x1xf32> -> vector<16x1xf32>
      %42 = vector.broadcast %41 : vector<16x1xf32> to vector<16x16xf32>
      %43 = arith.mulf %39, %42 : vector<16x16xf32>
      %44 = arith.truncf %43 : vector<16x16xf32> to vector<16x16xbf16>
      %c0_33 = arith.constant 0 : index
      %c0_34 = arith.constant 0 : index
      %c0_35 = arith.constant 0 : index
      %45 = vector.load %arg6[%c0_33, %c0_34, %c0_35] : memref<1x16x16xbf16, #tpu.memory_space<vmem>>, vector<1x16x16xbf16>
      %46 = vector.shape_cast %45 : vector<1x16x16xbf16> to vector<16x16xbf16>
      %47 = vector.shape_cast %44 : vector<16x16xbf16> to vector<1x16x16xbf16>
      tpu.vector_store %arg6[%c0_33, %c0_34, %c0_35], %47 {strides = array<i32>} : memref<1x16x16xbf16, #tpu.memory_space<vmem>>, vector<1x16x16xbf16>,
    } else {
    }
    return
  }
  func.func @transform_0(%arg0: i32, %arg1: i32, %arg2: i32) -> (i32, i32, i32) {
    %c0_i32 = arith.constant 0 : i32
    %c0_i32_0 = arith.constant 0 : i32
    return %arg0, %arg1, %c0_i32 : i32, i32, i32
  }
  func.func @transform_1(%arg0: i32, %arg1: i32, %arg2: i32) -> (i32, i32, i32) {
    %c0_i32 = arith.constant 0 : i32
    %c0_i32_0 = arith.constant 0 : i32
    return %arg0, %arg2, %c0_i32 : i32, i32, i32
  }
  func.func @transform_2(%arg0: i32, %arg1: i32, %arg2: i32) -> (i32, i32, i32) {
    %c0_i32 = arith.constant 0 : i32
    %c0_i32_0 = arith.constant 0 : i32
    return %arg0, %arg2, %c0_i32 : i32, i32, i32
  }
  func.func @transform_3(%arg0: i32, %arg1: i32, %arg2: i32) -> (i32, i32, i32) {
    %c0_i32 = arith.constant 0 : i32
    %c0_i32_0 = arith.constant 0 : i32
    return %arg0, %arg1, %c0_i32 : i32, i32, i32
  }
}

module attributes {stable_mosaic.version = 11 : i64} {
  func.func @_mm_kernel(%arg0: i32, %arg1: i32, %arg2: i32, %arg3: memref<32x16xbf16, #tpu.memory_space<vmem>>, %arg4: memref<16x16xbf16, #tpu.memory_space<vmem>>, %arg5: memref<32x16xbf16, #tpu.memory_space<vmem>>, %arg6: memref<32x16xbf16, #tpu.memory_space<vmem>>, %arg7: memref<32x16xf32, #tpu.memory_space<vmem>>) attributes {dimension_semantics = [#tpu.dimension_semantics<parallel>, #tpu.dimension_semantics<parallel>, #tpu.dimension_semantics<arbitrary>], iteration_bounds = array<i64: 1, 1, 1>, scalar_prefetch = 0 : i64, scratch_operands = 1 : i64, tpu.core_type = #tpu.core_type<tc>, window_params = [{transform_indices = @transform_0, window_bounds = array<i64: 32, 16>}, {transform_indices = @transform_1, window_bounds = array<i64: 16, 16>}, {transform_indices = @transform_2, window_bounds = array<i64: 32, 16>}, {transform_indices = @transform_3, window_bounds = array<i64: 32, 16>}]} {
    %c0_i32 = arith.constant 0 : i32
    %0 = arith.cmpi eq, %arg2, %c0_i32 : i32
    %1 = arith.extui %0 : i1 to i32
    %c0_i32_0 = arith.constant 0 : i32
    %2 = arith.cmpi ne, %1, %c0_i32_0 : i32
    scf.if %2 {
      %cst_10 = arith.constant 0.000000e+00 : f32
      %12 = vector.broadcast %cst_10 : f32 to vector<32x16xf32>
      %c0_11 = arith.constant 0 : index
      %c0_12 = arith.constant 0 : index
      %13 = vector.load %arg7[%c0_11, %c0_12] : memref<32x16xf32, #tpu.memory_space<vmem>>, vector<32x16xf32>
      tpu.vector_store %arg7[%c0_11, %c0_12], %12 {strides = array<i32>} : memref<32x16xf32, #tpu.memory_space<vmem>>, vector<32x16xf32>,
    } else {
    }
    %c0 = arith.constant 0 : index
    %c0_1 = arith.constant 0 : index
    %3 = vector.load %arg7[%c0, %c0_1] : memref<32x16xf32, #tpu.memory_space<vmem>>, vector<32x16xf32>
    %c0_2 = arith.constant 0 : index
    %c0_3 = arith.constant 0 : index
    %4 = vector.load %arg3[%c0_2, %c0_3] : memref<32x16xbf16, #tpu.memory_space<vmem>>, vector<32x16xbf16>
    %c0_4 = arith.constant 0 : index
    %c0_5 = arith.constant 0 : index
    %5 = vector.load %arg4[%c0_4, %c0_5] : memref<16x16xbf16, #tpu.memory_space<vmem>>, vector<16x16xbf16>
    %cst = arith.constant dense<0.000000e+00> : vector<32x16xf32>
    %6 = tpu.matmul %4, %5, %cst {dimension_numbers = #tpu.dot_dimension_numbers<[1], [0], [0], [1], [0, 0, 1, 1], [], []>} : vector<32x16xbf16>, vector<16x16xbf16>, vector<32x16xf32> -> vector<32x16xf32>
    %7 = arith.addf %3, %6 : vector<32x16xf32>
    %c0_6 = arith.constant 0 : index
    %c0_7 = arith.constant 0 : index
    %8 = vector.load %arg7[%c0_6, %c0_7] : memref<32x16xf32, #tpu.memory_space<vmem>>, vector<32x16xf32>
    tpu.vector_store %arg7[%c0_6, %c0_7], %7 {strides = array<i32>} : memref<32x16xf32, #tpu.memory_space<vmem>>, vector<32x16xf32>,
    %c0_i32_8 = arith.constant 0 : i32
    %9 = arith.cmpi eq, %arg2, %c0_i32_8 : i32
    %10 = arith.extui %9 : i1 to i32
    %c0_i32_9 = arith.constant 0 : i32
    %11 = arith.cmpi ne, %10, %c0_i32_9 : i32
    scf.if %11 {
      %c0_10 = arith.constant 0 : index
      %c0_11 = arith.constant 0 : index
      %12 = vector.load %arg7[%c0_10, %c0_11] : memref<32x16xf32, #tpu.memory_space<vmem>>, vector<32x16xf32>
      %c0_12 = arith.constant 0 : index
      %c0_13 = arith.constant 0 : index
      %13 = vector.load %arg5[%c0_12, %c0_13] : memref<32x16xbf16, #tpu.memory_space<vmem>>, vector<32x16xbf16>
      %14 = arith.extf %13 : vector<32x16xbf16> to vector<32x16xf32>
      %15 = arith.addf %12, %14 : vector<32x16xf32>
      %16 = arith.truncf %15 : vector<32x16xf32> to vector<32x16xbf16>
      %c0_14 = arith.constant 0 : index
      %c0_15 = arith.constant 0 : index
      %17 = vector.load %arg6[%c0_14, %c0_15] : memref<32x16xbf16, #tpu.memory_space<vmem>>, vector<32x16xbf16>
      tpu.vector_store %arg6[%c0_14, %c0_15], %16 {strides = array<i32>} : memref<32x16xbf16, #tpu.memory_space<vmem>>, vector<32x16xbf16>,
    } else {
    }
    return
  }
  func.func @transform_0(%arg0: i32, %arg1: i32, %arg2: i32) -> (i32, i32) {
    %c0_i32 = arith.constant 0 : i32
    return %arg0, %arg2 : i32, i32
  }
  func.func @transform_1(%arg0: i32, %arg1: i32, %arg2: i32) -> (i32, i32) {
    %c0_i32 = arith.constant 0 : i32
    return %arg2, %arg1 : i32, i32
  }
  func.func @transform_2(%arg0: i32, %arg1: i32, %arg2: i32) -> (i32, i32) {
    %c0_i32 = arith.constant 0 : i32
    return %arg0, %arg1 : i32, i32
  }
  func.func @transform_3(%arg0: i32, %arg1: i32, %arg2: i32) -> (i32, i32) {
    %c0_i32 = arith.constant 0 : i32
    return %arg0, %arg1 : i32, i32
  }
}

module attributes {stable_mosaic.version = 11 : i64} {
  func.func @_conv3x3_kernel(%arg0: i32, %arg1: i32, %arg2: i32, %arg3: memref<1x116x16xbf16, #tpu.memory_space<vmem>>, %arg4: memref<9x16x16xbf16, #tpu.memory_space<vmem>>, %arg5: memref<1x16xf32, #tpu.memory_space<vmem>>, %arg6: memref<1x96x16xbf16, #tpu.memory_space<vmem>>, %arg7: memref<96x16xf32, #tpu.memory_space<vmem>>) attributes {dimension_semantics = [#tpu.dimension_semantics<parallel>, #tpu.dimension_semantics<parallel>, #tpu.dimension_semantics<arbitrary>], iteration_bounds = array<i64: 2, 1, 1>, scalar_prefetch = 0 : i64, scratch_operands = 1 : i64, tpu.core_type = #tpu.core_type<tc>, window_params = [{transform_indices = @transform_0, window_bounds = array<i64: 1, 116, 16>}, {transform_indices = @transform_1, window_bounds = array<i64: 9, 16, 16>}, {transform_indices = @transform_2, window_bounds = array<i64: 1, 16>}, {transform_indices = @transform_3, window_bounds = array<i64: 1, 96, 16>}]} {
    %c0_i32 = arith.constant 0 : i32
    %0 = arith.cmpi eq, %arg2, %c0_i32 : i32
    %1 = arith.extui %0 : i1 to i32
    %c0_i32_0 = arith.constant 0 : i32
    %2 = arith.cmpi ne, %1, %c0_i32_0 : i32
    scf.if %2 {
      %cst_57 = arith.constant 0.000000e+00 : f32
      %62 = vector.broadcast %cst_57 : f32 to vector<96x16xf32>
      %c0_58 = arith.constant 0 : index
      %c0_59 = arith.constant 0 : index
      %63 = vector.load %arg7[%c0_58, %c0_59] : memref<96x16xf32, #tpu.memory_space<vmem>>, vector<96x16xf32>
      tpu.vector_store %arg7[%c0_58, %c0_59], %62 {strides = array<i32>} : memref<96x16xf32, #tpu.memory_space<vmem>>, vector<96x16xf32>,
    } else {
    }
    %c0 = arith.constant 0 : index
    %c0_1 = arith.constant 0 : index
    %c0_2 = arith.constant 0 : index
    %3 = vector.load %arg3[%c0, %c0_1, %c0_2] : memref<1x116x16xbf16, #tpu.memory_space<vmem>>, vector<1x96x16xbf16>
    %4 = vector.shape_cast %3 : vector<1x96x16xbf16> to vector<96x16xbf16>
    %c0_3 = arith.constant 0 : index
    %c0_4 = arith.constant 0 : index
    %c0_5 = arith.constant 0 : index
    %5 = vector.load %arg4[%c0_3, %c0_4, %c0_5] : memref<9x16x16xbf16, #tpu.memory_space<vmem>>, vector<1x16x16xbf16>
    %6 = vector.shape_cast %5 : vector<1x16x16xbf16> to vector<16x16xbf16>
    %cst = arith.constant dense<0.000000e+00> : vector<96x16xf32>
    %7 = tpu.matmul %4, %6, %cst {dimension_numbers = #tpu.dot_dimension_numbers<[1], [0], [0], [1], [0, 0, 1, 1], [], []>} : vector<96x16xbf16>, vector<16x16xbf16>, vector<96x16xf32> -> vector<96x16xf32>
    %c0_6 = arith.constant 0 : index
    %c1 = arith.constant 1 : index
    %c0_7 = arith.constant 0 : index
    %8 = vector.load %arg3[%c0_6, %c1, %c0_7] : memref<1x116x16xbf16, #tpu.memory_space<vmem>>, vector<1x96x16xbf16>
    %9 = vector.shape_cast %8 : vector<1x96x16xbf16> to vector<96x16xbf16>
    %c1_8 = arith.constant 1 : index
    %c0_9 = arith.constant 0 : index
    %c0_10 = arith.constant 0 : index
    %10 = vector.load %arg4[%c1_8, %c0_9, %c0_10] : memref<9x16x16xbf16, #tpu.memory_space<vmem>>, vector<1x16x16xbf16>
    %11 = vector.shape_cast %10 : vector<1x16x16xbf16> to vector<16x16xbf16>
    %cst_11 = arith.constant dense<0.000000e+00> : vector<96x16xf32>
    %12 = tpu.matmul %9, %11, %cst_11 {dimension_numbers = #tpu.dot_dimension_numbers<[1], [0], [0], [1], [0, 0, 1, 1], [], []>} : vector<96x16xbf16>, vector<16x16xbf16>, vector<96x16xf32> -> vector<96x16xf32>
    %13 = arith.addf %7, %12 : vector<96x16xf32>
    %c0_12 = arith.constant 0 : index
    %c2 = arith.constant 2 : index
    %c0_13 = arith.constant 0 : index
    %14 = vector.load %arg3[%c0_12, %c2, %c0_13] : memref<1x116x16xbf16, #tpu.memory_space<vmem>>, vector<1x96x16xbf16>
    %15 = vector.shape_cast %14 : vector<1x96x16xbf16> to vector<96x16xbf16>
    %c2_14 = arith.constant 2 : index
    %c0_15 = arith.constant 0 : index
    %c0_16 = arith.constant 0 : index
    %16 = vector.load %arg4[%c2_14, %c0_15, %c0_16] : memref<9x16x16xbf16, #tpu.memory_space<vmem>>, vector<1x16x16xbf16>
    %17 = vector.shape_cast %16 : vector<1x16x16xbf16> to vector<16x16xbf16>
    %cst_17 = arith.constant dense<0.000000e+00> : vector<96x16xf32>
    %18 = tpu.matmul %15, %17, %cst_17 {dimension_numbers = #tpu.dot_dimension_numbers<[1], [0], [0], [1], [0, 0, 1, 1], [], []>} : vector<96x16xbf16>, vector<16x16xbf16>, vector<96x16xf32> -> vector<96x16xf32>
    %19 = arith.addf %13, %18 : vector<96x16xf32>
    %c0_18 = arith.constant 0 : index
    %c6 = arith.constant 6 : index
    %c0_19 = arith.constant 0 : index
    %20 = vector.load %arg3[%c0_18, %c6, %c0_19] : memref<1x116x16xbf16, #tpu.memory_space<vmem>>, vector<1x96x16xbf16>
    %21 = vector.shape_cast %20 : vector<1x96x16xbf16> to vector<96x16xbf16>
    %c3 = arith.constant 3 : index
    %c0_20 = arith.constant 0 : index
    %c0_21 = arith.constant 0 : index
    %22 = vector.load %arg4[%c3, %c0_20, %c0_21] : memref<9x16x16xbf16, #tpu.memory_space<vmem>>, vector<1x16x16xbf16>
    %23 = vector.shape_cast %22 : vector<1x16x16xbf16> to vector<16x16xbf16>
    %cst_22 = arith.constant dense<0.000000e+00> : vector<96x16xf32>
    %24 = tpu.matmul %21, %23, %cst_22 {dimension_numbers = #tpu.dot_dimension_numbers<[1], [0], [0], [1], [0, 0, 1, 1], [], []>} : vector<96x16xbf16>, vector<16x16xbf16>, vector<96x16xf32> -> vector<96x16xf32>
    %25 = arith.addf %19, %24 : vector<96x16xf32>
    %c0_23 = arith.constant 0 : index
    %c7 = arith.constant 7 : index
    %c0_24 = arith.constant 0 : index
    %26 = vector.load %arg3[%c0_23, %c7, %c0_24] : memref<1x116x16xbf16, #tpu.memory_space<vmem>>, vector<1x96x16xbf16>
    %27 = vector.shape_cast %26 : vector<1x96x16xbf16> to vector<96x16xbf16>
    %c4 = arith.constant 4 : index
    %c0_25 = arith.constant 0 : index
    %c0_26 = arith.constant 0 : index
    %28 = vector.load %arg4[%c4, %c0_25, %c0_26] : memref<9x16x16xbf16, #tpu.memory_space<vmem>>, vector<1x16x16xbf16>
    %29 = vector.shape_cast %28 : vector<1x16x16xbf16> to vector<16x16xbf16>
    %cst_27 = arith.constant dense<0.000000e+00> : vector<96x16xf32>
    %30 = tpu.matmul %27, %29, %cst_27 {dimension_numbers = #tpu.dot_dimension_numbers<[1], [0], [0], [1], [0, 0, 1, 1], [], []>} : vector<96x16xbf16>, vector<16x16xbf16>, vector<96x16xf32> -> vector<96x16xf32>
    %31 = arith.addf %25, %30 : vector<96x16xf32>
    %c0_28 = arith.constant 0 : index
    %c8 = arith.constant 8 : index
    %c0_29 = arith.constant 0 : index
    %32 = vector.load %arg3[%c0_28, %c8, %c0_29] : memref<1x116x16xbf16, #tpu.memory_space<vmem>>, vector<1x96x16xbf16>
    %33 = vector.shape_cast %32 : vector<1x96x16xbf16> to vector<96x16xbf16>
    %c5 = arith.constant 5 : index
    %c0_30 = arith.constant 0 : index
    %c0_31 = arith.constant 0 : index
    %34 = vector.load %arg4[%c5, %c0_30, %c0_31] : memref<9x16x16xbf16, #tpu.memory_space<vmem>>, vector<1x16x16xbf16>
    %35 = vector.shape_cast %34 : vector<1x16x16xbf16> to vector<16x16xbf16>
    %cst_32 = arith.constant dense<0.000000e+00> : vector<96x16xf32>
    %36 = tpu.matmul %33, %35, %cst_32 {dimension_numbers = #tpu.dot_dimension_numbers<[1], [0], [0], [1], [0, 0, 1, 1], [], []>} : vector<96x16xbf16>, vector<16x16xbf16>, vector<96x16xf32> -> vector<96x16xf32>
    %37 = arith.addf %31, %36 : vector<96x16xf32>
    %c0_33 = arith.constant 0 : index
    %c12 = arith.constant 12 : index
    %c0_34 = arith.constant 0 : index
    %38 = vector.load %arg3[%c0_33, %c12, %c0_34] : memref<1x116x16xbf16, #tpu.memory_space<vmem>>, vector<1x96x16xbf16>
    %39 = vector.shape_cast %38 : vector<1x96x16xbf16> to vector<96x16xbf16>
    %c6_35 = arith.constant 6 : index
    %c0_36 = arith.constant 0 : index
    %c0_37 = arith.constant 0 : index
    %40 = vector.load %arg4[%c6_35, %c0_36, %c0_37] : memref<9x16x16xbf16, #tpu.memory_space<vmem>>, vector<1x16x16xbf16>
    %41 = vector.shape_cast %40 : vector<1x16x16xbf16> to vector<16x16xbf16>
    %cst_38 = arith.constant dense<0.000000e+00> : vector<96x16xf32>
    %42 = tpu.matmul %39, %41, %cst_38 {dimension_numbers = #tpu.dot_dimension_numbers<[1], [0], [0], [1], [0, 0, 1, 1], [], []>} : vector<96x16xbf16>, vector<16x16xbf16>, vector<96x16xf32> -> vector<96x16xf32>
    %43 = arith.addf %37, %42 : vector<96x16xf32>
    %c0_39 = arith.constant 0 : index
    %c13 = arith.constant 13 : index
    %c0_40 = arith.constant 0 : index
    %44 = vector.load %arg3[%c0_39, %c13, %c0_40] : memref<1x116x16xbf16, #tpu.memory_space<vmem>>, vector<1x96x16xbf16>
    %45 = vector.shape_cast %44 : vector<1x96x16xbf16> to vector<96x16xbf16>
    %c7_41 = arith.constant 7 : index
    %c0_42 = arith.constant 0 : index
    %c0_43 = arith.constant 0 : index
    %46 = vector.load %arg4[%c7_41, %c0_42, %c0_43] : memref<9x16x16xbf16, #tpu.memory_space<vmem>>, vector<1x16x16xbf16>
    %47 = vector.shape_cast %46 : vector<1x16x16xbf16> to vector<16x16xbf16>
    %cst_44 = arith.constant dense<0.000000e+00> : vector<96x16xf32>
    %48 = tpu.matmul %45, %47, %cst_44 {dimension_numbers = #tpu.dot_dimension_numbers<[1], [0], [0], [1], [0, 0, 1, 1], [], []>} : vector<96x16xbf16>, vector<16x16xbf16>, vector<96x16xf32> -> vector<96x16xf32>
    %49 = arith.addf %43, %48 : vector<96x16xf32>
    %c0_45 = arith.constant 0 : index
    %c14 = arith.constant 14 : index
    %c0_46 = arith.constant 0 : index
    %50 = vector.load %arg3[%c0_45, %c14, %c0_46] : memref<1x116x16xbf16, #tpu.memory_space<vmem>>, vector<1x96x16xbf16>
    %51 = vector.shape_cast %50 : vector<1x96x16xbf16> to vector<96x16xbf16>
    %c8_47 = arith.constant 8 : index
    %c0_48 = arith.constant 0 : index
    %c0_49 = arith.constant 0 : index
    %52 = vector.load %arg4[%c8_47, %c0_48, %c0_49] : memref<9x16x16xbf16, #tpu.memory_space<vmem>>, vector<1x16x16xbf16>
    %53 = vector.shape_cast %52 : vector<1x16x16xbf16> to vector<16x16xbf16>
    %cst_50 = arith.constant dense<0.000000e+00> : vector<96x16xf32>
    %54 = tpu.matmul %51, %53, %cst_50 {dimension_numbers = #tpu.dot_dimension_numbers<[1], [0], [0], [1], [0, 0, 1, 1], [], []>} : vector<96x16xbf16>, vector<16x16xbf16>, vector<96x16xf32> -> vector<96x16xf32>
    %55 = arith.addf %49, %54 : vector<96x16xf32>
    %c0_51 = arith.constant 0 : index
    %c0_52 = arith.constant 0 : index
    %56 = vector.load %arg7[%c0_51, %c0_52] : memref<96x16xf32, #tpu.memory_space<vmem>>, vector<96x16xf32>
    %57 = arith.addf %56, %55 : vector<96x16xf32>
    %c0_53 = arith.constant 0 : index
    %c0_54 = arith.constant 0 : index
    %58 = vector.load %arg7[%c0_53, %c0_54] : memref<96x16xf32, #tpu.memory_space<vmem>>, vector<96x16xf32>
    tpu.vector_store %arg7[%c0_53, %c0_54], %57 {strides = array<i32>} : memref<96x16xf32, #tpu.memory_space<vmem>>, vector<96x16xf32>,
    %c0_i32_55 = arith.constant 0 : i32
    %59 = arith.cmpi eq, %arg2, %c0_i32_55 : i32
    %60 = arith.extui %59 : i1 to i32
    %c0_i32_56 = arith.constant 0 : i32
    %61 = arith.cmpi ne, %60, %c0_i32_56 : i32
    scf.if %61 {
      %c0_57 = arith.constant 0 : index
      %c0_58 = arith.constant 0 : index
      %62 = vector.load %arg7[%c0_57, %c0_58] : memref<96x16xf32, #tpu.memory_space<vmem>>, vector<96x16xf32>
      %c0_59 = arith.constant 0 : index
      %c0_60 = arith.constant 0 : index
      %63 = vector.load %arg5[%c0_59, %c0_60] : memref<1x16xf32, #tpu.memory_space<vmem>>, vector<1x16xf32>
      %64 = vector.broadcast %63 : vector<1x16xf32> to vector<96x16xf32>
      %65 = arith.addf %62, %64 : vector<96x16xf32>
      %66 = arith.truncf %65 : vector<96x16xf32> to vector<96x16xbf16>
      %c0_61 = arith.constant 0 : index
      %c0_62 = arith.constant 0 : index
      %c0_63 = arith.constant 0 : index
      %67 = vector.load %arg6[%c0_61, %c0_62, %c0_63] : memref<1x96x16xbf16, #tpu.memory_space<vmem>>, vector<1x96x16xbf16>
      %68 = vector.shape_cast %67 : vector<1x96x16xbf16> to vector<96x16xbf16>
      %69 = vector.shape_cast %66 : vector<96x16xbf16> to vector<1x96x16xbf16>
      tpu.vector_store %arg6[%c0_61, %c0_62, %c0_63], %69 {strides = array<i32>} : memref<1x96x16xbf16, #tpu.memory_space<vmem>>, vector<1x96x16xbf16>,
    } else {
    }
    return
  }
  func.func @transform_0(%arg0: i32, %arg1: i32, %arg2: i32) -> (i32, i32, i32) {
    %c0_i32 = arith.constant 0 : i32
    %c0_i32_0 = arith.constant 0 : i32
    return %arg0, %c0_i32, %arg2 : i32, i32, i32
  }
  func.func @transform_1(%arg0: i32, %arg1: i32, %arg2: i32) -> (i32, i32, i32) {
    %c0_i32 = arith.constant 0 : i32
    %c0_i32_0 = arith.constant 0 : i32
    return %c0_i32, %arg2, %arg1 : i32, i32, i32
  }
  func.func @transform_2(%arg0: i32, %arg1: i32, %arg2: i32) -> (i32, i32) {
    %c0_i32 = arith.constant 0 : i32
    %c0_i32_0 = arith.constant 0 : i32
    return %c0_i32, %arg1 : i32, i32
  }
  func.func @transform_3(%arg0: i32, %arg1: i32, %arg2: i32) -> (i32, i32, i32) {
    %c0_i32 = arith.constant 0 : i32
    %c0_i32_0 = arith.constant 0 : i32
    return %arg0, %c0_i32, %arg1 : i32, i32, i32
  }
}

module attributes {stable_mosaic.version = 11 : i64} {
  func.func @_groupnorm_swish_kernel(%arg0: i32, %arg1: memref<1x64x16xbf16, #tpu.memory_space<vmem>>, %arg2: memref<1x16xf32, #tpu.memory_space<vmem>>, %arg3: memref<1x16xf32, #tpu.memory_space<vmem>>, %arg4: memref<16x16xf32, #tpu.memory_space<vmem>>, %arg5: memref<1x64x16xbf16, #tpu.memory_space<vmem>>) attributes {dimension_semantics = [#tpu.dimension_semantics<parallel>], iteration_bounds = array<i64: 2>, scalar_prefetch = 0 : i64, scratch_operands = 0 : i64, tpu.core_type = #tpu.core_type<tc>, window_params = [{transform_indices = @transform_0, window_bounds = array<i64: 1, 64, 16>}, {pipeline_mode = #tpu.pipeline_mode<synchronous>, transform_indices = @transform_1, window_bounds = array<i64: 1, 16>}, {pipeline_mode = #tpu.pipeline_mode<synchronous>, transform_indices = @transform_2, window_bounds = array<i64: 1, 16>}, {pipeline_mode = #tpu.pipeline_mode<synchronous>, transform_indices = @transform_3, window_bounds = array<i64: 16, 16>}, {transform_indices = @transform_4, window_bounds = array<i64: 1, 64, 16>}]} {
    %c0 = arith.constant 0 : index
    %c0_0 = arith.constant 0 : index
    %c0_1 = arith.constant 0 : index
    %0 = vector.load %arg1[%c0, %c0_0, %c0_1] : memref<1x64x16xbf16, #tpu.memory_space<vmem>>, vector<1x64x16xbf16>
    %1 = vector.shape_cast %0 : vector<1x64x16xbf16> to vector<64x16xbf16>
    %2 = arith.extf %1 : vector<64x16xbf16> to vector<64x16xf32>
    %cst = arith.constant dense<0.000000e+00> : vector<16xf32>
    %3 = vector.multi_reduction <add>, %2, %cst [0] : vector<64x16xf32> to vector<16xf32>
    %4 = vector.shape_cast %3 : vector<16xf32> to vector<1x16xf32>
    %5 = arith.mulf %2, %2 : vector<64x16xf32>
    %cst_2 = arith.constant dense<0.000000e+00> : vector<16xf32>
    %6 = vector.multi_reduction <add>, %5, %cst_2 [0] : vector<64x16xf32> to vector<16xf32>
    %7 = vector.shape_cast %6 : vector<16xf32> to vector<1x16xf32>
    %c0_3 = arith.constant 0 : index
    %c0_4 = arith.constant 0 : index
    %8 = vector.load %arg4[%c0_3, %c0_4] : memref<16x16xf32, #tpu.memory_space<vmem>>, vector<16x16xf32>
    %cst_5 = arith.constant dense<0.000000e+00> : vector<1x16xf32>
    %9 = tpu.matmul %4, %8, %cst_5 {dimension_numbers = #tpu.dot_dimension_numbers<[1], [0], [0], [1], [0, 0, 1, 1], [], []>} : vector<1x16xf32>, vector<16x16xf32>, vector<1x16xf32> -> vector<1x16xf32>
    %c0_6 = arith.constant 0 : index
    %c0_7 = arith.constant 0 : index
    %10 = vector.load %arg4[%c0_6, %c0_7] : memref<16x16xf32, #tpu.memory_space<vmem>>, vector<16x16xf32>
    %cst_8 = arith.constant dense<0.000000e+00> : vector<1x16xf32>
    %11 = tpu.matmul %7, %10, %cst_8 {dimension_numbers = #tpu.dot_dimension_numbers<[1], [0], [0], [1], [0, 0, 1, 1], [], []>} : vector<1x16xf32>, vector<16x16xf32>, vector<1x16xf32> -> vector<1x16xf32>
    %cst_9 = arith.constant 1.562500e-02 : f32
    %12 = vector.broadcast %cst_9 : f32 to vector<1x16xf32>
    %13 = arith.mulf %9, %12 : vector<1x16xf32>
    %cst_10 = arith.constant 1.562500e-02 : f32
    %14 = vector.broadcast %cst_10 : f32 to vector<1x16xf32>
    %15 = arith.mulf %11, %14 : vector<1x16xf32>
    %16 = arith.mulf %13, %13 : vector<1x16xf32>
    %17 = arith.subf %15, %16 : vector<1x16xf32>
    %cst_11 = arith.constant 0.000000e+00 : f32
    %18 = vector.broadcast %cst_11 : f32 to vector<1x16xf32>
    %19 = arith.maximumf %17, %18 : vector<1x16xf32>
    %20 = vector.broadcast %13 : vector<1x16xf32> to vector<64x16xf32>
    %21 = arith.subf %2, %20 : vector<64x16xf32>
    %cst_12 = arith.constant 9.99999997E-7 : f32
    %22 = vector.broadcast %cst_12 : f32 to vector<1x16xf32>
    %23 = arith.addf %19, %22 : vector<1x16xf32>
    %24 = math.rsqrt %23 : vector<1x16xf32>
    %25 = vector.broadcast %24 : vector<1x16xf32> to vector<64x16xf32>
    %26 = arith.mulf %21, %25 : vector<64x16xf32>
    %c0_13 = arith.constant 0 : index
    %c0_14 = arith.constant 0 : index
    %27 = vector.load %arg2[%c0_13, %c0_14] : memref<1x16xf32, #tpu.memory_space<vmem>>, vector<1x16xf32>
    %28 = vector.broadcast %27 : vector<1x16xf32> to vector<64x16xf32>
    %29 = arith.mulf %26, %28 : vector<64x16xf32>
    %c0_15 = arith.constant 0 : index
    %c0_16 = arith.constant 0 : index
    %30 = vector.load %arg3[%c0_15, %c0_16] : memref<1x16xf32, #tpu.memory_space<vmem>>, vector<1x16xf32>
    %31 = vector.broadcast %30 : vector<1x16xf32> to vector<64x16xf32>
    %32 = arith.addf %29, %31 : vector<64x16xf32>
    %33 = arith.negf %32 : vector<64x16xf32>
    %34 = math.exp %33 : vector<64x16xf32>
    %cst_17 = arith.constant 1.000000e+00 : f32
    %35 = vector.broadcast %cst_17 : f32 to vector<64x16xf32>
    %36 = arith.addf %35, %34 : vector<64x16xf32>
    %37 = arith.divf %35, %36 : vector<64x16xf32>
    %38 = arith.mulf %32, %37 : vector<64x16xf32>
    %39 = arith.truncf %38 : vector<64x16xf32> to vector<64x16xbf16>
    %c0_18 = arith.constant 0 : index
    %c0_19 = arith.constant 0 : index
    %c0_20 = arith.constant 0 : index
    %40 = vector.load %arg5[%c0_18, %c0_19, %c0_20] : memref<1x64x16xbf16, #tpu.memory_space<vmem>>, vector<1x64x16xbf16>
    %41 = vector.shape_cast %40 : vector<1x64x16xbf16> to vector<64x16xbf16>
    %42 = vector.shape_cast %39 : vector<64x16xbf16> to vector<1x64x16xbf16>
    tpu.vector_store %arg5[%c0_18, %c0_19, %c0_20], %42 {strides = array<i32>} : memref<1x64x16xbf16, #tpu.memory_space<vmem>>, vector<1x64x16xbf16>,
    return
  }
  func.func @transform_0(%arg0: i32) -> (i32, i32, i32) {
    %c0_i32 = arith.constant 0 : i32
    %c0_i32_0 = arith.constant 0 : i32
    %c0_i32_1 = arith.constant 0 : i32
    return %arg0, %c0_i32, %c0_i32_0 : i32, i32, i32
  }
  func.func @transform_1(%arg0: i32) -> (i32, i32) {
    %c0_i32 = arith.constant 0 : i32
    %c0_i32_0 = arith.constant 0 : i32
    %c0_i32_1 = arith.constant 0 : i32
    return %c0_i32, %c0_i32_0 : i32, i32
  }
  func.func @transform_2(%arg0: i32) -> (i32, i32) {
    %c0_i32 = arith.constant 0 : i32
    %c0_i32_0 = arith.constant 0 : i32
    %c0_i32_1 = arith.constant 0 : i32
    return %c0_i32, %c0_i32_0 : i32, i32
  }
  func.func @transform_3(%arg0: i32) -> (i32, i32) {
    %c0_i32 = arith.constant 0 : i32
    %c0_i32_0 = arith.constant 0 : i32
    %c0_i32_1 = arith.constant 0 : i32
    return %c0_i32, %c0_i32_0 : i32, i32
  }
  func.func @transform_4(%arg0: i32) -> (i32, i32, i32) {
    %c0_i32 = arith.constant 0 : i32
    %c0_i32_0 = arith.constant 0 : i32
    %c0_i32_1 = arith.constant 0 : i32
    return %arg0, %c0_i32, %c0_i32_0 : i32, i32, i32
  }
}

module attributes {stable_mosaic.version = 11 : i64} {
  func.func @_conv3x3_kernel(%arg0: i32, %arg1: i32, %arg2: i32, %arg3: memref<1x116x16xbf16, #tpu.memory_space<vmem>>, %arg4: memref<9x16x8xbf16, #tpu.memory_space<vmem>>, %arg5: memref<1x8xf32, #tpu.memory_space<vmem>>, %arg6: memref<1x96x8xbf16, #tpu.memory_space<vmem>>, %arg7: memref<96x8xf32, #tpu.memory_space<vmem>>) attributes {dimension_semantics = [#tpu.dimension_semantics<parallel>, #tpu.dimension_semantics<parallel>, #tpu.dimension_semantics<arbitrary>], iteration_bounds = array<i64: 2, 1, 1>, scalar_prefetch = 0 : i64, scratch_operands = 1 : i64, tpu.core_type = #tpu.core_type<tc>, window_params = [{transform_indices = @transform_0, window_bounds = array<i64: 1, 116, 16>}, {transform_indices = @transform_1, window_bounds = array<i64: 9, 16, 8>}, {transform_indices = @transform_2, window_bounds = array<i64: 1, 8>}, {transform_indices = @transform_3, window_bounds = array<i64: 1, 96, 8>}]} {
    %c0_i32 = arith.constant 0 : i32
    %0 = arith.cmpi eq, %arg2, %c0_i32 : i32
    %1 = arith.extui %0 : i1 to i32
    %c0_i32_0 = arith.constant 0 : i32
    %2 = arith.cmpi ne, %1, %c0_i32_0 : i32
    scf.if %2 {
      %cst_57 = arith.constant 0.000000e+00 : f32
      %62 = vector.broadcast %cst_57 : f32 to vector<96x8xf32>
      %c0_58 = arith.constant 0 : index
      %c0_59 = arith.constant 0 : index
      %63 = vector.load %arg7[%c0_58, %c0_59] : memref<96x8xf32, #tpu.memory_space<vmem>>, vector<96x8xf32>
      tpu.vector_store %arg7[%c0_58, %c0_59], %62 {strides = array<i32>} : memref<96x8xf32, #tpu.memory_space<vmem>>, vector<96x8xf32>,
    } else {
    }
    %c0 = arith.constant 0 : index
    %c0_1 = arith.constant 0 : index
    %c0_2 = arith.constant 0 : index
    %3 = vector.load %arg3[%c0, %c0_1, %c0_2] : memref<1x116x16xbf16, #tpu.memory_space<vmem>>, vector<1x96x16xbf16>
    %4 = vector.shape_cast %3 : vector<1x96x16xbf16> to vector<96x16xbf16>
    %c0_3 = arith.constant 0 : index
    %c0_4 = arith.constant 0 : index
    %c0_5 = arith.constant 0 : index
    %5 = vector.load %arg4[%c0_3, %c0_4, %c0_5] : memref<9x16x8xbf16, #tpu.memory_space<vmem>>, vector<1x16x8xbf16>
    %6 = vector.shape_cast %5 : vector<1x16x8xbf16> to vector<16x8xbf16>
    %cst = arith.constant dense<0.000000e+00> : vector<96x8xf32>
    %7 = tpu.matmul %4, %6, %cst {dimension_numbers = #tpu.dot_dimension_numbers<[1], [0], [0], [1], [0, 0, 1, 1], [], []>} : vector<96x16xbf16>, vector<16x8xbf16>, vector<96x8xf32> -> vector<96x8xf32>
    %c0_6 = arith.constant 0 : index
    %c1 = arith.constant 1 : index
    %c0_7 = arith.constant 0 : index
    %8 = vector.load %arg3[%c0_6, %c1, %c0_7] : memref<1x116x16xbf16, #tpu.memory_space<vmem>>, vector<1x96x16xbf16>
    %9 = vector.shape_cast %8 : vector<1x96x16xbf16> to vector<96x16xbf16>
    %c1_8 = arith.constant 1 : index
    %c0_9 = arith.constant 0 : index
    %c0_10 = arith.constant 0 : index
    %10 = vector.load %arg4[%c1_8, %c0_9, %c0_10] : memref<9x16x8xbf16, #tpu.memory_space<vmem>>, vector<1x16x8xbf16>
    %11 = vector.shape_cast %10 : vector<1x16x8xbf16> to vector<16x8xbf16>
    %cst_11 = arith.constant dense<0.000000e+00> : vector<96x8xf32>
    %12 = tpu.matmul %9, %11, %cst_11 {dimension_numbers = #tpu.dot_dimension_numbers<[1], [0], [0], [1], [0, 0, 1, 1], [], []>} : vector<96x16xbf16>, vector<16x8xbf16>, vector<96x8xf32> -> vector<96x8xf32>
    %13 = arith.addf %7, %12 : vector<96x8xf32>
    %c0_12 = arith.constant 0 : index
    %c2 = arith.constant 2 : index
    %c0_13 = arith.constant 0 : index
    %14 = vector.load %arg3[%c0_12, %c2, %c0_13] : memref<1x116x16xbf16, #tpu.memory_space<vmem>>, vector<1x96x16xbf16>
    %15 = vector.shape_cast %14 : vector<1x96x16xbf16> to vector<96x16xbf16>
    %c2_14 = arith.constant 2 : index
    %c0_15 = arith.constant 0 : index
    %c0_16 = arith.constant 0 : index
    %16 = vector.load %arg4[%c2_14, %c0_15, %c0_16] : memref<9x16x8xbf16, #tpu.memory_space<vmem>>, vector<1x16x8xbf16>
    %17 = vector.shape_cast %16 : vector<1x16x8xbf16> to vector<16x8xbf16>
    %cst_17 = arith.constant dense<0.000000e+00> : vector<96x8xf32>
    %18 = tpu.matmul %15, %17, %cst_17 {dimension_numbers = #tpu.dot_dimension_numbers<[1], [0], [0], [1], [0, 0, 1, 1], [], []>} : vector<96x16xbf16>, vector<16x8xbf16>, vector<96x8xf32> -> vector<96x8xf32>
    %19 = arith.addf %13, %18 : vector<96x8xf32>
    %c0_18 = arith.constant 0 : index
    %c6 = arith.constant 6 : index
    %c0_19 = arith.constant 0 : index
    %20 = vector.load %arg3[%c0_18, %c6, %c0_19] : memref<1x116x16xbf16, #tpu.memory_space<vmem>>, vector<1x96x16xbf16>
    %21 = vector.shape_cast %20 : vector<1x96x16xbf16> to vector<96x16xbf16>
    %c3 = arith.constant 3 : index
    %c0_20 = arith.constant 0 : index
    %c0_21 = arith.constant 0 : index
    %22 = vector.load %arg4[%c3, %c0_20, %c0_21] : memref<9x16x8xbf16, #tpu.memory_space<vmem>>, vector<1x16x8xbf16>
    %23 = vector.shape_cast %22 : vector<1x16x8xbf16> to vector<16x8xbf16>
    %cst_22 = arith.constant dense<0.000000e+00> : vector<96x8xf32>
    %24 = tpu.matmul %21, %23, %cst_22 {dimension_numbers = #tpu.dot_dimension_numbers<[1], [0], [0], [1], [0, 0, 1, 1], [], []>} : vector<96x16xbf16>, vector<16x8xbf16>, vector<96x8xf32> -> vector<96x8xf32>
    %25 = arith.addf %19, %24 : vector<96x8xf32>
    %c0_23 = arith.constant 0 : index
    %c7 = arith.constant 7 : index
    %c0_24 = arith.constant 0 : index
    %26 = vector.load %arg3[%c0_23, %c7, %c0_24] : memref<1x116x16xbf16, #tpu.memory_space<vmem>>, vector<1x96x16xbf16>
    %27 = vector.shape_cast %26 : vector<1x96x16xbf16> to vector<96x16xbf16>
    %c4 = arith.constant 4 : index
    %c0_25 = arith.constant 0 : index
    %c0_26 = arith.constant 0 : index
    %28 = vector.load %arg4[%c4, %c0_25, %c0_26] : memref<9x16x8xbf16, #tpu.memory_space<vmem>>, vector<1x16x8xbf16>
    %29 = vector.shape_cast %28 : vector<1x16x8xbf16> to vector<16x8xbf16>
    %cst_27 = arith.constant dense<0.000000e+00> : vector<96x8xf32>
    %30 = tpu.matmul %27, %29, %cst_27 {dimension_numbers = #tpu.dot_dimension_numbers<[1], [0], [0], [1], [0, 0, 1, 1], [], []>} : vector<96x16xbf16>, vector<16x8xbf16>, vector<96x8xf32> -> vector<96x8xf32>
    %31 = arith.addf %25, %30 : vector<96x8xf32>
    %c0_28 = arith.constant 0 : index
    %c8 = arith.constant 8 : index
    %c0_29 = arith.constant 0 : index
    %32 = vector.load %arg3[%c0_28, %c8, %c0_29] : memref<1x116x16xbf16, #tpu.memory_space<vmem>>, vector<1x96x16xbf16>
    %33 = vector.shape_cast %32 : vector<1x96x16xbf16> to vector<96x16xbf16>
    %c5 = arith.constant 5 : index
    %c0_30 = arith.constant 0 : index
    %c0_31 = arith.constant 0 : index
    %34 = vector.load %arg4[%c5, %c0_30, %c0_31] : memref<9x16x8xbf16, #tpu.memory_space<vmem>>, vector<1x16x8xbf16>
    %35 = vector.shape_cast %34 : vector<1x16x8xbf16> to vector<16x8xbf16>
    %cst_32 = arith.constant dense<0.000000e+00> : vector<96x8xf32>
    %36 = tpu.matmul %33, %35, %cst_32 {dimension_numbers = #tpu.dot_dimension_numbers<[1], [0], [0], [1], [0, 0, 1, 1], [], []>} : vector<96x16xbf16>, vector<16x8xbf16>, vector<96x8xf32> -> vector<96x8xf32>
    %37 = arith.addf %31, %36 : vector<96x8xf32>
    %c0_33 = arith.constant 0 : index
    %c12 = arith.constant 12 : index
    %c0_34 = arith.constant 0 : index
    %38 = vector.load %arg3[%c0_33, %c12, %c0_34] : memref<1x116x16xbf16, #tpu.memory_space<vmem>>, vector<1x96x16xbf16>
    %39 = vector.shape_cast %38 : vector<1x96x16xbf16> to vector<96x16xbf16>
    %c6_35 = arith.constant 6 : index
    %c0_36 = arith.constant 0 : index
    %c0_37 = arith.constant 0 : index
    %40 = vector.load %arg4[%c6_35, %c0_36, %c0_37] : memref<9x16x8xbf16, #tpu.memory_space<vmem>>, vector<1x16x8xbf16>
    %41 = vector.shape_cast %40 : vector<1x16x8xbf16> to vector<16x8xbf16>
    %cst_38 = arith.constant dense<0.000000e+00> : vector<96x8xf32>
    %42 = tpu.matmul %39, %41, %cst_38 {dimension_numbers = #tpu.dot_dimension_numbers<[1], [0], [0], [1], [0, 0, 1, 1], [], []>} : vector<96x16xbf16>, vector<16x8xbf16>, vector<96x8xf32> -> vector<96x8xf32>
    %43 = arith.addf %37, %42 : vector<96x8xf32>
    %c0_39 = arith.constant 0 : index
    %c13 = arith.constant 13 : index
    %c0_40 = arith.constant 0 : index
    %44 = vector.load %arg3[%c0_39, %c13, %c0_40] : memref<1x116x16xbf16, #tpu.memory_space<vmem>>, vector<1x96x16xbf16>
    %45 = vector.shape_cast %44 : vector<1x96x16xbf16> to vector<96x16xbf16>
    %c7_41 = arith.constant 7 : index
    %c0_42 = arith.constant 0 : index
    %c0_43 = arith.constant 0 : index
    %46 = vector.load %arg4[%c7_41, %c0_42, %c0_43] : memref<9x16x8xbf16, #tpu.memory_space<vmem>>, vector<1x16x8xbf16>
    %47 = vector.shape_cast %46 : vector<1x16x8xbf16> to vector<16x8xbf16>
    %cst_44 = arith.constant dense<0.000000e+00> : vector<96x8xf32>
    %48 = tpu.matmul %45, %47, %cst_44 {dimension_numbers = #tpu.dot_dimension_numbers<[1], [0], [0], [1], [0, 0, 1, 1], [], []>} : vector<96x16xbf16>, vector<16x8xbf16>, vector<96x8xf32> -> vector<96x8xf32>
    %49 = arith.addf %43, %48 : vector<96x8xf32>
    %c0_45 = arith.constant 0 : index
    %c14 = arith.constant 14 : index
    %c0_46 = arith.constant 0 : index
    %50 = vector.load %arg3[%c0_45, %c14, %c0_46] : memref<1x116x16xbf16, #tpu.memory_space<vmem>>, vector<1x96x16xbf16>
    %51 = vector.shape_cast %50 : vector<1x96x16xbf16> to vector<96x16xbf16>
    %c8_47 = arith.constant 8 : index
    %c0_48 = arith.constant 0 : index
    %c0_49 = arith.constant 0 : index
    %52 = vector.load %arg4[%c8_47, %c0_48, %c0_49] : memref<9x16x8xbf16, #tpu.memory_space<vmem>>, vector<1x16x8xbf16>
    %53 = vector.shape_cast %52 : vector<1x16x8xbf16> to vector<16x8xbf16>
    %cst_50 = arith.constant dense<0.000000e+00> : vector<96x8xf32>
    %54 = tpu.matmul %51, %53, %cst_50 {dimension_numbers = #tpu.dot_dimension_numbers<[1], [0], [0], [1], [0, 0, 1, 1], [], []>} : vector<96x16xbf16>, vector<16x8xbf16>, vector<96x8xf32> -> vector<96x8xf32>
    %55 = arith.addf %49, %54 : vector<96x8xf32>
    %c0_51 = arith.constant 0 : index
    %c0_52 = arith.constant 0 : index
    %56 = vector.load %arg7[%c0_51, %c0_52] : memref<96x8xf32, #tpu.memory_space<vmem>>, vector<96x8xf32>
    %57 = arith.addf %56, %55 : vector<96x8xf32>
    %c0_53 = arith.constant 0 : index
    %c0_54 = arith.constant 0 : index
    %58 = vector.load %arg7[%c0_53, %c0_54] : memref<96x8xf32, #tpu.memory_space<vmem>>, vector<96x8xf32>
    tpu.vector_store %arg7[%c0_53, %c0_54], %57 {strides = array<i32>} : memref<96x8xf32, #tpu.memory_space<vmem>>, vector<96x8xf32>,
    %c0_i32_55 = arith.constant 0 : i32
    %59 = arith.cmpi eq, %arg2, %c0_i32_55 : i32
    %60 = arith.extui %59 : i1 to i32
    %c0_i32_56 = arith.constant 0 : i32
    %61 = arith.cmpi ne, %60, %c0_i32_56 : i32
    scf.if %61 {
      %c0_57 = arith.constant 0 : index
      %c0_58 = arith.constant 0 : index
      %62 = vector.load %arg7[%c0_57, %c0_58] : memref<96x8xf32, #tpu.memory_space<vmem>>, vector<96x8xf32>
      %c0_59 = arith.constant 0 : index
      %c0_60 = arith.constant 0 : index
      %63 = vector.load %arg5[%c0_59, %c0_60] : memref<1x8xf32, #tpu.memory_space<vmem>>, vector<1x8xf32>
      %64 = vector.broadcast %63 : vector<1x8xf32> to vector<96x8xf32>
      %65 = arith.addf %62, %64 : vector<96x8xf32>
      %66 = arith.truncf %65 : vector<96x8xf32> to vector<96x8xbf16>
      %c0_61 = arith.constant 0 : index
      %c0_62 = arith.constant 0 : index
      %c0_63 = arith.constant 0 : index
      %67 = vector.load %arg6[%c0_61, %c0_62, %c0_63] : memref<1x96x8xbf16, #tpu.memory_space<vmem>>, vector<1x96x8xbf16>
      %68 = vector.shape_cast %67 : vector<1x96x8xbf16> to vector<96x8xbf16>
      %69 = vector.shape_cast %66 : vector<96x8xbf16> to vector<1x96x8xbf16>
      tpu.vector_store %arg6[%c0_61, %c0_62, %c0_63], %69 {strides = array<i32>} : memref<1x96x8xbf16, #tpu.memory_space<vmem>>, vector<1x96x8xbf16>,
    } else {
    }
    return
  }
  func.func @transform_0(%arg0: i32, %arg1: i32, %arg2: i32) -> (i32, i32, i32) {
    %c0_i32 = arith.constant 0 : i32
    %c0_i32_0 = arith.constant 0 : i32
    return %arg0, %c0_i32, %arg2 : i32, i32, i32
  }
  func.func @transform_1(%arg0: i32, %arg1: i32, %arg2: i32) -> (i32, i32, i32) {
    %c0_i32 = arith.constant 0 : i32
    %c0_i32_0 = arith.constant 0 : i32
    return %c0_i32, %arg2, %arg1 : i32, i32, i32
  }
  func.func @transform_2(%arg0: i32, %arg1: i32, %arg2: i32) -> (i32, i32) {
    %c0_i32 = arith.constant 0 : i32
    %c0_i32_0 = arith.constant 0 : i32
    return %c0_i32, %arg1 : i32, i32
  }
  func.func @transform_3(%arg0: i32, %arg1: i32, %arg2: i32) -> (i32, i32, i32) {
    %c0_i32 = arith.constant 0 : i32
    %c0_i32_0 = arith.constant 0 : i32
    return %arg0, %c0_i32, %arg1 : i32, i32, i32
  }
}

module attributes {stable_mosaic.version = 11 : i64} {
  func.func @_groupnorm_swish_kernel(%arg0: i32, %arg1: memref<1x64x8xbf16, #tpu.memory_space<vmem>>, %arg2: memref<1x8xf32, #tpu.memory_space<vmem>>, %arg3: memref<1x8xf32, #tpu.memory_space<vmem>>, %arg4: memref<8x8xf32, #tpu.memory_space<vmem>>, %arg5: memref<1x64x8xbf16, #tpu.memory_space<vmem>>) attributes {dimension_semantics = [#tpu.dimension_semantics<parallel>], iteration_bounds = array<i64: 2>, scalar_prefetch = 0 : i64, scratch_operands = 0 : i64, tpu.core_type = #tpu.core_type<tc>, window_params = [{transform_indices = @transform_0, window_bounds = array<i64: 1, 64, 8>}, {pipeline_mode = #tpu.pipeline_mode<synchronous>, transform_indices = @transform_1, window_bounds = array<i64: 1, 8>}, {pipeline_mode = #tpu.pipeline_mode<synchronous>, transform_indices = @transform_2, window_bounds = array<i64: 1, 8>}, {pipeline_mode = #tpu.pipeline_mode<synchronous>, transform_indices = @transform_3, window_bounds = array<i64: 8, 8>}, {transform_indices = @transform_4, window_bounds = array<i64: 1, 64, 8>}]} {
    %c0 = arith.constant 0 : index
    %c0_0 = arith.constant 0 : index
    %c0_1 = arith.constant 0 : index
    %0 = vector.load %arg1[%c0, %c0_0, %c0_1] : memref<1x64x8xbf16, #tpu.memory_space<vmem>>, vector<1x64x8xbf16>
    %1 = vector.shape_cast %0 : vector<1x64x8xbf16> to vector<64x8xbf16>
    %2 = arith.extf %1 : vector<64x8xbf16> to vector<64x8xf32>
    %cst = arith.constant dense<0.000000e+00> : vector<8xf32>
    %3 = vector.multi_reduction <add>, %2, %cst [0] : vector<64x8xf32> to vector<8xf32>
    %4 = vector.shape_cast %3 : vector<8xf32> to vector<1x8xf32>
    %5 = arith.mulf %2, %2 : vector<64x8xf32>
    %cst_2 = arith.constant dense<0.000000e+00> : vector<8xf32>
    %6 = vector.multi_reduction <add>, %5, %cst_2 [0] : vector<64x8xf32> to vector<8xf32>
    %7 = vector.shape_cast %6 : vector<8xf32> to vector<1x8xf32>
    %c0_3 = arith.constant 0 : index
    %c0_4 = arith.constant 0 : index
    %8 = vector.load %arg4[%c0_3, %c0_4] : memref<8x8xf32, #tpu.memory_space<vmem>>, vector<8x8xf32>
    %cst_5 = arith.constant dense<0.000000e+00> : vector<1x8xf32>
    %9 = tpu.matmul %4, %8, %cst_5 {dimension_numbers = #tpu.dot_dimension_numbers<[1], [0], [0], [1], [0, 0, 1, 1], [], []>} : vector<1x8xf32>, vector<8x8xf32>, vector<1x8xf32> -> vector<1x8xf32>
    %c0_6 = arith.constant 0 : index
    %c0_7 = arith.constant 0 : index
    %10 = vector.load %arg4[%c0_6, %c0_7] : memref<8x8xf32, #tpu.memory_space<vmem>>, vector<8x8xf32>
    %cst_8 = arith.constant dense<0.000000e+00> : vector<1x8xf32>
    %11 = tpu.matmul %7, %10, %cst_8 {dimension_numbers = #tpu.dot_dimension_numbers<[1], [0], [0], [1], [0, 0, 1, 1], [], []>} : vector<1x8xf32>, vector<8x8xf32>, vector<1x8xf32> -> vector<1x8xf32>
    %cst_9 = arith.constant 1.562500e-02 : f32
    %12 = vector.broadcast %cst_9 : f32 to vector<1x8xf32>
    %13 = arith.mulf %9, %12 : vector<1x8xf32>
    %cst_10 = arith.constant 1.562500e-02 : f32
    %14 = vector.broadcast %cst_10 : f32 to vector<1x8xf32>
    %15 = arith.mulf %11, %14 : vector<1x8xf32>
    %16 = arith.mulf %13, %13 : vector<1x8xf32>
    %17 = arith.subf %15, %16 : vector<1x8xf32>
    %cst_11 = arith.constant 0.000000e+00 : f32
    %18 = vector.broadcast %cst_11 : f32 to vector<1x8xf32>
    %19 = arith.maximumf %17, %18 : vector<1x8xf32>
    %20 = vector.broadcast %13 : vector<1x8xf32> to vector<64x8xf32>
    %21 = arith.subf %2, %20 : vector<64x8xf32>
    %cst_12 = arith.constant 9.99999997E-7 : f32
    %22 = vector.broadcast %cst_12 : f32 to vector<1x8xf32>
    %23 = arith.addf %19, %22 : vector<1x8xf32>
    %24 = math.rsqrt %23 : vector<1x8xf32>
    %25 = vector.broadcast %24 : vector<1x8xf32> to vector<64x8xf32>
    %26 = arith.mulf %21, %25 : vector<64x8xf32>
    %c0_13 = arith.constant 0 : index
    %c0_14 = arith.constant 0 : index
    %27 = vector.load %arg2[%c0_13, %c0_14] : memref<1x8xf32, #tpu.memory_space<vmem>>, vector<1x8xf32>
    %28 = vector.broadcast %27 : vector<1x8xf32> to vector<64x8xf32>
    %29 = arith.mulf %26, %28 : vector<64x8xf32>
    %c0_15 = arith.constant 0 : index
    %c0_16 = arith.constant 0 : index
    %30 = vector.load %arg3[%c0_15, %c0_16] : memref<1x8xf32, #tpu.memory_space<vmem>>, vector<1x8xf32>
    %31 = vector.broadcast %30 : vector<1x8xf32> to vector<64x8xf32>
    %32 = arith.addf %29, %31 : vector<64x8xf32>
    %33 = arith.negf %32 : vector<64x8xf32>
    %34 = math.exp %33 : vector<64x8xf32>
    %cst_17 = arith.constant 1.000000e+00 : f32
    %35 = vector.broadcast %cst_17 : f32 to vector<64x8xf32>
    %36 = arith.addf %35, %34 : vector<64x8xf32>
    %37 = arith.divf %35, %36 : vector<64x8xf32>
    %38 = arith.mulf %32, %37 : vector<64x8xf32>
    %39 = arith.truncf %38 : vector<64x8xf32> to vector<64x8xbf16>
    %c0_18 = arith.constant 0 : index
    %c0_19 = arith.constant 0 : index
    %c0_20 = arith.constant 0 : index
    %40 = vector.load %arg5[%c0_18, %c0_19, %c0_20] : memref<1x64x8xbf16, #tpu.memory_space<vmem>>, vector<1x64x8xbf16>
    %41 = vector.shape_cast %40 : vector<1x64x8xbf16> to vector<64x8xbf16>
    %42 = vector.shape_cast %39 : vector<64x8xbf16> to vector<1x64x8xbf16>
    tpu.vector_store %arg5[%c0_18, %c0_19, %c0_20], %42 {strides = array<i32>} : memref<1x64x8xbf16, #tpu.memory_space<vmem>>, vector<1x64x8xbf16>,
    return
  }
  func.func @transform_0(%arg0: i32) -> (i32, i32, i32) {
    %c0_i32 = arith.constant 0 : i32
    %c0_i32_0 = arith.constant 0 : i32
    %c0_i32_1 = arith.constant 0 : i32
    return %arg0, %c0_i32, %c0_i32_0 : i32, i32, i32
  }
  func.func @transform_1(%arg0: i32) -> (i32, i32) {
    %c0_i32 = arith.constant 0 : i32
    %c0_i32_0 = arith.constant 0 : i32
    %c0_i32_1 = arith.constant 0 : i32
    return %c0_i32, %c0_i32_0 : i32, i32
  }
  func.func @transform_2(%arg0: i32) -> (i32, i32) {
    %c0_i32 = arith.constant 0 : i32
    %c0_i32_0 = arith.constant 0 : i32
    %c0_i32_1 = arith.constant 0 : i32
    return %c0_i32, %c0_i32_0 : i32, i32
  }
  func.func @transform_3(%arg0: i32) -> (i32, i32) {
    %c0_i32 = arith.constant 0 : i32
    %c0_i32_0 = arith.constant 0 : i32
    %c0_i32_1 = arith.constant 0 : i32
    return %c0_i32, %c0_i32_0 : i32, i32
  }
  func.func @transform_4(%arg0: i32) -> (i32, i32, i32) {
    %c0_i32 = arith.constant 0 : i32
    %c0_i32_0 = arith.constant 0 : i32
    %c0_i32_1 = arith.constant 0 : i32
    return %arg0, %c0_i32, %c0_i32_0 : i32, i32, i32
  }
}

module attributes {stable_mosaic.version = 11 : i64} {
  func.func @_conv3x3_kernel(%arg0: i32, %arg1: i32, %arg2: i32, %arg3: memref<1x116x8xbf16, #tpu.memory_space<vmem>>, %arg4: memref<9x8x8xbf16, #tpu.memory_space<vmem>>, %arg5: memref<1x8xf32, #tpu.memory_space<vmem>>, %arg6: memref<1x96x8xbf16, #tpu.memory_space<vmem>>, %arg7: memref<96x8xf32, #tpu.memory_space<vmem>>) attributes {dimension_semantics = [#tpu.dimension_semantics<parallel>, #tpu.dimension_semantics<parallel>, #tpu.dimension_semantics<arbitrary>], iteration_bounds = array<i64: 2, 1, 1>, scalar_prefetch = 0 : i64, scratch_operands = 1 : i64, tpu.core_type = #tpu.core_type<tc>, window_params = [{transform_indices = @transform_0, window_bounds = array<i64: 1, 116, 8>}, {transform_indices = @transform_1, window_bounds = array<i64: 9, 8, 8>}, {transform_indices = @transform_2, window_bounds = array<i64: 1, 8>}, {transform_indices = @transform_3, window_bounds = array<i64: 1, 96, 8>}]} {
    %c0_i32 = arith.constant 0 : i32
    %0 = arith.cmpi eq, %arg2, %c0_i32 : i32
    %1 = arith.extui %0 : i1 to i32
    %c0_i32_0 = arith.constant 0 : i32
    %2 = arith.cmpi ne, %1, %c0_i32_0 : i32
    scf.if %2 {
      %cst_57 = arith.constant 0.000000e+00 : f32
      %62 = vector.broadcast %cst_57 : f32 to vector<96x8xf32>
      %c0_58 = arith.constant 0 : index
      %c0_59 = arith.constant 0 : index
      %63 = vector.load %arg7[%c0_58, %c0_59] : memref<96x8xf32, #tpu.memory_space<vmem>>, vector<96x8xf32>
      tpu.vector_store %arg7[%c0_58, %c0_59], %62 {strides = array<i32>} : memref<96x8xf32, #tpu.memory_space<vmem>>, vector<96x8xf32>,
    } else {
    }
    %c0 = arith.constant 0 : index
    %c0_1 = arith.constant 0 : index
    %c0_2 = arith.constant 0 : index
    %3 = vector.load %arg3[%c0, %c0_1, %c0_2] : memref<1x116x8xbf16, #tpu.memory_space<vmem>>, vector<1x96x8xbf16>
    %4 = vector.shape_cast %3 : vector<1x96x8xbf16> to vector<96x8xbf16>
    %c0_3 = arith.constant 0 : index
    %c0_4 = arith.constant 0 : index
    %c0_5 = arith.constant 0 : index
    %5 = vector.load %arg4[%c0_3, %c0_4, %c0_5] : memref<9x8x8xbf16, #tpu.memory_space<vmem>>, vector<1x8x8xbf16>
    %6 = vector.shape_cast %5 : vector<1x8x8xbf16> to vector<8x8xbf16>
    %cst = arith.constant dense<0.000000e+00> : vector<96x8xf32>
    %7 = tpu.matmul %4, %6, %cst {dimension_numbers = #tpu.dot_dimension_numbers<[1], [0], [0], [1], [0, 0, 1, 1], [], []>} : vector<96x8xbf16>, vector<8x8xbf16>, vector<96x8xf32> -> vector<96x8xf32>
    %c0_6 = arith.constant 0 : index
    %c1 = arith.constant 1 : index
    %c0_7 = arith.constant 0 : index
    %8 = vector.load %arg3[%c0_6, %c1, %c0_7] : memref<1x116x8xbf16, #tpu.memory_space<vmem>>, vector<1x96x8xbf16>
    %9 = vector.shape_cast %8 : vector<1x96x8xbf16> to vector<96x8xbf16>
    %c1_8 = arith.constant 1 : index
    %c0_9 = arith.constant 0 : index
    %c0_10 = arith.constant 0 : index
    %10 = vector.load %arg4[%c1_8, %c0_9, %c0_10] : memref<9x8x8xbf16, #tpu.memory_space<vmem>>, vector<1x8x8xbf16>
    %11 = vector.shape_cast %10 : vector<1x8x8xbf16> to vector<8x8xbf16>
    %cst_11 = arith.constant dense<0.000000e+00> : vector<96x8xf32>
    %12 = tpu.matmul %9, %11, %cst_11 {dimension_numbers = #tpu.dot_dimension_numbers<[1], [0], [0], [1], [0, 0, 1, 1], [], []>} : vector<96x8xbf16>, vector<8x8xbf16>, vector<96x8xf32> -> vector<96x8xf32>
    %13 = arith.addf %7, %12 : vector<96x8xf32>
    %c0_12 = arith.constant 0 : index
    %c2 = arith.constant 2 : index
    %c0_13 = arith.constant 0 : index
    %14 = vector.load %arg3[%c0_12, %c2, %c0_13] : memref<1x116x8xbf16, #tpu.memory_space<vmem>>, vector<1x96x8xbf16>
    %15 = vector.shape_cast %14 : vector<1x96x8xbf16> to vector<96x8xbf16>
    %c2_14 = arith.constant 2 : index
    %c0_15 = arith.constant 0 : index
    %c0_16 = arith.constant 0 : index
    %16 = vector.load %arg4[%c2_14, %c0_15, %c0_16] : memref<9x8x8xbf16, #tpu.memory_space<vmem>>, vector<1x8x8xbf16>
    %17 = vector.shape_cast %16 : vector<1x8x8xbf16> to vector<8x8xbf16>
    %cst_17 = arith.constant dense<0.000000e+00> : vector<96x8xf32>
    %18 = tpu.matmul %15, %17, %cst_17 {dimension_numbers = #tpu.dot_dimension_numbers<[1], [0], [0], [1], [0, 0, 1, 1], [], []>} : vector<96x8xbf16>, vector<8x8xbf16>, vector<96x8xf32> -> vector<96x8xf32>
    %19 = arith.addf %13, %18 : vector<96x8xf32>
    %c0_18 = arith.constant 0 : index
    %c6 = arith.constant 6 : index
    %c0_19 = arith.constant 0 : index
    %20 = vector.load %arg3[%c0_18, %c6, %c0_19] : memref<1x116x8xbf16, #tpu.memory_space<vmem>>, vector<1x96x8xbf16>
    %21 = vector.shape_cast %20 : vector<1x96x8xbf16> to vector<96x8xbf16>
    %c3 = arith.constant 3 : index
    %c0_20 = arith.constant 0 : index
    %c0_21 = arith.constant 0 : index
    %22 = vector.load %arg4[%c3, %c0_20, %c0_21] : memref<9x8x8xbf16, #tpu.memory_space<vmem>>, vector<1x8x8xbf16>
    %23 = vector.shape_cast %22 : vector<1x8x8xbf16> to vector<8x8xbf16>
    %cst_22 = arith.constant dense<0.000000e+00> : vector<96x8xf32>
    %24 = tpu.matmul %21, %23, %cst_22 {dimension_numbers = #tpu.dot_dimension_numbers<[1], [0], [0], [1], [0, 0, 1, 1], [], []>} : vector<96x8xbf16>, vector<8x8xbf16>, vector<96x8xf32> -> vector<96x8xf32>
    %25 = arith.addf %19, %24 : vector<96x8xf32>
    %c0_23 = arith.constant 0 : index
    %c7 = arith.constant 7 : index
    %c0_24 = arith.constant 0 : index
    %26 = vector.load %arg3[%c0_23, %c7, %c0_24] : memref<1x116x8xbf16, #tpu.memory_space<vmem>>, vector<1x96x8xbf16>
    %27 = vector.shape_cast %26 : vector<1x96x8xbf16> to vector<96x8xbf16>
    %c4 = arith.constant 4 : index
    %c0_25 = arith.constant 0 : index
    %c0_26 = arith.constant 0 : index
    %28 = vector.load %arg4[%c4, %c0_25, %c0_26] : memref<9x8x8xbf16, #tpu.memory_space<vmem>>, vector<1x8x8xbf16>
    %29 = vector.shape_cast %28 : vector<1x8x8xbf16> to vector<8x8xbf16>
    %cst_27 = arith.constant dense<0.000000e+00> : vector<96x8xf32>
    %30 = tpu.matmul %27, %29, %cst_27 {dimension_numbers = #tpu.dot_dimension_numbers<[1], [0], [0], [1], [0, 0, 1, 1], [], []>} : vector<96x8xbf16>, vector<8x8xbf16>, vector<96x8xf32> -> vector<96x8xf32>
    %31 = arith.addf %25, %30 : vector<96x8xf32>
    %c0_28 = arith.constant 0 : index
    %c8 = arith.constant 8 : index
    %c0_29 = arith.constant 0 : index
    %32 = vector.load %arg3[%c0_28, %c8, %c0_29] : memref<1x116x8xbf16, #tpu.memory_space<vmem>>, vector<1x96x8xbf16>
    %33 = vector.shape_cast %32 : vector<1x96x8xbf16> to vector<96x8xbf16>
    %c5 = arith.constant 5 : index
    %c0_30 = arith.constant 0 : index
    %c0_31 = arith.constant 0 : index
    %34 = vector.load %arg4[%c5, %c0_30, %c0_31] : memref<9x8x8xbf16, #tpu.memory_space<vmem>>, vector<1x8x8xbf16>
    %35 = vector.shape_cast %34 : vector<1x8x8xbf16> to vector<8x8xbf16>
    %cst_32 = arith.constant dense<0.000000e+00> : vector<96x8xf32>
    %36 = tpu.matmul %33, %35, %cst_32 {dimension_numbers = #tpu.dot_dimension_numbers<[1], [0], [0], [1], [0, 0, 1, 1], [], []>} : vector<96x8xbf16>, vector<8x8xbf16>, vector<96x8xf32> -> vector<96x8xf32>
    %37 = arith.addf %31, %36 : vector<96x8xf32>
    %c0_33 = arith.constant 0 : index
    %c12 = arith.constant 12 : index
    %c0_34 = arith.constant 0 : index
    %38 = vector.load %arg3[%c0_33, %c12, %c0_34] : memref<1x116x8xbf16, #tpu.memory_space<vmem>>, vector<1x96x8xbf16>
    %39 = vector.shape_cast %38 : vector<1x96x8xbf16> to vector<96x8xbf16>
    %c6_35 = arith.constant 6 : index
    %c0_36 = arith.constant 0 : index
    %c0_37 = arith.constant 0 : index
    %40 = vector.load %arg4[%c6_35, %c0_36, %c0_37] : memref<9x8x8xbf16, #tpu.memory_space<vmem>>, vector<1x8x8xbf16>
    %41 = vector.shape_cast %40 : vector<1x8x8xbf16> to vector<8x8xbf16>
    %cst_38 = arith.constant dense<0.000000e+00> : vector<96x8xf32>
    %42 = tpu.matmul %39, %41, %cst_38 {dimension_numbers = #tpu.dot_dimension_numbers<[1], [0], [0], [1], [0, 0, 1, 1], [], []>} : vector<96x8xbf16>, vector<8x8xbf16>, vector<96x8xf32> -> vector<96x8xf32>
    %43 = arith.addf %37, %42 : vector<96x8xf32>
    %c0_39 = arith.constant 0 : index
    %c13 = arith.constant 13 : index
    %c0_40 = arith.constant 0 : index
    %44 = vector.load %arg3[%c0_39, %c13, %c0_40] : memref<1x116x8xbf16, #tpu.memory_space<vmem>>, vector<1x96x8xbf16>
    %45 = vector.shape_cast %44 : vector<1x96x8xbf16> to vector<96x8xbf16>
    %c7_41 = arith.constant 7 : index
    %c0_42 = arith.constant 0 : index
    %c0_43 = arith.constant 0 : index
    %46 = vector.load %arg4[%c7_41, %c0_42, %c0_43] : memref<9x8x8xbf16, #tpu.memory_space<vmem>>, vector<1x8x8xbf16>
    %47 = vector.shape_cast %46 : vector<1x8x8xbf16> to vector<8x8xbf16>
    %cst_44 = arith.constant dense<0.000000e+00> : vector<96x8xf32>
    %48 = tpu.matmul %45, %47, %cst_44 {dimension_numbers = #tpu.dot_dimension_numbers<[1], [0], [0], [1], [0, 0, 1, 1], [], []>} : vector<96x8xbf16>, vector<8x8xbf16>, vector<96x8xf32> -> vector<96x8xf32>
    %49 = arith.addf %43, %48 : vector<96x8xf32>
    %c0_45 = arith.constant 0 : index
    %c14 = arith.constant 14 : index
    %c0_46 = arith.constant 0 : index
    %50 = vector.load %arg3[%c0_45, %c14, %c0_46] : memref<1x116x8xbf16, #tpu.memory_space<vmem>>, vector<1x96x8xbf16>
    %51 = vector.shape_cast %50 : vector<1x96x8xbf16> to vector<96x8xbf16>
    %c8_47 = arith.constant 8 : index
    %c0_48 = arith.constant 0 : index
    %c0_49 = arith.constant 0 : index
    %52 = vector.load %arg4[%c8_47, %c0_48, %c0_49] : memref<9x8x8xbf16, #tpu.memory_space<vmem>>, vector<1x8x8xbf16>
    %53 = vector.shape_cast %52 : vector<1x8x8xbf16> to vector<8x8xbf16>
    %cst_50 = arith.constant dense<0.000000e+00> : vector<96x8xf32>
    %54 = tpu.matmul %51, %53, %cst_50 {dimension_numbers = #tpu.dot_dimension_numbers<[1], [0], [0], [1], [0, 0, 1, 1], [], []>} : vector<96x8xbf16>, vector<8x8xbf16>, vector<96x8xf32> -> vector<96x8xf32>
    %55 = arith.addf %49, %54 : vector<96x8xf32>
    %c0_51 = arith.constant 0 : index
    %c0_52 = arith.constant 0 : index
    %56 = vector.load %arg7[%c0_51, %c0_52] : memref<96x8xf32, #tpu.memory_space<vmem>>, vector<96x8xf32>
    %57 = arith.addf %56, %55 : vector<96x8xf32>
    %c0_53 = arith.constant 0 : index
    %c0_54 = arith.constant 0 : index
    %58 = vector.load %arg7[%c0_53, %c0_54] : memref<96x8xf32, #tpu.memory_space<vmem>>, vector<96x8xf32>
    tpu.vector_store %arg7[%c0_53, %c0_54], %57 {strides = array<i32>} : memref<96x8xf32, #tpu.memory_space<vmem>>, vector<96x8xf32>,
    %c0_i32_55 = arith.constant 0 : i32
    %59 = arith.cmpi eq, %arg2, %c0_i32_55 : i32
    %60 = arith.extui %59 : i1 to i32
    %c0_i32_56 = arith.constant 0 : i32
    %61 = arith.cmpi ne, %60, %c0_i32_56 : i32
    scf.if %61 {
      %c0_57 = arith.constant 0 : index
      %c0_58 = arith.constant 0 : index
      %62 = vector.load %arg7[%c0_57, %c0_58] : memref<96x8xf32, #tpu.memory_space<vmem>>, vector<96x8xf32>
      %c0_59 = arith.constant 0 : index
      %c0_60 = arith.constant 0 : index
      %63 = vector.load %arg5[%c0_59, %c0_60] : memref<1x8xf32, #tpu.memory_space<vmem>>, vector<1x8xf32>
      %64 = vector.broadcast %63 : vector<1x8xf32> to vector<96x8xf32>
      %65 = arith.addf %62, %64 : vector<96x8xf32>
      %66 = arith.truncf %65 : vector<96x8xf32> to vector<96x8xbf16>
      %c0_61 = arith.constant 0 : index
      %c0_62 = arith.constant 0 : index
      %c0_63 = arith.constant 0 : index
      %67 = vector.load %arg6[%c0_61, %c0_62, %c0_63] : memref<1x96x8xbf16, #tpu.memory_space<vmem>>, vector<1x96x8xbf16>
      %68 = vector.shape_cast %67 : vector<1x96x8xbf16> to vector<96x8xbf16>
      %69 = vector.shape_cast %66 : vector<96x8xbf16> to vector<1x96x8xbf16>
      tpu.vector_store %arg6[%c0_61, %c0_62, %c0_63], %69 {strides = array<i32>} : memref<1x96x8xbf16, #tpu.memory_space<vmem>>, vector<1x96x8xbf16>,
    } else {
    }
    return
  }
  func.func @transform_0(%arg0: i32, %arg1: i32, %arg2: i32) -> (i32, i32, i32) {
    %c0_i32 = arith.constant 0 : i32
    %c0_i32_0 = arith.constant 0 : i32
    return %arg0, %c0_i32, %arg2 : i32, i32, i32
  }
  func.func @transform_1(%arg0: i32, %arg1: i32, %arg2: i32) -> (i32, i32, i32) {
    %c0_i32 = arith.constant 0 : i32
    %c0_i32_0 = arith.constant 0 : i32
    return %c0_i32, %arg2, %arg1 : i32, i32, i32
  }
  func.func @transform_2(%arg0: i32, %arg1: i32, %arg2: i32) -> (i32, i32) {
    %c0_i32 = arith.constant 0 : i32
    %c0_i32_0 = arith.constant 0 : i32
    return %c0_i32, %arg1 : i32, i32
  }
  func.func @transform_3(%arg0: i32, %arg1: i32, %arg2: i32) -> (i32, i32, i32) {
    %c0_i32 = arith.constant 0 : i32
    %c0_i32_0 = arith.constant 0 : i32
    return %arg0, %c0_i32, %arg1 : i32, i32, i32
  }
}

module attributes {stable_mosaic.version = 11 : i64} {
  func.func @_mm_kernel(%arg0: i32, %arg1: i32, %arg2: i32, %arg3: memref<128x16xbf16, #tpu.memory_space<vmem>>, %arg4: memref<16x8xbf16, #tpu.memory_space<vmem>>, %arg5: memref<1x8xf32, #tpu.memory_space<vmem>>, %arg6: memref<128x8xbf16, #tpu.memory_space<vmem>>, %arg7: memref<128x8xbf16, #tpu.memory_space<vmem>>, %arg8: memref<128x8xf32, #tpu.memory_space<vmem>>) attributes {dimension_semantics = [#tpu.dimension_semantics<parallel>, #tpu.dimension_semantics<parallel>, #tpu.dimension_semantics<arbitrary>], iteration_bounds = array<i64: 1, 1, 1>, scalar_prefetch = 0 : i64, scratch_operands = 1 : i64, tpu.core_type = #tpu.core_type<tc>, window_params = [{transform_indices = @transform_0, window_bounds = array<i64: 128, 16>}, {transform_indices = @transform_1, window_bounds = array<i64: 16, 8>}, {transform_indices = @transform_2, window_bounds = array<i64: 1, 8>}, {transform_indices = @transform_3, window_bounds = array<i64: 128, 8>}, {transform_indices = @transform_4, window_bounds = array<i64: 128, 8>}]} {
    %c0_i32 = arith.constant 0 : i32
    %0 = arith.cmpi eq, %arg2, %c0_i32 : i32
    %1 = arith.extui %0 : i1 to i32
    %c0_i32_0 = arith.constant 0 : i32
    %2 = arith.cmpi ne, %1, %c0_i32_0 : i32
    scf.if %2 {
      %cst_10 = arith.constant 0.000000e+00 : f32
      %12 = vector.broadcast %cst_10 : f32 to vector<128x8xf32>
      %c0_11 = arith.constant 0 : index
      %c0_12 = arith.constant 0 : index
      %13 = vector.load %arg8[%c0_11, %c0_12] : memref<128x8xf32, #tpu.memory_space<vmem>>, vector<128x8xf32>
      tpu.vector_store %arg8[%c0_11, %c0_12], %12 {strides = array<i32>} : memref<128x8xf32, #tpu.memory_space<vmem>>, vector<128x8xf32>,
    } else {
    }
    %c0 = arith.constant 0 : index
    %c0_1 = arith.constant 0 : index
    %3 = vector.load %arg8[%c0, %c0_1] : memref<128x8xf32, #tpu.memory_space<vmem>>, vector<128x8xf32>
    %c0_2 = arith.constant 0 : index
    %c0_3 = arith.constant 0 : index
    %4 = vector.load %arg3[%c0_2, %c0_3] : memref<128x16xbf16, #tpu.memory_space<vmem>>, vector<128x16xbf16>
    %c0_4 = arith.constant 0 : index
    %c0_5 = arith.constant 0 : index
    %5 = vector.load %arg4[%c0_4, %c0_5] : memref<16x8xbf16, #tpu.memory_space<vmem>>, vector<16x8xbf16>
    %cst = arith.constant dense<0.000000e+00> : vector<128x8xf32>
    %6 = tpu.matmul %4, %5, %cst {dimension_numbers = #tpu.dot_dimension_numbers<[1], [0], [0], [1], [0, 0, 1, 1], [], []>} : vector<128x16xbf16>, vector<16x8xbf16>, vector<128x8xf32> -> vector<128x8xf32>
    %7 = arith.addf %3, %6 : vector<128x8xf32>
    %c0_6 = arith.constant 0 : index
    %c0_7 = arith.constant 0 : index
    %8 = vector.load %arg8[%c0_6, %c0_7] : memref<128x8xf32, #tpu.memory_space<vmem>>, vector<128x8xf32>
    tpu.vector_store %arg8[%c0_6, %c0_7], %7 {strides = array<i32>} : memref<128x8xf32, #tpu.memory_space<vmem>>, vector<128x8xf32>,
    %c0_i32_8 = arith.constant 0 : i32
    %9 = arith.cmpi eq, %arg2, %c0_i32_8 : i32
    %10 = arith.extui %9 : i1 to i32
    %c0_i32_9 = arith.constant 0 : i32
    %11 = arith.cmpi ne, %10, %c0_i32_9 : i32
    scf.if %11 {
      %c0_10 = arith.constant 0 : index
      %c0_11 = arith.constant 0 : index
      %12 = vector.load %arg8[%c0_10, %c0_11] : memref<128x8xf32, #tpu.memory_space<vmem>>, vector<128x8xf32>
      %c0_12 = arith.constant 0 : index
      %c0_13 = arith.constant 0 : index
      %13 = vector.load %arg5[%c0_12, %c0_13] : memref<1x8xf32, #tpu.memory_space<vmem>>, vector<1x8xf32>
      %14 = vector.broadcast %13 : vector<1x8xf32> to vector<128x8xf32>
      %15 = arith.addf %12, %14 : vector<128x8xf32>
      %c0_14 = arith.constant 0 : index
      %c0_15 = arith.constant 0 : index
      %16 = vector.load %arg6[%c0_14, %c0_15] : memref<128x8xbf16, #tpu.memory_space<vmem>>, vector<128x8xbf16>
      %17 = arith.extf %16 : vector<128x8xbf16> to vector<128x8xf32>
      %18 = arith.addf %15, %17 : vector<128x8xf32>
      %19 = arith.truncf %18 : vector<128x8xf32> to vector<128x8xbf16>
      %c0_16 = arith.constant 0 : index
      %c0_17 = arith.constant 0 : index
      %20 = vector.load %arg7[%c0_16, %c0_17] : memref<128x8xbf16, #tpu.memory_space<vmem>>, vector<128x8xbf16>
      tpu.vector_store %arg7[%c0_16, %c0_17], %19 {strides = array<i32>} : memref<128x8xbf16, #tpu.memory_space<vmem>>, vector<128x8xbf16>,
    } else {
    }
    return
  }
  func.func @transform_0(%arg0: i32, %arg1: i32, %arg2: i32) -> (i32, i32) {
    %c0_i32 = arith.constant 0 : i32
    return %arg0, %arg2 : i32, i32
  }
  func.func @transform_1(%arg0: i32, %arg1: i32, %arg2: i32) -> (i32, i32) {
    %c0_i32 = arith.constant 0 : i32
    return %arg2, %arg1 : i32, i32
  }
  func.func @transform_2(%arg0: i32, %arg1: i32, %arg2: i32) -> (i32, i32) {
    %c0_i32 = arith.constant 0 : i32
    %c0_i32_0 = arith.constant 0 : i32
    return %c0_i32, %arg1 : i32, i32
  }
  func.func @transform_3(%arg0: i32, %arg1: i32, %arg2: i32) -> (i32, i32) {
    %c0_i32 = arith.constant 0 : i32
    return %arg0, %arg1 : i32, i32
  }
  func.func @transform_4(%arg0: i32, %arg1: i32, %arg2: i32) -> (i32, i32) {
    %c0_i32 = arith.constant 0 : i32
    return %arg0, %arg1 : i32, i32
  }
}

module attributes {stable_mosaic.version = 11 : i64} {
  func.func @_conv3x3_kernel(%arg0: i32, %arg1: i32, %arg2: i32, %arg3: memref<1x116x8xbf16, #tpu.memory_space<vmem>>, %arg4: memref<9x8x4xbf16, #tpu.memory_space<vmem>>, %arg5: memref<1x4xf32, #tpu.memory_space<vmem>>, %arg6: memref<1x96x4xf32, #tpu.memory_space<vmem>>, %arg7: memref<96x4xf32, #tpu.memory_space<vmem>>) attributes {dimension_semantics = [#tpu.dimension_semantics<parallel>, #tpu.dimension_semantics<parallel>, #tpu.dimension_semantics<arbitrary>], iteration_bounds = array<i64: 2, 1, 1>, scalar_prefetch = 0 : i64, scratch_operands = 1 : i64, tpu.core_type = #tpu.core_type<tc>, window_params = [{transform_indices = @transform_0, window_bounds = array<i64: 1, 116, 8>}, {transform_indices = @transform_1, window_bounds = array<i64: 9, 8, 4>}, {transform_indices = @transform_2, window_bounds = array<i64: 1, 4>}, {transform_indices = @transform_3, window_bounds = array<i64: 1, 96, 4>}]} {
    %c0_i32 = arith.constant 0 : i32
    %0 = arith.cmpi eq, %arg2, %c0_i32 : i32
    %1 = arith.extui %0 : i1 to i32
    %c0_i32_0 = arith.constant 0 : i32
    %2 = arith.cmpi ne, %1, %c0_i32_0 : i32
    scf.if %2 {
      %cst_57 = arith.constant 0.000000e+00 : f32
      %62 = vector.broadcast %cst_57 : f32 to vector<96x4xf32>
      %c0_58 = arith.constant 0 : index
      %c0_59 = arith.constant 0 : index
      %63 = vector.load %arg7[%c0_58, %c0_59] : memref<96x4xf32, #tpu.memory_space<vmem>>, vector<96x4xf32>
      tpu.vector_store %arg7[%c0_58, %c0_59], %62 {strides = array<i32>} : memref<96x4xf32, #tpu.memory_space<vmem>>, vector<96x4xf32>,
    } else {
    }
    %c0 = arith.constant 0 : index
    %c0_1 = arith.constant 0 : index
    %c0_2 = arith.constant 0 : index
    %3 = vector.load %arg3[%c0, %c0_1, %c0_2] : memref<1x116x8xbf16, #tpu.memory_space<vmem>>, vector<1x96x8xbf16>
    %4 = vector.shape_cast %3 : vector<1x96x8xbf16> to vector<96x8xbf16>
    %c0_3 = arith.constant 0 : index
    %c0_4 = arith.constant 0 : index
    %c0_5 = arith.constant 0 : index
    %5 = vector.load %arg4[%c0_3, %c0_4, %c0_5] : memref<9x8x4xbf16, #tpu.memory_space<vmem>>, vector<1x8x4xbf16>
    %6 = vector.shape_cast %5 : vector<1x8x4xbf16> to vector<8x4xbf16>
    %cst = arith.constant dense<0.000000e+00> : vector<96x4xf32>
    %7 = tpu.matmul %4, %6, %cst {dimension_numbers = #tpu.dot_dimension_numbers<[1], [0], [0], [1], [0, 0, 1, 1], [], []>} : vector<96x8xbf16>, vector<8x4xbf16>, vector<96x4xf32> -> vector<96x4xf32>
    %c0_6 = arith.constant 0 : index
    %c1 = arith.constant 1 : index
    %c0_7 = arith.constant 0 : index
    %8 = vector.load %arg3[%c0_6, %c1, %c0_7] : memref<1x116x8xbf16, #tpu.memory_space<vmem>>, vector<1x96x8xbf16>
    %9 = vector.shape_cast %8 : vector<1x96x8xbf16> to vector<96x8xbf16>
    %c1_8 = arith.constant 1 : index
    %c0_9 = arith.constant 0 : index
    %c0_10 = arith.constant 0 : index
    %10 = vector.load %arg4[%c1_8, %c0_9, %c0_10] : memref<9x8x4xbf16, #tpu.memory_space<vmem>>, vector<1x8x4xbf16>
    %11 = vector.shape_cast %10 : vector<1x8x4xbf16> to vector<8x4xbf16>
    %cst_11 = arith.constant dense<0.000000e+00> : vector<96x4xf32>
    %12 = tpu.matmul %9, %11, %cst_11 {dimension_numbers = #tpu.dot_dimension_numbers<[1], [0], [0], [1], [0, 0, 1, 1], [], []>} : vector<96x8xbf16>, vector<8x4xbf16>, vector<96x4xf32> -> vector<96x4xf32>
    %13 = arith.addf %7, %12 : vector<96x4xf32>
    %c0_12 = arith.constant 0 : index
    %c2 = arith.constant 2 : index
    %c0_13 = arith.constant 0 : index
    %14 = vector.load %arg3[%c0_12, %c2, %c0_13] : memref<1x116x8xbf16, #tpu.memory_space<vmem>>, vector<1x96x8xbf16>
    %15 = vector.shape_cast %14 : vector<1x96x8xbf16> to vector<96x8xbf16>
    %c2_14 = arith.constant 2 : index
    %c0_15 = arith.constant 0 : index
    %c0_16 = arith.constant 0 : index
    %16 = vector.load %arg4[%c2_14, %c0_15, %c0_16] : memref<9x8x4xbf16, #tpu.memory_space<vmem>>, vector<1x8x4xbf16>
    %17 = vector.shape_cast %16 : vector<1x8x4xbf16> to vector<8x4xbf16>
    %cst_17 = arith.constant dense<0.000000e+00> : vector<96x4xf32>
    %18 = tpu.matmul %15, %17, %cst_17 {dimension_numbers = #tpu.dot_dimension_numbers<[1], [0], [0], [1], [0, 0, 1, 1], [], []>} : vector<96x8xbf16>, vector<8x4xbf16>, vector<96x4xf32> -> vector<96x4xf32>
    %19 = arith.addf %13, %18 : vector<96x4xf32>
    %c0_18 = arith.constant 0 : index
    %c6 = arith.constant 6 : index
    %c0_19 = arith.constant 0 : index
    %20 = vector.load %arg3[%c0_18, %c6, %c0_19] : memref<1x116x8xbf16, #tpu.memory_space<vmem>>, vector<1x96x8xbf16>
    %21 = vector.shape_cast %20 : vector<1x96x8xbf16> to vector<96x8xbf16>
    %c3 = arith.constant 3 : index
    %c0_20 = arith.constant 0 : index
    %c0_21 = arith.constant 0 : index
    %22 = vector.load %arg4[%c3, %c0_20, %c0_21] : memref<9x8x4xbf16, #tpu.memory_space<vmem>>, vector<1x8x4xbf16>
    %23 = vector.shape_cast %22 : vector<1x8x4xbf16> to vector<8x4xbf16>
    %cst_22 = arith.constant dense<0.000000e+00> : vector<96x4xf32>
    %24 = tpu.matmul %21, %23, %cst_22 {dimension_numbers = #tpu.dot_dimension_numbers<[1], [0], [0], [1], [0, 0, 1, 1], [], []>} : vector<96x8xbf16>, vector<8x4xbf16>, vector<96x4xf32> -> vector<96x4xf32>
    %25 = arith.addf %19, %24 : vector<96x4xf32>
    %c0_23 = arith.constant 0 : index
    %c7 = arith.constant 7 : index
    %c0_24 = arith.constant 0 : index
    %26 = vector.load %arg3[%c0_23, %c7, %c0_24] : memref<1x116x8xbf16, #tpu.memory_space<vmem>>, vector<1x96x8xbf16>
    %27 = vector.shape_cast %26 : vector<1x96x8xbf16> to vector<96x8xbf16>
    %c4 = arith.constant 4 : index
    %c0_25 = arith.constant 0 : index
    %c0_26 = arith.constant 0 : index
    %28 = vector.load %arg4[%c4, %c0_25, %c0_26] : memref<9x8x4xbf16, #tpu.memory_space<vmem>>, vector<1x8x4xbf16>
    %29 = vector.shape_cast %28 : vector<1x8x4xbf16> to vector<8x4xbf16>
    %cst_27 = arith.constant dense<0.000000e+00> : vector<96x4xf32>
    %30 = tpu.matmul %27, %29, %cst_27 {dimension_numbers = #tpu.dot_dimension_numbers<[1], [0], [0], [1], [0, 0, 1, 1], [], []>} : vector<96x8xbf16>, vector<8x4xbf16>, vector<96x4xf32> -> vector<96x4xf32>
    %31 = arith.addf %25, %30 : vector<96x4xf32>
    %c0_28 = arith.constant 0 : index
    %c8 = arith.constant 8 : index
    %c0_29 = arith.constant 0 : index
    %32 = vector.load %arg3[%c0_28, %c8, %c0_29] : memref<1x116x8xbf16, #tpu.memory_space<vmem>>, vector<1x96x8xbf16>
    %33 = vector.shape_cast %32 : vector<1x96x8xbf16> to vector<96x8xbf16>
    %c5 = arith.constant 5 : index
    %c0_30 = arith.constant 0 : index
    %c0_31 = arith.constant 0 : index
    %34 = vector.load %arg4[%c5, %c0_30, %c0_31] : memref<9x8x4xbf16, #tpu.memory_space<vmem>>, vector<1x8x4xbf16>
    %35 = vector.shape_cast %34 : vector<1x8x4xbf16> to vector<8x4xbf16>
    %cst_32 = arith.constant dense<0.000000e+00> : vector<96x4xf32>
    %36 = tpu.matmul %33, %35, %cst_32 {dimension_numbers = #tpu.dot_dimension_numbers<[1], [0], [0], [1], [0, 0, 1, 1], [], []>} : vector<96x8xbf16>, vector<8x4xbf16>, vector<96x4xf32> -> vector<96x4xf32>
    %37 = arith.addf %31, %36 : vector<96x4xf32>
    %c0_33 = arith.constant 0 : index
    %c12 = arith.constant 12 : index
    %c0_34 = arith.constant 0 : index
    %38 = vector.load %arg3[%c0_33, %c12, %c0_34] : memref<1x116x8xbf16, #tpu.memory_space<vmem>>, vector<1x96x8xbf16>
    %39 = vector.shape_cast %38 : vector<1x96x8xbf16> to vector<96x8xbf16>
    %c6_35 = arith.constant 6 : index
    %c0_36 = arith.constant 0 : index
    %c0_37 = arith.constant 0 : index
    %40 = vector.load %arg4[%c6_35, %c0_36, %c0_37] : memref<9x8x4xbf16, #tpu.memory_space<vmem>>, vector<1x8x4xbf16>
    %41 = vector.shape_cast %40 : vector<1x8x4xbf16> to vector<8x4xbf16>
    %cst_38 = arith.constant dense<0.000000e+00> : vector<96x4xf32>
    %42 = tpu.matmul %39, %41, %cst_38 {dimension_numbers = #tpu.dot_dimension_numbers<[1], [0], [0], [1], [0, 0, 1, 1], [], []>} : vector<96x8xbf16>, vector<8x4xbf16>, vector<96x4xf32> -> vector<96x4xf32>
    %43 = arith.addf %37, %42 : vector<96x4xf32>
    %c0_39 = arith.constant 0 : index
    %c13 = arith.constant 13 : index
    %c0_40 = arith.constant 0 : index
    %44 = vector.load %arg3[%c0_39, %c13, %c0_40] : memref<1x116x8xbf16, #tpu.memory_space<vmem>>, vector<1x96x8xbf16>
    %45 = vector.shape_cast %44 : vector<1x96x8xbf16> to vector<96x8xbf16>
    %c7_41 = arith.constant 7 : index
    %c0_42 = arith.constant 0 : index
    %c0_43 = arith.constant 0 : index
    %46 = vector.load %arg4[%c7_41, %c0_42, %c0_43] : memref<9x8x4xbf16, #tpu.memory_space<vmem>>, vector<1x8x4xbf16>
    %47 = vector.shape_cast %46 : vector<1x8x4xbf16> to vector<8x4xbf16>
    %cst_44 = arith.constant dense<0.000000e+00> : vector<96x4xf32>
    %48 = tpu.matmul %45, %47, %cst_44 {dimension_numbers = #tpu.dot_dimension_numbers<[1], [0], [0], [1], [0, 0, 1, 1], [], []>} : vector<96x8xbf16>, vector<8x4xbf16>, vector<96x4xf32> -> vector<96x4xf32>
    %49 = arith.addf %43, %48 : vector<96x4xf32>
    %c0_45 = arith.constant 0 : index
    %c14 = arith.constant 14 : index
    %c0_46 = arith.constant 0 : index
    %50 = vector.load %arg3[%c0_45, %c14, %c0_46] : memref<1x116x8xbf16, #tpu.memory_space<vmem>>, vector<1x96x8xbf16>
    %51 = vector.shape_cast %50 : vector<1x96x8xbf16> to vector<96x8xbf16>
    %c8_47 = arith.constant 8 : index
    %c0_48 = arith.constant 0 : index
    %c0_49 = arith.constant 0 : index
    %52 = vector.load %arg4[%c8_47, %c0_48, %c0_49] : memref<9x8x4xbf16, #tpu.memory_space<vmem>>, vector<1x8x4xbf16>
    %53 = vector.shape_cast %52 : vector<1x8x4xbf16> to vector<8x4xbf16>
    %cst_50 = arith.constant dense<0.000000e+00> : vector<96x4xf32>
    %54 = tpu.matmul %51, %53, %cst_50 {dimension_numbers = #tpu.dot_dimension_numbers<[1], [0], [0], [1], [0, 0, 1, 1], [], []>} : vector<96x8xbf16>, vector<8x4xbf16>, vector<96x4xf32> -> vector<96x4xf32>
    %55 = arith.addf %49, %54 : vector<96x4xf32>
    %c0_51 = arith.constant 0 : index
    %c0_52 = arith.constant 0 : index
    %56 = vector.load %arg7[%c0_51, %c0_52] : memref<96x4xf32, #tpu.memory_space<vmem>>, vector<96x4xf32>
    %57 = arith.addf %56, %55 : vector<96x4xf32>
    %c0_53 = arith.constant 0 : index
    %c0_54 = arith.constant 0 : index
    %58 = vector.load %arg7[%c0_53, %c0_54] : memref<96x4xf32, #tpu.memory_space<vmem>>, vector<96x4xf32>
    tpu.vector_store %arg7[%c0_53, %c0_54], %57 {strides = array<i32>} : memref<96x4xf32, #tpu.memory_space<vmem>>, vector<96x4xf32>,
    %c0_i32_55 = arith.constant 0 : i32
    %59 = arith.cmpi eq, %arg2, %c0_i32_55 : i32
    %60 = arith.extui %59 : i1 to i32
    %c0_i32_56 = arith.constant 0 : i32
    %61 = arith.cmpi ne, %60, %c0_i32_56 : i32
    scf.if %61 {
      %c0_57 = arith.constant 0 : index
      %c0_58 = arith.constant 0 : index
      %62 = vector.load %arg7[%c0_57, %c0_58] : memref<96x4xf32, #tpu.memory_space<vmem>>, vector<96x4xf32>
      %c0_59 = arith.constant 0 : index
      %c0_60 = arith.constant 0 : index
      %63 = vector.load %arg5[%c0_59, %c0_60] : memref<1x4xf32, #tpu.memory_space<vmem>>, vector<1x4xf32>
      %64 = vector.broadcast %63 : vector<1x4xf32> to vector<96x4xf32>
      %65 = arith.addf %62, %64 : vector<96x4xf32>
      %c0_61 = arith.constant 0 : index
      %c0_62 = arith.constant 0 : index
      %c0_63 = arith.constant 0 : index
      %66 = vector.load %arg6[%c0_61, %c0_62, %c0_63] : memref<1x96x4xf32, #tpu.memory_space<vmem>>, vector<1x96x4xf32>
      %67 = vector.shape_cast %66 : vector<1x96x4xf32> to vector<96x4xf32>
      %68 = vector.shape_cast %65 : vector<96x4xf32> to vector<1x96x4xf32>
      tpu.vector_store %arg6[%c0_61, %c0_62, %c0_63], %68 {strides = array<i32>} : memref<1x96x4xf32, #tpu.memory_space<vmem>>, vector<1x96x4xf32>,
    } else {
    }
    return
  }
  func.func @transform_0(%arg0: i32, %arg1: i32, %arg2: i32) -> (i32, i32, i32) {
    %c0_i32 = arith.constant 0 : i32
    %c0_i32_0 = arith.constant 0 : i32
    return %arg0, %c0_i32, %arg2 : i32, i32, i32
  }
  func.func @transform_1(%arg0: i32, %arg1: i32, %arg2: i32) -> (i32, i32, i32) {
    %c0_i32 = arith.constant 0 : i32
    %c0_i32_0 = arith.constant 0 : i32
    return %c0_i32, %arg2, %arg1 : i32, i32, i32
  }
  func.func @transform_2(%arg0: i32, %arg1: i32, %arg2: i32) -> (i32, i32) {
    %c0_i32 = arith.constant 0 : i32
    %c0_i32_0 = arith.constant 0 : i32
    return %c0_i32, %arg1 : i32, i32
  }
  func.func @transform_3(%arg0: i32, %arg1: i32, %arg2: i32) -> (i32, i32, i32) {
    %c0_i32 = arith.constant 0 : i32
    %c0_i32_0 = arith.constant 0 : i32
    return %arg0, %c0_i32, %arg1 : i32, i32, i32
  }
}

</mosaic_0001>

<bundles_post_ra>
// kernel: _lambda_.33
= control target key start
LH: loop header
LB: loop body
LE: loop exit
PB: predicated region body
PF: predicated region fallthrough
CT: control target
= control target key end

     0   :  { %s479_s15 = smov 0   ;;  %s521_s0 = inlined_call_operand.vmem [shape: bf16[2,16,16], index: 0, kind: input, shape index: {}]   ;;  %s522_s1 = inlined_call_operand.vmem [shape: f32[1,16], index: 1, kind: input, shape index: {}]   ;;  %s523_s2 = inlined_call_operand.vmem [shape: f32[1,16], index: 2, kind: input, shape index: {}]   ;;  %s524_s3 = inlined_call_operand.vmem [shape: f32[16,16], index: 3, kind: input, shape index: {}]   ;;  %s525_s4 = inlined_call_operand.vmem [shape: bf16[2,16,16], index: 4, kind: output, shape index: {}]  }
   0x1 LB: > { %s405_s16 = sadd.s32 4294967295, %s452_s15   ;;  %p409_p0 = scmp.ge.s32.totalorder %s452_s15, 1  ;;  %s452_s15 = sphi %s479_s15, %s14_s15  }
   0x2   : > { %p162_p1 = scmp.lt.s32.totalorder %s452_s15, 3 }
   0x4   : > { %p163_p2 = pnand %p409_p0, %p162_p1 }
   0x5   : > { %p188_p3 = scmp.lt.s32.totalorder (!%p163_p2), %s405_s16, 1 }
   0x6   : > { %166 = sbr.rel (%p163_p2) target bundleno = 228 (0xe4), region = 36 }
   0xb   : > { %v224_v0 = vld [vmem:[%s524_s3 + $0x8] sm:$0xff]  ;;  %v223_v1 = vld [vmem:[%s524_s3] sm:$0xff]  ;;  %s527_s16 = smov (!%p188_p3, %s405_s16), 1  ;;  %vm202_vm0 = vcmask 130048   ;;  %vm347_vm12 = vcmask 125952  }
   0xc   : > { %242 = vmatpush.msra.mxu0 %v224_v0  ;;  %265 = vmatpush.msra.mxu1 %v224_v0  ;;  %s420_s21 = sshll.u32 %s527_s16, 3  ;;  %v434_v44 = vld [vmem:[%s522_s1] ss:$0 sm:$0xff] }
   0xd   : > { %s192_s24 = scalar_lea.vmem %s521_s0, %s420_s21  ;;  %v435_v47 = vld [vmem:[%s523_s2] ss:$0 sm:$0xff]  ;;  %s197_s5 = scalar_lea.vmem %s525_s4, %s420_s21 }
   0xe   : > { %243 = vmatpush.msra.mxu0 %v223_v1  ;;  %266 = vmatpush.msra.mxu1 %v223_v1  ;;  %v423_v2 = vld [vmem:[%s192_s24] sm:$0xff]  }
   0xf   : > { %v424_v3 = vunpack.c.l.bf16 %v423_v2  ;;  %v425_v4 = vunpack.c.h.bf16 %v423_v2 }
  0x11   : > { %v203_v5 = vsel %vm202_vm0, %v424_v3, 0.0  ;;  %v204_v6 = vsel %vm202_vm0, %v425_v4, 0.0  ;;  %v212_v7 = vmul.f32 %v424_v3, %v424_v3  ;;  %v213_v8 = vmul.f32 %v425_v4, %v425_v4 }
  0x12   : > { %v205_v9 = vadd.f32 %v204_v6, %v203_v5 }
  0x13   : > { %v214_v10 = vsel %vm202_vm0, %v212_v7, 0.0  ;;  %v215_v11 = vsel %vm202_vm0, %v213_v8, 0.0 }
  0x14   : > { %v206_v12 = vrot.slane %v205_v9, 4  ;;  %v216_v13 = vadd.f32 %v215_v11, %v214_v10 }
  0x16   : > { %v207_v14 = vadd.f32 %v206_v12, %v205_v9  ;;  %v217_v15 = vrot.slane %v216_v13, 4 }
  0x18   : > { %v208_v16 = vrot.slane %v207_v14, 2  ;;  %v218_v17 = vadd.f32 %v217_v15, %v216_v13 }
  0x1a   : > { %v209_v18 = vadd.f32 %v208_v16, %v207_v14  ;;  %v219_v19 = vrot.slane %v218_v17, 2 }
  0x1c   : > { %v210_v20 = vrot.slane %v209_v18, 1  ;;  %v220_v21 = vadd.f32 %v219_v19, %v218_v17 }
  0x1e   : > { %v211_v22 = vadd.f32 %v210_v20, %v209_v18  ;;  %v221_v23 = vrot.slane %v220_v21, 1 }
  0x20   : > { %414 = vmatmul.msk.f32.vlgmr.msra.gmra.mxu0 %vm202_vm0, %v211_v22  ;;  %v222_v24 = vadd.f32 %v221_v23, %v220_v21 }
  0x22   : > { %415 = vmatmul.msk.f32.vlgmr.msra.gmra.mxu1 %vm202_vm0, %v222_v24 }
  0x9d   : > { %v245_v25 = vpop.f32.mrf.mxu0 }
  0x9e   : > { %v271_v26 = vmul.f32 0.0625, %v245_v25 }
  0x9f   : > { %v268_v27 = vpop.f32.mrf.mxu1 }
  0xa0   : > { %v273_v28 = vmul.f32 %v271_v26, %v271_v26  ;;  %v272_v29 = vmul.f32 0.0625, %v268_v27  ;;  %v276_v38 = vperm.slane %v271_v26, 0 }
  0xa2   : > { %v274_v30 = vsub.f32 %v272_v29, %v273_v28  ;;  %v277_v41 = vsub.f32 %v424_v3, %v276_v38  ;;  %v278_v42 = vsub.f32 %v425_v4, %v276_v38 }
  0xa4   : > { %v275_v31 = vmax.f32 %v274_v30, 0.0 }
  0xa6   : > { %v279_v32 = vadd.f32 1e-06, %v275_v31 }
  0xa8   : > { %436 = vrsqrt.f32 %v279_v32  ;;  %vm286_vm2 = vweird.f32 %v279_v32 }
  0xae   : > { %v437_v33 = vpop.eup %436 }
  0xaf   : > { %v281_v34 = vmul.f32 %v437_v33, %v279_v32  ;;  %vm287_vm1 = vweird.f32 %v437_v33 }
  0xb0   : > { %vm288_vm3 = vmor %vm286_vm2, %vm287_vm1 }
  0xb1   : > { %v282_v35 = vmul.f32 %v437_v33, %v281_v34 }
  0xb3   : > { %v283_v36 = vmul.f32 0.5, %v282_v35 }
  0xb5   : > { %v284_v37 = vsub.f32 1.5, %v283_v36 }
  0xb7   : > { %v285_v39 = vmul.f32 %v437_v33, %v284_v37 }
  0xb9   : > { %v289_v40 = vsel %vm288_vm3, %v437_v33, %v285_v39 }
  0xba   : > { %v290_v43 = vperm.slane %v289_v40, 0 }
  0xbc   : > { %v291_v45 = vmul.f32 %v290_v43, %v277_v41  ;;  %v292_v46 = vmul.f32 %v290_v43, %v278_v42 }
  0xbe   : > { %v297_v48 = vmul.f32 %v434_v44, %v291_v45  ;;  %v298_v49 = vmul.f32 %v434_v44, %v292_v46 }
  0xc0   : > { %v303_v50 = vadd.f32 %v435_v47, %v297_v48  ;;  %v304_v51 = vadd.f32 %v435_v47, %v298_v49 }
  0xc2   : > { %v416_v52 = vmul.f32 -1.442695, %v303_v50  ;;  %v417_v53 = vmul.f32 -1.442695, %v304_v51 }
  0xc4   : > { %438 = vpow2.f32 %v416_v52 }
  0xc5   : > { %440 = vpow2.f32 %v417_v53 }
  0xca   : > { %v439_v54 = vpop.eup %438 }
  0xcb   : > { %v441_v55 = vpop.eup %440  ;;  %v311_v56 = vadd.f32 1.0, %v439_v54 }
  0xcc   : > { %v312_v57 = vadd.f32 1.0, %v441_v55 }
  0xcd   : > { %442 = vrcp.f32 %v311_v56  ;;  %v324_v63 = vand.u32 2147483648, %v311_v56  ;;  %v322_v2 = vand.u32 2147483647, %v311_v56  ;;  %vm318_vm6 = vweird.f32 %v311_v56 }
  0xce   : > { %444 = vrcp.f32 %v312_v57  ;;  %v339_v3 = vand.u32 2147483648, %v312_v57  ;;  %v337_v5 = vand.u32 2147483647, %v312_v57  ;;  %vm333_vm8 = vweird.f32 %v312_v57 }
  0xcf   : > { %v325_v7 = vor.u32 1.1754944e-38, %v324_v63  ;;  %vm323_vm9 = vcmp.eq.f32.partialorder %v322_v2, 8.507059e+37 }
  0xd0   : > { %v340_v10 = vor.u32 1.1754944e-38, %v339_v3  ;;  %vm338_vm11 = vcmp.eq.f32.partialorder %v337_v5, 8.507059e+37 }
  0xd3   : > { %v443_v58 = vpop.eup %442 }
  0xd4   : > { %v445_v59 = vpop.eup %444  ;;  %v314_v60 = vmul.f32 %v443_v58, %v311_v56  ;;  %vm319_vm4 = vweird.f32 %v443_v58 }
  0xd5   : > { %v329_v61 = vmul.f32 %v445_v59, %v312_v57  ;;  %vm334_vm5 = vweird.f32 %v445_v59  ;;  %vm320_vm7 = vmor %vm318_vm6, %vm319_vm4 }
  0xd6   : > { %v315_v62 = vsub.f32 1.0, %v314_v60  ;;  %vm335_vm10 = vmor %vm333_vm8, %vm334_vm5 }
  0xd7   : > { %v330_v0 = vsub.f32 1.0, %v329_v61 }
  0xd8   : > { %v316_v1 = vmul.f32 %v443_v58, %v315_v62 }
  0xd9   : > { %v331_v4 = vmul.f32 %v445_v59, %v330_v0 }
  0xda   : > { %v317_v6 = vadd.f32 %v443_v58, %v316_v1 }
  0xdb   : > { %v332_v8 = vadd.f32 %v445_v59, %v331_v4 }
  0xdc   : > { %v321_v9 = vsel %vm320_vm7, %v443_v58, %v317_v6 }
  0xdd   : > { %v326_v11 = vsel %vm323_vm9, %v325_v7, %v321_v9  ;;  %v336_v12 = vsel %vm335_vm10, %v445_v59, %v332_v8 }
  0xde   : > { %v341_v13 = vsel %vm338_vm11, %v340_v10, %v336_v12  ;;  %v343_v14 = vmul.f32 %v326_v11, %v303_v50 }
  0xdf   : > { %v344_v15 = vmul.f32 %v341_v13, %v304_v51 }
  0xe0   : > { %v345_v16 = vpack.c.bf16 %v343_v14, %v343_v14 }
  0xe1   : > { %v346_v17 = vpack.c.bf16 %v344_v15, %v344_v15 }
  0xe2   : > { %348 = vst.msk [vmem:[%s197_s5] sm:$0xf] %vm347_vm12, %v345_v16 }
  0xe3   : > { %349 = vst.msk [vmem:[%s197_s5 + $0x4] sm:$0xf] %vm347_vm12, %v346_v17 }
  0xe4 PF: > { %s14_s15 = sadd.s32 1, %s452_s15  }
  0xe5   : > { %p11_p4 = scmp.ge.s32.totalorder %s14_s15, 4  }
  0xe7   :  { %13 = sbr.rel (!%p11_p4) target bundleno = 1 (0x1), region = 66 }

// kernel: _lambda_.37
= control target key start
LH: loop header
LB: loop body
LE: loop exit
PB: predicated region body
PF: predicated region fallthrough
CT: control target
= control target key end

     0   :  { %vm26_vm0 = vcmask 130048   ;;  %v216_v10 = vmov 16.0   ;;  %vm177_vm14 = vcmask 388096   ;;  %s299_s0 = inlined_call_operand.vmem [shape: bf16[32,16], index: 0, kind: input, shape index: {}]   ;;  %s300_s2 = inlined_call_operand.vmem [shape: f32[1,16], index: 2, kind: input, shape index: {}]   ;;  %s301_s3 = inlined_call_operand.vmem [shape: f32[1,16], index: 3, kind: input, shape index: {}]   ;;  %s302_s1 = inlined_call_operand.vmem [shape: bf16[16,48], index: 1, kind: input, shape index: {}]   ;;  %s303_s4 = inlined_call_operand.vmem [shape: bf16[32,48], index: 4, kind: output, shape index: {}]  }
   0x1   :  { %v201_v0 = vld [vmem:[%s299_s0 + $0x8] sm:$0xff]   ;;  %v194_v1 = vld [vmem:[%s299_s0] sm:$0xff]   ;;  %206 = vrcp.f32 %v216_v10 }
   0x2   :  { %v199_v2 = vunpack.c.l.bf16 %v201_v0  ;;  %v195_v3 = vunpack.c.l.bf16 %v194_v1  ;;  %v200_v6 = vunpack.c.h.bf16 %v201_v0  ;;  %v196_v7 = vunpack.c.h.bf16 %v194_v1  ;;  %v192_v39 = vld [vmem:[%s302_s1] sm:$0xff] }
   0x3   :  { %161 = vmatpush.bf16.msra.mxu0 %v192_v39  ;;  %202 = vmatpush.bf16.msra.mxu1 %v192_v39 }
   0x4   :  { %v33_v4 = vsel %vm26_vm0, %v199_v2, 0.0  ;;  %v27_v5 = vsel %vm26_vm0, %v195_v3, 0.0  ;;  %v36_v8 = vsel %vm26_vm0, %v200_v6, 0.0  ;;  %v30_v9 = vsel %vm26_vm0, %v196_v7, 0.0 }
   0x5   :  { %34 = vadd.xlane.f32.xlu1 %v33_v4  ;;  %28 = vadd.xlane.f32.xlu0 %v27_v5 }
   0x7   :  { %v207_v11 = vpop.eup %206 }
   0x8   :  { %v40_v12 = vmul.f32 16.0, %v207_v11  ;;  %vm44_vm1 = vweird.f32 %v207_v11 }
   0xa   :  { %v41_v13 = vsub.f32 1.0, %v40_v12 }
   0xc   :  { %v42_v14 = vmul.f32 %v207_v11, %v41_v13 }
   0xd   :  { %37 = vadd.xlane.f32.xlu1 %v36_v8  ;;  %31 = vadd.xlane.f32.xlu0 %v30_v9 }
   0xe   :  { %v43_v15 = vadd.f32 %v207_v11, %v42_v14 }
  0x10   :  { %v45_v16 = vsel %vm44_vm1, %v207_v11, %v43_v15  ;;  %v204_v11 = vld [vmem:[%s300_s2] ss:$0 sm:$0xff] }
  0x78   :  { %v35_v17 = vpop.xlane.xlu1 %34  ;;  %v29_v18 = vpop.xlane.xlu0 %28 }
  0x79   :  { %v48_v19 = vmul.f32 %v45_v16, %v35_v17  ;;  %v46_v20 = vmul.f32 %v45_v16, %v29_v18  ;;  %v205_v18 = vld [vmem:[%s301_s3] ss:$0 sm:$0xff] }
  0x7b   :  { %v252_v21 = vsub.f32 %v199_v2, %v48_v19  ;;  %v254_v22 = vsub.f32 %v195_v3, %v46_v20 }
  0x7d   :  { %v56_v23 = vmul.f32 %v252_v21, %v252_v21  ;;  %v54_v24 = vmul.f32 %v254_v22, %v254_v22 }
  0x7f   :  { %v64_v25 = vsel %vm26_vm0, %v56_v23, 0.0  ;;  %v58_v26 = vsel %vm26_vm0, %v54_v24, 0.0 }
  0x80   :  { %v38_v27 = vpop.xlane.xlu1 %37  ;;  %65 = vadd.xlane.f32.xlu0 %v64_v25  ;;  %59 = vadd.xlane.f32.xlu2 %v58_v26  ;;  %v32_v28 = vpop.xlane.xlu0 %31 }
  0x81   :  { %v49_v29 = vmul.f32 %v45_v16, %v38_v27  ;;  %v47_v30 = vmul.f32 %v45_v16, %v32_v28 }
  0x83   :  { %v262_v31 = vsub.f32 %v200_v6, %v49_v29  ;;  %v264_v32 = vsub.f32 %v196_v7, %v47_v30 }
  0x85   :  { %v57_v33 = vmul.f32 %v262_v31, %v262_v31  ;;  %v55_v34 = vmul.f32 %v264_v32, %v264_v32 }
  0x87   :  { %v67_v35 = vsel %vm26_vm0, %v57_v33, 0.0  ;;  %v61_v36 = vsel %vm26_vm0, %v55_v34, 0.0 }
  0x88   :  { %68 = vadd.xlane.f32.xlu1 %v67_v35  ;;  %62 = vadd.xlane.f32.xlu2 %v61_v36 }
  0xf3   :  { %v60_v37 = vpop.xlane.xlu2 %59  ;;  %v66_v38 = vpop.xlane.xlu0 %65 }
  0xf4   :  { %v70_v40 = vmul.f32 %v60_v37, %v45_v16  ;;  %v72_v41 = vmul.f32 %v66_v38, %v45_v16 }
  0xf6   :  { %v74_v42 = vadd.f32 1e-05, %v70_v40  ;;  %v76_v43 = vadd.f32 1e-05, %v72_v41 }
  0xf8   :  { %208 = vrsqrt.f32 %v74_v42  ;;  %vm104_vm4 = vweird.f32 %v76_v43  ;;  %vm84_vm5 = vweird.f32 %v74_v42 }
  0xf9   :  { %210 = vrsqrt.f32 %v76_v43 }
  0xfb   :  { %v69_v44 = vpop.xlane.xlu1 %68  ;;  %v63_v45 = vpop.xlane.xlu2 %62 }
  0xfc   :  { %v73_v46 = vmul.f32 %v69_v44, %v45_v16  ;;  %v71_v47 = vmul.f32 %v63_v45, %v45_v16 }
  0xfe   :  { %v209_v48 = vpop.eup %208  ;;  %v77_v49 = vadd.f32 1e-05, %v73_v46  ;;  %v75_v50 = vadd.f32 1e-05, %v71_v47 }
  0xff   :  { %v211_v51 = vpop.eup %210  ;;  %v79_v52 = vmul.f32 %v209_v48, %v74_v42  ;;  %vm85_vm3 = vweird.f32 %v209_v48 }
 0x100   :  { %v99_v53 = vmul.f32 %v211_v51, %v76_v43  ;;  %212 = vrsqrt.f32 %v77_v49  ;;  %vm105_vm2 = vweird.f32 %v211_v51  ;;  %vm86_vm7 = vmor %vm84_vm5, %vm85_vm3  ;;  %vm114_vm10 = vweird.f32 %v77_v49 }
 0x101   :  { %v80_v54 = vmul.f32 %v209_v48, %v79_v52  ;;  %214 = vrsqrt.f32 %v75_v50  ;;  %vm106_vm6 = vmor %vm104_vm4, %vm105_vm2  ;;  %vm94_vm12 = vweird.f32 %v75_v50 }
 0x102   :  { %v100_v55 = vmul.f32 %v211_v51, %v99_v53 }
 0x103   :  { %v81_v56 = vmul.f32 0.5, %v80_v54 }
 0x104   :  { %v101_v57 = vmul.f32 0.5, %v100_v55 }
 0x105   :  { %v82_v58 = vsub.f32 1.5, %v81_v56 }
 0x106   :  { %v213_v59 = vpop.eup %212  ;;  %v102_v60 = vsub.f32 1.5, %v101_v57 }
 0x107   :  { %v215_v61 = vpop.eup %214  ;;  %v109_v62 = vmul.f32 %v213_v59, %v77_v49  ;;  %v83_v63 = vmul.f32 %v209_v48, %v82_v58  ;;  %vm115_vm8 = vweird.f32 %v213_v59 }
 0x108   :  { %v103_v0 = vmul.f32 %v211_v51, %v102_v60  ;;  %v89_v1 = vmul.f32 %v215_v61, %v75_v50  ;;  %vm95_vm9 = vweird.f32 %v215_v61  ;;  %vm116_vm11 = vmor %vm114_vm10, %vm115_vm8 }
 0x109   :  { %v110_v2 = vmul.f32 %v213_v59, %v109_v62  ;;  %v87_v6 = vsel %vm86_vm7, %v209_v48, %v83_v63  ;;  %vm96_vm13 = vmor %vm94_vm12, %vm95_vm9 }
 0x10a   :  { %v90_v3 = vmul.f32 %v215_v61, %v89_v1  ;;  %v107_v4 = vsel %vm106_vm6, %v211_v51, %v103_v0  ;;  %v118_v12 = vmul.f32 %v87_v6, %v254_v22 }
 0x10b   :  { %v111_v5 = vmul.f32 0.5, %v110_v2  ;;  %v120_v9 = vmul.f32 %v107_v4, %v252_v21 }
 0x10c   :  { %v91_v7 = vmul.f32 0.5, %v90_v3  ;;  %v126_v21 = vmul.f32 %v204_v11, %v118_v12 }
 0x10d   :  { %v112_v8 = vsub.f32 1.5, %v111_v5  ;;  %v128_v19 = vmul.f32 %v204_v11, %v120_v9 }
 0x10e   :  { %v92_v10 = vsub.f32 1.5, %v91_v7  ;;  %v134_v26 = vadd.f32 %v205_v18, %v126_v21 }
 0x10f   :  { %v113_v13 = vmul.f32 %v213_v59, %v112_v8  ;;  %v136_v24 = vadd.f32 %v205_v18, %v128_v19 }
 0x110   :  { %v93_v14 = vmul.f32 %v215_v61, %v92_v10 }
 0x111   :  { %v117_v15 = vsel %vm116_vm11, %v213_v59, %v113_v13 }
 0x112   :  { %v121_v16 = vmul.f32 %v117_v15, %v262_v31  ;;  %v97_v17 = vsel %vm96_vm13, %v215_v61, %v93_v14 }
 0x113   :  { %v119_v20 = vmul.f32 %v97_v17, %v264_v32 }
 0x114   :  { %v129_v23 = vmul.f32 %v204_v11, %v121_v16 }
 0x115   :  { %v127_v22 = vmul.f32 %v204_v11, %v119_v20 }
 0x116   :  { %v137_v25 = vadd.f32 %v205_v18, %v129_v23 }
 0x117   :  { %v135_v27 = vadd.f32 %v205_v18, %v127_v22 }
 0x118   :  { %v139_v28 = vpack.c.bf16 %v137_v25, %v136_v24 }
 0x119   :  { %v138_v29 = vpack.c.bf16 %v135_v27, %v134_v26 }
 0x11a   :  { %191 = vmatmul.msk.bf16.vlgmr.msra.gmra.mxu1 %vm26_vm0, %v139_v28 }
 0x11b   :  { %190 = vmatmul.msk.bf16.vlgmr.msra.gmra.mxu0 %vm26_vm0, %v138_v29 }
 0x197   :  { %v168_v30 = vpop.f32.mrf.mxu1 }
 0x198   :  { %v163_v31 = vpop.f32.mrf.mxu0  ;;  %v175_v33 = vpack.c.bf16 %v168_v30, %v168_v30 }
 0x199   :  { %v173_v34 = vpack.c.bf16 %v163_v31, %v163_v31 }
 0x19a   :  { %180 = vst.msk [vmem:[%s303_s4 + $0x8] sm:$0xf] %vm177_vm14, %v175_v33 }
 0x19b   :  { %178 = vst.msk [vmem:[%s303_s4] sm:$0xf] %vm177_vm14, %v173_v34 }
 0x19f   :  { %v170_v32 = vpop.f32.mrf.mxu1 }
 0x1a0   :  { %v165_v35 = vpop.f32.mrf.mxu0  ;;  %v176_v36 = vpack.c.bf16 %v170_v32, %v170_v32 }
 0x1a1   :  { %v174_v37 = vpack.c.bf16 %v165_v35, %v165_v35 }
 0x1a2   :  { %181 = vst.msk [vmem:[%s303_s4 + $0xc] sm:$0xf] %vm177_vm14, %v176_v36 }
 0x1a3   :  { %179 = vst.msk [vmem:[%s303_s4 + $0x4] sm:$0xf] %vm177_vm14, %v174_v37 }

// kernel: _lambda_.38
= control target key start
LH: loop header
LB: loop body
LE: loop exit
PB: predicated region body
PF: predicated region fallthrough
CT: control target
= control target key end

     0   :  { %s709_s12 = smov 0   ;;  %s711_s13 = smov 0   ;;  %s773_s0 = inlined_call_operand.vmem [shape: bf16[2,16,16], index: 0, kind: input, shape index: {}]   ;;  %s774_s1 = inlined_call_operand.vmem [shape: bf16[2,16,16], index: 1, kind: input, shape index: {}]   ;;  %s775_s2 = inlined_call_operand.vmem [shape: bf16[2,16,16], index: 2, kind: input, shape index: {}]   ;;  %s776_s3 = inlined_call_operand.vmem [shape: bf16[2,16,16], index: 3, kind: output, shape index: {}]  }
   0x1   :  { %s713_s14 = smov 0  }
   0x2 LB: > { %s32_s15 = sadd.s32 1, %s680_s13  ;;  %p588_p0 = scmp.ge.s32.totalorder %s684_s14, 1  ;;  %s684_s14 = sphi %s713_s14, %s13_s14   ;;  %s680_s13 = sphi %s711_s13, %s778_s13   ;;  %s676_s12 = sphi %s709_s12, %s777_s12  }
   0x3   : > { %p34_p1 = scmp.ge.s32.totalorder %s32_s15, 2  ;;  %p199_p2 = scmp.lt.s32.totalorder %s684_s14, 3 }
   0x5   : > { %s780_s15 = smov (%p34_p1, %s32_s15), 0  ;;  %p200_p3 = pnand %p588_p0, %p199_p2 }
   0x6   : > { %p250_p4 = scmp.lt.s32.totalorder (!%p200_p3), %s676_s12, 1 }
   0x7   : > { %203 = sbr.rel (%p200_p3) target bundleno = 659 (0x293), region = 32 }
   0xc   : > { %s782_s12 = smov (!%p250_p4, %s676_s12), 1  ;;  %vm299_vm0 = vcmask 130048   ;;  %vm294_vm1 = vcmask 7168   ;;  %v686_v3 = vmov -inf   ;;  %v687_v10 = vmov 0  }
   0xd   : > { %s727_s16 = sshll.u32 %s782_s12, 3  ;;  %295 = vst.msk [vmem:[#allocation2] sm:$0xff] %vm294_vm1, %v686_v3  ;;  %647 = vset.pattern.permute.xlu1 %v687_v10  ;;  %648 = vset.pattern.permute.xlu0 %v687_v10  ;;  %v688_v11 = vmov 0.0   ;;  %vm455_vm2 = vcmask 125952  }
   0xe   : > { %s267_s19 = scalar_lea.vmem %s774_s1, %s727_s16  ;;  %s257_s22 = scalar_lea.vmem %s773_s0, %s727_s16  ;;  %296 = vst.msk [vmem:[#allocation2 + $0x8] sm:$0xff] %vm294_vm1, %v686_v3  ;;  %649 = vset.pattern.permute.xlu2 %v687_v10 }
   0xf   : > { %v618_v0 = vld [vmem:[%s267_s19] sm:$0xff]  ;;  %300 = vst.msk [vmem:[#allocation4] sm:$0xff] %vm299_vm0, %v688_v11  ;;  %s277_s25 = scalar_lea.vmem %s775_s2, %s727_s16  ;;  %s287_s28 = scalar_lea.vmem %s776_s3, %s727_s16 }
  0x10   : > { %v323_v1 = vsel %vm299_vm0, %v618_v0, 0  ;;  %v617_v2 = vld [vmem:[%s257_s22] sm:$0xff]  ;;  %297 = vst.msk [vmem:[#allocation3] sm:$0xff] %vm294_vm1, %v688_v11 }
  0x11   : > { %332 = vmatpush.bf16.xpose.msra.mxu0 %v323_v1  ;;  %298 = vst.msk [vmem:[#allocation3 + $0x8] sm:$0xff] %vm294_vm1, %v688_v11  ;;  %v619_v24 = vld [vmem:[%s277_s25] sm:$0xff] }
  0x12   : > { %301 = vst.msk [vmem:[#allocation4 + $0x8] sm:$0xff] %vm299_vm0, %v688_v11  ;;  %419 = vmatpush.bf16.msra.mxu1 %v619_v24 }
  0x14   : > { %v341_v12 = vld [vmem:[#allocation2] sm:$0xff] }
  0x15   : > { %v342_v17 = vld [vmem:[#allocation2 + $0x8] sm:$0xff] }
  0x16   : > { %v388_v45 = vld [vmem:[#allocation4] sm:$0xff] }
  0x17   : > { %v373_v36 = vld [vmem:[#allocation3] sm:$0xff] }
  0x18   : > { %605 = vmatmul.msk.bf16.vlgmr.msra.gmra.mxu0 %vm299_vm0, %v617_v2  ;;  %v374_v40 = vld [vmem:[#allocation3 + $0x8] sm:$0xff] }
  0x19   : > { %v389_v52 = vld [vmem:[#allocation4 + $0x8] sm:$0xff] }
  0x95   : > { %v334_v4 = vpop.f32.mrf.mxu0 }
  0x96   : > { %v339_v5 = vmul.f32 0.25, %v334_v4 }
  0x98   : > { %v343_v6 = vsel %vm299_vm0, %v339_v5, -inf }
  0x99   : > { %344 = vmax.xlane.f32.xlu0 %v343_v6 }
  0x9d   : > { %v336_v7 = vpop.f32.mrf.mxu0 }
  0x9e   : > { %v340_v8 = vmul.f32 0.25, %v336_v7 }
  0xa0   : > { %v346_v9 = vsel %vm299_vm0, %v340_v8, -inf }
  0xa1   : > { %347 = vmax.xlane.f32.xlu0 %v346_v9 }
 0x10c   : > { %v345_v13 = vpop.xlane.xlu0 %344 }
 0x10d   : > { %v349_v14 = vmax.f32 %v341_v12, %v345_v13 }
 0x10f   : > { %v351_v15 = vsub.f32 %v341_v12, %v349_v14  ;;  %430 = vst.msk [vmem:[#allocation2] sm:$0xff] %vm294_vm1, %v349_v14  ;;  %359 = vperm.xlu1 %647, %v349_v14  }
 0x111   : > { %v353_v16 = vmul.f32 1.442695, %v351_v15 }
 0x113   : > { %650 = vpow2.f32 %v353_v16 }
 0x114   : > { %v348_v18 = vpop.xlane.xlu0 %347 }
 0x115   : > { %v350_v19 = vmax.f32 %v342_v17, %v348_v18 }
 0x117   : > { %v352_v20 = vsub.f32 %v342_v17, %v350_v19  ;;  %431 = vst.msk [vmem:[#allocation2 + $0x8] sm:$0xff] %vm294_vm1, %v350_v19  ;;  %364 = vperm.xlu1 %647, %v350_v19  }
 0x119   : > { %v651_v21 = vpop.eup %650  ;;  %v355_v22 = vmul.f32 1.442695, %v352_v20 }
 0x11a   : > { %392 = vperm.xlu0 %648, %v651_v21   ;;  %v375_v37 = vmul.f32 %v651_v21, %v373_v36 }
 0x11b   : > { %652 = vpow2.f32 %v355_v22 }
 0x121   : > { %v653_v23 = vpop.eup %652 }
 0x122   : > { %397 = vperm.xlu1 %647, %v653_v23   ;;  %v376_v41 = vmul.f32 %v653_v23, %v374_v40 }
 0x181   : > { %v360_v25 = vpop.permute.xlu1 %359 }
 0x182   : > { %v367_v26 = vsub.f32 %v339_v5, %v360_v25 }
 0x184   : > { %v369_v27 = vmul.f32 1.442695, %v367_v26 }
 0x186   : > { %654 = vpow2.f32 %v369_v27 }
 0x189   : > { %v365_v28 = vpop.permute.xlu1 %364 }
 0x18a   : > { %v368_v29 = vsub.f32 %v340_v8, %v365_v28 }
 0x18c   : > { %v655_v30 = vpop.eup %654  ;;  %v371_v31 = vmul.f32 1.442695, %v368_v29  ;;  %v393_v46 = vpop.permute.xlu0 %392 }
 0x18d   : > { %v377_v32 = vsel %vm299_vm0, %v655_v30, 0.0  ;;  %v400_v48 = vmul.f32 %v393_v46, %v388_v45 }
 0x18e   : > { %656 = vpow2.f32 %v371_v31  ;;  %378 = vadd.xlane.f32.xlu2 %v377_v32 }
 0x194   : > { %v657_v33 = vpop.eup %656  ;;  %v398_v53 = vpop.permute.xlu1 %397 }
 0x195   : > { %v380_v34 = vsel %vm299_vm0, %v657_v33, 0.0  ;;  %v402_v35 = vpack.c.bf16 %v657_v33, %v655_v30  ;;  %v401_v55 = vmul.f32 %v398_v53, %v389_v52 }
 0x196   : > { %381 = vadd.xlane.f32.xlu2 %v380_v34 }
 0x197   : > { %610 = vmatmul.msk.bf16.vlgmr.msra.gmra.mxu1 %vm299_vm0, %v402_v35 }
 0x201   : > { %v379_v38 = vpop.xlane.xlu2 %378 }
 0x202   : > { %v383_v39 = vadd.f32 %v379_v38, %v375_v37 }
 0x204   : > { %386 = vst.msk [vmem:[#allocation3] sm:$0xff] %vm294_vm1, %v383_v39 }
 0x209   : > { %v382_v42 = vpop.xlane.xlu2 %381 }
 0x20a   : > { %v384_v43 = vadd.f32 %v382_v42, %v376_v41 }
 0x20b   : > { %v437_v44 = vld [vmem:[#allocation3] sm:$0xff] }
 0x20c   : > { %387 = vst.msk [vmem:[#allocation3 + $0x8] sm:$0xff] %vm294_vm1, %v384_v43  ;;  %658 = vrcp.f32 %v437_v44 }
 0x212   : > { %v659_v47 = vpop.eup %658 }
 0x213   : > { %443 = vperm.xlu2 %649, %v659_v47   ;;  %v438_v49 = vld [vmem:[#allocation3 + $0x8] sm:$0xff] }
 0x214   : > { %v421_v50 = vpop.f32.mrf.mxu1  ;;  %660 = vrcp.f32 %v438_v49 }
 0x215   : > { %v426_v51 = vadd.f32 %v421_v50, %v400_v48 }
 0x217   : > { %428 = vst.msk [vmem:[#allocation4] sm:$0xff] %vm299_vm0, %v426_v51 }
 0x21a   : > { %v661_v54 = vpop.eup %660 }
 0x21b   : > { %448 = vperm.xlu1 %647, %v661_v54  }
 0x21c   : > { %v423_v56 = vpop.f32.mrf.mxu1 }
 0x21d   : > { %v427_v57 = vadd.f32 %v423_v56, %v401_v55 }
 0x21e   : > { %v435_v59 = vld [vmem:[#allocation4] sm:$0xff] }
 0x21f   : > { %429 = vst.msk [vmem:[#allocation4 + $0x8] sm:$0xff] %vm299_vm0, %v427_v57 }
 0x226   : > { %v436_v62 = vld [vmem:[#allocation4 + $0x8] sm:$0xff] }
 0x26d   : > { %v444_v58 = vpop.permute.xlu2 %443 }
 0x26e   : > { %v451_v60 = vmul.f32 %v444_v58, %v435_v59 }
 0x270   : > { %v453_v61 = vpack.c.bf16 %v451_v60, %v451_v60 }
 0x272   : > { %456 = vst.msk [vmem:[%s287_s28] sm:$0xf] %vm455_vm2, %v453_v61 }
 0x28d   : > { %v449_v63 = vpop.permute.xlu1 %448 }
 0x28e   : > { %v452_v0 = vmul.f32 %v449_v63, %v436_v62 }
 0x290   : > { %v454_v1 = vpack.c.bf16 %v452_v0, %v452_v0 }
 0x292   : > { %457 = vst.msk [vmem:[%s287_s28 + $0x4] sm:$0xf] %vm455_vm2, %v454_v1 }
 0x293 PF: > { %s13_s14 = sadd.s32 1, %s684_s14   ;;  %s777_s12 = smov %s680_s13 }
 0x294   : > { %p10_p5 = scmp.ge.s32.totalorder %s13_s14, 4   ;;  %s778_s13 = smov %s780_s15 }
 0x296   :  { %12 = sbr.rel (!%p10_p5) target bundleno = 2 (0x2), region = 76 }

// kernel: _lambda_.32
= control target key start
LH: loop header
LB: loop body
LE: loop exit
PB: predicated region body
PF: predicated region fallthrough
CT: control target
= control target key end

     0   :  { %s1023_s12 = smov 0   ;;  %s1025_s13 = smov 0   ;;  %s1159_s0 = inlined_call_operand.vmem [shape: bf16[2,44,16], index: 0, kind: input, shape index: {}]   ;;  %s1160_s1 = inlined_call_operand.vmem [shape: bf16[9,16,16], index: 1, kind: input, shape index: {}]   ;;  %s1161_s2 = inlined_call_operand.vmem [shape: f32[1,16], index: 2, kind: input, shape index: {}]   ;;  %s1162_s3 = inlined_call_operand.vmem [shape: bf16[2,24,16], index: 3, kind: output, shape index: {}]  }
   0x1   :  { %s1027_s14 = smov 0  }
   0x2 LB: > { %s32_s15 = sadd.s32 1, %s996_s13  ;;  %p856_p0 = scmp.ge.s32.totalorder %s1000_s14, 1  ;;  %s1000_s14 = sphi %s1027_s14, %s13_s14   ;;  %s996_s13 = sphi %s1025_s13, %s1164_s13   ;;  %s992_s12 = sphi %s1023_s12, %s1163_s12  }
   0x3   : > { %p34_p1 = scmp.ge.s32.totalorder %s32_s15, 2  ;;  %p187_p2 = scmp.lt.s32.totalorder %s1000_s14, 3 }
   0x5   : > { %s1166_s15 = smov (%p34_p1, %s32_s15), 0  ;;  %p188_p3 = pnand %p856_p0, %p187_p2 }
   0x6   : > { %p228_p4 = scmp.lt.s32.totalorder (!%p188_p3), %s992_s12, 1 }
   0x7   : > { %191 = sbr.rel (%p188_p3) target bundleno = 241 (0xf1), region = 32 }
   0xc   : > { %v932_v0 = vld [vmem:[%s1160_s1 + $0x8] sm:$0xff]  ;;  %v931_v1 = vld [vmem:[%s1160_s1] sm:$0xff]  ;;  %v933_v2 = vld [vmem:[%s1160_s1 + $0x10] sm:$0xff]  ;;  %s1168_s12 = smov (!%p228_p4, %s992_s12), 1  ;;  %vm368_vm0 = vcmask 1046528   ;;  %vm261_vm2 = vcmask 130048  }
   0xd   : > { %v934_v3 = vld [vmem:[%s1160_s1 + $0x18] sm:$0xff]  ;;  %v935_v4 = vld [vmem:[%s1160_s1 + $0x20] sm:$0xff]  ;;  %320 = vmatpush.bf16.msra.mxu0 %v932_v0  ;;  %949 = vmatpush.bf16.msra.mxu1 %v932_v0  ;;  %v937_v5 = vld [vmem:[%s1160_s1 + $0x30] sm:$0xff]  ;;  %s950_s30 = smul.u32 24, %s1168_s12  ;;  %vm284_vm1 = vsmask.f32 7424 }
   0xe   : > { %v938_v6 = vld [vmem:[%s1160_s1 + $0x38] sm:$0xff]  ;;  %391 = vmatpush.bf16.msra.mxu2 %v933_v2  ;;  %439 = vmatpush.bf16.msra.mxu3 %v934_v3  ;;  %vm416_vm3 = vcmask 1044480   ;;  %v936_v36 = vld [vmem:[%s1160_s1 + $0x28] sm:$0xff]  ;;  %v939_v37 = vld [vmem:[%s1160_s1 + $0x40] sm:$0xff]  ;;  %vm460_vm4 = vsmask.f32 4352 }
   0xf   : > { %s1068_s6 = scalar_lea.vmem %s1159_s0, %s950_s30  ;;  %vm566_vm5 = vcmask 1045504   ;;  %vm610_vm6 = vsmask.f32 5376  ;;  %s951_s17 = smul.u32 12, %s1168_s12  ;;  %vm729_vm7 = vcmask 125952  }
  0x10   : > { %v1071_v7 = vld [vmem:[%s1068_s6] sm:$0xff]   ;;  %v1074_v8 = vld [vmem:[%s1068_s6 + $0x8] sm:$0xff]   ;;  %v603_v51 = vld [vmem:[%s1068_s6 + $0x10] sm:$0x7] }
  0x11   : > { %350 = vmatpush.bf16.msrb.mxu1 %v931_v1  ;;  %497 = vmatpush.bf16.msrb.mxu0 %v935_v4  ;;  %v270_v9 = vld [vmem:[%s1068_s6 + $0xc] sm:$0x1]  ;;  %v1078_v10 = vunpack.c.l.b16 %v1074_v8  ;;  %v286_v12 = vshrl.u32 %v1071_v7, 16  ;;  %v288_v13 = vshll.u32 %v1071_v7, 16  ;;  %v361_v14 = vld [vmem:[%s1068_s6] sm:$0xe]  ;;  %v1085_v16 = vunpack.c.h.b16 %v1071_v7  ;;  %s255_s20 = scalar_lea.vmem %s1162_s3, %s951_s17 }
  0x12   : > { %589 = vmatpush.bf16.msrb.mxu2 %v937_v5  ;;  %647 = vmatpush.bf16.msrb.mxu3 %v938_v6  ;;  %v281_v11 = vunpack.c.l.b16 %v270_v9  ;;  %v405_v15 = vld [vmem:[%s1068_s6] sm:$0x8]  ;;  %v366_v17 = vunpack.c.l.b16 %v361_v14  ;;  %v406_v18 = vld [vmem:[%s1068_s6 + $0xc] sm:$0x7]  ;;  %v458_v23 = vunpack.c.h.b16 %v1074_v8  ;;  %v470_v43 = vshrl.u32 %v1074_v8, 16 }
  0x13   : > { %v412_v19 = vunpack.c.l.b16 %v405_v15  ;;  %v290_v21 = vrot.slane %v288_v13, 1  ;;  %v413_v22 = vunpack.c.l.b16 %v406_v18  ;;  %v473_v44 = vshll.u32 %v1074_v8, 16  ;;  %v549_v49 = vld [vmem:[%s1068_s6 + $0x4] sm:$0xc]  ;;  %v948_v50 = vld [vmem:[%s1068_s6 + $0x8] sm:$0xff]  }
  0x14   : > { %v283_v20 = vpack.c.b16 %v281_v11, %v1078_v10  ;;  %v367_v24 = vpack.c.b16 %v1085_v16, %v366_v17  ;;  %v472_v47 = vrot.slane %v470_v43, 3  ;;  %v946_v54 = vunpack.c.l.b16 %v948_v50  ;;  %v552_v59 = vld [vmem:[%s1068_s6 + $0x10] sm:$0x3]  ;;  %v661_v18 = vld [vmem:[%s1068_s6 + $0x4] sm:$0x8] }
  0x15   : > { %v414_v25 = vpack.c.b16 %v1085_v16, %v412_v19  ;;  %v291_v26 = vor.u32 %v290_v21, %v286_v12  ;;  %v415_v31 = vpack.c.b16 %v413_v22, %v1078_v10  ;;  %v475_v48 = vrot.slane %v473_v44, 4 }
  0x16   : > { %v293_v27 = vshll.u32 %v283_v20, 16  ;;  %v297_v28 = vshrl.u32 %v283_v20, 16  ;;  %v370_v29 = vrot.slane %v283_v20, 1  ;;  %v369_v30 = vrot.slane %v367_v24, 1 }
  0x17   : > { %v417_v32 = vrot.slane %v414_v25, 3  ;;  %v418_v35 = vrot.slane %v415_v31, 3  ;;  %v462_v41 = vshrl.u32 %v414_v25, 16  ;;  %v465_v42 = vshll.u32 %v414_v25, 16 }
  0x18   : > { %v295_v33 = vrot.slane %v293_v27, 1  ;;  %v371_v34 = vsel %vm368_vm0, %v369_v30, %v370_v29  ;;  %v476_v53 = vor.u32 %v475_v48, %v472_v47  ;;  %v947_v55 = vunpack.c.h.b16 %v948_v50 }
  0x19   : > { %879 = vmatmul.msk.bf16.vlgmr.msra.gmra.mxu2 %vm261_vm2, %v371_v34  ;;  %v419_v40 = vsel %vm416_vm3, %v417_v32, %v418_v35  ;;  %v464_v45 = vrot.slane %v462_v41, 3  ;;  %v467_v46 = vrot.slane %v465_v42, 4  ;;  %v560_v56 = vunpack.c.l.b16 %v549_v49 }
  0x1a   : > { %v296_v38 = vsel %vm284_vm1, %v291_v26, %v295_v33  ;;  %v299_v39 = vor.u32 %v297_v28, %v295_v33  ;;  %887 = vmatmul.msk.bf16.vlgmr.msra.gmra.mxu3 %vm261_vm2, %v419_v40  ;;  %v608_v57 = vunpack.c.l.b16 %v603_v51  ;;  %v563_v62 = vunpack.c.l.b16 %v552_v59 }
  0x1b   : > { %865 = vmatmul.msk.bf16.vlgmr.msra.gmra.mxu0 %vm261_vm2, %v296_v38  ;;  %v468_v52 = vor.u32 %v467_v46, %v464_v45  ;;  %v564_v60 = vpack.c.b16 %v946_v54, %v560_v56  ;;  %v666_v19 = vunpack.c.l.b16 %v661_v18  ;;  %v514_v25 = vpack.c.b16 %v1078_v10, %v1085_v16 }
  0x1c   : > { %866 = vmatmul.msk.bf16.vlgmr.msra.gmra.mxu1 %vm261_vm2, %v299_v39  ;;  %690 = vmatpush.bf16.msra.mxu0 %v939_v37  ;;  %v609_v61 = vpack.c.b16 %v608_v57, %v947_v55  ;;  %v565_v3 = vpack.c.b16 %v563_v62, %v947_v55  ;;  %v515_v26 = vpack.c.b16 %v458_v23, %v458_v23 }
  0x1d   : > { %535 = vmatpush.bf16.msra.mxu1 %v936_v36  ;;  %v477_v58 = vsel %vm460_vm4, %v468_v52, %v476_v53  ;;  %v612_v63 = vshrl.u32 %v564_v60, 16  ;;  %v615_v0 = vshll.u32 %v564_v60, 16  ;;  %v567_v11 = vrot.slane %v564_v60, 2 }
  0x1e   : > { %v620_v1 = vshrl.u32 %v609_v61, 16  ;;  %v623_v2 = vshll.u32 %v609_v61, 16  ;;  %v568_v12 = vrot.slane %v565_v3, 2  ;;  %v667_v20 = vpack.c.b16 %v946_v54, %v666_v19 }
  0x1f   : > { %v614_v4 = vrot.slane %v612_v63, 2  ;;  %v617_v5 = vrot.slane %v615_v0, 3  ;;  %v669_v22 = vrot.slane %v609_v61, 3 }
  0x20   : > { %v622_v6 = vrot.slane %v620_v1, 2  ;;  %v625_v9 = vrot.slane %v623_v2, 3  ;;  %v569_v15 = vsel %vm566_vm5, %v567_v11, %v568_v12  ;;  %v668_v21 = vrot.slane %v667_v20, 3 }
  0x21   : > { %v618_v13 = vor.u32 %v617_v5, %v614_v4 }
  0x22   : > { %v626_v14 = vor.u32 %v625_v9, %v622_v6  ;;  %v670_v24 = vsel %vm416_vm3, %v668_v21, %v669_v22 }
  0x24   : > { %v627_v17 = vsel %vm610_vm6, %v618_v13, %v626_v14 }
  0x29   : > { %880 = vmatmul.msk.bf16.gmra.mxu2 %vm261_vm2, %v370_v29 }
  0x2a   : > { %888 = vmatmul.msk.bf16.gmra.mxu3 %vm261_vm2, %v418_v35  ;;  %v1002_v35 = vmov 0.0  }
  0x2b   : > { %895 = vmatmul.msk.bf16.vlgmr.msrb.gmra.mxu0 %vm261_vm2, %v477_v58  ;;  %262 = vst.msk [vmem:[#allocation2] sm:$0xff] %vm261_vm2, %v1002_v35 }
  0x2c   : > { %871 = vmatmul.msk.bf16.vlgmr.msrb.gmra.mxu1 %vm261_vm2, %v1071_v7  ;;  %v331_v7 = vpack.c.b16 %v1078_v10, %v1078_v10  ;;  %263 = vst.msk [vmem:[#allocation2 + $0x8] sm:$0xff] %vm261_vm2, %v1002_v35 }
  0x2d   : > { %264 = vst.msk [vmem:[#allocation2 + $0x10] sm:$0xff] %vm261_vm2, %v1002_v35 }
  0x32   : > { %v704_v62 = vld [vmem:[#allocation2] sm:$0xff] }
  0x39   : > { %911 = vmatmul.msk.bf16.vlgmr.msrb.gmra.mxu2 %vm261_vm2, %v569_v15 }
  0x3a   : > { %919 = vmatmul.msk.bf16.vlgmr.msrb.gmra.mxu3 %vm261_vm2, %v627_v17 }
  0x3b   : > { %896 = vmatmul.msk.bf16.gmra.mxu0 %vm261_vm2, %v476_v53 }
  0x3c   : > { %872 = vmatmul.msk.bf16.gmra.mxu1 %vm261_vm2, %v331_v7  ;;  %v977_v7 = vld [vmem:[%s1161_s2] ss:$0 sm:$0xff] }
  0x49   : > { %912 = vmatmul.msk.bf16.gmra.mxu2 %vm261_vm2, %v568_v12 }
  0x4a   : > { %920 = vmatmul.msk.bf16.gmra.mxu3 %vm261_vm2, %v626_v14  ;;  %v705_v14 = vld [vmem:[#allocation2 + $0x8] sm:$0xff] }
  0x4b   : > { %927 = vmatmul.msk.bf16.vlgmr.msra.gmra.mxu0 %vm261_vm2, %v670_v24 }
  0x4c   : > { %903 = vmatmul.msk.bf16.vlgmr.msra.gmra.mxu1 %vm261_vm2, %v514_v25 }
  0x5b   : > { %928 = vmatmul.msk.bf16.gmra.mxu0 %vm261_vm2, %v669_v22 }
  0x5c   : > { %904 = vmatmul.msk.bf16.gmra.mxu1 %vm261_vm2, %v515_v26 }
  0x98   : > { %v322_v27 = vpop.f32.mrf.mxu0 }
  0x99   : > { %v327_v28 = vpop.f32.mrf.mxu1 }
  0x9c   : > { %v393_v29 = vpop.f32.mrf.mxu2 }
  0x9d   : > { %v441_v10 = vpop.f32.mrf.mxu3 }
  0xa0   : > { %v324_v16 = vpop.f32.mrf.mxu0 }
  0xa1   : > { %v329_v30 = vpop.f32.mrf.mxu1 }
  0xa4   : > { %v395_v31 = vpop.f32.mrf.mxu2 }
  0xa5   : > { %v443_v32 = vpop.f32.mrf.mxu3 }
  0xa8   : > { %v499_v33 = vpop.f32.mrf.mxu0 }
  0xa9   : > { %v352_v34 = vpop.f32.mrf.mxu1 }
  0xaa   : > { %v353_v42 = vadd.f32 %v352_v34, %v322_v27 }
  0xac   : > { %v398_v8 = vpop.f32.mrf.mxu2  ;;  %v402_v45 = vadd.f32 %v393_v29, %v353_v42  ;;  %v706_v29 = vld [vmem:[#allocation2 + $0x10] sm:$0xff] }
  0xad   : > { %v446_v23 = vpop.f32.mrf.mxu3 }
  0xae   : > { %v450_v49 = vadd.f32 %v441_v10, %v402_v45 }
  0xb0   : > { %v501_v36 = vpop.f32.mrf.mxu0  ;;  %v508_v54 = vadd.f32 %v499_v33, %v450_v49 }
  0xb1   : > { %v354_v37 = vpop.f32.mrf.mxu1 }
  0xb2   : > { %v355_v48 = vadd.f32 %v354_v37, %v324_v16 }
  0xb4   : > { %v400_v38 = vpop.f32.mrf.mxu2  ;;  %v403_v52 = vadd.f32 %v395_v31, %v355_v48 }
  0xb5   : > { %v448_v39 = vpop.f32.mrf.mxu3 }
  0xb6   : > { %v451_v59 = vadd.f32 %v443_v32, %v403_v52 }
  0xb8   : > { %v504_v40 = vpop.f32.mrf.mxu0  ;;  %v509_v3 = vadd.f32 %v501_v36, %v451_v59 }
  0xb9   : > { %v357_v41 = vpop.f32.mrf.mxu1 }
  0xba   : > { %v358_v57 = vadd.f32 %v357_v41, %v327_v28 }
  0xbc   : > { %v591_v43 = vpop.f32.mrf.mxu2  ;;  %v404_v0 = vadd.f32 %v398_v8, %v358_v57 }
  0xbd   : > { %v649_v44 = vpop.f32.mrf.mxu3 }
  0xbe   : > { %v452_v11 = vadd.f32 %v446_v23, %v404_v0 }
  0xc0   : > { %v506_v46 = vpop.f32.mrf.mxu0  ;;  %v510_v19 = vadd.f32 %v504_v40, %v452_v11 }
  0xc1   : > { %v359_v47 = vpop.f32.mrf.mxu1 }
  0xc4   : > { %v593_v50 = vpop.f32.mrf.mxu2 }
  0xc5   : > { %v651_v51 = vpop.f32.mrf.mxu3 }
  0xc8   : > { %v692_v53 = vpop.f32.mrf.mxu0 }
  0xc9   : > { %v537_v55 = vpop.f32.mrf.mxu1 }
  0xca   : > { %v546_v56 = vadd.f32 %v537_v55, %v508_v54 }
  0xcc   : > { %v600_v58 = vadd.f32 %v591_v43, %v546_v56  ;;  %v596_v60 = vpop.f32.mrf.mxu2 }
  0xcd   : > { %v654_v63 = vpop.f32.mrf.mxu3 }
  0xce   : > { %v658_v61 = vadd.f32 %v649_v44, %v600_v58 }
  0xd0   : > { %v701_v1 = vadd.f32 %v692_v53, %v658_v61  ;;  %v694_v2 = vpop.f32.mrf.mxu0 }
  0xd1   : > { %v539_v4 = vpop.f32.mrf.mxu1 }
  0xd2   : > { %v707_v5 = vadd.f32 %v704_v62, %v701_v1  ;;  %v547_v6 = vadd.f32 %v539_v4, %v509_v3 }
  0xd4   : > { %710 = vst.msk [vmem:[#allocation2] sm:$0xff] %vm261_vm2, %v707_v5  ;;  %v601_v9 = vadd.f32 %v593_v50, %v547_v6  ;;  %v598_v12 = vpop.f32.mrf.mxu2 }
  0xd5   : > { %v656_v15 = vpop.f32.mrf.mxu3 }
  0xd6   : > { %v659_v13 = vadd.f32 %v651_v51, %v601_v9 }
  0xd8   : > { %v702_v17 = vadd.f32 %v694_v2, %v659_v13  ;;  %v697_v18 = vpop.f32.mrf.mxu0 }
  0xd9   : > { %v542_v20 = vpop.f32.mrf.mxu1 }
  0xda   : > { %v708_v21 = vadd.f32 %v705_v14, %v702_v17  ;;  %v548_v22 = vadd.f32 %v542_v20, %v510_v19 }
  0xdb   : > { %v716_v24 = vld [vmem:[#allocation2] sm:$0xff] }
  0xdc   : > { %v723_v25 = vadd.f32 %v977_v7, %v716_v24  ;;  %711 = vst.msk [vmem:[#allocation2 + $0x8] sm:$0xff] %vm261_vm2, %v708_v21  ;;  %v602_v26 = vadd.f32 %v596_v60, %v548_v22 }
  0xde   : > { %v726_v27 = vpack.c.bf16 %v723_v25, %v723_v25  ;;  %v660_v28 = vadd.f32 %v654_v63, %v602_v26 }
  0xe0   : > { %730 = vst.msk [vmem:[%s255_s20] sm:$0xf] %vm729_vm7, %v726_v27  ;;  %v703_v10 = vadd.f32 %v697_v18, %v660_v28  ;;  %v699_v16 = vpop.f32.mrf.mxu0 }
  0xe1   : > { %v544_v30 = vpop.f32.mrf.mxu1 }
  0xe2   : > { %v709_v31 = vadd.f32 %v706_v29, %v703_v10 }
  0xe3   : > { %v717_v32 = vld [vmem:[#allocation2 + $0x8] sm:$0xff] }
  0xe4   : > { %v724_v33 = vadd.f32 %v977_v7, %v717_v32  ;;  %712 = vst.msk [vmem:[#allocation2 + $0x10] sm:$0xff] %vm261_vm2, %v709_v31 }
  0xe6   : > { %v727_v34 = vpack.c.bf16 %v724_v33, %v724_v33 }
  0xe8   : > { %731 = vst.msk [vmem:[%s255_s20 + $0x4] sm:$0xf] %vm729_vm7, %v727_v34 }
  0xeb   : > { %v718_v35 = vld [vmem:[#allocation2 + $0x10] sm:$0xff] }
  0xec   : > { %v725_v8 = vadd.f32 %v977_v7, %v718_v35 }
  0xee   : > { %v728_v23 = vpack.c.bf16 %v725_v8, %v725_v8 }
  0xf0   : > { %732 = vst.msk [vmem:[%s255_s20 + $0x8] sm:$0xf] %vm729_vm7, %v728_v23 }
  0xf1 PF: > { %s13_s14 = sadd.s32 1, %s1000_s14   ;;  %s1163_s12 = smov %s996_s13 }
  0xf2   : > { %p10_p5 = scmp.ge.s32.totalorder %s13_s14, 4   ;;  %s1164_s13 = smov %s1166_s15 }
  0xf4   :  { %12 = sbr.rel (!%p10_p5) target bundleno = 2 (0x2), region = 84 }

// kernel: _lambda_.39
= control target key start
LH: loop header
LB: loop body
LE: loop exit
PB: predicated region body
PF: predicated region fallthrough
CT: control target
= control target key end

     0   :  { %vm19_vm0 = vcmask 130048   ;;  %v144_v1 = vmov 0.0   ;;  %vm107_vm1 = vcmask 125952   ;;  %s206_s1 = inlined_call_operand.vmem [shape: bf16[16,16], index: 1, kind: input, shape index: {}]   ;;  %s207_s0 = inlined_call_operand.vmem [shape: bf16[32,16], index: 0, kind: input, shape index: {}]   ;;  %s208_s2 = inlined_call_operand.vmem [shape: bf16[32,16], index: 2, kind: input, shape index: {}]   ;;  %s209_s3 = inlined_call_operand.vmem [shape: bf16[32,16], index: 3, kind: output, shape index: {}]  }
   0x1   :  { %v132_v0 = vld [vmem:[%s206_s1] sm:$0xff]  ;;  %20 = vst.msk [vmem:[#allocation2] sm:$0xff] %vm19_vm0, %v144_v1  ;;  %v131_v3 = vld [vmem:[%s207_s0 + $0x8] sm:$0xff] }
   0x2   :  { %v130_v2 = vld [vmem:[%s207_s0] sm:$0xff]  ;;  %21 = vst.msk [vmem:[#allocation2 + $0x8] sm:$0xff] %vm19_vm0, %v144_v1  ;;  %64 = vmatpush.bf16.msra.mxu0 %v132_v0  ;;  %142 = vmatpush.bf16.msra.mxu1 %v132_v0  ;;  %v141_v11 = vld [vmem:[%s208_s2 + $0x8] sm:$0xff]  }
   0x3   :  { %22 = vst.msk [vmem:[#allocation2 + $0x10] sm:$0xff] %vm19_vm0, %v144_v1  ;;  %v134_v10 = vld [vmem:[%s208_s2] sm:$0xff]   ;;  %v139_v15 = vunpack.c.l.bf16 %v141_v11  ;;  %v140_v27 = vunpack.c.h.bf16 %v141_v11 }
   0x4   :  { %23 = vst.msk [vmem:[#allocation2 + $0x18] sm:$0xff] %vm19_vm0, %v144_v1  ;;  %v135_v14 = vunpack.c.l.bf16 %v134_v10  ;;  %v136_v26 = vunpack.c.h.bf16 %v134_v10 }
   0x5   :  { %128 = vmatmul.msk.bf16.vlgmr.msra.gmra.mxu0 %vm19_vm0, %v130_v2  ;;  %129 = vmatmul.msk.bf16.vlgmr.msra.gmra.mxu1 %vm19_vm0, %v131_v3 }
   0x8   :  { %v24_v4 = vld [vmem:[#allocation2] sm:$0xff] }
   0x9   :  { %v25_v12 = vld [vmem:[#allocation2 + $0x8] sm:$0xff] }
   0xa   :  { %v26_v5 = vld [vmem:[#allocation2 + $0x10] sm:$0xff] }
   0xb   :  { %v27_v13 = vld [vmem:[#allocation2 + $0x18] sm:$0xff] }
  0x82   :  { %v66_v6 = vpop.f32.mrf.mxu0  ;;  %v71_v7 = vpop.f32.mrf.mxu1 }
  0x83   :  { %v76_v8 = vadd.f32 %v66_v6, %v24_v4  ;;  %v78_v9 = vadd.f32 %v71_v7, %v26_v5 }
  0x85   :  { %80 = vst.msk [vmem:[#allocation2] sm:$0xff] %vm19_vm0, %v76_v8 }
  0x86   :  { %82 = vst.msk [vmem:[#allocation2 + $0x10] sm:$0xff] %vm19_vm0, %v78_v9 }
  0x8a   :  { %v68_v16 = vpop.f32.mrf.mxu0  ;;  %v73_v17 = vpop.f32.mrf.mxu1 }
  0x8b   :  { %v77_v18 = vadd.f32 %v68_v16, %v25_v12  ;;  %v79_v19 = vadd.f32 %v73_v17, %v27_v13 }
  0x8c   :  { %v87_v20 = vld [vmem:[#allocation2] sm:$0xff] }
  0x8d   :  { %v99_v21 = vadd.f32 %v135_v14, %v87_v20  ;;  %v89_v22 = vld [vmem:[#allocation2 + $0x10] sm:$0xff]  ;;  %81 = vst.msk [vmem:[#allocation2 + $0x8] sm:$0xff] %vm19_vm0, %v77_v18 }
  0x8e   :  { %v101_v23 = vadd.f32 %v139_v15, %v89_v22  ;;  %83 = vst.msk [vmem:[#allocation2 + $0x18] sm:$0xff] %vm19_vm0, %v79_v19 }
  0x8f   :  { %v103_v24 = vpack.c.bf16 %v99_v21, %v99_v21 }
  0x90   :  { %v105_v25 = vpack.c.bf16 %v101_v23, %v101_v23 }
  0x91   :  { %108 = vst.msk [vmem:[%s209_s3] sm:$0xf] %vm107_vm1, %v103_v24 }
  0x92   :  { %110 = vst.msk [vmem:[%s209_s3 + $0x8] sm:$0xf] %vm107_vm1, %v105_v25 }
  0x94   :  { %v88_v28 = vld [vmem:[#allocation2 + $0x8] sm:$0xff] }
  0x95   :  { %v100_v29 = vadd.f32 %v136_v26, %v88_v28  ;;  %v90_v30 = vld [vmem:[#allocation2 + $0x18] sm:$0xff] }
  0x96   :  { %v102_v31 = vadd.f32 %v140_v27, %v90_v30 }
  0x97   :  { %v104_v32 = vpack.c.bf16 %v100_v29, %v100_v29 }
  0x98   :  { %v106_v33 = vpack.c.bf16 %v102_v31, %v102_v31 }
  0x99   :  { %109 = vst.msk [vmem:[%s209_s3 + $0x4] sm:$0xf] %vm107_vm1, %v104_v32 }
  0x9a   :  { %111 = vst.msk [vmem:[%s209_s3 + $0xc] sm:$0xf] %vm107_vm1, %v106_v33 }

// kernel: _lambda_.53
= control target key start
LH: loop header
LB: loop body
LE: loop exit
PB: predicated region body
PF: predicated region fallthrough
CT: control target
= control target key end

     0   :  { %s722_s15 = smov 0   ;;  %s1020_s0 = inlined_call_operand.vmem [shape: bf16[2,64,16], index: 0, kind: input, shape index: {}]   ;;  %s1021_s1 = inlined_call_operand.vmem [shape: f32[1,16], index: 1, kind: input, shape index: {}]   ;;  %s1022_s2 = inlined_call_operand.vmem [shape: f32[1,16], index: 2, kind: input, shape index: {}]   ;;  %s1023_s3 = inlined_call_operand.vmem [shape: f32[16,16], index: 3, kind: input, shape index: {}]   ;;  %s1024_s4 = inlined_call_operand.vmem [shape: bf16[2,64,16], index: 4, kind: output, shape index: {}]  }
   0x1 LB: > { %s603_s16 = sadd.s32 4294967295, %s695_s15   ;;  %p607_p0 = scmp.ge.s32.totalorder %s695_s15, 1  ;;  %s695_s15 = sphi %s722_s15, %s14_s15  }
   0x2   : > { %p162_p1 = scmp.lt.s32.totalorder %s695_s15, 3 }
   0x4   : > { %p163_p2 = pnand %p607_p0, %p162_p1 }
   0x5   : > { %p188_p3 = scmp.lt.s32.totalorder (!%p163_p2), %s603_s16, 1 }
   0x6   : > { %166 = sbr.rel (%p163_p2) target bundleno = 258 (0x102), region = 36 }
   0xb   : > { %v266_v0 = vld [vmem:[%s1023_s3 + $0x8] sm:$0xff]  ;;  %v265_v1 = vld [vmem:[%s1023_s3] sm:$0xff]  ;;  %s1044_s16 = smov (!%p188_p3, %s603_s16), 1  ;;  %vm214_vm0 = vcmask 130048  }
   0xc   : > { %284 = vmatpush.msra.mxu0 %v266_v0  ;;  %307 = vmatpush.msra.mxu1 %v266_v0  ;;  %s624_s21 = sshll.u32 %s1044_s16, 5 }
   0xd   : > { %s192_s24 = scalar_lea.vmem %s1020_s0, %s624_s21  ;;  %s989_s5 = scalar_lea.vmem %s1024_s4, %s624_s21 }
   0xe   : > { %285 = vmatpush.msra.mxu0 %v265_v1  ;;  %308 = vmatpush.msra.mxu1 %v265_v1  ;;  %v627_v2 = vld [vmem:[%s192_s24] sm:$0xff]   ;;  %v642_v3 = vld [vmem:[%s192_s24 + $0x8] sm:$0xff]   ;;  %v643_v4 = vld [vmem:[%s192_s24 + $0x10] sm:$0xff]  }
   0xf   : > { %v744_v5 = vunpack.c.l.bf16 %v627_v2  ;;  %v746_v6 = vunpack.c.h.bf16 %v627_v2  ;;  %v748_v7 = vunpack.c.l.bf16 %v642_v3  ;;  %v750_v8 = vunpack.c.h.bf16 %v642_v3  ;;  %v644_v10 = vld [vmem:[%s192_s24 + $0x18] sm:$0xff]  }
  0x10   : > { %v752_v9 = vunpack.c.l.bf16 %v643_v4  ;;  %v760_v14 = vunpack.c.h.bf16 %v643_v4  ;;  %v770_v20 = vunpack.c.l.bf16 %v644_v10  ;;  %v781_v30 = vunpack.c.h.bf16 %v644_v10 }
  0x11   : > { %v215_v11 = vsel %vm214_vm0, %v744_v5, 0.0  ;;  %v216_v12 = vsel %vm214_vm0, %v746_v6, 0.0  ;;  %v218_v13 = vsel %vm214_vm0, %v748_v7, 0.0  ;;  %v220_v16 = vsel %vm214_vm0, %v750_v8, 0.0 }
  0x12   : > { %v217_v15 = vadd.f32 %v216_v12, %v215_v11  ;;  %v236_v17 = vmul.f32 %v744_v5, %v744_v5  ;;  %v237_v18 = vmul.f32 %v746_v6, %v746_v6  ;;  %v238_v19 = vmul.f32 %v748_v7, %v748_v7 }
  0x13   : > { %v239_v22 = vmul.f32 %v750_v8, %v750_v8  ;;  %v222_v23 = vsel %vm214_vm0, %v752_v9, 0.0  ;;  %v240_v24 = vmul.f32 %v752_v9, %v752_v9  ;;  %v224_v31 = vsel %vm214_vm0, %v760_v14, 0.0 }
  0x14   : > { %v219_v21 = vadd.f32 %v218_v13, %v217_v15  ;;  %v244_v25 = vsel %vm214_vm0, %v236_v17, 0.0  ;;  %v245_v26 = vsel %vm214_vm0, %v237_v18, 0.0  ;;  %v247_v29 = vsel %vm214_vm0, %v238_v19, 0.0 }
  0x15   : > { %v246_v28 = vadd.f32 %v245_v26, %v244_v25  ;;  %v241_v32 = vmul.f32 %v760_v14, %v760_v14  ;;  %v249_v33 = vsel %vm214_vm0, %v239_v22, 0.0  ;;  %v226_v36 = vsel %vm214_vm0, %v770_v20, 0.0 }
  0x16   : > { %v221_v27 = vadd.f32 %v220_v16, %v219_v21  ;;  %v242_v37 = vmul.f32 %v770_v20, %v770_v20  ;;  %v251_v38 = vsel %vm214_vm0, %v240_v24, 0.0  ;;  %v228_v41 = vsel %vm214_vm0, %v781_v30, 0.0 }
  0x17   : > { %v248_v35 = vadd.f32 %v247_v29, %v246_v28  ;;  %v243_v42 = vmul.f32 %v781_v30, %v781_v30  ;;  %v253_v43 = vsel %vm214_vm0, %v241_v32, 0.0  ;;  %v653_v28 = vld [vmem:[%s1021_s1] ss:$0 sm:$0xff] }
  0x18   : > { %v223_v34 = vadd.f32 %v222_v23, %v221_v27  ;;  %v255_v46 = vsel %vm214_vm0, %v242_v37, 0.0 }
  0x19   : > { %v250_v40 = vadd.f32 %v249_v33, %v248_v35  ;;  %v257_v49 = vsel %vm214_vm0, %v243_v42, 0.0 }
  0x1a   : > { %v225_v39 = vadd.f32 %v224_v31, %v223_v34 }
  0x1b   : > { %v252_v45 = vadd.f32 %v251_v38, %v250_v40 }
  0x1c   : > { %v227_v44 = vadd.f32 %v226_v36, %v225_v39 }
  0x1d   : > { %v254_v48 = vadd.f32 %v253_v43, %v252_v45 }
  0x1e   : > { %v229_v47 = vadd.f32 %v228_v41, %v227_v44 }
  0x1f   : > { %v256_v51 = vadd.f32 %v255_v46, %v254_v48 }
  0x20   : > { %v230_v50 = vrot.slane %v229_v47, 4 }
  0x21   : > { %v258_v53 = vadd.f32 %v257_v49, %v256_v51 }
  0x22   : > { %v231_v52 = vadd.f32 %v230_v50, %v229_v47 }
  0x23   : > { %v259_v55 = vrot.slane %v258_v53, 4 }
  0x24   : > { %v232_v54 = vrot.slane %v231_v52, 2 }
  0x25   : > { %v260_v57 = vadd.f32 %v259_v55, %v258_v53 }
  0x26   : > { %v233_v56 = vadd.f32 %v232_v54, %v231_v52 }
  0x27   : > { %v261_v59 = vrot.slane %v260_v57, 2 }
  0x28   : > { %v234_v58 = vrot.slane %v233_v56, 1 }
  0x29   : > { %v262_v61 = vadd.f32 %v261_v59, %v260_v57 }
  0x2a   : > { %v235_v60 = vadd.f32 %v234_v58, %v233_v56 }
  0x2b   : > { %v263_v62 = vrot.slane %v262_v61, 1 }
  0x2c   : > { %612 = vmatmul.msk.f32.vlgmr.msra.gmra.mxu0 %vm214_vm0, %v235_v60 }
  0x2d   : > { %v264_v63 = vadd.f32 %v263_v62, %v262_v61 }
  0x2f   : > { %613 = vmatmul.msk.f32.vlgmr.msra.gmra.mxu1 %vm214_vm0, %v264_v63 }
  0xa9   : > { %v287_v0 = vpop.f32.mrf.mxu0 }
  0xaa   : > { %v313_v1 = vmul.f32 0.015625, %v287_v0 }
  0xac   : > { %v310_v2 = vpop.f32.mrf.mxu1  ;;  %v315_v3 = vmul.f32 %v313_v1, %v313_v1  ;;  %v318_v18 = vperm.slane %v313_v1, 0 }
  0xad   : > { %v314_v4 = vmul.f32 0.015625, %v310_v2 }
  0xae   : > { %v319_v22 = vsub.f32 %v744_v5, %v318_v18  ;;  %v320_v24 = vsub.f32 %v746_v6, %v318_v18  ;;  %v321_v25 = vsub.f32 %v748_v7, %v318_v18  ;;  %v322_v26 = vsub.f32 %v750_v8, %v318_v18  ;;  %v654_v7 = vld [vmem:[%s1022_s2] ss:$0 sm:$0xff] }
  0xaf   : > { %v316_v10 = vsub.f32 %v314_v4, %v315_v3  ;;  %v323_v29 = vsub.f32 %v752_v9, %v318_v18  ;;  %v324_v31 = vsub.f32 %v760_v14, %v318_v18  ;;  %v325_v32 = vsub.f32 %v770_v20, %v318_v18 }
  0xb0   : > { %v326_v5 = vsub.f32 %v781_v30, %v318_v18 }
  0xb1   : > { %v317_v11 = vmax.f32 %v316_v10, 0.0 }
  0xb3   : > { %v327_v12 = vadd.f32 1e-06, %v317_v11 }
  0xb5   : > { %655 = vrsqrt.f32 %v327_v12  ;;  %vm334_vm2 = vweird.f32 %v327_v12 }
  0xbb   : > { %v656_v13 = vpop.eup %655 }
  0xbc   : > { %v329_v15 = vmul.f32 %v656_v13, %v327_v12  ;;  %vm335_vm1 = vweird.f32 %v656_v13 }
  0xbd   : > { %vm336_vm3 = vmor %vm334_vm2, %vm335_vm1 }
  0xbe   : > { %v330_v16 = vmul.f32 %v656_v13, %v329_v15 }
  0xc0   : > { %v331_v17 = vmul.f32 0.5, %v330_v16 }
  0xc2   : > { %v332_v19 = vsub.f32 1.5, %v331_v17 }
  0xc4   : > { %v333_v21 = vmul.f32 %v656_v13, %v332_v19 }
  0xc6   : > { %v337_v23 = vsel %vm336_vm3, %v656_v13, %v333_v21 }
  0xc7   : > { %v338_v27 = vperm.slane %v337_v23, 0 }
  0xc9   : > { %v339_v33 = vmul.f32 %v338_v27, %v319_v22  ;;  %v340_v34 = vmul.f32 %v338_v27, %v320_v24  ;;  %v341_v6 = vmul.f32 %v338_v27, %v321_v25  ;;  %v342_v35 = vmul.f32 %v338_v27, %v322_v26 }
  0xca   : > { %v343_v8 = vmul.f32 %v338_v27, %v323_v29  ;;  %v344_v36 = vmul.f32 %v338_v27, %v324_v31  ;;  %v345_v37 = vmul.f32 %v338_v27, %v325_v32  ;;  %v346_v38 = vmul.f32 %v338_v27, %v326_v5 }
  0xcb   : > { %v351_v39 = vmul.f32 %v653_v28, %v339_v33  ;;  %v352_v9 = vmul.f32 %v653_v28, %v340_v34  ;;  %v353_v40 = vmul.f32 %v653_v28, %v341_v6  ;;  %v354_v14 = vmul.f32 %v653_v28, %v342_v35 }
  0xcc   : > { %v355_v41 = vmul.f32 %v653_v28, %v343_v8  ;;  %v356_v20 = vmul.f32 %v653_v28, %v344_v36  ;;  %v357_v42 = vmul.f32 %v653_v28, %v345_v37  ;;  %v358_v30 = vmul.f32 %v653_v28, %v346_v38 }
  0xcd   : > { %v816_v43 = vadd.f32 %v654_v7, %v351_v39  ;;  %v818_v44 = vadd.f32 %v654_v7, %v352_v9  ;;  %v820_v45 = vadd.f32 %v654_v7, %v353_v40  ;;  %v822_v46 = vadd.f32 %v654_v7, %v354_v14 }
  0xce   : > { %v824_v47 = vadd.f32 %v654_v7, %v355_v41  ;;  %v826_v48 = vadd.f32 %v654_v7, %v356_v20  ;;  %v831_v52 = vadd.f32 %v654_v7, %v357_v42  ;;  %v834_v54 = vadd.f32 %v654_v7, %v358_v30 }
  0xcf   : > { %v614_v49 = vmul.f32 -1.442695, %v816_v43  ;;  %v615_v50 = vmul.f32 -1.442695, %v818_v44  ;;  %v616_v51 = vmul.f32 -1.442695, %v820_v45 }
  0xd0   : > { %v617_v53 = vmul.f32 -1.442695, %v822_v46  ;;  %v618_v55 = vmul.f32 -1.442695, %v824_v47  ;;  %v619_v56 = vmul.f32 -1.442695, %v826_v48 }
  0xd1   : > { %657 = vpow2.f32 %v614_v49  ;;  %v620_v57 = vmul.f32 -1.442695, %v831_v52  ;;  %v621_v58 = vmul.f32 -1.442695, %v834_v54 }
  0xd2   : > { %659 = vpow2.f32 %v615_v50 }
  0xd3   : > { %661 = vpow2.f32 %v616_v51 }
  0xd4   : > { %663 = vpow2.f32 %v617_v53 }
  0xd5   : > { %665 = vpow2.f32 %v618_v55 }
  0xd6   : > { %667 = vpow2.f32 %v619_v56 }
  0xd7   : > { %v658_v59 = vpop.eup %657  ;;  %669 = vpow2.f32 %v620_v57 }
  0xd8   : > { %v660_v60 = vpop.eup %659  ;;  %v840_v61 = vadd.f32 1.0, %v658_v59  ;;  %671 = vpow2.f32 %v621_v58 }
  0xd9   : > { %v662_v62 = vpop.eup %661  ;;  %v842_v63 = vadd.f32 1.0, %v660_v60 }
  0xda   : > { %v664_v0 = vpop.eup %663  ;;  %v844_v1 = vadd.f32 1.0, %v662_v62  ;;  %673 = vrcp.f32 %v840_v61  ;;  %v414_v11 = vand.u32 2147483648, %v840_v61  ;;  %vm408_vm4 = vweird.f32 %v840_v61 }
  0xdb   : > { %v666_v2 = vpop.eup %665  ;;  %v847_v3 = vadd.f32 1.0, %v664_v0  ;;  %675 = vrcp.f32 %v842_v63  ;;  %v429_v13 = vand.u32 2147483648, %v842_v63  ;;  %v412_v18 = vand.u32 2147483647, %v840_v61 }
  0xdc   : > { %v668_v4 = vpop.eup %667  ;;  %v850_v10 = vadd.f32 1.0, %v666_v2  ;;  %677 = vrcp.f32 %v844_v1  ;;  %v415_v22 = vor.u32 1.1754944e-38, %v414_v11  ;;  %vm423_vm5 = vweird.f32 %v842_v63 }
  0xdd   : > { %v670_v12 = vpop.eup %669  ;;  %v855_v16 = vadd.f32 1.0, %v668_v4  ;;  %679 = vrcp.f32 %v847_v3  ;;  %v427_v23 = vand.u32 2147483647, %v842_v63  ;;  %v444_v24 = vand.u32 2147483648, %v844_v1 }
  0xde   : > { %v672_v15 = vpop.eup %671  ;;  %681 = vrcp.f32 %v850_v10  ;;  %v870_v25 = vadd.f32 1.0, %v670_v12  ;;  %v430_v27 = vor.u32 1.1754944e-38, %v429_v13  ;;  %vm438_vm6 = vweird.f32 %v844_v1 }
  0xdf   : > { %v442_v28 = vand.u32 2147483647, %v844_v1  ;;  %v878_v31 = vadd.f32 1.0, %v672_v15  ;;  %v457_v5 = vand.u32 2147483647, %v847_v3  ;;  %683 = vrcp.f32 %v855_v16 }
  0xe0   : > { %v858_v17 = vpop.eup %673  ;;  %vm883_vm8 = vcmp.eq.f32.partialorder %v412_v18, 8.507059e+37  ;;  %vm453_vm9 = vweird.f32 %v847_v3  ;;  %v459_v35 = vand.u32 2147483648, %v847_v3  ;;  %vm892_vm10 = vcmp.eq.f32.partialorder %v427_v23, 8.507059e+37 }
  0xe1   : > { %v863_v19 = vpop.eup %675  ;;  %v404_v21 = vmul.f32 %v858_v17, %v840_v61  ;;  %vm409_vm7 = vweird.f32 %v858_v17  ;;  %v445_v37 = vor.u32 1.1754944e-38, %v444_v24  ;;  %vm468_vm11 = vweird.f32 %v850_v10 }
  0xe2   : > { %v419_v26 = vmul.f32 %v863_v19, %v842_v63  ;;  %v876_v29 = vpop.eup %677  ;;  %v472_v38 = vand.u32 2147483647, %v850_v10  ;;  %vm424_vm12 = vweird.f32 %v863_v19  ;;  %vm900_vm13 = vcmp.eq.f32.partialorder %v442_v28, 8.507059e+37  ;;  %vm919_vm0 = vmor %vm408_vm4, %vm409_vm7 }
  0xe3   : > { %v405_v32 = vsub.f32 1.0, %v404_v21  ;;  %v434_v6 = vmul.f32 %v876_v29, %v844_v1  ;;  %v680_v7 = vpop.eup %679  ;;  %vm906_vm14 = vcmp.eq.f32.partialorder %v457_v5, 8.507059e+37  ;;  %v474_v49 = vand.u32 2147483648, %v850_v10  ;;  %vm935_vm2 = vmor %vm423_vm5, %vm424_vm12 }
  0xe4   : > { %v420_v34 = vsub.f32 1.0, %v419_v26  ;;  %v682_v39 = vpop.eup %681  ;;  %v449_v41 = vmul.f32 %v680_v7, %v847_v3  ;;  %vm439_vm15 = vweird.f32 %v876_v29  ;;  %v460_v57 = vor.u32 1.1754944e-38, %v459_v35 }
  0xe5   : > { %v406_v8 = vmul.f32 %v858_v17, %v405_v32  ;;  %v435_v40 = vsub.f32 1.0, %v434_v6  ;;  %v464_v30 = vmul.f32 %v682_v39, %v850_v10  ;;  %v684_v55 = vpop.eup %683  ;;  %vm923_vm1 = vcmp.eq.f32.partialorder %v472_v38, 8.507059e+37  ;;  %vm945_vm4 = vmor %vm438_vm6, %vm439_vm15 }
  0xe6   : > { %v421_v9 = vmul.f32 %v863_v19, %v420_v34  ;;  %v450_v53 = vsub.f32 1.0, %v449_v41  ;;  %685 = vrcp.f32 %v870_v25  ;;  %vm454_vm3 = vweird.f32 %v680_v7 }
  0xe7   : > { %v407_v20 = vadd.f32 %v858_v17, %v406_v8  ;;  %v436_v51 = vmul.f32 %v876_v29, %v435_v40  ;;  %v465_v58 = vsub.f32 1.0, %v464_v30  ;;  %vm469_vm7 = vweird.f32 %v682_v39  ;;  %vm455_vm5 = vmor %vm453_vm9, %vm454_vm3 }
  0xe8   : > { %v422_v50 = vadd.f32 %v863_v19, %v421_v9  ;;  %v451_v0 = vmul.f32 %v680_v7, %v450_v53  ;;  %v479_v63 = vmul.f32 %v684_v55, %v855_v16  ;;  %v475_v15 = vor.u32 1.1754944e-38, %v474_v49  ;;  %vm470_vm6 = vmor %vm468_vm11, %vm469_vm7 }
  0xe9   : > { %v411_v60 = vsel %vm919_vm0, %v858_v17, %v407_v20  ;;  %v437_v62 = vadd.f32 %v876_v29, %v436_v51  ;;  %v466_v11 = vmul.f32 %v682_v39, %v465_v58  ;;  %v487_v17 = vand.u32 2147483647, %v855_v16 }
  0xea   : > { %v426_v2 = vsel %vm935_vm2, %v863_v19, %v422_v50  ;;  %v452_v13 = vadd.f32 %v680_v7, %v451_v0  ;;  %v416_v18 = vsel %vm883_vm8, %v415_v22, %v411_v60  ;;  %v480_v19 = vsub.f32 1.0, %v479_v63 }
  0xeb   : > { %v441_v12 = vsel %vm945_vm4, %v876_v29, %v437_v62  ;;  %v467_v1 = vadd.f32 %v682_v39, %v466_v11  ;;  %v489_v21 = vand.u32 2147483648, %v855_v16  ;;  %v431_v23 = vsel %vm892_vm10, %v430_v27, %v426_v2 }
  0xec   : > { %v456_v24 = vsel %vm455_vm5, %v680_v7, %v452_v13  ;;  %vm484_vm12 = vweird.f32 %v684_v55  ;;  %687 = vrcp.f32 %v878_v31  ;;  %v686_v26 = vpop.eup %685  ;;  %v446_v22 = vsel %vm900_vm13, %v445_v37, %v441_v12 }
  0xed   : > { %v461_v3 = vsel %vm906_vm14, %v460_v57, %v456_v24  ;;  %v471_v28 = vsel %vm470_vm6, %v682_v39, %v467_v1  ;;  %v481_v29 = vmul.f32 %v684_v55, %v480_v19  ;;  %vm483_vm8 = vweird.f32 %v855_v16 }
  0xee   : > { %v476_v32 = vsel %vm923_vm1, %v475_v15, %v471_v28  ;;  %vm971_vm9 = vcmp.eq.f32.partialorder %v487_v17, 8.507059e+37  ;;  %v494_v27 = vmul.f32 %v686_v26, %v870_v25  ;;  %v490_v33 = vor.u32 1.1754944e-38, %v489_v21  ;;  %vm485_vm10 = vmor %vm483_vm8, %vm484_vm12 }
  0xef   : > { %v482_v5 = vadd.f32 %v684_v55, %v481_v29  ;;  %v523_v34 = vmul.f32 %v416_v18, %v816_v43  ;;  %v524_v6 = vmul.f32 %v431_v23, %v818_v44  ;;  %v502_v7 = vand.u32 2147483647, %v870_v25 }
  0xf0   : > { %v495_v35 = vsub.f32 1.0, %v494_v27  ;;  %v525_v16 = vmul.f32 %v446_v22, %v820_v45  ;;  %v526_v8 = vmul.f32 %v461_v3, %v822_v46  ;;  %v504_v37 = vand.u32 2147483648, %v870_v25 }
  0xf1   : > { %v486_v36 = vsel %vm485_vm10, %v684_v55, %v482_v5  ;;  %v527_v38 = vmul.f32 %v476_v32, %v824_v47  ;;  %v531_v39 = vpack.c.bf16 %v523_v34, %v523_v34  ;;  %vm499_vm11 = vweird.f32 %v686_v26 }
  0xf2   : > { %v688_v9 = vpop.eup %687  ;;  %v491_v43 = vsel %vm971_vm9, %v490_v33, %v486_v36  ;;  %v496_v44 = vmul.f32 %v686_v26, %v495_v35  ;;  %v532_v45 = vpack.c.bf16 %v524_v6, %v524_v6  ;;  %v533_v40 = vpack.c.bf16 %v525_v16, %v525_v16 }
  0xf3   : > { %v509_v46 = vmul.f32 %v688_v9, %v878_v31  ;;  %v528_v47 = vmul.f32 %v491_v43, %v826_v48  ;;  %vm498_vm13 = vweird.f32 %v870_v25  ;;  %v534_v41 = vpack.c.bf16 %v526_v8, %v526_v8 }
  0xf4   : > { %v497_v14 = vadd.f32 %v686_v26, %v496_v44  ;;  %vm539_vm14 = vcmask 125952   ;;  %vm500_vm15 = vmor %vm498_vm13, %vm499_vm11  ;;  %v505_v20 = vor.u32 1.1754944e-38, %v504_v37  ;;  %v535_v30 = vpack.c.bf16 %v527_v38, %v527_v38 }
  0xf5   : > { %v510_v42 = vsub.f32 1.0, %v509_v46  ;;  %540 = vst.msk [vmem:[%s989_s5] sm:$0xf] %vm539_vm14, %v531_v39  ;;  %vm503_vm0 = vcmp.eq.f32.partialorder %v502_v7, 8.507059e+37  ;;  %v519_v50 = vand.u32 2147483648, %v878_v31  ;;  %v536_v48 = vpack.c.bf16 %v528_v47, %v528_v47 }
  0xf6   : > { %v501_v49 = vsel %vm500_vm15, %v686_v26, %v497_v14  ;;  %541 = vst.msk [vmem:[%s989_s5 + $0x4] sm:$0xf] %vm539_vm14, %v532_v45  ;;  %vm514_vm1 = vweird.f32 %v688_v9  ;;  %v517_v53 = vand.u32 2147483647, %v878_v31  ;;  %vm513_vm2 = vweird.f32 %v878_v31 }
  0xf7   : > { %v506_v25 = vsel %vm503_vm0, %v505_v20, %v501_v49  ;;  %v511_v51 = vmul.f32 %v688_v9, %v510_v42  ;;  %542 = vst.msk [vmem:[%s989_s5 + $0x8] sm:$0xf] %vm539_vm14, %v533_v40  ;;  %vm515_vm3 = vmor %vm513_vm2, %vm514_vm1  ;;  %v520_v57 = vor.u32 1.1754944e-38, %v519_v50 }
  0xf8   : > { %v529_v55 = vmul.f32 %v506_v25, %v831_v52  ;;  %543 = vst.msk [vmem:[%s989_s5 + $0xc] sm:$0xf] %vm539_vm14, %v534_v41  ;;  %vm518_vm4 = vcmp.eq.f32.partialorder %v517_v53, 8.507059e+37 }
  0xf9   : > { %v512_v56 = vadd.f32 %v688_v9, %v511_v51  ;;  %544 = vst.msk [vmem:[%s989_s5 + $0x10] sm:$0xf] %vm539_vm14, %v535_v30 }
  0xfa   : > { %v537_v58 = vpack.c.bf16 %v529_v55, %v529_v55  ;;  %545 = vst.msk [vmem:[%s989_s5 + $0x14] sm:$0xf] %vm539_vm14, %v536_v48 }
  0xfb   : > { %v516_v59 = vsel %vm515_vm3, %v688_v9, %v512_v56 }
  0xfc   : > { %v521_v60 = vsel %vm518_vm4, %v520_v57, %v516_v59  ;;  %546 = vst.msk [vmem:[%s989_s5 + $0x18] sm:$0xf] %vm539_vm14, %v537_v58 }
  0xfd   : > { %v530_v61 = vmul.f32 %v521_v60, %v834_v54 }
  0xff   : > { %v538_v52 = vpack.c.bf16 %v530_v61, %v530_v61 }
 0x101   : > { %547 = vst.msk [vmem:[%s989_s5 + $0x1c] sm:$0xf] %vm539_vm14, %v538_v52 }
 0x102 PF: > { %s14_s15 = sadd.s32 1, %s695_s15  }
 0x103   : > { %p11_p4 = scmp.ge.s32.totalorder %s14_s15, 4  }
 0x105   :  { %13 = sbr.rel (!%p11_p4) target bundleno = 1 (0x1), region = 66 }

// kernel: _lambda_.52
= control target key start
LH: loop header
LB: loop body
LE: loop exit
PB: predicated region body
PF: predicated region fallthrough
CT: control target
= control target key end

     0   :  { %s1770_s12 = smov 0   ;;  %s1772_s13 = smov 0   ;;  %s2201_s0 = inlined_call_operand.vmem [shape: bf16[2,116,16], index: 0, kind: input, shape index: {}]   ;;  %s2202_s1 = inlined_call_operand.vmem [shape: bf16[9,16,16], index: 1, kind: input, shape index: {}]   ;;  %s2203_s2 = inlined_call_operand.vmem [shape: f32[1,16], index: 2, kind: input, shape index: {}]   ;;  %s2204_s3 = inlined_call_operand.vmem [shape: bf16[2,96,16], index: 3, kind: output, shape index: {}]  }
   0x1   :  { %s1774_s14 = smov 0  }
   0x2 LB: > { %s32_s15 = sadd.s32 1, %s1743_s13  ;;  %p1492_p0 = scmp.ge.s32.totalorder %s1747_s14, 1  ;;  %s1747_s14 = sphi %s1774_s14, %s13_s14   ;;  %s1743_s13 = sphi %s1772_s13, %s2206_s13   ;;  %s1739_s12 = sphi %s1770_s12, %s2205_s12  }
   0x3   : > { %p34_p1 = scmp.ge.s32.totalorder %s32_s15, 2  ;;  %p187_p2 = scmp.lt.s32.totalorder %s1747_s14, 3 }
   0x5   : > { %s2208_s15 = smov (%p34_p1, %s32_s15), 0  ;;  %p188_p3 = pnand %p1492_p0, %p187_p2 }
   0x6   : > { %p228_p4 = scmp.lt.s32.totalorder (!%p188_p3), %s1739_s12, 1 }
   0x7   : > { %191 = sbr.rel (%p188_p3) target bundleno = 393 (0x189), region = 32 }
   0xc   : > { %v1624_v0 = vld [vmem:[%s2202_s1 + $0x8] sm:$0xff]  ;;  %v1625_v1 = vld [vmem:[%s2202_s1 + $0x10] sm:$0xff]  ;;  %v1623_v2 = vld [vmem:[%s2202_s1] sm:$0xff]  ;;  %s2210_s12 = smov (!%p228_p4, %s1739_s12), 1  ;;  %vm325_vm0 = vsmask.f32 7424 }
   0xd   : > { %v1626_v3 = vld [vmem:[%s2202_s1 + $0x18] sm:$0xff]  ;;  %1694 = vmatpush.bf16.msra.mxu1 %v1624_v0  ;;  %1695 = vmatpush.bf16.msra.mxu2 %v1624_v0  ;;  %v1627_v4 = vld [vmem:[%s2202_s1 + $0x20] sm:$0xff]  ;;  %s1697_s26 = smul.u32 60, %s2210_s12  ;;  %vm261_vm1 = vcmask 130048   ;;  %v1634_v36 = vld [vmem:[%s2202_s1 + $0x30] sm:$0xff]  ;;  %vm606_vm2 = vcmask 1044480  }
   0xe   : > { %1696 = vmatpush.bf16.msra.mxu3 %v1624_v0  ;;  %410 = vmatpush.bf16.msra.mxu0 %v1624_v0  ;;  %v1628_v37 = vld [vmem:[%s2202_s1 + $0x28] sm:$0xff]  ;;  %v1635_v42 = vld [vmem:[%s2202_s1 + $0x38] sm:$0xff]  ;;  %v1636_v45 = vld [vmem:[%s2202_s1 + $0x40] sm:$0xff]  ;;  %vm702_vm3 = vsmask.f32 4352  ;;  %vm506_vm4 = vcmask 1046528  }
   0xf   : > { %s1809_s29 = scalar_lea.vmem %s2201_s0, %s1697_s26  ;;  %vm1044_vm5 = vsmask.f32 5376  ;;  %vm948_vm6 = vcmask 1045504   ;;  %s1698_s17 = smul.u32 48, %s2210_s12  ;;  %vm1356_vm7 = vcmask 125952  }
  0x10   : > { %v1812_v5 = vld [vmem:[%s1809_s29 + $0x8] sm:$0xff]   ;;  %v1815_v6 = vld [vmem:[%s1809_s29 + $0x10] sm:$0xff]   ;;  %v1818_v7 = vld [vmem:[%s1809_s29 + $0x18] sm:$0xff]  }
  0x11   : > { %551 = vmatpush.bf16.msrb.mxu2 %v1625_v1  ;;  %467 = vmatpush.bf16.msrb.mxu1 %v1623_v2  ;;  %v334_v8 = vshll.u32 %v1812_v5, 16  ;;  %v338_v9 = vshrl.u32 %v1812_v5, 16  ;;  %v342_v10 = vshll.u32 %v1815_v6, 16  ;;  %v1824_v11 = vld [vmem:[%s1809_s29 + $0x20] sm:$0xff]   ;;  %v350_v12 = vshll.u32 %v1818_v7, 16  ;;  %v1828_v13 = vld [vmem:[%s1809_s29 + $0x28] sm:$0xff]   ;;  %s2136_s20 = scalar_lea.vmem %s2204_s3, %s1698_s17 }
  0x12   : > { %651 = vmatpush.bf16.msrb.mxu3 %v1626_v3  ;;  %771 = vmatpush.bf16.msrb.mxu0 %v1627_v4  ;;  %v354_v14 = vshrl.u32 %v1818_v7, 16  ;;  %v358_v15 = vshll.u32 %v1824_v11, 16  ;;  %v288_v16 = vld [vmem:[%s1809_s29 + $0x30] sm:$0x1]  ;;  %v366_v17 = vshll.u32 %v1828_v13, 16  ;;  %v370_v18 = vshrl.u32 %v1828_v13, 16 }
  0x13   : > { %v336_v19 = vrot.slane %v334_v8, 1  ;;  %v344_v20 = vrot.slane %v342_v10, 1  ;;  %v352_v21 = vrot.slane %v350_v12, 1  ;;  %v317_v22 = vunpack.c.l.b16 %v288_v16  ;;  %v1844_v25 = vld [vmem:[%s1809_s29] sm:$0xff]  }
  0x14   : > { %v360_v23 = vrot.slane %v358_v15, 1  ;;  %v368_v24 = vrot.slane %v366_v17, 1  ;;  %v327_v30 = vshrl.u32 %v1844_v25, 16  ;;  %v595_v31 = vld [vmem:[%s1809_s29] sm:$0x8]  ;;  %v329_v35 = vshll.u32 %v1844_v25, 16 }
  0x15   : > { %v340_v26 = vor.u32 %v338_v9, %v336_v19  ;;  %v356_v27 = vor.u32 %v354_v14, %v352_v21  ;;  %v1848_v28 = vpack.c.b16 %v317_v22, %v317_v22  ;;  %v1867_v39 = vunpack.c.h.b16 %v1844_v25  ;;  %v499_v62 = vld [vmem:[%s1809_s29] sm:$0xe] }
  0x16   : > { %v372_v29 = vor.u32 %v370_v18, %v368_v24  ;;  %v331_v40 = vrot.slane %v329_v35, 1  ;;  %v602_v41 = vunpack.c.l.b16 %v595_v31  ;;  %v346_v46 = vshrl.u32 %v1815_v6, 16 }
  0x17   : > { %v345_v32 = vsel %vm325_vm0, %v340_v26, %v344_v20  ;;  %v361_v33 = vsel %vm325_vm0, %v356_v27, %v360_v23  ;;  %v374_v34 = vshll.u32 %v1848_v28, 16  ;;  %v362_v47 = vshrl.u32 %v1824_v11, 16 }
  0x18   : > { %1502 = vmatmul.msk.bf16.vlgmr.msra.gmra.mxu1 %vm261_vm1, %v345_v32  ;;  %1504 = vmatmul.msk.bf16.vlgmr.msra.gmra.mxu2 %vm261_vm1, %v361_v33  ;;  %v332_v44 = vor.u32 %v331_v40, %v327_v30  ;;  %v604_v49 = vpack.c.b16 %v1867_v39, %v602_v41  ;;  %v348_v52 = vor.u32 %v346_v46, %v344_v20  ;;  %v711_v56 = vrot.slane %v338_v9, 3 }
  0x19   : > { %v376_v38 = vrot.slane %v374_v34, 1  ;;  %993 = vmatpush.bf16.msra.mxu2 %v1634_v36  ;;  %855 = vmatpush.bf16.msra.mxu1 %v1628_v37  ;;  %v364_v53 = vor.u32 %v362_v47, %v360_v23  ;;  %v712_v57 = vrot.slane %v334_v8, 4  ;;  %v608_v61 = vrot.slane %v1812_v5, 3 }
  0x1a   : > { %v337_v48 = vsel %vm325_vm0, %v332_v44, %v336_v19  ;;  %v704_v50 = vshrl.u32 %v604_v49, 16  ;;  %v707_v51 = vshll.u32 %v604_v49, 16  ;;  %v353_v58 = vsel %vm325_vm0, %v348_v52, %v352_v21 }
  0x1b   : > { %v377_v43 = vsel %vm325_vm0, %v372_v29, %v376_v38  ;;  %1501 = vmatmul.msk.bf16.vlgmr.msra.gmra.mxu0 %vm261_vm1, %v337_v48  ;;  %v369_v59 = vsel %vm325_vm0, %v364_v53, %v368_v24  ;;  %v607_v60 = vrot.slane %v604_v49, 3  ;;  %v713_v0 = vor.u32 %v712_v57, %v711_v56  ;;  %v900_v53 = vld [vmem:[%s1809_s29 + $0x8] sm:$0xf] }
  0x1c   : > { %1506 = vmatmul.msk.bf16.vlgmr.msra.gmra.mxu3 %vm261_vm1, %v377_v43  ;;  %1233 = vmatpush.bf16.msra.mxu0 %v1636_v45  ;;  %v706_v54 = vrot.slane %v704_v50, 3  ;;  %v709_v55 = vrot.slane %v707_v51, 4  ;;  %v504_v2 = vunpack.c.l.b16 %v499_v62  ;;  %v508_v9 = vrot.slane %v1812_v5, 1  ;;  %v1960_v62 = vld [vmem:[%s1809_s29 + $0xc] sm:$0xff] }
  0x1d   : > { %1138 = vmatpush.bf16.msra.mxu3 %v1635_v42  ;;  %v609_v1 = vsel %vm606_vm2, %v607_v60, %v608_v61  ;;  %v715_v16 = vrot.slane %v346_v46, 3  ;;  %v716_v19 = vrot.slane %v342_v10, 4  ;;  %v610_v21 = vrot.slane %v1815_v6, 3  ;;  %v596_v46 = vld [vmem:[%s1809_s29 + $0x30] sm:$0x7] }
  0x1e   : > { %v710_v63 = vor.u32 %v709_v55, %v706_v54  ;;  %v505_v4 = vpack.c.b16 %v1867_v39, %v504_v2  ;;  %v510_v10 = vrot.slane %v1815_v6, 1  ;;  %v719_v26 = vrot.slane %v354_v14, 3 }
  0x1f   : > { %v717_v22 = vor.u32 %v716_v19, %v715_v16  ;;  %v611_v23 = vsel %vm606_vm2, %v608_v61, %v610_v21  ;;  %v720_v27 = vrot.slane %v350_v12, 4  ;;  %v612_v29 = vrot.slane %v1818_v7, 3 }
  0x20   : > { %v714_v3 = vsel %vm702_vm3, %v710_v63, %v713_v0  ;;  %v507_v8 = vrot.slane %v505_v4, 1  ;;  %v512_v12 = vrot.slane %v1818_v7, 1  ;;  %v723_v14 = vrot.slane %v362_v47, 3 }
  0x21   : > { %v718_v24 = vsel %vm702_vm3, %v713_v0, %v717_v22  ;;  %v721_v30 = vor.u32 %v720_v27, %v719_v26  ;;  %v613_v31 = vsel %vm606_vm2, %v610_v21, %v612_v29  ;;  %v724_v33 = vrot.slane %v358_v15, 4 }
  0x22   : > { %v509_v20 = vsel %vm506_vm4, %v507_v8, %v508_v9  ;;  %v513_v34 = vsel %vm506_vm4, %v510_v10, %v512_v12  ;;  %v614_v35 = vrot.slane %v1824_v11, 3  ;;  %v727_v36 = vrot.slane %v370_v18, 3  ;;  %v695_v18 = vld [vmem:[%s1809_s29 + $0x30] sm:$0xf] }
  0x23   : > { %v722_v32 = vsel %vm702_vm3, %v717_v22, %v721_v30  ;;  %v728_v37 = vrot.slane %v366_v17, 4  ;;  %v725_v38 = vor.u32 %v724_v33, %v723_v14  ;;  %v514_v17 = vrot.slane %v1824_v11, 1 }
  0x24   : > { %v615_v15 = vsel %vm606_vm2, %v612_v29, %v614_v35  ;;  %v1940_v44 = vunpack.c.l.b16 %v695_v18  ;;  %v603_v48 = vunpack.c.l.b16 %v596_v46  ;;  %v516_v51 = vrot.slane %v1828_v13, 1 }
  0x25   : > { %v729_v40 = vor.u32 %v728_v37, %v727_v36  ;;  %v726_v42 = vsel %vm702_vm3, %v721_v30, %v725_v38  ;;  %v515_v43 = vsel %vm506_vm4, %v512_v12, %v514_v17  ;;  %v1054_v4 = vshrl.u32 %v1960_v62, 16 }
  0x26   : > { %v701_v47 = vpack.c.b16 %v1940_v44, %v1940_v44  ;;  %v605_v52 = vpack.c.b16 %v603_v48, %v603_v48  ;;  %v517_v56 = vsel %vm506_vm4, %v514_v17, %v516_v51  ;;  %v1057_v8 = vshll.u32 %v1960_v62, 16 }
  0x27   : > { %v730_v41 = vsel %vm702_vm3, %v725_v38, %v729_v40  ;;  %v1190_v27 = vrot.slane %v1960_v62, 3  ;;  %v950_v14 = vrot.slane %v1960_v62, 2 }
  0x28   : > { %1503 = vmatmul.msk.bf16.gmra.mxu1 %vm261_vm1, %v353_v58  ;;  %1505 = vmatmul.msk.bf16.gmra.mxu2 %vm261_vm1, %v369_v59  ;;  %v732_v49 = vshrl.u32 %v701_v47, 16  ;;  %v735_v50 = vshll.u32 %v701_v47, 16  ;;  %v618_v57 = vrot.slane %v605_v52, 3  ;;  %v929_v59 = vunpack.c.l.b16 %v900_v53 }
  0x29   : > { %v1059_v21 = vrot.slane %v1057_v8, 3  ;;  %v1690_v8 = vld [vmem:[%s1809_s29 + $0x14] sm:$0xff]  }
  0x2a   : > { %v734_v54 = vrot.slane %v732_v49, 3  ;;  %v737_v55 = vrot.slane %v735_v50, 4  ;;  %v1688_v50 = vld [vmem:[%s1809_s29 + $0xc] sm:$0xff]  }
  0x2b   : > { %1547 = vmatmul.msk.bf16.vlgmr.msrb.gmra.mxu0 %vm261_vm1, %v714_v3 }
  0x2c   : > { %1535 = vmatmul.msk.bf16.vlgmr.msrb.gmra.mxu3 %vm261_vm1, %v609_v1  ;;  %v738_v60 = vor.u32 %v737_v55, %v734_v54  ;;  %v1182_v1 = vld [vmem:[%s1809_s29 + $0x4] sm:$0x8] }
  0x2e   : > { %v739_v0 = vsel %vm702_vm3, %v729_v40, %v738_v60 }
  0x38   : > { %1511 = vmatmul.msk.bf16.vlgmr.msrb.gmra.mxu1 %vm261_vm1, %v1844_v25  ;;  %1523 = vmatmul.msk.bf16.vlgmr.msrb.gmra.mxu2 %vm261_vm1, %v509_v20  ;;  %v511_v25 = vsel %vm506_vm4, %v508_v9, %v510_v10  ;;  %v518_v9 = vrot.slane %v1848_v28, 1  ;;  %v1056_v20 = vrot.slane %v1054_v4, 2 }
  0x3a   : > { %v1060_v10 = vor.u32 %v1059_v21, %v1056_v20 }
  0x3b   : > { %1548 = vmatmul.msk.bf16.gmra.mxu0 %vm261_vm1, %v718_v24 }
  0x3c   : > { %1536 = vmatmul.msk.bf16.gmra.mxu3 %vm261_vm1, %v611_v23  ;;  %v519_v23 = vsel %vm506_vm4, %v516_v51, %v518_v9 }
  0x48   : > { %1512 = vmatmul.msk.bf16.gmra.mxu1 %vm261_vm1, %v1812_v5  ;;  %1524 = vmatmul.msk.bf16.gmra.mxu2 %vm261_vm1, %v511_v25  ;;  %v1976_v25 = vld [vmem:[%s1809_s29 + $0x14] sm:$0xff] }
  0x49   : > { %v1063_v30 = vshrl.u32 %v1976_v25, 16  ;;  %v1192_v40 = vrot.slane %v1976_v25, 3 }
  0x4b   : > { %1549 = vmatmul.msk.bf16.gmra.mxu0 %vm261_vm1, %v722_v32  ;;  %v1643_v32 = vunpack.c.l.b16 %v1812_v5  ;;  %v1065_v33 = vrot.slane %v1063_v30, 2 }
  0x4c   : > { %1537 = vmatmul.msk.bf16.gmra.mxu3 %vm261_vm1, %v613_v31  ;;  %v1066_v31 = vshll.u32 %v1976_v25, 16 }
  0x58   : > { %1513 = vmatmul.msk.bf16.gmra.mxu1 %vm261_vm1, %v1815_v6  ;;  %1525 = vmatmul.msk.bf16.gmra.mxu2 %vm261_vm1, %v513_v34  ;;  %v616_v6 = vrot.slane %v1828_v13, 3  ;;  %v1068_v34 = vrot.slane %v1066_v31, 3 }
  0x5a   : > { %v617_v45 = vsel %vm606_vm2, %v614_v35, %v616_v6  ;;  %v619_v61 = vsel %vm606_vm2, %v616_v6, %v618_v57  ;;  %v818_v35 = vpack.c.b16 %v1643_v32, %v1867_v39  ;;  %v1069_v38 = vor.u32 %v1068_v34, %v1065_v33 }
  0x5b   : > { %1550 = vmatmul.msk.bf16.gmra.mxu0 %vm261_vm1, %v726_v42  ;;  %v1193_v39 = vsel %vm606_vm2, %v1190_v27, %v1192_v40 }
  0x5c   : > { %1538 = vmatmul.msk.bf16.gmra.mxu3 %vm261_vm1, %v615_v15  ;;  %v1070_v5 = vsel %vm1044_vm5, %v1060_v10, %v1069_v38  ;;  %v1994_v15 = vld [vmem:[%s1809_s29 + $0x1c] sm:$0xff] }
  0x5d   : > { %v1072_v18 = vshrl.u32 %v1994_v15, 16  ;;  %v1194_v54 = vrot.slane %v1994_v15, 3 }
  0x5f   : > { %v1074_v46 = vrot.slane %v1072_v18, 2 }
  0x68   : > { %1514 = vmatmul.msk.bf16.gmra.mxu1 %vm261_vm1, %v1818_v7  ;;  %1526 = vmatmul.msk.bf16.gmra.mxu2 %vm261_vm1, %v515_v43  ;;  %v899_v7 = vld [vmem:[%s1809_s29 + $0x4] sm:$0xc]  ;;  %v1075_v43 = vshll.u32 %v1994_v15, 16 }
  0x69   : > { %v928_v58 = vunpack.c.l.b16 %v899_v7 }
  0x6a   : > { %v1077_v47 = vrot.slane %v1075_v43, 3 }
  0x6b   : > { %1551 = vmatmul.msk.bf16.gmra.mxu0 %vm261_vm1, %v730_v41  ;;  %v941_v63 = vpack.c.b16 %v929_v59, %v928_v58 }
  0x6c   : > { %1539 = vmatmul.msk.bf16.gmra.mxu3 %vm261_vm1, %v617_v45  ;;  %v952_v45 = vrot.slane %v1976_v25, 2  ;;  %v1078_v7 = vor.u32 %v1077_v47, %v1074_v46 }
  0x6d   : > { %v1046_v2 = vshrl.u32 %v941_v63, 16  ;;  %v1049_v3 = vshll.u32 %v941_v63, 16  ;;  %v949_v12 = vrot.slane %v941_v63, 2 }
  0x6e   : > { %v953_v52 = vsel %vm948_vm6, %v950_v14, %v952_v45  ;;  %v1079_v55 = vsel %vm1044_vm5, %v1069_v38, %v1078_v7 }
  0x6f   : > { %v1048_v16 = vrot.slane %v1046_v2, 2  ;;  %v1051_v19 = vrot.slane %v1049_v3, 3  ;;  %v951_v37 = vsel %vm948_vm6, %v949_v12, %v950_v14 }
  0x71   : > { %v1052_v24 = vor.u32 %v1051_v19, %v1048_v16 }
  0x73   : > { %v1061_v28 = vsel %vm1044_vm5, %v1052_v24, %v1060_v10 }
  0x78   : > { %1515 = vmatmul.msk.bf16.gmra.mxu1 %vm261_vm1, %v1824_v11  ;;  %1527 = vmatmul.msk.bf16.gmra.mxu2 %vm261_vm1, %v517_v56  ;;  %v1187_v11 = vunpack.c.l.b16 %v1182_v1  ;;  %v2021_v56 = vld [vmem:[%s1809_s29 + $0x24] sm:$0xff] }
  0x79   : > { %v1084_v62 = vshll.u32 %v2021_v56, 16  ;;  %v1196_v21 = vrot.slane %v2021_v56, 3  ;;  %v956_v14 = vrot.slane %v2021_v56, 2 }
  0x7a   : > { %v1188_v22 = vpack.c.b16 %v929_v59, %v1187_v11  ;;  %v1195_v59 = vsel %vm606_vm2, %v1192_v40, %v1194_v54 }
  0x7b   : > { %1552 = vmatmul.msk.bf16.gmra.mxu0 %vm261_vm1, %v739_v0  ;;  %v954_v0 = vrot.slane %v1994_v15, 2  ;;  %v1086_v2 = vrot.slane %v1084_v62, 3 }
  0x7c   : > { %1540 = vmatmul.msk.bf16.gmra.mxu3 %vm261_vm1, %v619_v61  ;;  %v1189_v26 = vrot.slane %v1188_v22, 3  ;;  %v1081_v61 = vshrl.u32 %v2021_v56, 16 }
  0x7d   : > { %v955_v9 = vsel %vm948_vm6, %v952_v45, %v954_v0 }
  0x7e   : > { %v1191_v29 = vsel %vm606_vm2, %v1189_v26, %v1190_v27  ;;  %v1083_v1 = vrot.slane %v1081_v61, 2  ;;  %v1197_v26 = vsel %vm606_vm2, %v1194_v54, %v1196_v21 }
  0x80   : > { %v1087_v16 = vor.u32 %v1086_v2, %v1083_v1 }
  0x82   : > { %v1088_v22 = vsel %vm1044_vm5, %v1078_v7, %v1087_v16 }
  0x88   : > { %1516 = vmatmul.msk.bf16.gmra.mxu1 %vm261_vm1, %v1828_v13  ;;  %1528 = vmatmul.msk.bf16.gmra.mxu2 %vm261_vm1, %v519_v23  ;;  %v2042_v23 = vld [vmem:[%s1809_s29 + $0x2c] sm:$0xff] }
  0x89   : > { %v1090_v25 = vshrl.u32 %v2042_v23, 16  ;;  %v1198_v47 = vrot.slane %v2042_v23, 3  ;;  %v958_v1 = vrot.slane %v2042_v23, 2 }
  0x8b   : > { %1615 = vmatmul.msk.bf16.vlgmr.msra.gmra.mxu0 %vm261_vm1, %v1191_v29  ;;  %v1093_v29 = vshll.u32 %v2042_v23, 16  ;;  %v1092_v33 = vrot.slane %v1090_v25, 2 }
  0x8c   : > { %1603 = vmatmul.msk.bf16.vlgmr.msra.gmra.mxu3 %vm261_vm1, %v1061_v28 }
  0x8d   : > { %v1095_v34 = vrot.slane %v1093_v29, 3 }
  0x95   : > { %v1986_v36 = vpop.f32.mrf.mxu1 }
  0x98   : > { %1559 = vmatmul.msk.bf16.vlgmr.msra.gmra.mxu1 %vm261_vm1, %v818_v35  ;;  %1591 = vmatmul.msk.bf16.vlgmr.msra.gmra.mxu2 %vm261_vm1, %v951_v37  ;;  %v412_v42 = vpop.f32.mrf.mxu0  ;;  %v1037_v35 = vld [vmem:[%s1809_s29 + $0x34] sm:$0x7] }
  0x99   : > { %v1042_v18 = vunpack.c.l.b16 %v1037_v35  ;;  %v1660_v35 = vunpack.c.h.b16 %v1828_v13 }
  0x9b   : > { %v1996_v41 = vpop.f32.mrf.mxu2  ;;  %1616 = vmatmul.msk.bf16.gmra.mxu0 %vm261_vm1, %v1193_v39  ;;  %v1096_v39 = vor.u32 %v1095_v34, %v1092_v33 }
  0x9c   : > { %1604 = vmatmul.msk.bf16.gmra.mxu3 %vm261_vm1, %v1070_v5  ;;  %v1692_v5 = vld [vmem:[%s1809_s29 + $0x1c] sm:$0xff]  }
  0x9d   : > { %v2000_v17 = vpop.f32.mrf.mxu1 }
  0x9f   : > { %v2005_v6 = vpop.f32.mrf.mxu3 }
  0xa0   : > { %v414_v49 = vpop.f32.mrf.mxu0 }
  0xa3   : > { %v2008_v48 = vpop.f32.mrf.mxu2 }
  0xa5   : > { %v2011_v51 = vpop.f32.mrf.mxu1 }
  0xa7   : > { %v2014_v53 = vpop.f32.mrf.mxu3 }
  0xa8   : > { %1560 = vmatmul.msk.bf16.gmra.mxu1 %vm261_vm1, %v1688_v50  ;;  %1592 = vmatmul.msk.bf16.gmra.mxu2 %vm261_vm1, %v953_v52  ;;  %v773_v58 = vpop.f32.mrf.mxu0  ;;  %v1097_v50 = vsel %vm1044_vm5, %v1087_v16, %v1096_v39  ;;  %v1043_v52 = vpack.c.b16 %v1042_v18, %v1042_v18  ;;  %v1693_v16 = vld [vmem:[%s1809_s29 + $0x24] sm:$0xff]  }
  0xab   : > { %v2023_v57 = vpop.f32.mrf.mxu2  ;;  %1617 = vmatmul.msk.bf16.gmra.mxu0 %vm261_vm1, %v1195_v59  ;;  %v1102_v59 = vshll.u32 %v1043_v52, 16 }
  0xac   : > { %1605 = vmatmul.msk.bf16.gmra.mxu3 %vm261_vm1, %v1079_v55  ;;  %v1199_v55 = vsel %vm606_vm2, %v1196_v21, %v1198_v47 }
  0xad   : > { %v2027_v60 = vpop.f32.mrf.mxu1 }
  0xaf   : > { %v653_v63 = vpop.f32.mrf.mxu3 }
  0xb0   : > { %v775_v4 = vpop.f32.mrf.mxu0 }
  0xb3   : > { %v2033_v3 = vpop.f32.mrf.mxu2 }
  0xb5   : > { %v469_v11 = vpop.f32.mrf.mxu1 }
  0xb6   : > { %v470_v19 = vadd.f32 %v469_v11, %v412_v42  ;;  %v957_v42 = vsel %vm948_vm6, %v954_v0, %v956_v14 }
  0xb7   : > { %v655_v20 = vpop.f32.mrf.mxu3 }
  0xb8   : > { %1561 = vmatmul.msk.bf16.gmra.mxu1 %vm261_vm1, %v1690_v8  ;;  %1593 = vmatmul.msk.bf16.gmra.mxu2 %vm261_vm1, %v955_v9  ;;  %v778_v10 = vpop.f32.mrf.mxu0 }
  0xbb   : > { %v553_v24 = vpop.f32.mrf.mxu2  ;;  %1618 = vmatmul.msk.bf16.gmra.mxu0 %vm261_vm1, %v1197_v26 }
  0xbc   : > { %v583_v27 = vadd.f32 %v553_v24, %v470_v19  ;;  %1606 = vmatmul.msk.bf16.gmra.mxu3 %vm261_vm1, %v1088_v22  ;;  %v911_v24 = vld [vmem:[%s1809_s29 + $0x34] sm:$0x3] }
  0xbd   : > { %v471_v28 = vpop.f32.mrf.mxu1 }
  0xbe   : > { %v683_v30 = vadd.f32 %v653_v63, %v583_v27  ;;  %v472_v31 = vadd.f32 %v471_v28, %v414_v49  ;;  %v1200_v27 = vrot.slane %v1043_v52, 3  ;;  %v940_v28 = vunpack.c.l.b16 %v911_v24 }
  0xbf   : > { %v658_v32 = vpop.f32.mrf.mxu3 }
  0xc0   : > { %v2049_v12 = vadd.f32 %v773_v58, %v683_v30  ;;  %v780_v38 = vpop.f32.mrf.mxu0  ;;  %v1099_v58 = vshrl.u32 %v1043_v52, 16  ;;  %v1201_v30 = vsel %vm606_vm2, %v1198_v47, %v1200_v27 }
  0xc2   : > { %v1101_v2 = vrot.slane %v1099_v58, 2 }
  0xc3   : > { %v555_v37 = vpop.f32.mrf.mxu2 }
  0xc4   : > { %v584_v40 = vadd.f32 %v555_v37, %v472_v31 }
  0xc5   : > { %v474_v15 = vpop.f32.mrf.mxu1 }
  0xc6   : > { %v684_v43 = vadd.f32 %v655_v20, %v584_v40  ;;  %v475_v45 = vadd.f32 %v474_v15, %v1986_v36  ;;  %v959_v20 = vsel %vm948_vm6, %v956_v14, %v958_v1 }
  0xc7   : > { %v660_v46 = vpop.f32.mrf.mxu3 }
  0xc8   : > { %1562 = vmatmul.msk.bf16.gmra.mxu1 %vm261_vm1, %v1692_v5  ;;  %1594 = vmatmul.msk.bf16.gmra.mxu2 %vm261_vm1, %v957_v42  ;;  %v2059_v49 = vadd.f32 %v775_v4, %v684_v43  ;;  %v783_v54 = vpop.f32.mrf.mxu0  ;;  %v1104_v4 = vrot.slane %v1102_v59, 3  ;;  %v823_v42 = vpack.c.b16 %v1940_v44, %v1660_v35 }
  0xca   : > { %v1105_v21 = vor.u32 %v1104_v4, %v1101_v2 }
  0xcb   : > { %v558_v7 = vpop.f32.mrf.mxu2  ;;  %1619 = vmatmul.msk.bf16.gmra.mxu0 %vm261_vm1, %v1199_v55 }
  0xcc   : > { %v585_v56 = vadd.f32 %v558_v7, %v475_v45  ;;  %1607 = vmatmul.msk.bf16.gmra.mxu3 %vm261_vm1, %v1097_v50 }
  0xcd   : > { %v476_v36 = vpop.f32.mrf.mxu1 }
  0xce   : > { %v685_v61 = vadd.f32 %v658_v32, %v585_v56  ;;  %v477_v62 = vadd.f32 %v476_v36, %v2000_v17  ;;  %v947_v32 = vpack.c.b16 %v940_v28, %v940_v28 }
  0xcf   : > { %v663_v63 = vpop.f32.mrf.mxu3 }
  0xd0   : > { %v2066_v0 = vadd.f32 %v778_v10, %v685_v61  ;;  %v785_v11 = vpop.f32.mrf.mxu0  ;;  %v1106_v10 = vsel %vm1044_vm5, %v1096_v39, %v1105_v21 }
  0xd3   : > { %v560_v8 = vpop.f32.mrf.mxu2 }
  0xd4   : > { %v586_v9 = vadd.f32 %v560_v8, %v477_v62 }
  0xd5   : > { %v479_v19 = vpop.f32.mrf.mxu1 }
  0xd6   : > { %v686_v22 = vadd.f32 %v660_v46, %v586_v9  ;;  %v480_v17 = vadd.f32 %v479_v19, %v2011_v51 }
  0xd7   : > { %v665_v26 = vpop.f32.mrf.mxu3 }
  0xd8   : > { %1563 = vmatmul.msk.bf16.gmra.mxu1 %vm261_vm1, %v1693_v16  ;;  %1595 = vmatmul.msk.bf16.gmra.mxu2 %vm261_vm1, %v959_v20  ;;  %v2075_v23 = vadd.f32 %v780_v38, %v686_v22  ;;  %v788_v29 = vpop.f32.mrf.mxu0  ;;  %v960_v38 = vrot.slane %v947_v32, 2 }
  0xda   : > { %v961_v18 = vsel %vm948_vm6, %v958_v1, %v960_v38 }
  0xdb   : > { %v563_v25 = vpop.f32.mrf.mxu2  ;;  %1620 = vmatmul.msk.bf16.gmra.mxu0 %vm261_vm1, %v1201_v30 }
  0xdc   : > { %v587_v31 = vadd.f32 %v563_v25, %v480_v17  ;;  %1608 = vmatmul.msk.bf16.gmra.mxu3 %vm261_vm1, %v1106_v10 }
  0xdd   : > { %v481_v51 = vpop.f32.mrf.mxu1 }
  0xde   : > { %v687_v14 = vadd.f32 %v663_v63, %v587_v31  ;;  %v482_v33 = vadd.f32 %v481_v51, %v2027_v60  ;;  %v1749_v63 = vmov 0.0  }
  0xdf   : > { %v668_v34 = vpop.f32.mrf.mxu3  ;;  %262 = vst.msk [vmem:[#allocation2] sm:$0xff] %vm261_vm1, %v1749_v63 }
  0xe0   : > { %v2083_v37 = vadd.f32 %v783_v54, %v687_v14  ;;  %v790_v5 = vpop.f32.mrf.mxu0  ;;  %263 = vst.msk [vmem:[#allocation2 + $0x8] sm:$0xff] %vm261_vm1, %v1749_v63 }
  0xe1   : > { %264 = vst.msk [vmem:[#allocation2 + $0x10] sm:$0xff] %vm261_vm1, %v1749_v63 }
  0xe2   : > { %265 = vst.msk [vmem:[#allocation2 + $0x18] sm:$0xff] %vm261_vm1, %v1749_v63 }
  0xe3   : > { %v565_v40 = vpop.f32.mrf.mxu2  ;;  %266 = vst.msk [vmem:[#allocation2 + $0x20] sm:$0xff] %vm261_vm1, %v1749_v63 }
  0xe4   : > { %v588_v15 = vadd.f32 %v565_v40, %v482_v33  ;;  %267 = vst.msk [vmem:[#allocation2 + $0x28] sm:$0xff] %vm261_vm1, %v1749_v63 }
  0xe5   : > { %v484_v39 = vpop.f32.mrf.mxu1  ;;  %268 = vst.msk [vmem:[#allocation2 + $0x30] sm:$0xff] %vm261_vm1, %v1749_v63 }
  0xe6   : > { %v688_v43 = vadd.f32 %v665_v26, %v588_v15  ;;  %v485_v13 = vadd.f32 %v484_v39, %v1996_v41  ;;  %269 = vst.msk [vmem:[#allocation2 + $0x38] sm:$0xff] %vm261_vm1, %v1749_v63 }
  0xe7   : > { %v670_v45 = vpop.f32.mrf.mxu3  ;;  %270 = vst.msk [vmem:[#allocation2 + $0x40] sm:$0xff] %vm261_vm1, %v1749_v63 }
  0xe8   : > { %1564 = vmatmul.msk.bf16.gmra.mxu1 %vm261_vm1, %v823_v42  ;;  %1596 = vmatmul.msk.bf16.gmra.mxu2 %vm261_vm1, %v961_v18  ;;  %v2089_v60 = vadd.f32 %v785_v11, %v688_v43  ;;  %v793_v47 = vpop.f32.mrf.mxu0  ;;  %271 = vst.msk [vmem:[#allocation2 + $0x48] sm:$0xff] %vm261_vm1, %v1749_v63  ;;  %v1277_v43 = vld [vmem:[#allocation2] sm:$0xff] }
  0xe9   : > { %272 = vst.msk [vmem:[#allocation2 + $0x50] sm:$0xff] %vm261_vm1, %v1749_v63 }
  0xea   : > { %273 = vst.msk [vmem:[#allocation2 + $0x58] sm:$0xff] %vm261_vm1, %v1749_v63 }
  0xeb   : > { %v568_v46 = vpop.f32.mrf.mxu2 }
  0xec   : > { %v589_v50 = vadd.f32 %v568_v46, %v485_v13 }
  0xed   : > { %v486_v52 = vpop.f32.mrf.mxu1 }
  0xee   : > { %v689_v7 = vadd.f32 %v668_v34, %v589_v50  ;;  %v487_v55 = vadd.f32 %v486_v52, %v2008_v48 }
  0xef   : > { %v673_v54 = vpop.f32.mrf.mxu3 }
  0xf0   : > { %v2092_v44 = vadd.f32 %v788_v29, %v689_v7  ;;  %v795_v36 = vpop.f32.mrf.mxu0 }
  0xf3   : > { %v570_v56 = vpop.f32.mrf.mxu2 }
  0xf4   : > { %v590_v58 = vadd.f32 %v570_v56, %v487_v55  ;;  %v2127_v56 = vld [vmem:[%s2203_s2] ss:$0 sm:$0xff] }
  0xf5   : > { %v489_v59 = vpop.f32.mrf.mxu1 }
  0xf6   : > { %v690_v61 = vadd.f32 %v670_v45, %v590_v58  ;;  %v490_v1 = vadd.f32 %v489_v59, %v2023_v57 }
  0xf7   : > { %v675_v62 = vpop.f32.mrf.mxu3 }
  0xf8   : > { %v2097_v41 = vadd.f32 %v790_v5, %v690_v61  ;;  %v798_v2 = vpop.f32.mrf.mxu0 }
  0xfb   : > { %v573_v48 = vpop.f32.mrf.mxu2 }
  0xfc   : > { %v591_v4 = vadd.f32 %v573_v48, %v490_v1 }
  0xfd   : > { %v491_v8 = vpop.f32.mrf.mxu1 }
  0xfe   : > { %v691_v11 = vadd.f32 %v673_v54, %v591_v4  ;;  %v492_v16 = vadd.f32 %v491_v8, %v2033_v3  ;;  %v1278_v54 = vld [vmem:[#allocation2 + $0x8] sm:$0xff]  ;;  %v1279_v4 = vld [vmem:[#allocation2 + $0x10] sm:$0xff] }
  0xff   : > { %v678_v9 = vpop.f32.mrf.mxu3 }
 0x100   : > { %v2108_v57 = vadd.f32 %v793_v47, %v691_v11  ;;  %v800_v20 = vpop.f32.mrf.mxu0 }
 0x103   : > { %v575_v19 = vpop.f32.mrf.mxu2 }
 0x104   : > { %v592_v21 = vadd.f32 %v575_v19, %v492_v16 }
 0x105   : > { %v494_v22 = vpop.f32.mrf.mxu1 }
 0x106   : > { %v692_v17 = vadd.f32 %v675_v62, %v592_v21  ;;  %v495_v27 = vadd.f32 %v494_v22, %v2005_v6 }
 0x107   : > { %v680_v24 = vpop.f32.mrf.mxu3 }
 0x108   : > { %v2113_v26 = vadd.f32 %v795_v36, %v692_v17  ;;  %v1235_v28 = vpop.f32.mrf.mxu0 }
 0x10b   : > { %v578_v10 = vpop.f32.mrf.mxu2 }
 0x10c   : > { %v593_v25 = vadd.f32 %v578_v10, %v495_v27  ;;  %v1280_v10 = vld [vmem:[#allocation2 + $0x18] sm:$0xff] }
 0x10d   : > { %v496_v29 = vpop.f32.mrf.mxu1 }
 0x10e   : > { %v693_v30 = vadd.f32 %v678_v9, %v593_v25  ;;  %v497_v3 = vadd.f32 %v496_v29, %v2014_v53 }
 0x10f   : > { %v1140_v31 = vpop.f32.mrf.mxu3 }
 0x110   : > { %v2116_v51 = vadd.f32 %v798_v2, %v693_v30  ;;  %v1237_v14 = vpop.f32.mrf.mxu0 }
 0x113   : > { %v580_v32 = vpop.f32.mrf.mxu2 }
 0x114   : > { %v594_v33 = vadd.f32 %v580_v32, %v497_v3 }
 0x115   : > { %v857_v34 = vpop.f32.mrf.mxu1 }
 0x116   : > { %v694_v35 = vadd.f32 %v680_v24, %v594_v33  ;;  %v887_v6 = vadd.f32 %v857_v34, %v2049_v12 }
 0x117   : > { %v1142_v38 = vpop.f32.mrf.mxu3 }
 0x118   : > { %v2119_v40 = vadd.f32 %v800_v20, %v694_v35  ;;  %v1240_v39 = vpop.f32.mrf.mxu0 }
 0x11b   : > { %v995_v5 = vpop.f32.mrf.mxu2 }
 0x11c   : > { %v1025_v15 = vadd.f32 %v995_v5, %v887_v6 }
 0x11d   : > { %v859_v42 = vpop.f32.mrf.mxu1 }
 0x11e   : > { %v1170_v18 = vadd.f32 %v1140_v31, %v1025_v15  ;;  %v888_v46 = vadd.f32 %v859_v42, %v2059_v49 }
 0x11f   : > { %v1145_v45 = vpop.f32.mrf.mxu3 }
 0x120   : > { %v1265_v13 = vadd.f32 %v1235_v28, %v1170_v18  ;;  %v1242_v55 = vpop.f32.mrf.mxu0 }
 0x122   : > { %v1289_v53 = vadd.f32 %v1277_v43, %v1265_v13 }
 0x123   : > { %v997_v47 = vpop.f32.mrf.mxu2 }
 0x124   : > { %1301 = vst.msk [vmem:[#allocation2] sm:$0xff] %vm261_vm1, %v1289_v53  ;;  %v1026_v50 = vadd.f32 %v997_v47, %v888_v46  ;;  %v1282_v47 = vld [vmem:[#allocation2 + $0x28] sm:$0xff] }
 0x125   : > { %v862_v52 = vpop.f32.mrf.mxu1 }
 0x126   : > { %v1171_v7 = vadd.f32 %v1142_v38, %v1026_v50  ;;  %v889_v59 = vadd.f32 %v862_v52, %v2066_v0  ;;  %v1281_v38 = vld [vmem:[#allocation2 + $0x20] sm:$0xff] }
 0x127   : > { %v1147_v12 = vpop.f32.mrf.mxu3 }
 0x128   : > { %v1266_v36 = vadd.f32 %v1237_v14, %v1171_v7  ;;  %v1245_v11 = vpop.f32.mrf.mxu0 }
 0x12a   : > { %v1290_v58 = vadd.f32 %v1278_v54, %v1266_v36 }
 0x12b   : > { %v1316_v49 = vld [vmem:[#allocation2] sm:$0xff]  ;;  %v1000_v61 = vpop.f32.mrf.mxu2 }
 0x12c   : > { %v1332_v62 = vadd.f32 %v2127_v56, %v1316_v49  ;;  %1302 = vst.msk [vmem:[#allocation2 + $0x8] sm:$0xff] %vm261_vm1, %v1290_v58  ;;  %v1027_v63 = vadd.f32 %v1000_v61, %v889_v59  ;;  %v1283_v61 = vld [vmem:[#allocation2 + $0x30] sm:$0xff] }
 0x12d   : > { %v864_v1 = vpop.f32.mrf.mxu1 }
 0x12e   : > { %v1344_v48 = vpack.c.bf16 %v1332_v62, %v1332_v62  ;;  %v1172_v2 = vadd.f32 %v1145_v45, %v1027_v63  ;;  %v890_v16 = vadd.f32 %v864_v1, %v2075_v23 }
 0x12f   : > { %v1150_v0 = vpop.f32.mrf.mxu3 }
 0x130   : > { %1357 = vst.msk [vmem:[%s2136_s20] sm:$0xf] %vm1356_vm7, %v1344_v48  ;;  %v1267_v8 = vadd.f32 %v1240_v39, %v1172_v2  ;;  %v1247_v3 = vpop.f32.mrf.mxu0 }
 0x132   : > { %v1291_v9 = vadd.f32 %v1279_v4, %v1267_v8 }
 0x133   : > { %v1317_v19 = vld [vmem:[#allocation2 + $0x8] sm:$0xff]  ;;  %v1002_v20 = vpop.f32.mrf.mxu2 }
 0x134   : > { %v1333_v21 = vadd.f32 %v2127_v56, %v1317_v19  ;;  %1303 = vst.msk [vmem:[#allocation2 + $0x10] sm:$0xff] %vm261_vm1, %v1291_v9  ;;  %v1028_v22 = vadd.f32 %v1002_v20, %v890_v16  ;;  %v1284_v16 = vld [vmem:[#allocation2 + $0x38] sm:$0xff] }
 0x135   : > { %v867_v17 = vpop.f32.mrf.mxu1 }
 0x136   : > { %v1345_v24 = vpack.c.bf16 %v1333_v21, %v1333_v21  ;;  %v1173_v27 = vadd.f32 %v1147_v12, %v1028_v22  ;;  %v891_v30 = vadd.f32 %v867_v17, %v2083_v37 }
 0x137   : > { %v1152_v25 = vpop.f32.mrf.mxu3 }
 0x138   : > { %1358 = vst.msk [vmem:[%s2136_s20 + $0x4] sm:$0xf] %vm1356_vm7, %v1345_v24  ;;  %v1268_v28 = vadd.f32 %v1242_v55, %v1173_v27  ;;  %v1250_v13 = vpop.f32.mrf.mxu0 }
 0x13a   : > { %v1292_v29 = vadd.f32 %v1280_v10, %v1268_v28 }
 0x13b   : > { %v1318_v23 = vld [vmem:[#allocation2 + $0x10] sm:$0xff]  ;;  %v1005_v31 = vpop.f32.mrf.mxu2 }
 0x13c   : > { %v1334_v32 = vadd.f32 %v2127_v56, %v1318_v23  ;;  %1304 = vst.msk [vmem:[#allocation2 + $0x18] sm:$0xff] %vm261_vm1, %v1292_v29  ;;  %v1029_v14 = vadd.f32 %v1005_v31, %v891_v30  ;;  %v1285_v30 = vld [vmem:[#allocation2 + $0x40] sm:$0xff] }
 0x13d   : > { %v869_v33 = vpop.f32.mrf.mxu1 }
 0x13e   : > { %v1346_v34 = vpack.c.bf16 %v1334_v32, %v1334_v32  ;;  %v1174_v35 = vadd.f32 %v1150_v0, %v1029_v14  ;;  %v892_v15 = vadd.f32 %v869_v33, %v2089_v60 }
 0x13f   : > { %v1155_v39 = vpop.f32.mrf.mxu3 }
 0x140   : > { %1359 = vst.msk [vmem:[%s2136_s20 + $0x8] sm:$0xf] %vm1356_vm7, %v1346_v34  ;;  %v1269_v6 = vadd.f32 %v1245_v11, %v1174_v35  ;;  %v1252_v62 = vpop.f32.mrf.mxu0 }
 0x142   : > { %v1293_v5 = vadd.f32 %v1281_v38, %v1269_v6 }
 0x143   : > { %v1319_v37 = vld [vmem:[#allocation2 + $0x18] sm:$0xff]  ;;  %v1007_v42 = vpop.f32.mrf.mxu2 }
 0x144   : > { %v1335_v18 = vadd.f32 %v2127_v56, %v1319_v37  ;;  %1305 = vst.msk [vmem:[#allocation2 + $0x20] sm:$0xff] %vm261_vm1, %v1293_v5  ;;  %v1030_v43 = vadd.f32 %v1007_v42, %v892_v15  ;;  %v1286_v15 = vld [vmem:[#allocation2 + $0x48] sm:$0xff] }
 0x145   : > { %v872_v45 = vpop.f32.mrf.mxu1 }
 0x146   : > { %v1347_v53 = vpack.c.bf16 %v1335_v18, %v1335_v18  ;;  %v1175_v46 = vadd.f32 %v1152_v25, %v1030_v43  ;;  %v893_v60 = vadd.f32 %v872_v45, %v2092_v44 }
 0x147   : > { %v1157_v58 = vpop.f32.mrf.mxu3 }
 0x148   : > { %1360 = vst.msk [vmem:[%s2136_s20 + $0xc] sm:$0xf] %vm1356_vm7, %v1347_v53  ;;  %v1270_v50 = vadd.f32 %v1247_v3, %v1175_v46  ;;  %v1255_v21 = vpop.f32.mrf.mxu0 }
 0x14a   : > { %v1294_v52 = vadd.f32 %v1282_v47, %v1270_v50  ;;  %v1287_v50 = vld [vmem:[#allocation2 + $0x50] sm:$0xff] }
 0x14b   : > { %v1320_v7 = vld [vmem:[#allocation2 + $0x20] sm:$0xff]  ;;  %v1010_v54 = vpop.f32.mrf.mxu2 }
 0x14c   : > { %v1336_v12 = vadd.f32 %v2127_v56, %v1320_v7  ;;  %1306 = vst.msk [vmem:[#allocation2 + $0x28] sm:$0xff] %vm261_vm1, %v1294_v52  ;;  %v1031_v55 = vadd.f32 %v1010_v54, %v893_v60 }
 0x14d   : > { %v874_v36 = vpop.f32.mrf.mxu1 }
 0x14e   : > { %v1348_v59 = vpack.c.bf16 %v1336_v12, %v1336_v12  ;;  %v1176_v49 = vadd.f32 %v1155_v39, %v1031_v55  ;;  %v894_v44 = vadd.f32 %v874_v36, %v2097_v41 }
 0x14f   : > { %v1160_v19 = vpop.f32.mrf.mxu3 }
 0x150   : > { %1361 = vst.msk [vmem:[%s2136_s20 + $0x10] sm:$0xf] %vm1356_vm7, %v1348_v59  ;;  %v1271_v63 = vadd.f32 %v1250_v13, %v1176_v49  ;;  %v1257_v14 = vpop.f32.mrf.mxu0 }
 0x152   : > { %v1295_v1 = vadd.f32 %v1283_v61, %v1271_v63 }
 0x153   : > { %v1321_v48 = vld [vmem:[#allocation2 + $0x28] sm:$0xff]  ;;  %v1012_v2 = vpop.f32.mrf.mxu2 }
 0x154   : > { %v1337_v4 = vadd.f32 %v2127_v56, %v1321_v48  ;;  %1307 = vst.msk [vmem:[#allocation2 + $0x30] sm:$0xff] %vm261_vm1, %v1295_v1  ;;  %v1032_v0 = vadd.f32 %v1012_v2, %v894_v44 }
 0x155   : > { %v877_v8 = vpop.f32.mrf.mxu1 }
 0x156   : > { %v1349_v11 = vpack.c.bf16 %v1337_v4, %v1337_v4  ;;  %v1177_v9 = vadd.f32 %v1157_v58, %v1032_v0  ;;  %v895_v41 = vadd.f32 %v877_v8, %v2108_v57 }
 0x157   : > { %v1162_v31 = vpop.f32.mrf.mxu3 }
 0x158   : > { %1362 = vst.msk [vmem:[%s2136_s20 + $0x14] sm:$0xf] %vm1356_vm7, %v1349_v11  ;;  %v1272_v20 = vadd.f32 %v1252_v62, %v1177_v9  ;;  %v1260_v53 = vpop.f32.mrf.mxu0  ;;  %v1288_v62 = vld [vmem:[#allocation2 + $0x58] sm:$0xff] }
 0x15a   : > { %v1296_v22 = vadd.f32 %v1284_v16, %v1272_v20 }
 0x15b   : > { %v1322_v17 = vld [vmem:[#allocation2 + $0x30] sm:$0xff]  ;;  %v1015_v24 = vpop.f32.mrf.mxu2 }
 0x15c   : > { %v1338_v27 = vadd.f32 %v2127_v56, %v1322_v17  ;;  %1308 = vst.msk [vmem:[#allocation2 + $0x38] sm:$0xff] %vm261_vm1, %v1296_v22  ;;  %v1033_v10 = vadd.f32 %v1015_v24, %v895_v41 }
 0x15d   : > { %v879_v28 = vpop.f32.mrf.mxu1 }
 0x15e   : > { %v1350_v25 = vpack.c.bf16 %v1338_v27, %v1338_v27  ;;  %v1178_v29 = vadd.f32 %v1160_v19, %v1033_v10  ;;  %v896_v32 = vadd.f32 %v879_v28, %v2113_v26 }
 0x15f   : > { %v1165_v18 = vpop.f32.mrf.mxu3 }
 0x160   : > { %1363 = vst.msk [vmem:[%s2136_s20 + $0x18] sm:$0xf] %vm1356_vm7, %v1350_v25  ;;  %v1273_v23 = vadd.f32 %v1255_v21, %v1178_v29  ;;  %v1262_v61 = vpop.f32.mrf.mxu0 }
 0x162   : > { %v1297_v3 = vadd.f32 %v1285_v30, %v1273_v23 }
 0x163   : > { %v1323_v57 = vld [vmem:[#allocation2 + $0x38] sm:$0xff]  ;;  %v1017_v33 = vpop.f32.mrf.mxu2 }
 0x164   : > { %v1339_v34 = vadd.f32 %v2127_v56, %v1323_v57  ;;  %1309 = vst.msk [vmem:[#allocation2 + $0x40] sm:$0xff] %vm261_vm1, %v1297_v3  ;;  %v1034_v35 = vadd.f32 %v1017_v33, %v896_v32 }
 0x165   : > { %v882_v38 = vpop.f32.mrf.mxu1 }
 0x166   : > { %v1351_v6 = vpack.c.bf16 %v1339_v34, %v1339_v34  ;;  %v1179_v5 = vadd.f32 %v1162_v31, %v1034_v35  ;;  %v897_v39 = vadd.f32 %v882_v38, %v2116_v51 }
 0x167   : > { %v1167_v58 = vpop.f32.mrf.mxu3 }
 0x168   : > { %1364 = vst.msk [vmem:[%s2136_s20 + $0x1c] sm:$0xf] %vm1356_vm7, %v1351_v6  ;;  %v1274_v37 = vadd.f32 %v1257_v14, %v1179_v5 }
 0x16a   : > { %v1298_v42 = vadd.f32 %v1286_v15, %v1274_v37 }
 0x16b   : > { %v1324_v26 = vld [vmem:[#allocation2 + $0x40] sm:$0xff]  ;;  %v1020_v43 = vpop.f32.mrf.mxu2 }
 0x16c   : > { %v1340_v45 = vadd.f32 %v2127_v56, %v1324_v26  ;;  %1310 = vst.msk [vmem:[#allocation2 + $0x48] sm:$0xff] %vm261_vm1, %v1298_v42  ;;  %v1035_v13 = vadd.f32 %v1020_v43, %v897_v39 }
 0x16d   : > { %v884_v52 = vpop.f32.mrf.mxu1 }
 0x16e   : > { %v1352_v46 = vpack.c.bf16 %v1340_v45, %v1340_v45  ;;  %v1180_v47 = vadd.f32 %v1165_v18, %v1035_v13  ;;  %v898_v51 = vadd.f32 %v884_v52, %v2119_v40 }
 0x170   : > { %1365 = vst.msk [vmem:[%s2136_s20 + $0x20] sm:$0xf] %vm1356_vm7, %v1352_v46  ;;  %v1275_v60 = vadd.f32 %v1260_v53, %v1180_v47 }
 0x172   : > { %v1299_v7 = vadd.f32 %v1287_v50, %v1275_v60 }
 0x173   : > { %v1325_v54 = vld [vmem:[#allocation2 + $0x48] sm:$0xff]  ;;  %v1022_v12 = vpop.f32.mrf.mxu2 }
 0x174   : > { %v1341_v55 = vadd.f32 %v2127_v56, %v1325_v54  ;;  %1311 = vst.msk [vmem:[#allocation2 + $0x50] sm:$0xff] %vm261_vm1, %v1299_v7  ;;  %v1036_v36 = vadd.f32 %v1022_v12, %v898_v51 }
 0x176   : > { %v1353_v59 = vpack.c.bf16 %v1341_v55, %v1341_v55  ;;  %v1181_v49 = vadd.f32 %v1167_v58, %v1036_v36 }
 0x178   : > { %1366 = vst.msk [vmem:[%s2136_s20 + $0x24] sm:$0xf] %vm1356_vm7, %v1353_v59  ;;  %v1276_v63 = vadd.f32 %v1262_v61, %v1181_v49 }
 0x17a   : > { %v1300_v1 = vadd.f32 %v1288_v62, %v1276_v63 }
 0x17b   : > { %v1326_v44 = vld [vmem:[#allocation2 + $0x50] sm:$0xff] }
 0x17c   : > { %v1342_v40 = vadd.f32 %v2127_v56, %v1326_v44  ;;  %1312 = vst.msk [vmem:[#allocation2 + $0x58] sm:$0xff] %vm261_vm1, %v1300_v1 }
 0x17e   : > { %v1354_v48 = vpack.c.bf16 %v1342_v40, %v1342_v40 }
 0x180   : > { %1367 = vst.msk [vmem:[%s2136_s20 + $0x28] sm:$0xf] %vm1356_vm7, %v1354_v48 }
 0x183   : > { %v1327_v2 = vld [vmem:[#allocation2 + $0x58] sm:$0xff] }
 0x184   : > { %v1343_v4 = vadd.f32 %v2127_v56, %v1327_v2 }
 0x186   : > { %v1355_v0 = vpack.c.bf16 %v1343_v4, %v1343_v4 }
 0x188   : > { %1368 = vst.msk [vmem:[%s2136_s20 + $0x2c] sm:$0xf] %vm1356_vm7, %v1355_v0 }
 0x189 PF: > { %s13_s14 = sadd.s32 1, %s1747_s14   ;;  %s2205_s12 = smov %s1743_s13 }
 0x18a   : > { %p10_p5 = scmp.ge.s32.totalorder %s13_s14, 4   ;;  %s2206_s13 = smov %s2208_s15 }
 0x18c   :  { %12 = sbr.rel (!%p10_p5) target bundleno = 2 (0x2), region = 84 }

// kernel: _lambda_.54
= control target key start
LH: loop header
LB: loop body
LE: loop exit
PB: predicated region body
PF: predicated region fallthrough
CT: control target
= control target key end

     0   :  { %s1771_s12 = smov 0   ;;  %s1773_s13 = smov 0   ;;  %s2202_s0 = inlined_call_operand.vmem [shape: bf16[2,116,16], index: 0, kind: input, shape index: {}]   ;;  %s2203_s1 = inlined_call_operand.vmem [shape: bf16[9,16,8], index: 1, kind: input, shape index: {}]   ;;  %s2204_s2 = inlined_call_operand.vmem [shape: f32[1,8], index: 2, kind: input, shape index: {}]   ;;  %s2205_s3 = inlined_call_operand.vmem [shape: bf16[2,96,8], index: 3, kind: output, shape index: {}]  }
   0x1   :  { %s1775_s14 = smov 0  }
   0x2 LB: > { %s32_s15 = sadd.s32 1, %s1744_s13  ;;  %p1493_p0 = scmp.ge.s32.totalorder %s1748_s14, 1  ;;  %s1748_s14 = sphi %s1775_s14, %s13_s14   ;;  %s1744_s13 = sphi %s1773_s13, %s2207_s13   ;;  %s1740_s12 = sphi %s1771_s12, %s2206_s12  }
   0x3   : > { %p34_p1 = scmp.ge.s32.totalorder %s32_s15, 2  ;;  %p187_p2 = scmp.lt.s32.totalorder %s1748_s14, 3 }
   0x5   : > { %s2209_s15 = smov (%p34_p1, %s32_s15), 0  ;;  %p188_p3 = pnand %p1493_p0, %p187_p2 }
   0x6   : > { %p228_p4 = scmp.lt.s32.totalorder (!%p188_p3), %s1740_s12, 1 }
   0x7   : > { %191 = sbr.rel (%p188_p3) target bundleno = 393 (0x189), region = 32 }
   0xc   : > { %v1625_v0 = vld [vmem:[%s2203_s1 + $0x8] sm:$0xff]  ;;  %v1626_v1 = vld [vmem:[%s2203_s1 + $0x10] sm:$0xff]  ;;  %v1624_v2 = vld [vmem:[%s2203_s1] sm:$0xff]  ;;  %s2211_s12 = smov (!%p228_p4, %s1740_s12), 1  ;;  %vm325_vm0 = vsmask.f32 7424 }
   0xd   : > { %v1627_v3 = vld [vmem:[%s2203_s1 + $0x18] sm:$0xff]  ;;  %1695 = vmatpush.bf16.msra.mxu1 %v1625_v0  ;;  %1696 = vmatpush.bf16.msra.mxu2 %v1625_v0  ;;  %v1628_v4 = vld [vmem:[%s2203_s1 + $0x20] sm:$0xff]  ;;  %s1698_s26 = smul.u32 60, %s2211_s12  ;;  %vm384_vm1 = vcmask 130048   ;;  %v1635_v36 = vld [vmem:[%s2203_s1 + $0x30] sm:$0xff]  ;;  %vm606_vm2 = vcmask 1044480  }
   0xe   : > { %1697 = vmatpush.bf16.msra.mxu3 %v1625_v0  ;;  %410 = vmatpush.bf16.msra.mxu0 %v1625_v0  ;;  %v1629_v37 = vld [vmem:[%s2203_s1 + $0x28] sm:$0xff]  ;;  %v1636_v42 = vld [vmem:[%s2203_s1 + $0x38] sm:$0xff]  ;;  %v1637_v45 = vld [vmem:[%s2203_s1 + $0x40] sm:$0xff]  ;;  %vm702_vm3 = vsmask.f32 4352  ;;  %vm506_vm4 = vcmask 1046528  }
   0xf   : > { %s1810_s29 = scalar_lea.vmem %s2202_s0, %s1698_s26  ;;  %vm1044_vm5 = vsmask.f32 5376  ;;  %vm948_vm6 = vcmask 1045504   ;;  %vm261_vm7 = vcmask 64512   ;;  %s1699_s17 = smul.u32 48, %s2211_s12  ;;  %vm1357_vm8 = vcmask 60416  }
  0x10   : > { %v1813_v5 = vld [vmem:[%s1810_s29 + $0x8] sm:$0xff]   ;;  %v1816_v6 = vld [vmem:[%s1810_s29 + $0x10] sm:$0xff]   ;;  %v1819_v7 = vld [vmem:[%s1810_s29 + $0x18] sm:$0xff]  }
  0x11   : > { %551 = vmatpush.bf16.msrb.mxu2 %v1626_v1  ;;  %467 = vmatpush.bf16.msrb.mxu1 %v1624_v2  ;;  %v334_v8 = vshll.u32 %v1813_v5, 16  ;;  %v338_v9 = vshrl.u32 %v1813_v5, 16  ;;  %v342_v10 = vshll.u32 %v1816_v6, 16  ;;  %v1825_v11 = vld [vmem:[%s1810_s29 + $0x20] sm:$0xff]   ;;  %v350_v12 = vshll.u32 %v1819_v7, 16  ;;  %v1829_v13 = vld [vmem:[%s1810_s29 + $0x28] sm:$0xff]   ;;  %s2137_s20 = scalar_lea.vmem %s2205_s3, %s1699_s17 }
  0x12   : > { %651 = vmatpush.bf16.msrb.mxu3 %v1627_v3  ;;  %771 = vmatpush.bf16.msrb.mxu0 %v1628_v4  ;;  %v354_v14 = vshrl.u32 %v1819_v7, 16  ;;  %v358_v15 = vshll.u32 %v1825_v11, 16  ;;  %v288_v16 = vld [vmem:[%s1810_s29 + $0x30] sm:$0x1]  ;;  %v366_v17 = vshll.u32 %v1829_v13, 16  ;;  %v370_v18 = vshrl.u32 %v1829_v13, 16 }
  0x13   : > { %v336_v19 = vrot.slane %v334_v8, 1  ;;  %v344_v20 = vrot.slane %v342_v10, 1  ;;  %v352_v21 = vrot.slane %v350_v12, 1  ;;  %v317_v22 = vunpack.c.l.b16 %v288_v16  ;;  %v1845_v25 = vld [vmem:[%s1810_s29] sm:$0xff]  }
  0x14   : > { %v360_v23 = vrot.slane %v358_v15, 1  ;;  %v368_v24 = vrot.slane %v366_v17, 1  ;;  %v327_v30 = vshrl.u32 %v1845_v25, 16  ;;  %v595_v31 = vld [vmem:[%s1810_s29] sm:$0x8]  ;;  %v329_v35 = vshll.u32 %v1845_v25, 16 }
  0x15   : > { %v340_v26 = vor.u32 %v338_v9, %v336_v19  ;;  %v356_v27 = vor.u32 %v354_v14, %v352_v21  ;;  %v1849_v28 = vpack.c.b16 %v317_v22, %v317_v22  ;;  %v1868_v39 = vunpack.c.h.b16 %v1845_v25  ;;  %v499_v62 = vld [vmem:[%s1810_s29] sm:$0xe] }
  0x16   : > { %v372_v29 = vor.u32 %v370_v18, %v368_v24  ;;  %v331_v40 = vrot.slane %v329_v35, 1  ;;  %v602_v41 = vunpack.c.l.b16 %v595_v31  ;;  %v346_v46 = vshrl.u32 %v1816_v6, 16 }
  0x17   : > { %v345_v32 = vsel %vm325_vm0, %v340_v26, %v344_v20  ;;  %v361_v33 = vsel %vm325_vm0, %v356_v27, %v360_v23  ;;  %v374_v34 = vshll.u32 %v1849_v28, 16  ;;  %v362_v47 = vshrl.u32 %v1825_v11, 16 }
  0x18   : > { %1503 = vmatmul.msk.bf16.vlgmr.msra.gmra.mxu1 %vm384_vm1, %v345_v32  ;;  %1505 = vmatmul.msk.bf16.vlgmr.msra.gmra.mxu2 %vm384_vm1, %v361_v33  ;;  %v332_v44 = vor.u32 %v331_v40, %v327_v30  ;;  %v604_v49 = vpack.c.b16 %v1868_v39, %v602_v41  ;;  %v348_v52 = vor.u32 %v346_v46, %v344_v20  ;;  %v711_v56 = vrot.slane %v338_v9, 3 }
  0x19   : > { %v376_v38 = vrot.slane %v374_v34, 1  ;;  %993 = vmatpush.bf16.msra.mxu2 %v1635_v36  ;;  %855 = vmatpush.bf16.msra.mxu1 %v1629_v37  ;;  %v364_v53 = vor.u32 %v362_v47, %v360_v23  ;;  %v712_v57 = vrot.slane %v334_v8, 4  ;;  %v608_v61 = vrot.slane %v1813_v5, 3 }
  0x1a   : > { %v337_v48 = vsel %vm325_vm0, %v332_v44, %v336_v19  ;;  %v704_v50 = vshrl.u32 %v604_v49, 16  ;;  %v707_v51 = vshll.u32 %v604_v49, 16  ;;  %v353_v58 = vsel %vm325_vm0, %v348_v52, %v352_v21 }
  0x1b   : > { %v377_v43 = vsel %vm325_vm0, %v372_v29, %v376_v38  ;;  %1502 = vmatmul.msk.bf16.vlgmr.msra.gmra.mxu0 %vm384_vm1, %v337_v48  ;;  %v369_v59 = vsel %vm325_vm0, %v364_v53, %v368_v24  ;;  %v607_v60 = vrot.slane %v604_v49, 3  ;;  %v713_v0 = vor.u32 %v712_v57, %v711_v56  ;;  %v900_v53 = vld [vmem:[%s1810_s29 + $0x8] sm:$0xf] }
  0x1c   : > { %1507 = vmatmul.msk.bf16.vlgmr.msra.gmra.mxu3 %vm384_vm1, %v377_v43  ;;  %1233 = vmatpush.bf16.msra.mxu0 %v1637_v45  ;;  %v706_v54 = vrot.slane %v704_v50, 3  ;;  %v709_v55 = vrot.slane %v707_v51, 4  ;;  %v504_v2 = vunpack.c.l.b16 %v499_v62  ;;  %v508_v9 = vrot.slane %v1813_v5, 1  ;;  %v1961_v62 = vld [vmem:[%s1810_s29 + $0xc] sm:$0xff] }
  0x1d   : > { %1138 = vmatpush.bf16.msra.mxu3 %v1636_v42  ;;  %v609_v1 = vsel %vm606_vm2, %v607_v60, %v608_v61  ;;  %v715_v16 = vrot.slane %v346_v46, 3  ;;  %v716_v19 = vrot.slane %v342_v10, 4  ;;  %v610_v21 = vrot.slane %v1816_v6, 3  ;;  %v596_v46 = vld [vmem:[%s1810_s29 + $0x30] sm:$0x7] }
  0x1e   : > { %v710_v63 = vor.u32 %v709_v55, %v706_v54  ;;  %v505_v4 = vpack.c.b16 %v1868_v39, %v504_v2  ;;  %v510_v10 = vrot.slane %v1816_v6, 1  ;;  %v719_v26 = vrot.slane %v354_v14, 3 }
  0x1f   : > { %v717_v22 = vor.u32 %v716_v19, %v715_v16  ;;  %v611_v23 = vsel %vm606_vm2, %v608_v61, %v610_v21  ;;  %v720_v27 = vrot.slane %v350_v12, 4  ;;  %v612_v29 = vrot.slane %v1819_v7, 3 }
  0x20   : > { %v714_v3 = vsel %vm702_vm3, %v710_v63, %v713_v0  ;;  %v507_v8 = vrot.slane %v505_v4, 1  ;;  %v512_v12 = vrot.slane %v1819_v7, 1  ;;  %v723_v14 = vrot.slane %v362_v47, 3 }
  0x21   : > { %v718_v24 = vsel %vm702_vm3, %v713_v0, %v717_v22  ;;  %v721_v30 = vor.u32 %v720_v27, %v719_v26  ;;  %v613_v31 = vsel %vm606_vm2, %v610_v21, %v612_v29  ;;  %v724_v33 = vrot.slane %v358_v15, 4 }
  0x22   : > { %v509_v20 = vsel %vm506_vm4, %v507_v8, %v508_v9  ;;  %v513_v34 = vsel %vm506_vm4, %v510_v10, %v512_v12  ;;  %v614_v35 = vrot.slane %v1825_v11, 3  ;;  %v727_v36 = vrot.slane %v370_v18, 3  ;;  %v695_v18 = vld [vmem:[%s1810_s29 + $0x30] sm:$0xf] }
  0x23   : > { %v722_v32 = vsel %vm702_vm3, %v717_v22, %v721_v30  ;;  %v728_v37 = vrot.slane %v366_v17, 4  ;;  %v725_v38 = vor.u32 %v724_v33, %v723_v14  ;;  %v514_v17 = vrot.slane %v1825_v11, 1 }
  0x24   : > { %v615_v15 = vsel %vm606_vm2, %v612_v29, %v614_v35  ;;  %v1941_v44 = vunpack.c.l.b16 %v695_v18  ;;  %v603_v48 = vunpack.c.l.b16 %v596_v46  ;;  %v516_v51 = vrot.slane %v1829_v13, 1 }
  0x25   : > { %v729_v40 = vor.u32 %v728_v37, %v727_v36  ;;  %v726_v42 = vsel %vm702_vm3, %v721_v30, %v725_v38  ;;  %v515_v43 = vsel %vm506_vm4, %v512_v12, %v514_v17  ;;  %v1054_v4 = vshrl.u32 %v1961_v62, 16 }
  0x26   : > { %v701_v47 = vpack.c.b16 %v1941_v44, %v1941_v44  ;;  %v605_v52 = vpack.c.b16 %v603_v48, %v603_v48  ;;  %v517_v56 = vsel %vm506_vm4, %v514_v17, %v516_v51  ;;  %v1057_v8 = vshll.u32 %v1961_v62, 16 }
  0x27   : > { %v730_v41 = vsel %vm702_vm3, %v725_v38, %v729_v40  ;;  %v1190_v27 = vrot.slane %v1961_v62, 3  ;;  %v950_v14 = vrot.slane %v1961_v62, 2 }
  0x28   : > { %1504 = vmatmul.msk.bf16.gmra.mxu1 %vm384_vm1, %v353_v58  ;;  %1506 = vmatmul.msk.bf16.gmra.mxu2 %vm384_vm1, %v369_v59  ;;  %v732_v49 = vshrl.u32 %v701_v47, 16  ;;  %v735_v50 = vshll.u32 %v701_v47, 16  ;;  %v618_v57 = vrot.slane %v605_v52, 3  ;;  %v929_v59 = vunpack.c.l.b16 %v900_v53 }
  0x29   : > { %v1059_v21 = vrot.slane %v1057_v8, 3  ;;  %v1691_v8 = vld [vmem:[%s1810_s29 + $0x14] sm:$0xff]  }
  0x2a   : > { %v734_v54 = vrot.slane %v732_v49, 3  ;;  %v737_v55 = vrot.slane %v735_v50, 4  ;;  %v1689_v50 = vld [vmem:[%s1810_s29 + $0xc] sm:$0xff]  }
  0x2b   : > { %1548 = vmatmul.msk.bf16.vlgmr.msrb.gmra.mxu0 %vm384_vm1, %v714_v3 }
  0x2c   : > { %1536 = vmatmul.msk.bf16.vlgmr.msrb.gmra.mxu3 %vm384_vm1, %v609_v1  ;;  %v738_v60 = vor.u32 %v737_v55, %v734_v54  ;;  %v1182_v1 = vld [vmem:[%s1810_s29 + $0x4] sm:$0x8] }
  0x2e   : > { %v739_v0 = vsel %vm702_vm3, %v729_v40, %v738_v60 }
  0x38   : > { %1512 = vmatmul.msk.bf16.vlgmr.msrb.gmra.mxu1 %vm384_vm1, %v1845_v25  ;;  %1524 = vmatmul.msk.bf16.vlgmr.msrb.gmra.mxu2 %vm384_vm1, %v509_v20  ;;  %v511_v25 = vsel %vm506_vm4, %v508_v9, %v510_v10  ;;  %v518_v9 = vrot.slane %v1849_v28, 1  ;;  %v1056_v20 = vrot.slane %v1054_v4, 2 }
  0x3a   : > { %v1060_v10 = vor.u32 %v1059_v21, %v1056_v20 }
  0x3b   : > { %1549 = vmatmul.msk.bf16.gmra.mxu0 %vm384_vm1, %v718_v24 }
  0x3c   : > { %1537 = vmatmul.msk.bf16.gmra.mxu3 %vm384_vm1, %v611_v23  ;;  %v519_v23 = vsel %vm506_vm4, %v516_v51, %v518_v9 }
  0x48   : > { %1513 = vmatmul.msk.bf16.gmra.mxu1 %vm384_vm1, %v1813_v5  ;;  %1525 = vmatmul.msk.bf16.gmra.mxu2 %vm384_vm1, %v511_v25  ;;  %v1977_v25 = vld [vmem:[%s1810_s29 + $0x14] sm:$0xff] }
  0x49   : > { %v1063_v30 = vshrl.u32 %v1977_v25, 16  ;;  %v1192_v40 = vrot.slane %v1977_v25, 3 }
  0x4b   : > { %1550 = vmatmul.msk.bf16.gmra.mxu0 %vm384_vm1, %v722_v32  ;;  %v1644_v32 = vunpack.c.l.b16 %v1813_v5  ;;  %v1065_v33 = vrot.slane %v1063_v30, 2 }
  0x4c   : > { %1538 = vmatmul.msk.bf16.gmra.mxu3 %vm384_vm1, %v613_v31  ;;  %v1066_v31 = vshll.u32 %v1977_v25, 16 }
  0x58   : > { %1514 = vmatmul.msk.bf16.gmra.mxu1 %vm384_vm1, %v1816_v6  ;;  %1526 = vmatmul.msk.bf16.gmra.mxu2 %vm384_vm1, %v513_v34  ;;  %v616_v6 = vrot.slane %v1829_v13, 3  ;;  %v1068_v34 = vrot.slane %v1066_v31, 3 }
  0x5a   : > { %v617_v45 = vsel %vm606_vm2, %v614_v35, %v616_v6  ;;  %v619_v61 = vsel %vm606_vm2, %v616_v6, %v618_v57  ;;  %v818_v35 = vpack.c.b16 %v1644_v32, %v1868_v39  ;;  %v1069_v38 = vor.u32 %v1068_v34, %v1065_v33 }
  0x5b   : > { %1551 = vmatmul.msk.bf16.gmra.mxu0 %vm384_vm1, %v726_v42  ;;  %v1193_v39 = vsel %vm606_vm2, %v1190_v27, %v1192_v40 }
  0x5c   : > { %1539 = vmatmul.msk.bf16.gmra.mxu3 %vm384_vm1, %v615_v15  ;;  %v1070_v5 = vsel %vm1044_vm5, %v1060_v10, %v1069_v38  ;;  %v1995_v15 = vld [vmem:[%s1810_s29 + $0x1c] sm:$0xff] }
  0x5d   : > { %v1072_v18 = vshrl.u32 %v1995_v15, 16  ;;  %v1194_v54 = vrot.slane %v1995_v15, 3 }
  0x5f   : > { %v1074_v46 = vrot.slane %v1072_v18, 2 }
  0x68   : > { %1515 = vmatmul.msk.bf16.gmra.mxu1 %vm384_vm1, %v1819_v7  ;;  %1527 = vmatmul.msk.bf16.gmra.mxu2 %vm384_vm1, %v515_v43  ;;  %v899_v7 = vld [vmem:[%s1810_s29 + $0x4] sm:$0xc]  ;;  %v1075_v43 = vshll.u32 %v1995_v15, 16 }
  0x69   : > { %v928_v58 = vunpack.c.l.b16 %v899_v7 }
  0x6a   : > { %v1077_v47 = vrot.slane %v1075_v43, 3 }
  0x6b   : > { %1552 = vmatmul.msk.bf16.gmra.mxu0 %vm384_vm1, %v730_v41  ;;  %v941_v63 = vpack.c.b16 %v929_v59, %v928_v58 }
  0x6c   : > { %1540 = vmatmul.msk.bf16.gmra.mxu3 %vm384_vm1, %v617_v45  ;;  %v952_v45 = vrot.slane %v1977_v25, 2  ;;  %v1078_v7 = vor.u32 %v1077_v47, %v1074_v46 }
  0x6d   : > { %v1046_v2 = vshrl.u32 %v941_v63, 16  ;;  %v1049_v3 = vshll.u32 %v941_v63, 16  ;;  %v949_v12 = vrot.slane %v941_v63, 2 }
  0x6e   : > { %v953_v52 = vsel %vm948_vm6, %v950_v14, %v952_v45  ;;  %v1079_v55 = vsel %vm1044_vm5, %v1069_v38, %v1078_v7 }
  0x6f   : > { %v1048_v16 = vrot.slane %v1046_v2, 2  ;;  %v1051_v19 = vrot.slane %v1049_v3, 3  ;;  %v951_v37 = vsel %vm948_vm6, %v949_v12, %v950_v14 }
  0x71   : > { %v1052_v24 = vor.u32 %v1051_v19, %v1048_v16 }
  0x73   : > { %v1061_v28 = vsel %vm1044_vm5, %v1052_v24, %v1060_v10 }
  0x78   : > { %1516 = vmatmul.msk.bf16.gmra.mxu1 %vm384_vm1, %v1825_v11  ;;  %1528 = vmatmul.msk.bf16.gmra.mxu2 %vm384_vm1, %v517_v56  ;;  %v1187_v11 = vunpack.c.l.b16 %v1182_v1  ;;  %v2022_v56 = vld [vmem:[%s1810_s29 + $0x24] sm:$0xff] }
  0x79   : > { %v1084_v62 = vshll.u32 %v2022_v56, 16  ;;  %v1196_v21 = vrot.slane %v2022_v56, 3  ;;  %v956_v14 = vrot.slane %v2022_v56, 2 }
  0x7a   : > { %v1188_v22 = vpack.c.b16 %v929_v59, %v1187_v11  ;;  %v1195_v59 = vsel %vm606_vm2, %v1192_v40, %v1194_v54 }
  0x7b   : > { %1553 = vmatmul.msk.bf16.gmra.mxu0 %vm384_vm1, %v739_v0  ;;  %v954_v0 = vrot.slane %v1995_v15, 2  ;;  %v1086_v2 = vrot.slane %v1084_v62, 3 }
  0x7c   : > { %1541 = vmatmul.msk.bf16.gmra.mxu3 %vm384_vm1, %v619_v61  ;;  %v1189_v26 = vrot.slane %v1188_v22, 3  ;;  %v1081_v61 = vshrl.u32 %v2022_v56, 16 }
  0x7d   : > { %v955_v9 = vsel %vm948_vm6, %v952_v45, %v954_v0 }
  0x7e   : > { %v1191_v29 = vsel %vm606_vm2, %v1189_v26, %v1190_v27  ;;  %v1083_v1 = vrot.slane %v1081_v61, 2  ;;  %v1197_v26 = vsel %vm606_vm2, %v1194_v54, %v1196_v21 }
  0x80   : > { %v1087_v16 = vor.u32 %v1086_v2, %v1083_v1 }
  0x82   : > { %v1088_v22 = vsel %vm1044_vm5, %v1078_v7, %v1087_v16 }
  0x88   : > { %1517 = vmatmul.msk.bf16.gmra.mxu1 %vm384_vm1, %v1829_v13  ;;  %1529 = vmatmul.msk.bf16.gmra.mxu2 %vm384_vm1, %v519_v23  ;;  %v2043_v23 = vld [vmem:[%s1810_s29 + $0x2c] sm:$0xff] }
  0x89   : > { %v1090_v25 = vshrl.u32 %v2043_v23, 16  ;;  %v1198_v47 = vrot.slane %v2043_v23, 3  ;;  %v958_v1 = vrot.slane %v2043_v23, 2 }
  0x8b   : > { %1616 = vmatmul.msk.bf16.vlgmr.msra.gmra.mxu0 %vm384_vm1, %v1191_v29  ;;  %v1093_v29 = vshll.u32 %v2043_v23, 16  ;;  %v1092_v33 = vrot.slane %v1090_v25, 2 }
  0x8c   : > { %1604 = vmatmul.msk.bf16.vlgmr.msra.gmra.mxu3 %vm384_vm1, %v1061_v28 }
  0x8d   : > { %v1095_v34 = vrot.slane %v1093_v29, 3 }
  0x95   : > { %v1987_v36 = vpop.f32.mrf.mxu1 }
  0x98   : > { %1560 = vmatmul.msk.bf16.vlgmr.msra.gmra.mxu1 %vm384_vm1, %v818_v35  ;;  %1592 = vmatmul.msk.bf16.vlgmr.msra.gmra.mxu2 %vm384_vm1, %v951_v37  ;;  %v412_v42 = vpop.f32.mrf.mxu0  ;;  %v1037_v35 = vld [vmem:[%s1810_s29 + $0x34] sm:$0x7] }
  0x99   : > { %v1042_v18 = vunpack.c.l.b16 %v1037_v35  ;;  %v1661_v35 = vunpack.c.h.b16 %v1829_v13 }
  0x9b   : > { %v1997_v41 = vpop.f32.mrf.mxu2  ;;  %1617 = vmatmul.msk.bf16.gmra.mxu0 %vm384_vm1, %v1193_v39  ;;  %v1096_v39 = vor.u32 %v1095_v34, %v1092_v33 }
  0x9c   : > { %1605 = vmatmul.msk.bf16.gmra.mxu3 %vm384_vm1, %v1070_v5  ;;  %v1693_v5 = vld [vmem:[%s1810_s29 + $0x1c] sm:$0xff]  }
  0x9d   : > { %v2001_v17 = vpop.f32.mrf.mxu1 }
  0x9f   : > { %v2006_v6 = vpop.f32.mrf.mxu3 }
  0xa0   : > { %v414_v49 = vpop.f32.mrf.mxu0 }
  0xa3   : > { %v2009_v48 = vpop.f32.mrf.mxu2 }
  0xa5   : > { %v2012_v51 = vpop.f32.mrf.mxu1 }
  0xa7   : > { %v2015_v53 = vpop.f32.mrf.mxu3 }
  0xa8   : > { %1561 = vmatmul.msk.bf16.gmra.mxu1 %vm384_vm1, %v1689_v50  ;;  %1593 = vmatmul.msk.bf16.gmra.mxu2 %vm384_vm1, %v953_v52  ;;  %v773_v58 = vpop.f32.mrf.mxu0  ;;  %v1097_v50 = vsel %vm1044_vm5, %v1087_v16, %v1096_v39  ;;  %v1043_v52 = vpack.c.b16 %v1042_v18, %v1042_v18  ;;  %v1694_v16 = vld [vmem:[%s1810_s29 + $0x24] sm:$0xff]  }
  0xab   : > { %v2024_v57 = vpop.f32.mrf.mxu2  ;;  %1618 = vmatmul.msk.bf16.gmra.mxu0 %vm384_vm1, %v1195_v59  ;;  %v1102_v59 = vshll.u32 %v1043_v52, 16 }
  0xac   : > { %1606 = vmatmul.msk.bf16.gmra.mxu3 %vm384_vm1, %v1079_v55  ;;  %v1199_v55 = vsel %vm606_vm2, %v1196_v21, %v1198_v47 }
  0xad   : > { %v2028_v60 = vpop.f32.mrf.mxu1 }
  0xaf   : > { %v653_v63 = vpop.f32.mrf.mxu3 }
  0xb0   : > { %v775_v4 = vpop.f32.mrf.mxu0 }
  0xb3   : > { %v2034_v3 = vpop.f32.mrf.mxu2 }
  0xb5   : > { %v469_v11 = vpop.f32.mrf.mxu1 }
  0xb6   : > { %v470_v19 = vadd.f32 %v469_v11, %v412_v42  ;;  %v957_v42 = vsel %vm948_vm6, %v954_v0, %v956_v14 }
  0xb7   : > { %v655_v20 = vpop.f32.mrf.mxu3 }
  0xb8   : > { %1562 = vmatmul.msk.bf16.gmra.mxu1 %vm384_vm1, %v1691_v8  ;;  %1594 = vmatmul.msk.bf16.gmra.mxu2 %vm384_vm1, %v955_v9  ;;  %v778_v10 = vpop.f32.mrf.mxu0 }
  0xbb   : > { %v553_v24 = vpop.f32.mrf.mxu2  ;;  %1619 = vmatmul.msk.bf16.gmra.mxu0 %vm384_vm1, %v1197_v26 }
  0xbc   : > { %v583_v27 = vadd.f32 %v553_v24, %v470_v19  ;;  %1607 = vmatmul.msk.bf16.gmra.mxu3 %vm384_vm1, %v1088_v22  ;;  %v911_v24 = vld [vmem:[%s1810_s29 + $0x34] sm:$0x3] }
  0xbd   : > { %v471_v28 = vpop.f32.mrf.mxu1 }
  0xbe   : > { %v683_v30 = vadd.f32 %v653_v63, %v583_v27  ;;  %v472_v31 = vadd.f32 %v471_v28, %v414_v49  ;;  %v1200_v27 = vrot.slane %v1043_v52, 3  ;;  %v940_v28 = vunpack.c.l.b16 %v911_v24 }
  0xbf   : > { %v658_v32 = vpop.f32.mrf.mxu3 }
  0xc0   : > { %v2050_v12 = vadd.f32 %v773_v58, %v683_v30  ;;  %v780_v38 = vpop.f32.mrf.mxu0  ;;  %v1099_v58 = vshrl.u32 %v1043_v52, 16  ;;  %v1201_v30 = vsel %vm606_vm2, %v1198_v47, %v1200_v27 }
  0xc2   : > { %v1101_v2 = vrot.slane %v1099_v58, 2 }
  0xc3   : > { %v555_v37 = vpop.f32.mrf.mxu2 }
  0xc4   : > { %v584_v40 = vadd.f32 %v555_v37, %v472_v31 }
  0xc5   : > { %v474_v15 = vpop.f32.mrf.mxu1 }
  0xc6   : > { %v684_v43 = vadd.f32 %v655_v20, %v584_v40  ;;  %v475_v45 = vadd.f32 %v474_v15, %v1987_v36  ;;  %v959_v20 = vsel %vm948_vm6, %v956_v14, %v958_v1 }
  0xc7   : > { %v660_v46 = vpop.f32.mrf.mxu3 }
  0xc8   : > { %1563 = vmatmul.msk.bf16.gmra.mxu1 %vm384_vm1, %v1693_v5  ;;  %1595 = vmatmul.msk.bf16.gmra.mxu2 %vm384_vm1, %v957_v42  ;;  %v2060_v49 = vadd.f32 %v775_v4, %v684_v43  ;;  %v783_v54 = vpop.f32.mrf.mxu0  ;;  %v1104_v4 = vrot.slane %v1102_v59, 3  ;;  %v823_v42 = vpack.c.b16 %v1941_v44, %v1661_v35 }
  0xca   : > { %v1105_v21 = vor.u32 %v1104_v4, %v1101_v2 }
  0xcb   : > { %v558_v7 = vpop.f32.mrf.mxu2  ;;  %1620 = vmatmul.msk.bf16.gmra.mxu0 %vm384_vm1, %v1199_v55 }
  0xcc   : > { %v585_v56 = vadd.f32 %v558_v7, %v475_v45  ;;  %1608 = vmatmul.msk.bf16.gmra.mxu3 %vm384_vm1, %v1097_v50 }
  0xcd   : > { %v476_v36 = vpop.f32.mrf.mxu1 }
  0xce   : > { %v685_v61 = vadd.f32 %v658_v32, %v585_v56  ;;  %v477_v62 = vadd.f32 %v476_v36, %v2001_v17  ;;  %v947_v32 = vpack.c.b16 %v940_v28, %v940_v28 }
  0xcf   : > { %v663_v63 = vpop.f32.mrf.mxu3 }
  0xd0   : > { %v2067_v0 = vadd.f32 %v778_v10, %v685_v61  ;;  %v785_v11 = vpop.f32.mrf.mxu0  ;;  %v1106_v10 = vsel %vm1044_vm5, %v1096_v39, %v1105_v21 }
  0xd3   : > { %v560_v8 = vpop.f32.mrf.mxu2 }
  0xd4   : > { %v586_v9 = vadd.f32 %v560_v8, %v477_v62 }
  0xd5   : > { %v479_v19 = vpop.f32.mrf.mxu1 }
  0xd6   : > { %v686_v22 = vadd.f32 %v660_v46, %v586_v9  ;;  %v480_v17 = vadd.f32 %v479_v19, %v2012_v51 }
  0xd7   : > { %v665_v26 = vpop.f32.mrf.mxu3 }
  0xd8   : > { %1564 = vmatmul.msk.bf16.gmra.mxu1 %vm384_vm1, %v1694_v16  ;;  %1596 = vmatmul.msk.bf16.gmra.mxu2 %vm384_vm1, %v959_v20  ;;  %v2076_v23 = vadd.f32 %v780_v38, %v686_v22  ;;  %v788_v29 = vpop.f32.mrf.mxu0  ;;  %v960_v38 = vrot.slane %v947_v32, 2 }
  0xda   : > { %v961_v18 = vsel %vm948_vm6, %v958_v1, %v960_v38 }
  0xdb   : > { %v563_v25 = vpop.f32.mrf.mxu2  ;;  %1621 = vmatmul.msk.bf16.gmra.mxu0 %vm384_vm1, %v1201_v30 }
  0xdc   : > { %v587_v31 = vadd.f32 %v563_v25, %v480_v17  ;;  %1609 = vmatmul.msk.bf16.gmra.mxu3 %vm384_vm1, %v1106_v10 }
  0xdd   : > { %v481_v51 = vpop.f32.mrf.mxu1 }
  0xde   : > { %v687_v14 = vadd.f32 %v663_v63, %v587_v31  ;;  %v482_v33 = vadd.f32 %v481_v51, %v2028_v60  ;;  %v1750_v63 = vmov 0.0  }
  0xdf   : > { %v668_v34 = vpop.f32.mrf.mxu3  ;;  %262 = vst.msk [vmem:[#allocation2] sm:$0xff] %vm261_vm7, %v1750_v63 }
  0xe0   : > { %v2084_v37 = vadd.f32 %v783_v54, %v687_v14  ;;  %v790_v5 = vpop.f32.mrf.mxu0  ;;  %263 = vst.msk [vmem:[#allocation2 + $0x8] sm:$0xff] %vm261_vm7, %v1750_v63 }
  0xe1   : > { %264 = vst.msk [vmem:[#allocation2 + $0x10] sm:$0xff] %vm261_vm7, %v1750_v63 }
  0xe2   : > { %265 = vst.msk [vmem:[#allocation2 + $0x18] sm:$0xff] %vm261_vm7, %v1750_v63 }
  0xe3   : > { %v565_v40 = vpop.f32.mrf.mxu2  ;;  %266 = vst.msk [vmem:[#allocation2 + $0x20] sm:$0xff] %vm261_vm7, %v1750_v63 }
  0xe4   : > { %v588_v15 = vadd.f32 %v565_v40, %v482_v33  ;;  %267 = vst.msk [vmem:[#allocation2 + $0x28] sm:$0xff] %vm261_vm7, %v1750_v63 }
  0xe5   : > { %v484_v39 = vpop.f32.mrf.mxu1  ;;  %268 = vst.msk [vmem:[#allocation2 + $0x30] sm:$0xff] %vm261_vm7, %v1750_v63 }
  0xe6   : > { %v688_v43 = vadd.f32 %v665_v26, %v588_v15  ;;  %v485_v13 = vadd.f32 %v484_v39, %v1997_v41  ;;  %269 = vst.msk [vmem:[#allocation2 + $0x38] sm:$0xff] %vm261_vm7, %v1750_v63 }
  0xe7   : > { %v670_v45 = vpop.f32.mrf.mxu3  ;;  %270 = vst.msk [vmem:[#allocation2 + $0x40] sm:$0xff] %vm261_vm7, %v1750_v63 }
  0xe8   : > { %1565 = vmatmul.msk.bf16.gmra.mxu1 %vm384_vm1, %v823_v42  ;;  %1597 = vmatmul.msk.bf16.gmra.mxu2 %vm384_vm1, %v961_v18  ;;  %v2090_v60 = vadd.f32 %v785_v11, %v688_v43  ;;  %v793_v47 = vpop.f32.mrf.mxu0  ;;  %271 = vst.msk [vmem:[#allocation2 + $0x48] sm:$0xff] %vm261_vm7, %v1750_v63  ;;  %v1277_v43 = vld [vmem:[#allocation2] sm:$0xff] }
  0xe9   : > { %272 = vst.msk [vmem:[#allocation2 + $0x50] sm:$0xff] %vm261_vm7, %v1750_v63 }
  0xea   : > { %273 = vst.msk [vmem:[#allocation2 + $0x58] sm:$0xff] %vm261_vm7, %v1750_v63 }
  0xeb   : > { %v568_v46 = vpop.f32.mrf.mxu2 }
  0xec   : > { %v589_v50 = vadd.f32 %v568_v46, %v485_v13 }
  0xed   : > { %v486_v52 = vpop.f32.mrf.mxu1 }
  0xee   : > { %v689_v7 = vadd.f32 %v668_v34, %v589_v50  ;;  %v487_v55 = vadd.f32 %v486_v52, %v2009_v48 }
  0xef   : > { %v673_v54 = vpop.f32.mrf.mxu3 }
  0xf0   : > { %v2093_v44 = vadd.f32 %v788_v29, %v689_v7  ;;  %v795_v36 = vpop.f32.mrf.mxu0 }
  0xf3   : > { %v570_v56 = vpop.f32.mrf.mxu2 }
  0xf4   : > { %v590_v58 = vadd.f32 %v570_v56, %v487_v55  ;;  %v2128_v56 = vld [vmem:[%s2204_s2] ss:$0 sm:$0xff] }
  0xf5   : > { %v489_v59 = vpop.f32.mrf.mxu1 }
  0xf6   : > { %v690_v61 = vadd.f32 %v670_v45, %v590_v58  ;;  %v490_v1 = vadd.f32 %v489_v59, %v2024_v57 }
  0xf7   : > { %v675_v62 = vpop.f32.mrf.mxu3 }
  0xf8   : > { %v2098_v41 = vadd.f32 %v790_v5, %v690_v61  ;;  %v798_v2 = vpop.f32.mrf.mxu0 }
  0xfb   : > { %v573_v48 = vpop.f32.mrf.mxu2 }
  0xfc   : > { %v591_v4 = vadd.f32 %v573_v48, %v490_v1 }
  0xfd   : > { %v491_v8 = vpop.f32.mrf.mxu1 }
  0xfe   : > { %v691_v11 = vadd.f32 %v673_v54, %v591_v4  ;;  %v492_v16 = vadd.f32 %v491_v8, %v2034_v3  ;;  %v1278_v54 = vld [vmem:[#allocation2 + $0x8] sm:$0xff]  ;;  %v1279_v4 = vld [vmem:[#allocation2 + $0x10] sm:$0xff] }
  0xff   : > { %v678_v9 = vpop.f32.mrf.mxu3 }
 0x100   : > { %v2109_v57 = vadd.f32 %v793_v47, %v691_v11  ;;  %v800_v20 = vpop.f32.mrf.mxu0 }
 0x103   : > { %v575_v19 = vpop.f32.mrf.mxu2 }
 0x104   : > { %v592_v21 = vadd.f32 %v575_v19, %v492_v16 }
 0x105   : > { %v494_v22 = vpop.f32.mrf.mxu1 }
 0x106   : > { %v692_v17 = vadd.f32 %v675_v62, %v592_v21  ;;  %v495_v27 = vadd.f32 %v494_v22, %v2006_v6 }
 0x107   : > { %v680_v24 = vpop.f32.mrf.mxu3 }
 0x108   : > { %v2114_v26 = vadd.f32 %v795_v36, %v692_v17  ;;  %v1235_v28 = vpop.f32.mrf.mxu0 }
 0x10b   : > { %v578_v10 = vpop.f32.mrf.mxu2 }
 0x10c   : > { %v593_v25 = vadd.f32 %v578_v10, %v495_v27  ;;  %v1280_v10 = vld [vmem:[#allocation2 + $0x18] sm:$0xff] }
 0x10d   : > { %v496_v29 = vpop.f32.mrf.mxu1 }
 0x10e   : > { %v693_v30 = vadd.f32 %v678_v9, %v593_v25  ;;  %v497_v3 = vadd.f32 %v496_v29, %v2015_v53 }
 0x10f   : > { %v1140_v31 = vpop.f32.mrf.mxu3 }
 0x110   : > { %v2117_v51 = vadd.f32 %v798_v2, %v693_v30  ;;  %v1237_v14 = vpop.f32.mrf.mxu0 }
 0x113   : > { %v580_v32 = vpop.f32.mrf.mxu2 }
 0x114   : > { %v594_v33 = vadd.f32 %v580_v32, %v497_v3 }
 0x115   : > { %v857_v34 = vpop.f32.mrf.mxu1 }
 0x116   : > { %v694_v35 = vadd.f32 %v680_v24, %v594_v33  ;;  %v887_v6 = vadd.f32 %v857_v34, %v2050_v12 }
 0x117   : > { %v1142_v38 = vpop.f32.mrf.mxu3 }
 0x118   : > { %v2120_v40 = vadd.f32 %v800_v20, %v694_v35  ;;  %v1240_v39 = vpop.f32.mrf.mxu0 }
 0x11b   : > { %v995_v5 = vpop.f32.mrf.mxu2 }
 0x11c   : > { %v1025_v15 = vadd.f32 %v995_v5, %v887_v6 }
 0x11d   : > { %v859_v42 = vpop.f32.mrf.mxu1 }
 0x11e   : > { %v1170_v18 = vadd.f32 %v1140_v31, %v1025_v15  ;;  %v888_v46 = vadd.f32 %v859_v42, %v2060_v49 }
 0x11f   : > { %v1145_v45 = vpop.f32.mrf.mxu3 }
 0x120   : > { %v1265_v13 = vadd.f32 %v1235_v28, %v1170_v18  ;;  %v1242_v55 = vpop.f32.mrf.mxu0 }
 0x122   : > { %v1289_v53 = vadd.f32 %v1277_v43, %v1265_v13 }
 0x123   : > { %v997_v47 = vpop.f32.mrf.mxu2 }
 0x124   : > { %1302 = vst.msk [vmem:[#allocation2] sm:$0xff] %vm261_vm7, %v1289_v53  ;;  %v1026_v50 = vadd.f32 %v997_v47, %v888_v46  ;;  %v1282_v47 = vld [vmem:[#allocation2 + $0x28] sm:$0xff] }
 0x125   : > { %v862_v52 = vpop.f32.mrf.mxu1 }
 0x126   : > { %v1171_v7 = vadd.f32 %v1142_v38, %v1026_v50  ;;  %v889_v59 = vadd.f32 %v862_v52, %v2067_v0  ;;  %v1281_v38 = vld [vmem:[#allocation2 + $0x20] sm:$0xff] }
 0x127   : > { %v1147_v12 = vpop.f32.mrf.mxu3 }
 0x128   : > { %v1266_v36 = vadd.f32 %v1237_v14, %v1171_v7  ;;  %v1245_v11 = vpop.f32.mrf.mxu0 }
 0x12a   : > { %v1290_v58 = vadd.f32 %v1278_v54, %v1266_v36 }
 0x12b   : > { %v1317_v49 = vld [vmem:[#allocation2] sm:$0xff]  ;;  %v1000_v61 = vpop.f32.mrf.mxu2 }
 0x12c   : > { %v1333_v62 = vadd.f32 %v2128_v56, %v1317_v49  ;;  %1303 = vst.msk [vmem:[#allocation2 + $0x8] sm:$0xff] %vm261_vm7, %v1290_v58  ;;  %v1027_v63 = vadd.f32 %v1000_v61, %v889_v59  ;;  %v1283_v61 = vld [vmem:[#allocation2 + $0x30] sm:$0xff] }
 0x12d   : > { %v864_v1 = vpop.f32.mrf.mxu1 }
 0x12e   : > { %v1345_v48 = vpack.c.bf16 %v1333_v62, %v1333_v62  ;;  %v1172_v2 = vadd.f32 %v1145_v45, %v1027_v63  ;;  %v890_v16 = vadd.f32 %v864_v1, %v2076_v23 }
 0x12f   : > { %v1150_v0 = vpop.f32.mrf.mxu3 }
 0x130   : > { %1358 = vst.msk [vmem:[%s2137_s20] sm:$0xf] %vm1357_vm8, %v1345_v48  ;;  %v1267_v8 = vadd.f32 %v1240_v39, %v1172_v2  ;;  %v1247_v3 = vpop.f32.mrf.mxu0 }
 0x132   : > { %v1291_v9 = vadd.f32 %v1279_v4, %v1267_v8 }
 0x133   : > { %v1318_v19 = vld [vmem:[#allocation2 + $0x8] sm:$0xff]  ;;  %v1002_v20 = vpop.f32.mrf.mxu2 }
 0x134   : > { %v1334_v21 = vadd.f32 %v2128_v56, %v1318_v19  ;;  %1304 = vst.msk [vmem:[#allocation2 + $0x10] sm:$0xff] %vm261_vm7, %v1291_v9  ;;  %v1028_v22 = vadd.f32 %v1002_v20, %v890_v16  ;;  %v1284_v16 = vld [vmem:[#allocation2 + $0x38] sm:$0xff] }
 0x135   : > { %v867_v17 = vpop.f32.mrf.mxu1 }
 0x136   : > { %v1346_v24 = vpack.c.bf16 %v1334_v21, %v1334_v21  ;;  %v1173_v27 = vadd.f32 %v1147_v12, %v1028_v22  ;;  %v891_v30 = vadd.f32 %v867_v17, %v2084_v37 }
 0x137   : > { %v1152_v25 = vpop.f32.mrf.mxu3 }
 0x138   : > { %1359 = vst.msk [vmem:[%s2137_s20 + $0x4] sm:$0xf] %vm1357_vm8, %v1346_v24  ;;  %v1268_v28 = vadd.f32 %v1242_v55, %v1173_v27  ;;  %v1250_v13 = vpop.f32.mrf.mxu0 }
 0x13a   : > { %v1292_v29 = vadd.f32 %v1280_v10, %v1268_v28 }
 0x13b   : > { %v1319_v23 = vld [vmem:[#allocation2 + $0x10] sm:$0xff]  ;;  %v1005_v31 = vpop.f32.mrf.mxu2 }
 0x13c   : > { %v1335_v32 = vadd.f32 %v2128_v56, %v1319_v23  ;;  %1305 = vst.msk [vmem:[#allocation2 + $0x18] sm:$0xff] %vm261_vm7, %v1292_v29  ;;  %v1029_v14 = vadd.f32 %v1005_v31, %v891_v30  ;;  %v1285_v30 = vld [vmem:[#allocation2 + $0x40] sm:$0xff] }
 0x13d   : > { %v869_v33 = vpop.f32.mrf.mxu1 }
 0x13e   : > { %v1347_v34 = vpack.c.bf16 %v1335_v32, %v1335_v32  ;;  %v1174_v35 = vadd.f32 %v1150_v0, %v1029_v14  ;;  %v892_v15 = vadd.f32 %v869_v33, %v2090_v60 }
 0x13f   : > { %v1155_v39 = vpop.f32.mrf.mxu3 }
 0x140   : > { %1360 = vst.msk [vmem:[%s2137_s20 + $0x8] sm:$0xf] %vm1357_vm8, %v1347_v34  ;;  %v1269_v6 = vadd.f32 %v1245_v11, %v1174_v35  ;;  %v1252_v62 = vpop.f32.mrf.mxu0 }
 0x142   : > { %v1293_v5 = vadd.f32 %v1281_v38, %v1269_v6 }
 0x143   : > { %v1320_v37 = vld [vmem:[#allocation2 + $0x18] sm:$0xff]  ;;  %v1007_v42 = vpop.f32.mrf.mxu2 }
 0x144   : > { %v1336_v18 = vadd.f32 %v2128_v56, %v1320_v37  ;;  %1306 = vst.msk [vmem:[#allocation2 + $0x20] sm:$0xff] %vm261_vm7, %v1293_v5  ;;  %v1030_v43 = vadd.f32 %v1007_v42, %v892_v15  ;;  %v1286_v15 = vld [vmem:[#allocation2 + $0x48] sm:$0xff] }
 0x145   : > { %v872_v45 = vpop.f32.mrf.mxu1 }
 0x146   : > { %v1348_v53 = vpack.c.bf16 %v1336_v18, %v1336_v18  ;;  %v1175_v46 = vadd.f32 %v1152_v25, %v1030_v43  ;;  %v893_v60 = vadd.f32 %v872_v45, %v2093_v44 }
 0x147   : > { %v1157_v58 = vpop.f32.mrf.mxu3 }
 0x148   : > { %1361 = vst.msk [vmem:[%s2137_s20 + $0xc] sm:$0xf] %vm1357_vm8, %v1348_v53  ;;  %v1270_v50 = vadd.f32 %v1247_v3, %v1175_v46  ;;  %v1255_v21 = vpop.f32.mrf.mxu0 }
 0x14a   : > { %v1294_v52 = vadd.f32 %v1282_v47, %v1270_v50  ;;  %v1287_v50 = vld [vmem:[#allocation2 + $0x50] sm:$0xff] }
 0x14b   : > { %v1321_v7 = vld [vmem:[#allocation2 + $0x20] sm:$0xff]  ;;  %v1010_v54 = vpop.f32.mrf.mxu2 }
 0x14c   : > { %v1337_v12 = vadd.f32 %v2128_v56, %v1321_v7  ;;  %1307 = vst.msk [vmem:[#allocation2 + $0x28] sm:$0xff] %vm261_vm7, %v1294_v52  ;;  %v1031_v55 = vadd.f32 %v1010_v54, %v893_v60 }
 0x14d   : > { %v874_v36 = vpop.f32.mrf.mxu1 }
 0x14e   : > { %v1349_v59 = vpack.c.bf16 %v1337_v12, %v1337_v12  ;;  %v1176_v49 = vadd.f32 %v1155_v39, %v1031_v55  ;;  %v894_v44 = vadd.f32 %v874_v36, %v2098_v41 }
 0x14f   : > { %v1160_v19 = vpop.f32.mrf.mxu3 }
 0x150   : > { %1362 = vst.msk [vmem:[%s2137_s20 + $0x10] sm:$0xf] %vm1357_vm8, %v1349_v59  ;;  %v1271_v63 = vadd.f32 %v1250_v13, %v1176_v49  ;;  %v1257_v14 = vpop.f32.mrf.mxu0 }
 0x152   : > { %v1295_v1 = vadd.f32 %v1283_v61, %v1271_v63 }
 0x153   : > { %v1322_v48 = vld [vmem:[#allocation2 + $0x28] sm:$0xff]  ;;  %v1012_v2 = vpop.f32.mrf.mxu2 }
 0x154   : > { %v1338_v4 = vadd.f32 %v2128_v56, %v1322_v48  ;;  %1308 = vst.msk [vmem:[#allocation2 + $0x30] sm:$0xff] %vm261_vm7, %v1295_v1  ;;  %v1032_v0 = vadd.f32 %v1012_v2, %v894_v44 }
 0x155   : > { %v877_v8 = vpop.f32.mrf.mxu1 }
 0x156   : > { %v1350_v11 = vpack.c.bf16 %v1338_v4, %v1338_v4  ;;  %v1177_v9 = vadd.f32 %v1157_v58, %v1032_v0  ;;  %v895_v41 = vadd.f32 %v877_v8, %v2109_v57 }
 0x157   : > { %v1162_v31 = vpop.f32.mrf.mxu3 }
 0x158   : > { %1363 = vst.msk [vmem:[%s2137_s20 + $0x14] sm:$0xf] %vm1357_vm8, %v1350_v11  ;;  %v1272_v20 = vadd.f32 %v1252_v62, %v1177_v9  ;;  %v1260_v53 = vpop.f32.mrf.mxu0  ;;  %v1288_v62 = vld [vmem:[#allocation2 + $0x58] sm:$0xff] }
 0x15a   : > { %v1296_v22 = vadd.f32 %v1284_v16, %v1272_v20 }
 0x15b   : > { %v1323_v17 = vld [vmem:[#allocation2 + $0x30] sm:$0xff]  ;;  %v1015_v24 = vpop.f32.mrf.mxu2 }
 0x15c   : > { %v1339_v27 = vadd.f32 %v2128_v56, %v1323_v17  ;;  %1309 = vst.msk [vmem:[#allocation2 + $0x38] sm:$0xff] %vm261_vm7, %v1296_v22  ;;  %v1033_v10 = vadd.f32 %v1015_v24, %v895_v41 }
 0x15d   : > { %v879_v28 = vpop.f32.mrf.mxu1 }
 0x15e   : > { %v1351_v25 = vpack.c.bf16 %v1339_v27, %v1339_v27  ;;  %v1178_v29 = vadd.f32 %v1160_v19, %v1033_v10  ;;  %v896_v32 = vadd.f32 %v879_v28, %v2114_v26 }
 0x15f   : > { %v1165_v18 = vpop.f32.mrf.mxu3 }
 0x160   : > { %1364 = vst.msk [vmem:[%s2137_s20 + $0x18] sm:$0xf] %vm1357_vm8, %v1351_v25  ;;  %v1273_v23 = vadd.f32 %v1255_v21, %v1178_v29  ;;  %v1262_v61 = vpop.f32.mrf.mxu0 }
 0x162   : > { %v1297_v3 = vadd.f32 %v1285_v30, %v1273_v23 }
 0x163   : > { %v1324_v57 = vld [vmem:[#allocation2 + $0x38] sm:$0xff]  ;;  %v1017_v33 = vpop.f32.mrf.mxu2 }
 0x164   : > { %v1340_v34 = vadd.f32 %v2128_v56, %v1324_v57  ;;  %1310 = vst.msk [vmem:[#allocation2 + $0x40] sm:$0xff] %vm261_vm7, %v1297_v3  ;;  %v1034_v35 = vadd.f32 %v1017_v33, %v896_v32 }
 0x165   : > { %v882_v38 = vpop.f32.mrf.mxu1 }
 0x166   : > { %v1352_v6 = vpack.c.bf16 %v1340_v34, %v1340_v34  ;;  %v1179_v5 = vadd.f32 %v1162_v31, %v1034_v35  ;;  %v897_v39 = vadd.f32 %v882_v38, %v2117_v51 }
 0x167   : > { %v1167_v58 = vpop.f32.mrf.mxu3 }
 0x168   : > { %1365 = vst.msk [vmem:[%s2137_s20 + $0x1c] sm:$0xf] %vm1357_vm8, %v1352_v6  ;;  %v1274_v37 = vadd.f32 %v1257_v14, %v1179_v5 }
 0x16a   : > { %v1298_v42 = vadd.f32 %v1286_v15, %v1274_v37 }
 0x16b   : > { %v1325_v26 = vld [vmem:[#allocation2 + $0x40] sm:$0xff]  ;;  %v1020_v43 = vpop.f32.mrf.mxu2 }
 0x16c   : > { %v1341_v45 = vadd.f32 %v2128_v56, %v1325_v26  ;;  %1311 = vst.msk [vmem:[#allocation2 + $0x48] sm:$0xff] %vm261_vm7, %v1298_v42  ;;  %v1035_v13 = vadd.f32 %v1020_v43, %v897_v39 }
 0x16d   : > { %v884_v52 = vpop.f32.mrf.mxu1 }
 0x16e   : > { %v1353_v46 = vpack.c.bf16 %v1341_v45, %v1341_v45  ;;  %v1180_v47 = vadd.f32 %v1165_v18, %v1035_v13  ;;  %v898_v51 = vadd.f32 %v884_v52, %v2120_v40 }
 0x170   : > { %1366 = vst.msk [vmem:[%s2137_s20 + $0x20] sm:$0xf] %vm1357_vm8, %v1353_v46  ;;  %v1275_v60 = vadd.f32 %v1260_v53, %v1180_v47 }
 0x172   : > { %v1299_v7 = vadd.f32 %v1287_v50, %v1275_v60 }
 0x173   : > { %v1326_v54 = vld [vmem:[#allocation2 + $0x48] sm:$0xff]  ;;  %v1022_v12 = vpop.f32.mrf.mxu2 }
 0x174   : > { %v1342_v55 = vadd.f32 %v2128_v56, %v1326_v54  ;;  %1312 = vst.msk [vmem:[#allocation2 + $0x50] sm:$0xff] %vm261_vm7, %v1299_v7  ;;  %v1036_v36 = vadd.f32 %v1022_v12, %v898_v51 }
 0x176   : > { %v1354_v59 = vpack.c.bf16 %v1342_v55, %v1342_v55  ;;  %v1181_v49 = vadd.f32 %v1167_v58, %v1036_v36 }
 0x178   : > { %1367 = vst.msk [vmem:[%s2137_s20 + $0x24] sm:$0xf] %vm1357_vm8, %v1354_v59  ;;  %v1276_v63 = vadd.f32 %v1262_v61, %v1181_v49 }
 0x17a   : > { %v1300_v1 = vadd.f32 %v1288_v62, %v1276_v63 }
 0x17b   : > { %v1327_v44 = vld [vmem:[#allocation2 + $0x50] sm:$0xff] }
 0x17c   : > { %v1343_v40 = vadd.f32 %v2128_v56, %v1327_v44  ;;  %1313 = vst.msk [vmem:[#allocation2 + $0x58] sm:$0xff] %vm261_vm7, %v1300_v1 }
 0x17e   : > { %v1355_v48 = vpack.c.bf16 %v1343_v40, %v1343_v40 }
 0x180   : > { %1368 = vst.msk [vmem:[%s2137_s20 + $0x28] sm:$0xf] %vm1357_vm8, %v1355_v48 }
 0x183   : > { %v1328_v2 = vld [vmem:[#allocation2 + $0x58] sm:$0xff] }
 0x184   : > { %v1344_v4 = vadd.f32 %v2128_v56, %v1328_v2 }
 0x186   : > { %v1356_v0 = vpack.c.bf16 %v1344_v4, %v1344_v4 }
 0x188   : > { %1369 = vst.msk [vmem:[%s2137_s20 + $0x2c] sm:$0xf] %vm1357_vm8, %v1356_v0 }
 0x189 PF: > { %s13_s14 = sadd.s32 1, %s1748_s14   ;;  %s2206_s12 = smov %s1744_s13 }
 0x18a   : > { %p10_p5 = scmp.ge.s32.totalorder %s13_s14, 4   ;;  %s2207_s13 = smov %s2209_s15 }
 0x18c   :  { %12 = sbr.rel (!%p10_p5) target bundleno = 2 (0x2), region = 84 }

// kernel: _lambda_.55
= control target key start
LH: loop header
LB: loop body
LE: loop exit
PB: predicated region body
PF: predicated region fallthrough
CT: control target
= control target key end

     0   :  { %s721_s15 = smov 0   ;;  %s1016_s0 = inlined_call_operand.vmem [shape: bf16[2,64,8], index: 0, kind: input, shape index: {}]   ;;  %s1017_s1 = inlined_call_operand.vmem [shape: f32[1,8], index: 1, kind: input, shape index: {}]   ;;  %s1018_s2 = inlined_call_operand.vmem [shape: f32[1,8], index: 2, kind: input, shape index: {}]   ;;  %s1019_s3 = inlined_call_operand.vmem [shape: f32[8,8], index: 3, kind: input, shape index: {}]   ;;  %s1020_s4 = inlined_call_operand.vmem [shape: bf16[2,64,8], index: 4, kind: output, shape index: {}]  }
   0x1 LB: > { %s602_s16 = sadd.s32 4294967295, %s694_s15   ;;  %p606_p0 = scmp.ge.s32.totalorder %s694_s15, 1  ;;  %s694_s15 = sphi %s721_s15, %s14_s15  }
   0x2   : > { %p162_p1 = scmp.lt.s32.totalorder %s694_s15, 3 }
   0x4   : > { %p163_p2 = pnand %p606_p0, %p162_p1 }
   0x5   : > { %p188_p3 = scmp.lt.s32.totalorder (!%p163_p2), %s602_s16, 1 }
   0x6   : > { %166 = sbr.rel (%p163_p2) target bundleno = 258 (0x102), region = 36 }
   0xb   : > { %v265_v0 = vld [vmem:[%s1019_s3] sm:$0xff]  ;;  %s1040_s16 = smov (!%p188_p3, %s602_s16), 1  ;;  %vm214_vm0 = vcmask 64512  }
   0xc   : > { %284 = vmatpush.msra.mxu0 %v265_v0  ;;  %307 = vmatpush.msra.mxu1 %v265_v0  ;;  %s623_s19 = sshll.u32 %s1040_s16, 5 }
   0xd   : > { %s192_s22 = scalar_lea.vmem %s1016_s0, %s623_s19  ;;  %s985_s29 = scalar_lea.vmem %s1020_s4, %s623_s19 }
   0xe   : > { %v626_v1 = vld [vmem:[%s192_s22] sm:$0xff]   ;;  %v641_v2 = vld [vmem:[%s192_s22 + $0x8] sm:$0xff]   ;;  %v642_v3 = vld [vmem:[%s192_s22 + $0x10] sm:$0xff]  }
   0xf   : > { %v740_v4 = vunpack.c.l.bf16 %v626_v1  ;;  %v742_v5 = vunpack.c.h.bf16 %v626_v1  ;;  %v744_v6 = vunpack.c.l.bf16 %v641_v2  ;;  %v746_v7 = vunpack.c.h.bf16 %v641_v2  ;;  %v643_v9 = vld [vmem:[%s192_s22 + $0x18] sm:$0xff]  }
  0x10   : > { %v748_v8 = vunpack.c.l.bf16 %v642_v3  ;;  %v756_v13 = vunpack.c.h.bf16 %v642_v3  ;;  %v766_v19 = vunpack.c.l.bf16 %v643_v9  ;;  %v777_v29 = vunpack.c.h.bf16 %v643_v9 }
  0x11   : > { %v215_v10 = vsel %vm214_vm0, %v740_v4, 0.0  ;;  %v216_v11 = vsel %vm214_vm0, %v742_v5, 0.0  ;;  %v218_v12 = vsel %vm214_vm0, %v744_v6, 0.0  ;;  %v220_v15 = vsel %vm214_vm0, %v746_v7, 0.0 }
  0x12   : > { %v217_v14 = vadd.f32 %v216_v11, %v215_v10  ;;  %v236_v16 = vmul.f32 %v740_v4, %v740_v4  ;;  %v237_v17 = vmul.f32 %v742_v5, %v742_v5  ;;  %v238_v18 = vmul.f32 %v744_v6, %v744_v6 }
  0x13   : > { %v239_v21 = vmul.f32 %v746_v7, %v746_v7  ;;  %v222_v22 = vsel %vm214_vm0, %v748_v8, 0.0  ;;  %v240_v23 = vmul.f32 %v748_v8, %v748_v8  ;;  %v224_v30 = vsel %vm214_vm0, %v756_v13, 0.0 }
  0x14   : > { %v219_v20 = vadd.f32 %v218_v12, %v217_v14  ;;  %v244_v24 = vsel %vm214_vm0, %v236_v16, 0.0  ;;  %v245_v25 = vsel %vm214_vm0, %v237_v17, 0.0  ;;  %v247_v28 = vsel %vm214_vm0, %v238_v18, 0.0 }
  0x15   : > { %v246_v27 = vadd.f32 %v245_v25, %v244_v24  ;;  %v241_v31 = vmul.f32 %v756_v13, %v756_v13  ;;  %v249_v32 = vsel %vm214_vm0, %v239_v21, 0.0  ;;  %v226_v35 = vsel %vm214_vm0, %v766_v19, 0.0 }
  0x16   : > { %v221_v26 = vadd.f32 %v220_v15, %v219_v20  ;;  %v242_v36 = vmul.f32 %v766_v19, %v766_v19  ;;  %v251_v37 = vsel %vm214_vm0, %v240_v23, 0.0  ;;  %v228_v40 = vsel %vm214_vm0, %v777_v29, 0.0 }
  0x17   : > { %v248_v34 = vadd.f32 %v247_v28, %v246_v27  ;;  %v243_v41 = vmul.f32 %v777_v29, %v777_v29  ;;  %v253_v42 = vsel %vm214_vm0, %v241_v31, 0.0  ;;  %v652_v27 = vld [vmem:[%s1017_s1] ss:$0 sm:$0xff] }
  0x18   : > { %v223_v33 = vadd.f32 %v222_v22, %v221_v26  ;;  %v255_v45 = vsel %vm214_vm0, %v242_v36, 0.0 }
  0x19   : > { %v250_v39 = vadd.f32 %v249_v32, %v248_v34  ;;  %v257_v48 = vsel %vm214_vm0, %v243_v41, 0.0 }
  0x1a   : > { %v225_v38 = vadd.f32 %v224_v30, %v223_v33 }
  0x1b   : > { %v252_v44 = vadd.f32 %v251_v37, %v250_v39 }
  0x1c   : > { %v227_v43 = vadd.f32 %v226_v35, %v225_v38 }
  0x1d   : > { %v254_v47 = vadd.f32 %v253_v42, %v252_v44 }
  0x1e   : > { %v229_v46 = vadd.f32 %v228_v40, %v227_v43 }
  0x1f   : > { %v256_v50 = vadd.f32 %v255_v45, %v254_v47 }
  0x20   : > { %v230_v49 = vrot.slane %v229_v46, 4 }
  0x21   : > { %v258_v52 = vadd.f32 %v257_v48, %v256_v50 }
  0x22   : > { %v231_v51 = vadd.f32 %v230_v49, %v229_v46 }
  0x23   : > { %v259_v54 = vrot.slane %v258_v52, 4 }
  0x24   : > { %v232_v53 = vrot.slane %v231_v51, 2 }
  0x25   : > { %v260_v56 = vadd.f32 %v259_v54, %v258_v52 }
  0x26   : > { %v233_v55 = vadd.f32 %v232_v53, %v231_v51 }
  0x27   : > { %v261_v58 = vrot.slane %v260_v56, 2 }
  0x28   : > { %v234_v57 = vrot.slane %v233_v55, 1 }
  0x29   : > { %v262_v60 = vadd.f32 %v261_v58, %v260_v56 }
  0x2a   : > { %v235_v59 = vadd.f32 %v234_v57, %v233_v55 }
  0x2b   : > { %v263_v61 = vrot.slane %v262_v60, 1 }
  0x2c   : > { %611 = vmatmul.msk.f32.vlgmr.msra.gmra.mxu0 %vm214_vm0, %v235_v59 }
  0x2d   : > { %v264_v62 = vadd.f32 %v263_v61, %v262_v60 }
  0x2f   : > { %612 = vmatmul.msk.f32.vlgmr.msra.gmra.mxu1 %vm214_vm0, %v264_v62 }
  0xa9   : > { %v286_v63 = vpop.f32.mrf.mxu0 }
  0xaa   : > { %v312_v0 = vmul.f32 0.015625, %v286_v63 }
  0xac   : > { %v309_v1 = vpop.f32.mrf.mxu1  ;;  %v314_v2 = vmul.f32 %v312_v0, %v312_v0  ;;  %v317_v17 = vperm.slane %v312_v0, 0 }
  0xad   : > { %v313_v3 = vmul.f32 0.015625, %v309_v1 }
  0xae   : > { %v318_v21 = vsub.f32 %v740_v4, %v317_v17  ;;  %v319_v23 = vsub.f32 %v742_v5, %v317_v17  ;;  %v320_v24 = vsub.f32 %v744_v6, %v317_v17  ;;  %v321_v25 = vsub.f32 %v746_v7, %v317_v17  ;;  %v653_v6 = vld [vmem:[%s1018_s2] ss:$0 sm:$0xff] }
  0xaf   : > { %v315_v9 = vsub.f32 %v313_v3, %v314_v2  ;;  %v322_v28 = vsub.f32 %v748_v8, %v317_v17  ;;  %v323_v30 = vsub.f32 %v756_v13, %v317_v17  ;;  %v324_v31 = vsub.f32 %v766_v19, %v317_v17 }
  0xb0   : > { %v325_v4 = vsub.f32 %v777_v29, %v317_v17 }
  0xb1   : > { %v316_v10 = vmax.f32 %v315_v9, 0.0 }
  0xb3   : > { %v326_v11 = vadd.f32 1e-06, %v316_v10 }
  0xb5   : > { %654 = vrsqrt.f32 %v326_v11  ;;  %vm333_vm2 = vweird.f32 %v326_v11 }
  0xbb   : > { %v655_v12 = vpop.eup %654 }
  0xbc   : > { %v328_v14 = vmul.f32 %v655_v12, %v326_v11  ;;  %vm334_vm1 = vweird.f32 %v655_v12 }
  0xbd   : > { %vm335_vm3 = vmor %vm333_vm2, %vm334_vm1 }
  0xbe   : > { %v329_v15 = vmul.f32 %v655_v12, %v328_v14 }
  0xc0   : > { %v330_v16 = vmul.f32 0.5, %v329_v15 }
  0xc2   : > { %v331_v18 = vsub.f32 1.5, %v330_v16 }
  0xc4   : > { %v332_v20 = vmul.f32 %v655_v12, %v331_v18 }
  0xc6   : > { %v336_v22 = vsel %vm335_vm3, %v655_v12, %v332_v20 }
  0xc7   : > { %v337_v26 = vperm.slane %v336_v22, 0 }
  0xc9   : > { %v338_v32 = vmul.f32 %v337_v26, %v318_v21  ;;  %v339_v33 = vmul.f32 %v337_v26, %v319_v23  ;;  %v340_v5 = vmul.f32 %v337_v26, %v320_v24  ;;  %v341_v34 = vmul.f32 %v337_v26, %v321_v25 }
  0xca   : > { %v342_v7 = vmul.f32 %v337_v26, %v322_v28  ;;  %v343_v35 = vmul.f32 %v337_v26, %v323_v30  ;;  %v344_v36 = vmul.f32 %v337_v26, %v324_v31  ;;  %v345_v37 = vmul.f32 %v337_v26, %v325_v4 }
  0xcb   : > { %v350_v38 = vmul.f32 %v652_v27, %v338_v32  ;;  %v351_v8 = vmul.f32 %v652_v27, %v339_v33  ;;  %v352_v39 = vmul.f32 %v652_v27, %v340_v5  ;;  %v353_v13 = vmul.f32 %v652_v27, %v341_v34 }
  0xcc   : > { %v354_v40 = vmul.f32 %v652_v27, %v342_v7  ;;  %v355_v19 = vmul.f32 %v652_v27, %v343_v35  ;;  %v356_v41 = vmul.f32 %v652_v27, %v344_v36  ;;  %v357_v29 = vmul.f32 %v652_v27, %v345_v37 }
  0xcd   : > { %v812_v42 = vadd.f32 %v653_v6, %v350_v38  ;;  %v814_v43 = vadd.f32 %v653_v6, %v351_v8  ;;  %v816_v44 = vadd.f32 %v653_v6, %v352_v39  ;;  %v818_v45 = vadd.f32 %v653_v6, %v353_v13 }
  0xce   : > { %v820_v46 = vadd.f32 %v653_v6, %v354_v40  ;;  %v822_v47 = vadd.f32 %v653_v6, %v355_v19  ;;  %v827_v51 = vadd.f32 %v653_v6, %v356_v41  ;;  %v830_v53 = vadd.f32 %v653_v6, %v357_v29 }
  0xcf   : > { %v613_v48 = vmul.f32 -1.442695, %v812_v42  ;;  %v614_v49 = vmul.f32 -1.442695, %v814_v43  ;;  %v615_v50 = vmul.f32 -1.442695, %v816_v44 }
  0xd0   : > { %v616_v52 = vmul.f32 -1.442695, %v818_v45  ;;  %v617_v54 = vmul.f32 -1.442695, %v820_v46  ;;  %v618_v55 = vmul.f32 -1.442695, %v822_v47 }
  0xd1   : > { %656 = vpow2.f32 %v613_v48  ;;  %v619_v56 = vmul.f32 -1.442695, %v827_v51  ;;  %v620_v57 = vmul.f32 -1.442695, %v830_v53 }
  0xd2   : > { %658 = vpow2.f32 %v614_v49 }
  0xd3   : > { %660 = vpow2.f32 %v615_v50 }
  0xd4   : > { %662 = vpow2.f32 %v616_v52 }
  0xd5   : > { %664 = vpow2.f32 %v617_v54 }
  0xd6   : > { %666 = vpow2.f32 %v618_v55 }
  0xd7   : > { %v657_v58 = vpop.eup %656  ;;  %668 = vpow2.f32 %v619_v56 }
  0xd8   : > { %v659_v59 = vpop.eup %658  ;;  %v836_v60 = vadd.f32 1.0, %v657_v58  ;;  %670 = vpow2.f32 %v620_v57 }
  0xd9   : > { %v661_v61 = vpop.eup %660  ;;  %v838_v62 = vadd.f32 1.0, %v659_v59 }
  0xda   : > { %v663_v63 = vpop.eup %662  ;;  %v840_v0 = vadd.f32 1.0, %v661_v61  ;;  %672 = vrcp.f32 %v836_v60  ;;  %v413_v10 = vand.u32 2147483648, %v836_v60  ;;  %vm407_vm4 = vweird.f32 %v836_v60 }
  0xdb   : > { %v665_v1 = vpop.eup %664  ;;  %v843_v2 = vadd.f32 1.0, %v663_v63  ;;  %674 = vrcp.f32 %v838_v62  ;;  %v428_v12 = vand.u32 2147483648, %v838_v62  ;;  %v411_v17 = vand.u32 2147483647, %v836_v60 }
  0xdc   : > { %v667_v3 = vpop.eup %666  ;;  %v846_v9 = vadd.f32 1.0, %v665_v1  ;;  %676 = vrcp.f32 %v840_v0  ;;  %v414_v21 = vor.u32 1.1754944e-38, %v413_v10  ;;  %vm422_vm5 = vweird.f32 %v838_v62 }
  0xdd   : > { %v669_v11 = vpop.eup %668  ;;  %v851_v15 = vadd.f32 1.0, %v667_v3  ;;  %678 = vrcp.f32 %v843_v2  ;;  %v426_v22 = vand.u32 2147483647, %v838_v62  ;;  %v443_v23 = vand.u32 2147483648, %v840_v0 }
  0xde   : > { %v671_v14 = vpop.eup %670  ;;  %680 = vrcp.f32 %v846_v9  ;;  %v866_v24 = vadd.f32 1.0, %v669_v11  ;;  %v429_v26 = vor.u32 1.1754944e-38, %v428_v12  ;;  %vm437_vm6 = vweird.f32 %v840_v0 }
  0xdf   : > { %v441_v27 = vand.u32 2147483647, %v840_v0  ;;  %v874_v30 = vadd.f32 1.0, %v671_v14  ;;  %v456_v4 = vand.u32 2147483647, %v843_v2  ;;  %682 = vrcp.f32 %v851_v15 }
  0xe0   : > { %v854_v16 = vpop.eup %672  ;;  %vm879_vm8 = vcmp.eq.f32.partialorder %v411_v17, 8.507059e+37  ;;  %vm452_vm9 = vweird.f32 %v843_v2  ;;  %v458_v34 = vand.u32 2147483648, %v843_v2  ;;  %vm888_vm10 = vcmp.eq.f32.partialorder %v426_v22, 8.507059e+37 }
  0xe1   : > { %v859_v18 = vpop.eup %674  ;;  %v403_v20 = vmul.f32 %v854_v16, %v836_v60  ;;  %vm408_vm7 = vweird.f32 %v854_v16  ;;  %v444_v36 = vor.u32 1.1754944e-38, %v443_v23  ;;  %vm467_vm11 = vweird.f32 %v846_v9 }
  0xe2   : > { %v418_v25 = vmul.f32 %v859_v18, %v838_v62  ;;  %v872_v28 = vpop.eup %676  ;;  %v471_v37 = vand.u32 2147483647, %v846_v9  ;;  %vm423_vm12 = vweird.f32 %v859_v18  ;;  %vm896_vm13 = vcmp.eq.f32.partialorder %v441_v27, 8.507059e+37  ;;  %vm915_vm0 = vmor %vm407_vm4, %vm408_vm7 }
  0xe3   : > { %v404_v31 = vsub.f32 1.0, %v403_v20  ;;  %v433_v5 = vmul.f32 %v872_v28, %v840_v0  ;;  %v679_v6 = vpop.eup %678  ;;  %vm902_vm14 = vcmp.eq.f32.partialorder %v456_v4, 8.507059e+37  ;;  %v473_v48 = vand.u32 2147483648, %v846_v9  ;;  %vm931_vm2 = vmor %vm422_vm5, %vm423_vm12 }
  0xe4   : > { %v419_v33 = vsub.f32 1.0, %v418_v25  ;;  %v681_v38 = vpop.eup %680  ;;  %v448_v40 = vmul.f32 %v679_v6, %v843_v2  ;;  %vm438_vm15 = vweird.f32 %v872_v28  ;;  %v459_v56 = vor.u32 1.1754944e-38, %v458_v34 }
  0xe5   : > { %v405_v7 = vmul.f32 %v854_v16, %v404_v31  ;;  %v434_v39 = vsub.f32 1.0, %v433_v5  ;;  %v463_v29 = vmul.f32 %v681_v38, %v846_v9  ;;  %v683_v54 = vpop.eup %682  ;;  %vm919_vm1 = vcmp.eq.f32.partialorder %v471_v37, 8.507059e+37  ;;  %vm941_vm4 = vmor %vm437_vm6, %vm438_vm15 }
  0xe6   : > { %v420_v8 = vmul.f32 %v859_v18, %v419_v33  ;;  %v449_v52 = vsub.f32 1.0, %v448_v40  ;;  %684 = vrcp.f32 %v866_v24  ;;  %vm453_vm3 = vweird.f32 %v679_v6 }
  0xe7   : > { %v406_v19 = vadd.f32 %v854_v16, %v405_v7  ;;  %v435_v50 = vmul.f32 %v872_v28, %v434_v39  ;;  %v464_v57 = vsub.f32 1.0, %v463_v29  ;;  %vm468_vm7 = vweird.f32 %v681_v38  ;;  %vm454_vm5 = vmor %vm452_vm9, %vm453_vm3 }
  0xe8   : > { %v421_v49 = vadd.f32 %v859_v18, %v420_v8  ;;  %v450_v63 = vmul.f32 %v679_v6, %v449_v52  ;;  %v478_v62 = vmul.f32 %v683_v54, %v851_v15  ;;  %v474_v14 = vor.u32 1.1754944e-38, %v473_v48  ;;  %vm469_vm6 = vmor %vm467_vm11, %vm468_vm7 }
  0xe9   : > { %v410_v59 = vsel %vm915_vm0, %v854_v16, %v406_v19  ;;  %v436_v61 = vadd.f32 %v872_v28, %v435_v50  ;;  %v465_v10 = vmul.f32 %v681_v38, %v464_v57  ;;  %v486_v16 = vand.u32 2147483647, %v851_v15 }
  0xea   : > { %v425_v1 = vsel %vm931_vm2, %v859_v18, %v421_v49  ;;  %v451_v12 = vadd.f32 %v679_v6, %v450_v63  ;;  %v415_v17 = vsel %vm879_vm8, %v414_v21, %v410_v59  ;;  %v479_v18 = vsub.f32 1.0, %v478_v62 }
  0xeb   : > { %v440_v11 = vsel %vm941_vm4, %v872_v28, %v436_v61  ;;  %v466_v0 = vadd.f32 %v681_v38, %v465_v10  ;;  %v488_v20 = vand.u32 2147483648, %v851_v15  ;;  %v430_v22 = vsel %vm888_vm10, %v429_v26, %v425_v1 }
  0xec   : > { %v455_v23 = vsel %vm454_vm5, %v679_v6, %v451_v12  ;;  %vm483_vm12 = vweird.f32 %v683_v54  ;;  %686 = vrcp.f32 %v874_v30  ;;  %v685_v25 = vpop.eup %684  ;;  %v445_v21 = vsel %vm896_vm13, %v444_v36, %v440_v11 }
  0xed   : > { %v460_v2 = vsel %vm902_vm14, %v459_v56, %v455_v23  ;;  %v470_v27 = vsel %vm469_vm6, %v681_v38, %v466_v0  ;;  %v480_v28 = vmul.f32 %v683_v54, %v479_v18  ;;  %vm482_vm8 = vweird.f32 %v851_v15 }
  0xee   : > { %v475_v31 = vsel %vm919_vm1, %v474_v14, %v470_v27  ;;  %vm967_vm9 = vcmp.eq.f32.partialorder %v486_v16, 8.507059e+37  ;;  %v493_v26 = vmul.f32 %v685_v25, %v866_v24  ;;  %v489_v32 = vor.u32 1.1754944e-38, %v488_v20  ;;  %vm484_vm10 = vmor %vm482_vm8, %vm483_vm12 }
  0xef   : > { %v481_v4 = vadd.f32 %v683_v54, %v480_v28  ;;  %v522_v33 = vmul.f32 %v415_v17, %v812_v42  ;;  %v523_v5 = vmul.f32 %v430_v22, %v814_v43  ;;  %v501_v6 = vand.u32 2147483647, %v866_v24 }
  0xf0   : > { %v494_v34 = vsub.f32 1.0, %v493_v26  ;;  %v524_v15 = vmul.f32 %v445_v21, %v816_v44  ;;  %v525_v7 = vmul.f32 %v460_v2, %v818_v45  ;;  %v503_v36 = vand.u32 2147483648, %v866_v24 }
  0xf1   : > { %v485_v35 = vsel %vm484_vm10, %v683_v54, %v481_v4  ;;  %v526_v37 = vmul.f32 %v475_v31, %v820_v46  ;;  %v530_v38 = vpack.c.bf16 %v522_v33, %v522_v33  ;;  %vm498_vm11 = vweird.f32 %v685_v25 }
  0xf2   : > { %v687_v8 = vpop.eup %686  ;;  %v490_v42 = vsel %vm967_vm9, %v489_v32, %v485_v35  ;;  %v495_v43 = vmul.f32 %v685_v25, %v494_v34  ;;  %v531_v44 = vpack.c.bf16 %v523_v5, %v523_v5  ;;  %v532_v39 = vpack.c.bf16 %v524_v15, %v524_v15 }
  0xf3   : > { %v508_v45 = vmul.f32 %v687_v8, %v874_v30  ;;  %v527_v46 = vmul.f32 %v490_v42, %v822_v47  ;;  %vm497_vm13 = vweird.f32 %v866_v24  ;;  %v533_v40 = vpack.c.bf16 %v525_v7, %v525_v7 }
  0xf4   : > { %v496_v13 = vadd.f32 %v685_v25, %v495_v43  ;;  %vm538_vm14 = vcmask 60416   ;;  %vm499_vm15 = vmor %vm497_vm13, %vm498_vm11  ;;  %v504_v19 = vor.u32 1.1754944e-38, %v503_v36  ;;  %v534_v29 = vpack.c.bf16 %v526_v37, %v526_v37 }
  0xf5   : > { %v509_v41 = vsub.f32 1.0, %v508_v45  ;;  %539 = vst.msk [vmem:[%s985_s29] sm:$0xf] %vm538_vm14, %v530_v38  ;;  %vm502_vm0 = vcmp.eq.f32.partialorder %v501_v6, 8.507059e+37  ;;  %v518_v49 = vand.u32 2147483648, %v874_v30  ;;  %v535_v47 = vpack.c.bf16 %v527_v46, %v527_v46 }
  0xf6   : > { %v500_v48 = vsel %vm499_vm15, %v685_v25, %v496_v13  ;;  %540 = vst.msk [vmem:[%s985_s29 + $0x4] sm:$0xf] %vm538_vm14, %v531_v44  ;;  %vm513_vm1 = vweird.f32 %v687_v8  ;;  %v516_v52 = vand.u32 2147483647, %v874_v30  ;;  %vm512_vm2 = vweird.f32 %v874_v30 }
  0xf7   : > { %v505_v24 = vsel %vm502_vm0, %v504_v19, %v500_v48  ;;  %v510_v50 = vmul.f32 %v687_v8, %v509_v41  ;;  %541 = vst.msk [vmem:[%s985_s29 + $0x8] sm:$0xf] %vm538_vm14, %v532_v39  ;;  %vm514_vm3 = vmor %vm512_vm2, %vm513_vm1  ;;  %v519_v56 = vor.u32 1.1754944e-38, %v518_v49 }
  0xf8   : > { %v528_v54 = vmul.f32 %v505_v24, %v827_v51  ;;  %542 = vst.msk [vmem:[%s985_s29 + $0xc] sm:$0xf] %vm538_vm14, %v533_v40  ;;  %vm517_vm4 = vcmp.eq.f32.partialorder %v516_v52, 8.507059e+37 }
  0xf9   : > { %v511_v55 = vadd.f32 %v687_v8, %v510_v50  ;;  %543 = vst.msk [vmem:[%s985_s29 + $0x10] sm:$0xf] %vm538_vm14, %v534_v29 }
  0xfa   : > { %v536_v57 = vpack.c.bf16 %v528_v54, %v528_v54  ;;  %544 = vst.msk [vmem:[%s985_s29 + $0x14] sm:$0xf] %vm538_vm14, %v535_v47 }
  0xfb   : > { %v515_v58 = vsel %vm514_vm3, %v687_v8, %v511_v55 }
  0xfc   : > { %v520_v59 = vsel %vm517_vm4, %v519_v56, %v515_v58  ;;  %545 = vst.msk [vmem:[%s985_s29 + $0x18] sm:$0xf] %vm538_vm14, %v536_v57 }
  0xfd   : > { %v529_v60 = vmul.f32 %v520_v59, %v830_v53 }
  0xff   : > { %v537_v51 = vpack.c.bf16 %v529_v60, %v529_v60 }
 0x101   : > { %546 = vst.msk [vmem:[%s985_s29 + $0x1c] sm:$0xf] %vm538_vm14, %v537_v51 }
 0x102 PF: > { %s14_s15 = sadd.s32 1, %s694_s15  }
 0x103   : > { %p11_p4 = scmp.ge.s32.totalorder %s14_s15, 4  }
 0x105   :  { %13 = sbr.rel (!%p11_p4) target bundleno = 1 (0x1), region = 66 }

// kernel: _lambda_.57
= control target key start
LH: loop header
LB: loop body
LE: loop exit
PB: predicated region body
PF: predicated region fallthrough
CT: control target
= control target key end

     0   :  { %vm22_vm0 = vcmask 64512   ;;  %v447_v1 = vmov 0.0   ;;  %vm119_vm1 = vcmask 130048   ;;  %vm329_vm2 = vcmask 60416   ;;  %s669_s1 = inlined_call_operand.vmem [shape: bf16[16,8], index: 1, kind: input, shape index: {}]   ;;  %s670_s0 = inlined_call_operand.vmem [shape: bf16[128,16], index: 0, kind: input, shape index: {}]   ;;  %s671_s2 = inlined_call_operand.vmem [shape: f32[1,8], index: 2, kind: input, shape index: {}]   ;;  %s672_s3 = inlined_call_operand.vmem [shape: bf16[128,8], index: 3, kind: input, shape index: {}]   ;;  %s673_s4 = inlined_call_operand.vmem [shape: bf16[128,8], index: 4, kind: output, shape index: {}]  }
   0x1   :  { %v402_v0 = vld [vmem:[%s669_s1] sm:$0xff]  ;;  %23 = vst.msk [vmem:[#allocation2] sm:$0xff] %vm22_vm0, %v447_v1  ;;  %v396_v3 = vld [vmem:[%s670_s0 + $0x10] sm:$0xff]  ;;  %v395_v6 = vld [vmem:[%s670_s0 + $0x8] sm:$0xff] }
   0x2   :  { %v394_v2 = vld [vmem:[%s670_s0] sm:$0xff]  ;;  %24 = vst.msk [vmem:[#allocation2 + $0x8] sm:$0xff] %vm22_vm0, %v447_v1  ;;  %151 = vmatpush.bf16.msra.mxu0 %v402_v0  ;;  %442 = vmatpush.bf16.msra.mxu1 %v402_v0  ;;  %v400_v5 = vld [vmem:[%s670_s0 + $0x30] sm:$0xff]  ;;  %v397_v7 = vld [vmem:[%s670_s0 + $0x18] sm:$0xff] }
   0x3   :  { %v398_v4 = vld [vmem:[%s670_s0 + $0x20] sm:$0xff]  ;;  %25 = vst.msk [vmem:[#allocation2 + $0x10] sm:$0xff] %vm22_vm0, %v447_v1  ;;  %443 = vmatpush.bf16.msra.mxu2 %v402_v0  ;;  %444 = vmatpush.bf16.msra.mxu3 %v402_v0  ;;  %v399_v8 = vld [vmem:[%s670_s0 + $0x28] sm:$0xff]  ;;  %v401_v9 = vld [vmem:[%s670_s0 + $0x38] sm:$0xff] }
   0x4   :  { %26 = vst.msk [vmem:[#allocation2 + $0x18] sm:$0xff] %vm22_vm0, %v447_v1  ;;  %v529_v18 = vld [vmem:[%s672_s3] sm:$0xff]   ;;  %v539_v22 = vld [vmem:[%s672_s3 + $0x10] sm:$0xff]  }
   0x5   :  { %27 = vst.msk [vmem:[#allocation2 + $0x20] sm:$0xff] %vm22_vm0, %v447_v1  ;;  %386 = vmatmul.msk.bf16.vlgmr.msra.gmra.mxu0 %vm119_vm1, %v394_v2  ;;  %388 = vmatmul.msk.bf16.vlgmr.msra.gmra.mxu1 %vm119_vm1, %v396_v3  ;;  %v534_v21 = vld [vmem:[%s671_s2] ss:$0 sm:$0xff]  ;;  %v405_v29 = vunpack.c.l.bf16 %v529_v18  ;;  %v413_v33 = vunpack.c.l.bf16 %v539_v22  ;;  %v557_v42 = vld [vmem:[%s672_s3 + $0x30] sm:$0xff]   ;;  %v406_v59 = vunpack.c.h.bf16 %v529_v18  ;;  %v414_v63 = vunpack.c.h.bf16 %v539_v22 }
   0x6   :  { %28 = vst.msk [vmem:[#allocation2 + $0x28] sm:$0xff] %vm22_vm0, %v447_v1  ;;  %390 = vmatmul.msk.bf16.vlgmr.msra.gmra.mxu2 %vm119_vm1, %v398_v4  ;;  %392 = vmatmul.msk.bf16.vlgmr.msra.gmra.mxu3 %vm119_vm1, %v400_v5  ;;  %v551_v38 = vld [vmem:[%s672_s3 + $0x20] sm:$0xff]   ;;  %v429_v55 = vunpack.c.l.bf16 %v557_v42 }
   0x7   :  { %29 = vst.msk [vmem:[#allocation2 + $0x30] sm:$0xff] %vm22_vm0, %v447_v1  ;;  %v421_v49 = vunpack.c.l.bf16 %v551_v38  ;;  %v422_v22 = vunpack.c.h.bf16 %v551_v38 }
   0x8   :  { %30 = vst.msk [vmem:[#allocation2 + $0x38] sm:$0xff] %vm22_vm0, %v447_v1  ;;  %v39_v10 = vld [vmem:[#allocation2] sm:$0xff] }
   0x9   :  { %31 = vst.msk [vmem:[#allocation2 + $0x40] sm:$0xff] %vm22_vm0, %v447_v1  ;;  %v40_v19 = vld [vmem:[#allocation2 + $0x8] sm:$0xff] }
   0xa   :  { %32 = vst.msk [vmem:[#allocation2 + $0x48] sm:$0xff] %vm22_vm0, %v447_v1  ;;  %v41_v43 = vld [vmem:[#allocation2 + $0x10] sm:$0xff] }
   0xb   :  { %33 = vst.msk [vmem:[#allocation2 + $0x50] sm:$0xff] %vm22_vm0, %v447_v1 }
   0xc   :  { %34 = vst.msk [vmem:[#allocation2 + $0x58] sm:$0xff] %vm22_vm0, %v447_v1  ;;  %v43_v11 = vld [vmem:[#allocation2 + $0x20] sm:$0xff] }
   0xd   :  { %35 = vst.msk [vmem:[#allocation2 + $0x60] sm:$0xff] %vm22_vm0, %v447_v1  ;;  %v44_v20 = vld [vmem:[#allocation2 + $0x28] sm:$0xff] }
   0xe   :  { %36 = vst.msk [vmem:[#allocation2 + $0x68] sm:$0xff] %vm22_vm0, %v447_v1  ;;  %v45_v47 = vld [vmem:[#allocation2 + $0x30] sm:$0xff] }
   0xf   :  { %37 = vst.msk [vmem:[#allocation2 + $0x70] sm:$0xff] %vm22_vm0, %v447_v1  ;;  %v46_v18 = vld [vmem:[#allocation2 + $0x38] sm:$0xff] }
  0x10   :  { %38 = vst.msk [vmem:[#allocation2 + $0x78] sm:$0xff] %vm22_vm0, %v447_v1  ;;  %v47_v16 = vld [vmem:[#allocation2 + $0x40] sm:$0xff] }
  0x11   :  { %v48_v39 = vld [vmem:[#allocation2 + $0x48] sm:$0xff] }
  0x12   :  { %v49_v5 = vld [vmem:[#allocation2 + $0x50] sm:$0xff] }
  0x14   :  { %v51_v17 = vld [vmem:[#allocation2 + $0x60] sm:$0xff] }
  0x15   :  { %387 = vmatmul.msk.bf16.gmra.mxu0 %vm119_vm1, %v395_v6  ;;  %389 = vmatmul.msk.bf16.gmra.mxu1 %vm119_vm1, %v397_v7  ;;  %v52_v40 = vld [vmem:[#allocation2 + $0x68] sm:$0xff] }
  0x16   :  { %391 = vmatmul.msk.bf16.gmra.mxu2 %vm119_vm1, %v399_v8  ;;  %393 = vmatmul.msk.bf16.gmra.mxu3 %vm119_vm1, %v401_v9  ;;  %v53_v8 = vld [vmem:[#allocation2 + $0x70] sm:$0xff] }
  0x82   :  { %v153_v12 = vpop.f32.mrf.mxu0  ;;  %v163_v13 = vpop.f32.mrf.mxu1 }
  0x83   :  { %v193_v14 = vadd.f32 %v153_v12, %v39_v10  ;;  %v197_v15 = vadd.f32 %v163_v13, %v43_v11  ;;  %v42_v13 = vld [vmem:[#allocation2 + $0x18] sm:$0xff] }
  0x85   :  { %210 = vst.msk [vmem:[#allocation2] sm:$0xff] %vm22_vm0, %v193_v14 }
  0x86   :  { %214 = vst.msk [vmem:[#allocation2 + $0x20] sm:$0xff] %vm22_vm0, %v197_v15  ;;  %v586_v15 = vld [vmem:[%s672_s3 + $0x8] sm:$0xff]  }
  0x89   :  { %v173_v23 = vpop.f32.mrf.mxu2  ;;  %v183_v24 = vpop.f32.mrf.mxu3 }
  0x8a   :  { %v201_v25 = vadd.f32 %v173_v23, %v47_v16  ;;  %v205_v26 = vadd.f32 %v183_v24, %v51_v17  ;;  %v155_v27 = vpop.f32.mrf.mxu0  ;;  %v165_v28 = vpop.f32.mrf.mxu1  ;;  %v437_v23 = vld [vmem:[%s672_s3 + $0x18] sm:$0xff]  }
  0x8b   :  { %v194_v30 = vadd.f32 %v155_v27, %v40_v19  ;;  %v198_v31 = vadd.f32 %v165_v28, %v44_v20 }
  0x8c   :  { %v229_v32 = vld [vmem:[#allocation2] sm:$0xff]  ;;  %218 = vst.msk [vmem:[#allocation2 + $0x40] sm:$0xff] %vm22_vm0, %v201_v25 }
  0x8d   :  { %v249_v34 = vadd.f32 %v534_v21, %v229_v32  ;;  %v233_v35 = vld [vmem:[#allocation2 + $0x20] sm:$0xff]  ;;  %222 = vst.msk [vmem:[#allocation2 + $0x60] sm:$0xff] %vm22_vm0, %v205_v26  ;;  %v430_v26 = vunpack.c.h.bf16 %v557_v42 }
  0x8e   :  { %v253_v36 = vadd.f32 %v534_v21, %v233_v35  ;;  %211 = vst.msk [vmem:[#allocation2 + $0x8] sm:$0xff] %vm22_vm0, %v194_v30  ;;  %v409_v30 = vunpack.c.l.bf16 %v586_v15 }
  0x8f   :  { %v297_v37 = vadd.f32 %v405_v29, %v249_v34  ;;  %215 = vst.msk [vmem:[#allocation2 + $0x28] sm:$0xff] %vm22_vm0, %v198_v31  ;;  %v417_v34 = vunpack.c.l.bf16 %v437_v23 }
  0x90   :  { %v301_v41 = vadd.f32 %v413_v33, %v253_v36 }
  0x91   :  { %v313_v44 = vpack.c.bf16 %v297_v37, %v297_v37  ;;  %v175_v45 = vpop.f32.mrf.mxu2  ;;  %v185_v46 = vpop.f32.mrf.mxu3 }
  0x92   :  { %v317_v48 = vpack.c.bf16 %v301_v41, %v301_v41  ;;  %v202_v50 = vadd.f32 %v175_v45, %v48_v39  ;;  %v206_v51 = vadd.f32 %v185_v46, %v52_v40  ;;  %v158_v52 = vpop.f32.mrf.mxu0  ;;  %v168_v53 = vpop.f32.mrf.mxu1  ;;  %v50_v40 = vld [vmem:[#allocation2 + $0x58] sm:$0xff] }
  0x93   :  { %330 = vst.msk [vmem:[%s673_s4] sm:$0xf] %vm329_vm2, %v313_v44  ;;  %v237_v54 = vld [vmem:[#allocation2 + $0x40] sm:$0xff]  ;;  %v195_v56 = vadd.f32 %v158_v52, %v41_v43  ;;  %v199_v60 = vadd.f32 %v168_v53, %v45_v47  ;;  %v439_v43 = vld [vmem:[%s672_s3 + $0x28] sm:$0xff]   ;;  %v54_v45 = vld [vmem:[#allocation2 + $0x78] sm:$0xff] }
  0x94   :  { %334 = vst.msk [vmem:[%s673_s4 + $0x10] sm:$0xf] %vm329_vm2, %v317_v48  ;;  %v257_v57 = vadd.f32 %v534_v21, %v237_v54  ;;  %v241_v58 = vld [vmem:[#allocation2 + $0x60] sm:$0xff]  ;;  %v425_v53 = vunpack.c.l.bf16 %v439_v43 }
  0x95   :  { %v261_v61 = vadd.f32 %v534_v21, %v241_v58  ;;  %v230_v62 = vld [vmem:[#allocation2 + $0x8] sm:$0xff]  ;;  %219 = vst.msk [vmem:[#allocation2 + $0x48] sm:$0xff] %vm22_vm0, %v202_v50 }
  0x96   :  { %v305_v0 = vadd.f32 %v421_v49, %v257_v57  ;;  %v250_v1 = vadd.f32 %v534_v21, %v230_v62  ;;  %v234_v2 = vld [vmem:[#allocation2 + $0x28] sm:$0xff]  ;;  %223 = vst.msk [vmem:[#allocation2 + $0x68] sm:$0xff] %vm22_vm0, %v206_v51  ;;  %v441_v49 = vld [vmem:[%s672_s3 + $0x38] sm:$0xff]   ;;  %v418_v62 = vunpack.c.h.bf16 %v437_v23 }
  0x97   :  { %v309_v3 = vadd.f32 %v429_v55, %v261_v61  ;;  %v254_v4 = vadd.f32 %v534_v21, %v234_v2  ;;  %212 = vst.msk [vmem:[#allocation2 + $0x10] sm:$0xff] %vm22_vm0, %v195_v56  ;;  %v433_v56 = vunpack.c.l.bf16 %v441_v49 }
  0x98   :  { %v321_v6 = vpack.c.bf16 %v305_v0, %v305_v0  ;;  %v298_v7 = vadd.f32 %v406_v59, %v250_v1  ;;  %216 = vst.msk [vmem:[#allocation2 + $0x30] sm:$0xff] %vm22_vm0, %v199_v60  ;;  %v410_v59 = vunpack.c.h.bf16 %v586_v15 }
  0x99   :  { %v325_v9 = vpack.c.bf16 %v309_v3, %v309_v3  ;;  %v302_v10 = vadd.f32 %v414_v63, %v254_v4  ;;  %v178_v11 = vpop.f32.mrf.mxu2  ;;  %v188_v12 = vpop.f32.mrf.mxu3 }
  0x9a   :  { %338 = vst.msk [vmem:[%s673_s4 + $0x20] sm:$0xf] %vm329_vm2, %v321_v6  ;;  %v314_v14 = vpack.c.bf16 %v298_v7, %v298_v7  ;;  %v203_v16 = vadd.f32 %v178_v11, %v49_v5  ;;  %v160_v17 = vpop.f32.mrf.mxu0  ;;  %v170_v19 = vpop.f32.mrf.mxu1  ;;  %v207_v24 = vadd.f32 %v188_v12, %v53_v8  ;;  %v434_v12 = vunpack.c.h.bf16 %v441_v49 }
  0x9b   :  { %342 = vst.msk [vmem:[%s673_s4 + $0x30] sm:$0xf] %vm329_vm2, %v325_v9  ;;  %v318_v20 = vpack.c.bf16 %v302_v10, %v302_v10  ;;  %v196_v27 = vadd.f32 %v160_v17, %v42_v13  ;;  %v200_v31 = vadd.f32 %v170_v19, %v46_v18  ;;  %v426_v10 = vunpack.c.h.bf16 %v439_v43 }
  0x9c   :  { %331 = vst.msk [vmem:[%s673_s4 + $0x4] sm:$0xf] %vm329_vm2, %v314_v14  ;;  %v238_v25 = vld [vmem:[#allocation2 + $0x48] sm:$0xff] }
  0x9d   :  { %335 = vst.msk [vmem:[%s673_s4 + $0x14] sm:$0xf] %vm329_vm2, %v318_v20  ;;  %v258_v28 = vadd.f32 %v534_v21, %v238_v25  ;;  %v242_v29 = vld [vmem:[#allocation2 + $0x68] sm:$0xff] }
  0x9e   :  { %v262_v32 = vadd.f32 %v534_v21, %v242_v29  ;;  %v231_v33 = vld [vmem:[#allocation2 + $0x10] sm:$0xff]  ;;  %220 = vst.msk [vmem:[#allocation2 + $0x50] sm:$0xff] %vm22_vm0, %v203_v16 }
  0x9f   :  { %v306_v35 = vadd.f32 %v422_v22, %v258_v28  ;;  %v251_v36 = vadd.f32 %v534_v21, %v231_v33  ;;  %v235_v37 = vld [vmem:[#allocation2 + $0x30] sm:$0xff]  ;;  %224 = vst.msk [vmem:[#allocation2 + $0x70] sm:$0xff] %vm22_vm0, %v207_v24 }
  0xa0   :  { %v310_v38 = vadd.f32 %v430_v26, %v262_v32  ;;  %v255_v39 = vadd.f32 %v534_v21, %v235_v37  ;;  %213 = vst.msk [vmem:[#allocation2 + $0x18] sm:$0xff] %vm22_vm0, %v196_v27 }
  0xa1   :  { %v322_v41 = vpack.c.bf16 %v306_v35, %v306_v35  ;;  %v299_v42 = vadd.f32 %v409_v30, %v251_v36  ;;  %217 = vst.msk [vmem:[#allocation2 + $0x38] sm:$0xff] %vm22_vm0, %v200_v31  ;;  %v180_v44 = vpop.f32.mrf.mxu2  ;;  %v190_v46 = vpop.f32.mrf.mxu3 }
  0xa2   :  { %v326_v47 = vpack.c.bf16 %v310_v38, %v310_v38  ;;  %v303_v48 = vadd.f32 %v417_v34, %v255_v39  ;;  %v204_v51 = vadd.f32 %v180_v44, %v50_v40  ;;  %v208_v54 = vadd.f32 %v190_v46, %v54_v45 }
  0xa3   :  { %339 = vst.msk [vmem:[%s673_s4 + $0x24] sm:$0xf] %vm329_vm2, %v322_v41  ;;  %v315_v50 = vpack.c.bf16 %v299_v42, %v299_v42 }
  0xa4   :  { %343 = vst.msk [vmem:[%s673_s4 + $0x34] sm:$0xf] %vm329_vm2, %v326_v47  ;;  %v319_v52 = vpack.c.bf16 %v303_v48, %v303_v48 }
  0xa5   :  { %332 = vst.msk [vmem:[%s673_s4 + $0x8] sm:$0xf] %vm329_vm2, %v315_v50  ;;  %v239_v55 = vld [vmem:[#allocation2 + $0x50] sm:$0xff] }
  0xa6   :  { %336 = vst.msk [vmem:[%s673_s4 + $0x18] sm:$0xf] %vm329_vm2, %v319_v52  ;;  %v259_v57 = vadd.f32 %v534_v21, %v239_v55  ;;  %v243_v58 = vld [vmem:[#allocation2 + $0x70] sm:$0xff] }
  0xa7   :  { %v263_v60 = vadd.f32 %v534_v21, %v243_v58  ;;  %v232_v61 = vld [vmem:[#allocation2 + $0x18] sm:$0xff]  ;;  %221 = vst.msk [vmem:[#allocation2 + $0x58] sm:$0xff] %vm22_vm0, %v204_v51 }
  0xa8   :  { %v307_v63 = vadd.f32 %v425_v53, %v259_v57  ;;  %v252_v0 = vadd.f32 %v534_v21, %v232_v61  ;;  %v236_v1 = vld [vmem:[#allocation2 + $0x38] sm:$0xff]  ;;  %225 = vst.msk [vmem:[#allocation2 + $0x78] sm:$0xff] %vm22_vm0, %v208_v54 }
  0xa9   :  { %v311_v2 = vadd.f32 %v433_v56, %v263_v60  ;;  %v256_v3 = vadd.f32 %v534_v21, %v236_v1 }
  0xaa   :  { %v323_v4 = vpack.c.bf16 %v307_v63, %v307_v63  ;;  %v300_v5 = vadd.f32 %v410_v59, %v252_v0 }
  0xab   :  { %v327_v6 = vpack.c.bf16 %v311_v2, %v311_v2  ;;  %v304_v7 = vadd.f32 %v418_v62, %v256_v3 }
  0xac   :  { %340 = vst.msk [vmem:[%s673_s4 + $0x28] sm:$0xf] %vm329_vm2, %v323_v4  ;;  %v316_v8 = vpack.c.bf16 %v300_v5, %v300_v5 }
  0xad   :  { %344 = vst.msk [vmem:[%s673_s4 + $0x38] sm:$0xf] %vm329_vm2, %v327_v6  ;;  %v320_v9 = vpack.c.bf16 %v304_v7, %v304_v7 }
  0xae   :  { %333 = vst.msk [vmem:[%s673_s4 + $0xc] sm:$0xf] %vm329_vm2, %v316_v8  ;;  %v240_v11 = vld [vmem:[#allocation2 + $0x58] sm:$0xff] }
  0xaf   :  { %337 = vst.msk [vmem:[%s673_s4 + $0x1c] sm:$0xf] %vm329_vm2, %v320_v9  ;;  %v260_v13 = vadd.f32 %v534_v21, %v240_v11  ;;  %v244_v14 = vld [vmem:[#allocation2 + $0x78] sm:$0xff] }
  0xb0   :  { %v264_v15 = vadd.f32 %v534_v21, %v244_v14 }
  0xb1   :  { %v308_v16 = vadd.f32 %v426_v10, %v260_v13 }
  0xb2   :  { %v312_v17 = vadd.f32 %v434_v12, %v264_v15 }
  0xb3   :  { %v324_v18 = vpack.c.bf16 %v308_v16, %v308_v16 }
  0xb4   :  { %v328_v19 = vpack.c.bf16 %v312_v17, %v312_v17 }
  0xb5   :  { %341 = vst.msk [vmem:[%s673_s4 + $0x2c] sm:$0xf] %vm329_vm2, %v324_v18 }
  0xb6   :  { %345 = vst.msk [vmem:[%s673_s4 + $0x3c] sm:$0xf] %vm329_vm2, %v328_v19 }

// kernel: _lambda_.56
= control target key start
LH: loop header
LB: loop body
LE: loop exit
PB: predicated region body
PF: predicated region fallthrough
CT: control target
= control target key end

     0   :  { %s1677_s12 = smov 0   ;;  %s1679_s13 = smov 0   ;;  %s2117_s0 = inlined_call_operand.vmem [shape: bf16[2,116,8], index: 0, kind: input, shape index: {}]   ;;  %s2118_s1 = inlined_call_operand.vmem [shape: bf16[9,8,8], index: 1, kind: input, shape index: {}]   ;;  %s2119_s2 = inlined_call_operand.vmem [shape: f32[1,8], index: 2, kind: input, shape index: {}]   ;;  %s2120_s3 = inlined_call_operand.vmem [shape: bf16[2,96,8], index: 3, kind: output, shape index: {}]  }
   0x1   :  { %s1681_s14 = smov 0  }
   0x2 LB: > { %s32_s15 = sadd.s32 1, %s1650_s13  ;;  %p1452_p0 = scmp.ge.s32.totalorder %s1654_s14, 1  ;;  %s1654_s14 = sphi %s1681_s14, %s13_s14   ;;  %s1650_s13 = sphi %s1679_s13, %s2122_s13   ;;  %s1646_s12 = sphi %s1677_s12, %s2121_s12  }
   0x3   : > { %p34_p1 = scmp.ge.s32.totalorder %s32_s15, 2  ;;  %p185_p2 = scmp.lt.s32.totalorder %s1654_s14, 3 }
   0x5   : > { %s2124_s15 = smov (%p34_p1, %s32_s15), 0  ;;  %p186_p3 = pnand %p1452_p0, %p185_p2 }
   0x6   : > { %p225_p4 = scmp.lt.s32.totalorder (!%p186_p3), %s1646_s12, 1 }
   0x7   : > { %189 = sbr.rel (%p186_p3) target bundleno = 394 (0x18a), region = 32 }
   0xc   : > { %v1455_v0 = vld [vmem:[%s2118_s1 + $0x4] sm:$0xf]  ;;  %vm390_vm0 = vcmask 1043456   ;;  %v1468_v2 = vld [vmem:[%s2118_s1 + $0x8] sm:$0xf]  ;;  %s2126_s12 = smov (!%p225_p4, %s1646_s12), 1 }
   0xd   : > { %v392_v1 = vsel %vm390_vm0, %v1455_v0, 0  ;;  %v526_v3 = vsel %vm390_vm0, %v1468_v2, 0  ;;  %v281_v4 = vld [vmem:[%s2118_s1] sm:$0xf]  ;;  %v1475_v5 = vld [vmem:[%s2118_s1 + $0xc] sm:$0xf] }
   0xe   : > { %1601 = vmatpush.bf16.msra.mxu1 %v392_v1  ;;  %1602 = vmatpush.bf16.msra.mxu2 %v392_v1  ;;  %v446_v6 = vsel %vm390_vm0, %v281_v4, 0  ;;  %v622_v7 = vsel %vm390_vm0, %v1475_v5, 0  ;;  %v1482_v8 = vld [vmem:[%s2118_s1 + $0x10] sm:$0xf]  ;;  %s1604_s26 = smul.u32 60, %s2126_s12  ;;  %vm256_vm2 = vcmask 64512  }
   0xf   : > { %1603 = vmatpush.bf16.msra.mxu3 %v392_v1  ;;  %401 = vmatpush.bf16.msra.mxu0 %v392_v1  ;;  %v738_v9 = vsel %vm390_vm0, %v1482_v8, 0  ;;  %vm318_vm1 = vsmask.f32 7424  ;;  %v1496_v41 = vld [vmem:[%s2118_s1 + $0x18] sm:$0xf]  ;;  %vm589_vm3 = vcmask 1044480  }
  0x10   : > { %s1721_s29 = scalar_lea.vmem %s2117_s0, %s1604_s26  ;;  %v952_v46 = vsel %vm390_vm0, %v1496_v41, 0  ;;  %v1523_v47 = vld [vmem:[%s2118_s1 + $0x1c] sm:$0xf]  ;;  %v1489_v48 = vld [vmem:[%s2118_s1 + $0x14] sm:$0xf]  ;;  %vm493_vm5 = vcmask 1046528  }
  0x11   : > { %v1724_v10 = vld [vmem:[%s1721_s29 + $0x8] sm:$0xff]   ;;  %v1727_v11 = vld [vmem:[%s1721_s29 + $0x10] sm:$0xff]   ;;  %v1730_v12 = vld [vmem:[%s1721_s29 + $0x18] sm:$0xff]   ;;  %v1093_v56 = vsel %vm390_vm0, %v1523_v47, 0  ;;  %v818_v57 = vsel %vm390_vm0, %v1489_v48, 0  ;;  %vm919_vm7 = vcmask 1045504  }
  0x12   : > { %535 = vmatpush.bf16.msrb.mxu2 %v526_v3  ;;  %455 = vmatpush.bf16.msrb.mxu1 %v446_v6  ;;  %v327_v13 = vshll.u32 %v1724_v10, 16  ;;  %v331_v14 = vshrl.u32 %v1724_v10, 16  ;;  %v335_v15 = vshll.u32 %v1727_v11, 16  ;;  %v1736_v16 = vld [vmem:[%s1721_s29 + $0x20] sm:$0xff]   ;;  %v343_v17 = vshll.u32 %v1730_v12, 16  ;;  %v1740_v18 = vld [vmem:[%s1721_s29 + $0x28] sm:$0xff]  }
  0x13   : > { %631 = vmatpush.bf16.msrb.mxu3 %v622_v7  ;;  %747 = vmatpush.bf16.msrb.mxu0 %v738_v9  ;;  %v347_v19 = vshrl.u32 %v1730_v12, 16  ;;  %v351_v20 = vshll.u32 %v1736_v16, 16  ;;  %v282_v21 = vld [vmem:[%s1721_s29 + $0x30] sm:$0x1]  ;;  %v359_v22 = vshll.u32 %v1740_v18, 16  ;;  %v363_v23 = vshrl.u32 %v1740_v18, 16 }
  0x14   : > { %v329_v24 = vrot.slane %v327_v13, 1  ;;  %v337_v25 = vrot.slane %v335_v15, 1  ;;  %v345_v26 = vrot.slane %v343_v17, 1  ;;  %v310_v27 = vunpack.c.l.b16 %v282_v21  ;;  %v1756_v30 = vld [vmem:[%s1721_s29] sm:$0xff]   ;;  %s1605_s17 = smul.u32 48, %s2126_s12 }
  0x15   : > { %v353_v28 = vrot.slane %v351_v20, 1  ;;  %v361_v29 = vrot.slane %v359_v22, 1  ;;  %v320_v35 = vshrl.u32 %v1756_v30, 16  ;;  %v579_v36 = vld [vmem:[%s1721_s29] sm:$0x8]  ;;  %v322_v40 = vshll.u32 %v1756_v30, 16 }
  0x16   : > { %v333_v31 = vor.u32 %v331_v14, %v329_v24  ;;  %v349_v32 = vor.u32 %v347_v19, %v345_v26  ;;  %v1760_v33 = vpack.c.b16 %v310_v27, %v310_v27  ;;  %v1776_v43 = vunpack.c.h.b16 %v1756_v30  ;;  %v1530_v53 = vld [vmem:[%s2118_s1 + $0x20] sm:$0xf]  ;;  %s2052_s20 = scalar_lea.vmem %s2120_s3, %s1605_s17 }
  0x17   : > { %v365_v34 = vor.u32 %v363_v23, %v361_v29  ;;  %v324_v44 = vrot.slane %v322_v40, 1  ;;  %v585_v45 = vunpack.c.l.b16 %v579_v36  ;;  %v339_v51 = vshrl.u32 %v1727_v11, 16  ;;  %v487_v7 = vld [vmem:[%s1721_s29] sm:$0xe] }
  0x18   : > { %v338_v37 = vsel %vm318_vm1, %v333_v31, %v337_v25  ;;  %v354_v38 = vsel %vm318_vm1, %v349_v32, %v353_v28  ;;  %v367_v39 = vshll.u32 %v1760_v33, 16  ;;  %v355_v52 = vshrl.u32 %v1736_v16, 16 }
  0x19   : > { %1457 = vmatmul.msk.bf16.vlgmr.msra.gmra.mxu1 %vm256_vm2, %v338_v37  ;;  %1459 = vmatmul.msk.bf16.vlgmr.msra.gmra.mxu2 %vm256_vm2, %v354_v38  ;;  %v325_v50 = vor.u32 %v324_v44, %v320_v35  ;;  %v587_v55 = vpack.c.b16 %v1776_v43, %v585_v45  ;;  %v1184_v60 = vsel %vm390_vm0, %v1530_v53, 0  ;;  %v341_v61 = vor.u32 %v339_v51, %v337_v25 }
  0x1a   : > { %v369_v42 = vrot.slane %v367_v39, 1  ;;  %961 = vmatpush.bf16.msra.mxu2 %v952_v46  ;;  %827 = vmatpush.bf16.msra.mxu1 %v818_v57  ;;  %v357_v62 = vor.u32 %v355_v52, %v353_v28  ;;  %v690_v1 = vrot.slane %v331_v14, 3  ;;  %v691_v2 = vrot.slane %v327_v13, 4 }
  0x1b   : > { %v330_v54 = vsel %vm318_vm1, %v325_v50, %v329_v24  ;;  %v683_v58 = vshrl.u32 %v587_v55, 16  ;;  %v686_v59 = vshll.u32 %v587_v55, 16  ;;  %v346_v3 = vsel %vm318_vm1, %v341_v61, %v345_v26 }
  0x1c   : > { %v370_v49 = vsel %vm318_vm1, %v365_v34, %v369_v42  ;;  %1456 = vmatmul.msk.bf16.vlgmr.msra.gmra.mxu0 %vm256_vm2, %v330_v54  ;;  %v362_v4 = vsel %vm318_vm1, %v357_v62, %v361_v29  ;;  %v590_v5 = vrot.slane %v587_v55, 3  ;;  %v591_v6 = vrot.slane %v1724_v10, 3  ;;  %v580_v55 = vld [vmem:[%s1721_s29 + $0x30] sm:$0x7]  ;;  %v872_v62 = vld [vmem:[%s1721_s29 + $0x8] sm:$0xf] }
  0x1d   : > { %1461 = vmatmul.msk.bf16.vlgmr.msra.gmra.mxu3 %vm256_vm2, %v370_v49  ;;  %1193 = vmatpush.bf16.msra.mxu0 %v1184_v60  ;;  %v685_v63 = vrot.slane %v683_v58, 3  ;;  %v688_v0 = vrot.slane %v686_v59, 4  ;;  %v692_v9 = vor.u32 %v691_v2, %v690_v1  ;;  %vm681_vm4 = vsmask.f32 4352 }
  0x1e   : > { %1102 = vmatpush.bf16.msra.mxu3 %v1093_v56  ;;  %v592_v21 = vsel %vm589_vm3, %v590_v5, %v591_v6  ;;  %v491_v14 = vunpack.c.l.b16 %v487_v7  ;;  %v495_v26 = vrot.slane %v1724_v10, 1  ;;  %v694_v27 = vrot.slane %v339_v51, 3  ;;  %v1876_v7 = vld [vmem:[%s1721_s29 + $0xc] sm:$0xff] }
  0x1f   : > { %v689_v8 = vor.u32 %v688_v0, %v685_v63  ;;  %v695_v28 = vrot.slane %v335_v15, 4  ;;  %v593_v31 = vrot.slane %v1727_v11, 3  ;;  %v497_v15 = vrot.slane %v1727_v11, 1 }
  0x20   : > { %v492_v24 = vpack.c.b16 %v1776_v43, %v491_v14  ;;  %v698_v36 = vrot.slane %v347_v19, 3  ;;  %v699_v37 = vrot.slane %v343_v17, 4  ;;  %v595_v38 = vrot.slane %v1730_v12, 3 }
  0x21   : > { %v693_v13 = vsel %vm681_vm4, %v689_v8, %v692_v9  ;;  %v696_v32 = vor.u32 %v695_v28, %v694_v27  ;;  %v594_v34 = vsel %vm589_vm3, %v591_v6, %v593_v31  ;;  %v499_v17 = vrot.slane %v1730_v12, 1 }
  0x22   : > { %v494_v25 = vrot.slane %v492_v24, 1  ;;  %v700_v39 = vor.u32 %v699_v37, %v698_v36  ;;  %v596_v40 = vsel %vm589_vm3, %v593_v31, %v595_v38  ;;  %v702_v19 = vrot.slane %v355_v52, 3 }
  0x23   : > { %v697_v35 = vsel %vm681_vm4, %v692_v9, %v696_v32  ;;  %v703_v42 = vrot.slane %v351_v20, 4  ;;  %v500_v44 = vsel %vm493_vm5, %v497_v15, %v499_v17  ;;  %v597_v45 = vrot.slane %v1736_v16, 3 }
  0x24   : > { %v496_v29 = vsel %vm493_vm5, %v494_v25, %v495_v26  ;;  %v701_v41 = vsel %vm681_vm4, %v696_v32, %v700_v39  ;;  %v706_v46 = vrot.slane %v363_v23, 3  ;;  %v707_v47 = vrot.slane %v359_v22, 4  ;;  %v675_v23 = vld [vmem:[%s1721_s29 + $0x30] sm:$0xf] }
  0x25   : > { %v704_v48 = vor.u32 %v703_v42, %v702_v19  ;;  %v598_v20 = vsel %vm589_vm3, %v595_v38, %v597_v45  ;;  %v501_v22 = vrot.slane %v1736_v16, 1  ;;  %v1856_v53 = vunpack.c.l.b16 %v675_v23 }
  0x26   : > { %v708_v49 = vor.u32 %v707_v47, %v706_v46  ;;  %v586_v57 = vunpack.c.l.b16 %v580_v55  ;;  %v503_v60 = vrot.slane %v1740_v18, 1  ;;  %v1021_v24 = vshrl.u32 %v1876_v7, 16 }
  0x27   : > { %v705_v51 = vsel %vm681_vm4, %v700_v39, %v704_v48  ;;  %v502_v52 = vsel %vm493_vm5, %v499_v17, %v501_v22  ;;  %v680_v56 = vpack.c.b16 %v1856_v53, %v1856_v53  ;;  %v1024_v25 = vshll.u32 %v1876_v7, 16 }
  0x28   : > { %v709_v50 = vsel %vm681_vm4, %v704_v48, %v708_v49  ;;  %v588_v61 = vpack.c.b16 %v586_v57, %v586_v57  ;;  %v504_v1 = vsel %vm493_vm5, %v501_v22, %v503_v60  ;;  %vm1011_vm6 = vsmask.f32 5376 }
  0x29   : > { %1458 = vmatmul.msk.bf16.gmra.mxu1 %vm256_vm2, %v346_v3  ;;  %1460 = vmatmul.msk.bf16.gmra.mxu2 %vm256_vm2, %v362_v4  ;;  %v711_v58 = vshrl.u32 %v680_v56, 16  ;;  %v714_v59 = vshll.u32 %v680_v56, 16  ;;  %v900_v4 = vunpack.c.l.b16 %v872_v62  ;;  %v1026_v31 = vrot.slane %v1024_v25, 3  ;;  %v1597_v25 = vld [vmem:[%s1721_s29 + $0x14] sm:$0xff]  }
  0x2a   : > { %v601_v2 = vrot.slane %v588_v61, 3  ;;  %v1153_v37 = vrot.slane %v1876_v7, 3  ;;  %v921_v19 = vrot.slane %v1876_v7, 2  ;;  %vm1316_vm8 = vcmask 60416  }
  0x2b   : > { %v713_v63 = vrot.slane %v711_v58, 3  ;;  %v716_v0 = vrot.slane %v714_v59, 4  ;;  %v1595_v59 = vld [vmem:[%s1721_s29 + $0xc] sm:$0xff]  }
  0x2c   : > { %1483 = vmatmul.msk.bf16.vlgmr.msrb.gmra.mxu0 %vm256_vm2, %v693_v13 }
  0x2d   : > { %1476 = vmatmul.msk.bf16.vlgmr.msrb.gmra.mxu3 %vm256_vm2, %v592_v21  ;;  %v717_v5 = vor.u32 %v716_v0, %v713_v63  ;;  %v1146_v21 = vld [vmem:[%s1721_s29 + $0x4] sm:$0x8] }
  0x2f   : > { %v718_v9 = vsel %vm681_vm4, %v708_v49, %v717_v5 }
  0x39   : > { %1462 = vmatmul.msk.bf16.vlgmr.msrb.gmra.mxu1 %vm256_vm2, %v1756_v30  ;;  %1469 = vmatmul.msk.bf16.vlgmr.msrb.gmra.mxu2 %vm256_vm2, %v496_v29  ;;  %v498_v30 = vsel %vm493_vm5, %v495_v26, %v497_v15  ;;  %v505_v26 = vrot.slane %v1760_v33, 1  ;;  %v1023_v29 = vrot.slane %v1021_v24, 2 }
  0x3b   : > { %v1027_v15 = vor.u32 %v1026_v31, %v1023_v29 }
  0x3c   : > { %1484 = vmatmul.msk.bf16.gmra.mxu0 %vm256_vm2, %v697_v35 }
  0x3d   : > { %1477 = vmatmul.msk.bf16.gmra.mxu3 %vm256_vm2, %v594_v34  ;;  %v506_v34 = vsel %vm493_vm5, %v503_v60, %v505_v26 }
  0x49   : > { %1463 = vmatmul.msk.bf16.gmra.mxu1 %vm256_vm2, %v1724_v10  ;;  %1470 = vmatmul.msk.bf16.gmra.mxu2 %vm256_vm2, %v498_v30  ;;  %v1892_v30 = vld [vmem:[%s1721_s29 + $0x14] sm:$0xff] }
  0x4a   : > { %v1030_v39 = vshrl.u32 %v1892_v30, 16  ;;  %v1155_v49 = vrot.slane %v1892_v30, 3 }
  0x4c   : > { %1485 = vmatmul.msk.bf16.gmra.mxu0 %vm256_vm2, %v701_v41  ;;  %v1550_v41 = vunpack.c.l.b16 %v1724_v10  ;;  %v1032_v42 = vrot.slane %v1030_v39, 2 }
  0x4d   : > { %1478 = vmatmul.msk.bf16.gmra.mxu3 %vm256_vm2, %v596_v40  ;;  %v1033_v40 = vshll.u32 %v1892_v30, 16 }
  0x59   : > { %1464 = vmatmul.msk.bf16.gmra.mxu1 %vm256_vm2, %v1727_v11  ;;  %1471 = vmatmul.msk.bf16.gmra.mxu2 %vm256_vm2, %v500_v44  ;;  %v599_v11 = vrot.slane %v1740_v18, 3  ;;  %v1035_v44 = vrot.slane %v1033_v40, 3 }
  0x5b   : > { %v600_v54 = vsel %vm589_vm3, %v597_v45, %v599_v11  ;;  %v602_v6 = vsel %vm589_vm3, %v599_v11, %v601_v2  ;;  %v793_v45 = vpack.c.b16 %v1550_v41, %v1776_v43  ;;  %v1036_v48 = vor.u32 %v1035_v44, %v1032_v42 }
  0x5c   : > { %1486 = vmatmul.msk.bf16.gmra.mxu0 %vm256_vm2, %v705_v51  ;;  %v1156_v43 = vsel %vm589_vm3, %v1153_v37, %v1155_v49 }
  0x5d   : > { %1479 = vmatmul.msk.bf16.gmra.mxu3 %vm256_vm2, %v598_v20  ;;  %v1037_v10 = vsel %vm1011_vm6, %v1027_v15, %v1036_v48  ;;  %v1910_v20 = vld [vmem:[%s1721_s29 + $0x1c] sm:$0xff] }
  0x5e   : > { %v1039_v23 = vshrl.u32 %v1910_v20, 16  ;;  %v1157_v63 = vrot.slane %v1910_v20, 3 }
  0x60   : > { %v1041_v55 = vrot.slane %v1039_v23, 2 }
  0x69   : > { %1465 = vmatmul.msk.bf16.gmra.mxu1 %vm256_vm2, %v1730_v12  ;;  %1472 = vmatmul.msk.bf16.gmra.mxu2 %vm256_vm2, %v502_v52  ;;  %v871_v12 = vld [vmem:[%s1721_s29 + $0x4] sm:$0xc]  ;;  %v1042_v52 = vshll.u32 %v1910_v20, 16 }
  0x6a   : > { %v899_v3 = vunpack.c.l.b16 %v871_v12 }
  0x6b   : > { %v1044_v56 = vrot.slane %v1042_v52, 3 }
  0x6c   : > { %1487 = vmatmul.msk.bf16.gmra.mxu0 %vm256_vm2, %v709_v50  ;;  %v912_v8 = vpack.c.b16 %v900_v4, %v899_v3 }
  0x6d   : > { %1480 = vmatmul.msk.bf16.gmra.mxu3 %vm256_vm2, %v600_v54  ;;  %v923_v54 = vrot.slane %v1892_v30, 2  ;;  %v1045_v12 = vor.u32 %v1044_v56, %v1041_v55 }
  0x6e   : > { %v1013_v14 = vshrl.u32 %v912_v8, 16  ;;  %v1016_v13 = vshll.u32 %v912_v8, 16  ;;  %v920_v17 = vrot.slane %v912_v8, 2 }
  0x6f   : > { %v924_v61 = vsel %vm919_vm7, %v921_v19, %v923_v54  ;;  %v1046_v0 = vsel %vm1011_vm6, %v1036_v48, %v1045_v12 }
  0x70   : > { %v1015_v27 = vrot.slane %v1013_v14, 2  ;;  %v1018_v28 = vrot.slane %v1016_v13, 3  ;;  %v922_v47 = vsel %vm919_vm7, %v920_v17, %v921_v19 }
  0x72   : > { %v1019_v35 = vor.u32 %v1018_v28, %v1015_v27 }
  0x74   : > { %v1028_v33 = vsel %vm1011_vm6, %v1019_v35, %v1027_v15 }
  0x79   : > { %1466 = vmatmul.msk.bf16.gmra.mxu1 %vm256_vm2, %v1736_v16  ;;  %1473 = vmatmul.msk.bf16.gmra.mxu2 %vm256_vm2, %v504_v1  ;;  %v1150_v16 = vunpack.c.l.b16 %v1146_v21  ;;  %v1937_v1 = vld [vmem:[%s1721_s29 + $0x24] sm:$0xff] }
  0x7a   : > { %v1051_v7 = vshll.u32 %v1937_v1, 16  ;;  %v1159_v31 = vrot.slane %v1937_v1, 3  ;;  %v927_v19 = vrot.slane %v1937_v1, 2 }
  0x7b   : > { %v1151_v32 = vpack.c.b16 %v900_v4, %v1150_v16  ;;  %v1158_v4 = vsel %vm589_vm3, %v1155_v49, %v1157_v63 }
  0x7c   : > { %1488 = vmatmul.msk.bf16.gmra.mxu0 %vm256_vm2, %v718_v9  ;;  %v925_v9 = vrot.slane %v1910_v20, 2  ;;  %v1053_v14 = vrot.slane %v1051_v7, 3 }
  0x7d   : > { %1481 = vmatmul.msk.bf16.gmra.mxu3 %vm256_vm2, %v602_v6  ;;  %v1152_v36 = vrot.slane %v1151_v32, 3  ;;  %v1048_v6 = vshrl.u32 %v1937_v1, 16 }
  0x7e   : > { %v926_v26 = vsel %vm919_vm7, %v923_v54, %v925_v9 }
  0x7f   : > { %v1154_v38 = vsel %vm589_vm3, %v1152_v36, %v1153_v37  ;;  %v1050_v21 = vrot.slane %v1048_v6, 2  ;;  %v1160_v36 = vsel %vm589_vm3, %v1157_v63, %v1159_v31 }
  0x81   : > { %v1054_v27 = vor.u32 %v1053_v14, %v1050_v21 }
  0x83   : > { %v1055_v32 = vsel %vm1011_vm6, %v1045_v12, %v1054_v27 }
  0x89   : > { %1467 = vmatmul.msk.bf16.gmra.mxu1 %vm256_vm2, %v1740_v18  ;;  %1474 = vmatmul.msk.bf16.gmra.mxu2 %vm256_vm2, %v506_v34  ;;  %v1958_v34 = vld [vmem:[%s1721_s29 + $0x2c] sm:$0xff] }
  0x8a   : > { %v1057_v30 = vshrl.u32 %v1958_v34, 16  ;;  %v1161_v56 = vrot.slane %v1958_v34, 3  ;;  %v929_v21 = vrot.slane %v1958_v34, 2 }
  0x8c   : > { %1531 = vmatmul.msk.bf16.vlgmr.msra.gmra.mxu0 %vm256_vm2, %v1154_v38  ;;  %v1060_v38 = vshll.u32 %v1958_v34, 16  ;;  %v1059_v42 = vrot.slane %v1057_v30, 2 }
  0x8d   : > { %1524 = vmatmul.msk.bf16.vlgmr.msra.gmra.mxu3 %vm256_vm2, %v1028_v33 }
  0x8e   : > { %v1062_v44 = vrot.slane %v1060_v38, 3 }
  0x96   : > { %v1902_v46 = vpop.f32.mrf.mxu1 }
  0x99   : > { %1490 = vmatmul.msk.bf16.vlgmr.msra.gmra.mxu1 %vm256_vm2, %v793_v45  ;;  %1517 = vmatmul.msk.bf16.vlgmr.msra.gmra.mxu2 %vm256_vm2, %v922_v47  ;;  %v403_v51 = vpop.f32.mrf.mxu0  ;;  %v1005_v45 = vld [vmem:[%s1721_s29 + $0x34] sm:$0x7] }
  0x9a   : > { %v1009_v23 = vunpack.c.l.b16 %v1005_v45  ;;  %v1567_v45 = vunpack.c.h.b16 %v1740_v18 }
  0x9c   : > { %v1912_v50 = vpop.f32.mrf.mxu2  ;;  %1532 = vmatmul.msk.bf16.gmra.mxu0 %vm256_vm2, %v1156_v43  ;;  %v1063_v43 = vor.u32 %v1062_v44, %v1059_v42 }
  0x9d   : > { %1525 = vmatmul.msk.bf16.gmra.mxu3 %vm256_vm2, %v1037_v10  ;;  %v1599_v10 = vld [vmem:[%s1721_s29 + $0x1c] sm:$0xff]  }
  0x9e   : > { %v1916_v22 = vpop.f32.mrf.mxu1 }
  0xa0   : > { %v1921_v11 = vpop.f32.mrf.mxu3 }
  0xa1   : > { %v405_v58 = vpop.f32.mrf.mxu0 }
  0xa4   : > { %v1924_v57 = vpop.f32.mrf.mxu2 }
  0xa6   : > { %v1927_v60 = vpop.f32.mrf.mxu1 }
  0xa8   : > { %v1930_v62 = vpop.f32.mrf.mxu3 }
  0xa9   : > { %1491 = vmatmul.msk.bf16.gmra.mxu1 %vm256_vm2, %v1595_v59  ;;  %1518 = vmatmul.msk.bf16.gmra.mxu2 %vm256_vm2, %v924_v61  ;;  %v749_v3 = vpop.f32.mrf.mxu0  ;;  %v1064_v59 = vsel %vm1011_vm6, %v1054_v27, %v1063_v43  ;;  %v1010_v61 = vpack.c.b16 %v1009_v23, %v1009_v23  ;;  %v1600_v27 = vld [vmem:[%s1721_s29 + $0x24] sm:$0xff]  }
  0xac   : > { %v1939_v2 = vpop.f32.mrf.mxu2  ;;  %1533 = vmatmul.msk.bf16.gmra.mxu0 %vm256_vm2, %v1158_v4  ;;  %v1069_v4 = vshll.u32 %v1010_v61, 16 }
  0xad   : > { %1526 = vmatmul.msk.bf16.gmra.mxu3 %vm256_vm2, %v1046_v0  ;;  %v1162_v0 = vsel %vm589_vm3, %v1159_v31, %v1161_v56 }
  0xae   : > { %v1943_v5 = vpop.f32.mrf.mxu1 }
  0xb0   : > { %v633_v8 = vpop.f32.mrf.mxu3 }
  0xb1   : > { %v751_v24 = vpop.f32.mrf.mxu0 }
  0xb4   : > { %v1949_v13 = vpop.f32.mrf.mxu2 }
  0xb6   : > { %v457_v16 = vpop.f32.mrf.mxu1 }
  0xb7   : > { %v458_v28 = vadd.f32 %v457_v16, %v403_v51  ;;  %v928_v51 = vsel %vm919_vm7, %v925_v9, %v927_v19 }
  0xb8   : > { %v635_v29 = vpop.f32.mrf.mxu3 }
  0xb9   : > { %1492 = vmatmul.msk.bf16.gmra.mxu1 %vm256_vm2, %v1597_v25  ;;  %1519 = vmatmul.msk.bf16.gmra.mxu2 %vm256_vm2, %v926_v26  ;;  %v754_v15 = vpop.f32.mrf.mxu0 }
  0xbc   : > { %v537_v35 = vpop.f32.mrf.mxu2  ;;  %1534 = vmatmul.msk.bf16.gmra.mxu0 %vm256_vm2, %v1160_v36 }
  0xbd   : > { %v567_v37 = vadd.f32 %v537_v35, %v458_v28  ;;  %1527 = vmatmul.msk.bf16.gmra.mxu3 %vm256_vm2, %v1055_v32  ;;  %v883_v35 = vld [vmem:[%s1721_s29 + $0x34] sm:$0x3] }
  0xbe   : > { %v459_v33 = vpop.f32.mrf.mxu1 }
  0xbf   : > { %v663_v39 = vadd.f32 %v633_v8, %v567_v37  ;;  %v460_v40 = vadd.f32 %v459_v33, %v405_v58  ;;  %v1163_v37 = vrot.slane %v1010_v61, 3  ;;  %v911_v33 = vunpack.c.l.b16 %v883_v35 }
  0xc0   : > { %v638_v41 = vpop.f32.mrf.mxu3 }
  0xc1   : > { %v1965_v17 = vadd.f32 %v749_v3, %v663_v39  ;;  %v756_v48 = vpop.f32.mrf.mxu0  ;;  %v1066_v3 = vshrl.u32 %v1010_v61, 16  ;;  %v1164_v39 = vsel %vm589_vm3, %v1161_v56, %v1163_v37 }
  0xc3   : > { %v1068_v14 = vrot.slane %v1066_v3, 2 }
  0xc4   : > { %v539_v47 = vpop.f32.mrf.mxu2 }
  0xc5   : > { %v568_v49 = vadd.f32 %v539_v47, %v460_v40 }
  0xc6   : > { %v462_v20 = vpop.f32.mrf.mxu1 }
  0xc7   : > { %v664_v52 = vadd.f32 %v635_v29, %v568_v49  ;;  %v463_v54 = vadd.f32 %v462_v20, %v1902_v46  ;;  %v930_v29 = vsel %vm919_vm7, %v927_v19, %v929_v21 }
  0xc8   : > { %v640_v55 = vpop.f32.mrf.mxu3 }
  0xc9   : > { %1493 = vmatmul.msk.bf16.gmra.mxu1 %vm256_vm2, %v1599_v10  ;;  %1520 = vmatmul.msk.bf16.gmra.mxu2 %vm256_vm2, %v928_v51  ;;  %v1975_v58 = vadd.f32 %v751_v24, %v664_v52  ;;  %v759_v63 = vpop.f32.mrf.mxu0  ;;  %v1071_v24 = vrot.slane %v1069_v4, 3  ;;  %v798_v51 = vpack.c.b16 %v1856_v53, %v1567_v45 }
  0xcb   : > { %v1072_v31 = vor.u32 %v1071_v24, %v1068_v14 }
  0xcc   : > { %v542_v12 = vpop.f32.mrf.mxu2  ;;  %1535 = vmatmul.msk.bf16.gmra.mxu0 %vm256_vm2, %v1162_v0 }
  0xcd   : > { %v569_v1 = vadd.f32 %v542_v12, %v463_v54  ;;  %1528 = vmatmul.msk.bf16.gmra.mxu3 %vm256_vm2, %v1064_v59 }
  0xce   : > { %v464_v46 = vpop.f32.mrf.mxu1 }
  0xcf   : > { %v665_v6 = vadd.f32 %v638_v41, %v569_v1  ;;  %v465_v7 = vadd.f32 %v464_v46, %v1916_v22  ;;  %v918_v41 = vpack.c.b16 %v911_v33, %v911_v33 }
  0xd0   : > { %v643_v8 = vpop.f32.mrf.mxu3 }
  0xd1   : > { %v1982_v9 = vadd.f32 %v754_v15, %v665_v6  ;;  %v761_v16 = vpop.f32.mrf.mxu0  ;;  %v1073_v15 = vsel %vm1011_vm6, %v1063_v43, %v1072_v31 }
  0xd4   : > { %v544_v25 = vpop.f32.mrf.mxu2 }
  0xd5   : > { %v570_v26 = vadd.f32 %v544_v25, %v465_v7 }
  0xd6   : > { %v467_v28 = vpop.f32.mrf.mxu1 }
  0xd7   : > { %v666_v32 = vadd.f32 %v640_v55, %v570_v26  ;;  %v468_v22 = vadd.f32 %v467_v28, %v1927_v60 }
  0xd8   : > { %v645_v36 = vpop.f32.mrf.mxu3 }
  0xd9   : > { %1494 = vmatmul.msk.bf16.gmra.mxu1 %vm256_vm2, %v1600_v27  ;;  %1521 = vmatmul.msk.bf16.gmra.mxu2 %vm256_vm2, %v930_v29  ;;  %v1991_v34 = vadd.f32 %v756_v48, %v666_v32  ;;  %v764_v38 = vpop.f32.mrf.mxu0  ;;  %v931_v48 = vrot.slane %v918_v41, 2 }
  0xdb   : > { %v932_v23 = vsel %vm919_vm7, %v929_v21, %v931_v48 }
  0xdc   : > { %v547_v30 = vpop.f32.mrf.mxu2  ;;  %1536 = vmatmul.msk.bf16.gmra.mxu0 %vm256_vm2, %v1164_v39 }
  0xdd   : > { %v571_v40 = vadd.f32 %v547_v30, %v468_v22  ;;  %1529 = vmatmul.msk.bf16.gmra.mxu3 %vm256_vm2, %v1073_v15 }
  0xde   : > { %v469_v60 = vpop.f32.mrf.mxu1 }
  0xdf   : > { %v667_v19 = vadd.f32 %v643_v8, %v571_v40  ;;  %v470_v42 = vadd.f32 %v469_v60, %v1943_v5  ;;  %v1656_v8 = vmov 0.0  }
  0xe0   : > { %v648_v44 = vpop.f32.mrf.mxu3  ;;  %257 = vst.msk [vmem:[#allocation2] sm:$0xff] %vm256_vm2, %v1656_v8 }
  0xe1   : > { %v1999_v47 = vadd.f32 %v759_v63, %v667_v19  ;;  %v766_v10 = vpop.f32.mrf.mxu0  ;;  %258 = vst.msk [vmem:[#allocation2 + $0x8] sm:$0xff] %vm256_vm2, %v1656_v8 }
  0xe2   : > { %259 = vst.msk [vmem:[#allocation2 + $0x10] sm:$0xff] %vm256_vm2, %v1656_v8 }
  0xe3   : > { %260 = vst.msk [vmem:[#allocation2 + $0x18] sm:$0xff] %vm256_vm2, %v1656_v8 }
  0xe4   : > { %v549_v49 = vpop.f32.mrf.mxu2  ;;  %261 = vst.msk [vmem:[#allocation2 + $0x20] sm:$0xff] %vm256_vm2, %v1656_v8 }
  0xe5   : > { %v572_v20 = vadd.f32 %v549_v49, %v470_v42  ;;  %262 = vst.msk [vmem:[#allocation2 + $0x28] sm:$0xff] %vm256_vm2, %v1656_v8 }
  0xe6   : > { %v472_v43 = vpop.f32.mrf.mxu1  ;;  %263 = vst.msk [vmem:[#allocation2 + $0x30] sm:$0xff] %vm256_vm2, %v1656_v8 }
  0xe7   : > { %v668_v52 = vadd.f32 %v645_v36, %v572_v20  ;;  %v473_v18 = vadd.f32 %v472_v43, %v1912_v50  ;;  %264 = vst.msk [vmem:[#allocation2 + $0x38] sm:$0xff] %vm256_vm2, %v1656_v8 }
  0xe8   : > { %v650_v54 = vpop.f32.mrf.mxu3  ;;  %265 = vst.msk [vmem:[#allocation2 + $0x40] sm:$0xff] %vm256_vm2, %v1656_v8 }
  0xe9   : > { %1495 = vmatmul.msk.bf16.gmra.mxu1 %vm256_vm2, %v798_v51  ;;  %1522 = vmatmul.msk.bf16.gmra.mxu2 %vm256_vm2, %v932_v23  ;;  %v2005_v5 = vadd.f32 %v761_v16, %v668_v52  ;;  %v769_v56 = vpop.f32.mrf.mxu0  ;;  %266 = vst.msk [vmem:[#allocation2 + $0x48] sm:$0xff] %vm256_vm2, %v1656_v8  ;;  %v1237_v52 = vld [vmem:[#allocation2] sm:$0xff] }
  0xea   : > { %267 = vst.msk [vmem:[#allocation2 + $0x50] sm:$0xff] %vm256_vm2, %v1656_v8 }
  0xeb   : > { %268 = vst.msk [vmem:[#allocation2 + $0x58] sm:$0xff] %vm256_vm2, %v1656_v8 }
  0xec   : > { %v552_v55 = vpop.f32.mrf.mxu2 }
  0xed   : > { %v573_v59 = vadd.f32 %v552_v55, %v473_v18 }
  0xee   : > { %v474_v61 = vpop.f32.mrf.mxu1 }
  0xef   : > { %v669_v12 = vadd.f32 %v648_v44, %v573_v59  ;;  %v475_v0 = vadd.f32 %v474_v61, %v1924_v57 }
  0xf0   : > { %v653_v63 = vpop.f32.mrf.mxu3 }
  0xf1   : > { %v2008_v53 = vadd.f32 %v764_v38, %v669_v12  ;;  %v771_v46 = vpop.f32.mrf.mxu0 }
  0xf4   : > { %v554_v1 = vpop.f32.mrf.mxu2 }
  0xf5   : > { %v574_v3 = vadd.f32 %v554_v1, %v475_v0  ;;  %v2043_v1 = vld [vmem:[%s2119_s2] ss:$0 sm:$0xff] }
  0xf6   : > { %v477_v4 = vpop.f32.mrf.mxu1 }
  0xf7   : > { %v670_v6 = vadd.f32 %v650_v54, %v574_v3  ;;  %v478_v21 = vadd.f32 %v477_v4, %v1939_v2 }
  0xf8   : > { %v655_v7 = vpop.f32.mrf.mxu3 }
  0xf9   : > { %v2013_v50 = vadd.f32 %v766_v10, %v670_v6  ;;  %v774_v14 = vpop.f32.mrf.mxu0 }
  0xfc   : > { %v557_v57 = vpop.f32.mrf.mxu2 }
  0xfd   : > { %v575_v24 = vadd.f32 %v557_v57, %v478_v21 }
  0xfe   : > { %v479_v25 = vpop.f32.mrf.mxu1 }
  0xff   : > { %v671_v16 = vadd.f32 %v653_v63, %v575_v24  ;;  %v480_v27 = vadd.f32 %v479_v25, %v1949_v13  ;;  %v1238_v63 = vld [vmem:[#allocation2 + $0x8] sm:$0xff]  ;;  %v1239_v24 = vld [vmem:[#allocation2 + $0x10] sm:$0xff] }
 0x100   : > { %v658_v26 = vpop.f32.mrf.mxu3 }
 0x101   : > { %v2024_v2 = vadd.f32 %v769_v56, %v671_v16  ;;  %v776_v29 = vpop.f32.mrf.mxu0 }
 0x104   : > { %v559_v28 = vpop.f32.mrf.mxu2 }
 0x105   : > { %v576_v31 = vadd.f32 %v559_v28, %v480_v27 }
 0x106   : > { %v482_v32 = vpop.f32.mrf.mxu1 }
 0x107   : > { %v672_v22 = vadd.f32 %v655_v7, %v576_v31  ;;  %v483_v37 = vadd.f32 %v482_v32, %v1921_v11 }
 0x108   : > { %v660_v35 = vpop.f32.mrf.mxu3 }
 0x109   : > { %v2029_v36 = vadd.f32 %v771_v46, %v672_v22  ;;  %v1195_v33 = vpop.f32.mrf.mxu0 }
 0x10c   : > { %v562_v15 = vpop.f32.mrf.mxu2 }
 0x10d   : > { %v577_v30 = vadd.f32 %v562_v15, %v483_v37  ;;  %v1240_v15 = vld [vmem:[#allocation2 + $0x18] sm:$0xff] }
 0x10e   : > { %v484_v38 = vpop.f32.mrf.mxu1 }
 0x10f   : > { %v673_v39 = vadd.f32 %v658_v26, %v577_v30  ;;  %v485_v13 = vadd.f32 %v484_v38, %v1930_v62 }
 0x110   : > { %v1104_v40 = vpop.f32.mrf.mxu3 }
 0x111   : > { %v2032_v60 = vadd.f32 %v774_v14, %v673_v39  ;;  %v1197_v19 = vpop.f32.mrf.mxu0 }
 0x114   : > { %v564_v41 = vpop.f32.mrf.mxu2 }
 0x115   : > { %v578_v42 = vadd.f32 %v564_v41, %v485_v13 }
 0x116   : > { %v829_v44 = vpop.f32.mrf.mxu1 }
 0x117   : > { %v674_v45 = vadd.f32 %v660_v35, %v578_v42  ;;  %v859_v11 = vadd.f32 %v829_v44, %v1965_v17 }
 0x118   : > { %v1106_v48 = vpop.f32.mrf.mxu3 }
 0x119   : > { %v2035_v49 = vadd.f32 %v776_v29, %v674_v45  ;;  %v1200_v43 = vpop.f32.mrf.mxu0 }
 0x11c   : > { %v963_v10 = vpop.f32.mrf.mxu2 }
 0x11d   : > { %v993_v20 = vadd.f32 %v963_v10, %v859_v11 }
 0x11e   : > { %v831_v51 = vpop.f32.mrf.mxu1 }
 0x11f   : > { %v1134_v23 = vadd.f32 %v1104_v40, %v993_v20  ;;  %v860_v55 = vadd.f32 %v831_v51, %v1975_v58 }
 0x120   : > { %v1109_v54 = vpop.f32.mrf.mxu3 }
 0x121   : > { %v1225_v18 = vadd.f32 %v1195_v33, %v1134_v23  ;;  %v1202_v0 = vpop.f32.mrf.mxu0 }
 0x123   : > { %v1249_v62 = vadd.f32 %v1237_v52, %v1225_v18 }
 0x124   : > { %v965_v56 = vpop.f32.mrf.mxu2 }
 0x125   : > { %1261 = vst.msk [vmem:[#allocation2] sm:$0xff] %vm256_vm2, %v1249_v62  ;;  %v994_v59 = vadd.f32 %v965_v56, %v860_v55  ;;  %v1242_v56 = vld [vmem:[#allocation2 + $0x28] sm:$0xff] }
 0x126   : > { %v834_v61 = vpop.f32.mrf.mxu1 }
 0x127   : > { %v1135_v12 = vadd.f32 %v1106_v48, %v994_v59  ;;  %v861_v4 = vadd.f32 %v834_v61, %v1982_v9  ;;  %v1241_v48 = vld [vmem:[#allocation2 + $0x20] sm:$0xff] }
 0x128   : > { %v1111_v17 = vpop.f32.mrf.mxu3 }
 0x129   : > { %v1226_v46 = vadd.f32 %v1197_v19, %v1135_v12  ;;  %v1205_v16 = vpop.f32.mrf.mxu0 }
 0x12b   : > { %v1250_v3 = vadd.f32 %v1238_v63, %v1226_v46 }
 0x12c   : > { %v1276_v58 = vld [vmem:[#allocation2] sm:$0xff]  ;;  %v968_v6 = vpop.f32.mrf.mxu2 }
 0x12d   : > { %v1292_v7 = vadd.f32 %v2043_v1, %v1276_v58  ;;  %1262 = vst.msk [vmem:[#allocation2 + $0x8] sm:$0xff] %vm256_vm2, %v1250_v3  ;;  %v995_v8 = vadd.f32 %v968_v6, %v861_v4  ;;  %v1243_v6 = vld [vmem:[#allocation2 + $0x30] sm:$0xff] }
 0x12e   : > { %v836_v21 = vpop.f32.mrf.mxu1 }
 0x12f   : > { %v1304_v57 = vpack.c.bf16 %v1292_v7, %v1292_v7  ;;  %v1136_v14 = vadd.f32 %v1109_v54, %v995_v8  ;;  %v862_v27 = vadd.f32 %v836_v21, %v1991_v34 }
 0x130   : > { %v1114_v9 = vpop.f32.mrf.mxu3 }
 0x131   : > { %1317 = vst.msk [vmem:[%s2052_s20] sm:$0xf] %vm1316_vm8, %v1304_v57  ;;  %v1227_v25 = vadd.f32 %v1200_v43, %v1136_v14  ;;  %v1207_v13 = vpop.f32.mrf.mxu0 }
 0x133   : > { %v1251_v26 = vadd.f32 %v1239_v24, %v1227_v25 }
 0x134   : > { %v1277_v28 = vld [vmem:[#allocation2 + $0x8] sm:$0xff]  ;;  %v970_v29 = vpop.f32.mrf.mxu2 }
 0x135   : > { %v1293_v31 = vadd.f32 %v2043_v1, %v1277_v28  ;;  %1263 = vst.msk [vmem:[#allocation2 + $0x10] sm:$0xff] %vm256_vm2, %v1251_v26  ;;  %v996_v32 = vadd.f32 %v970_v29, %v862_v27  ;;  %v1244_v27 = vld [vmem:[#allocation2 + $0x38] sm:$0xff] }
 0x136   : > { %v839_v22 = vpop.f32.mrf.mxu1 }
 0x137   : > { %v1305_v35 = vpack.c.bf16 %v1293_v31, %v1293_v31  ;;  %v1137_v37 = vadd.f32 %v1111_v17, %v996_v32  ;;  %v863_v39 = vadd.f32 %v839_v22, %v1999_v47 }
 0x138   : > { %v1116_v30 = vpop.f32.mrf.mxu3 }
 0x139   : > { %1318 = vst.msk [vmem:[%s2052_s20 + $0x4] sm:$0xf] %vm1316_vm8, %v1305_v35  ;;  %v1228_v33 = vadd.f32 %v1202_v0, %v1137_v37  ;;  %v1210_v18 = vpop.f32.mrf.mxu0 }
 0x13b   : > { %v1252_v38 = vadd.f32 %v1240_v15, %v1228_v33 }
 0x13c   : > { %v1278_v34 = vld [vmem:[#allocation2 + $0x10] sm:$0xff]  ;;  %v973_v40 = vpop.f32.mrf.mxu2 }
 0x13d   : > { %v1294_v41 = vadd.f32 %v2043_v1, %v1278_v34  ;;  %1264 = vst.msk [vmem:[#allocation2 + $0x18] sm:$0xff] %vm256_vm2, %v1252_v38  ;;  %v997_v19 = vadd.f32 %v973_v40, %v863_v39  ;;  %v1245_v39 = vld [vmem:[#allocation2 + $0x40] sm:$0xff] }
 0x13e   : > { %v841_v42 = vpop.f32.mrf.mxu1 }
 0x13f   : > { %v1306_v44 = vpack.c.bf16 %v1294_v41, %v1294_v41  ;;  %v1138_v45 = vadd.f32 %v1114_v9, %v997_v19  ;;  %v864_v20 = vadd.f32 %v841_v42, %v2005_v5 }
 0x140   : > { %v1119_v43 = vpop.f32.mrf.mxu3 }
 0x141   : > { %1319 = vst.msk [vmem:[%s2052_s20 + $0x8] sm:$0xf] %vm1316_vm8, %v1306_v44  ;;  %v1229_v11 = vadd.f32 %v1205_v16, %v1138_v45  ;;  %v1212_v7 = vpop.f32.mrf.mxu0 }
 0x143   : > { %v1253_v10 = vadd.f32 %v1241_v48, %v1229_v11 }
 0x144   : > { %v1279_v47 = vld [vmem:[#allocation2 + $0x18] sm:$0xff]  ;;  %v975_v51 = vpop.f32.mrf.mxu2 }
 0x145   : > { %v1295_v23 = vadd.f32 %v2043_v1, %v1279_v47  ;;  %1265 = vst.msk [vmem:[#allocation2 + $0x20] sm:$0xff] %vm256_vm2, %v1253_v10  ;;  %v998_v52 = vadd.f32 %v975_v51, %v864_v20  ;;  %v1246_v20 = vld [vmem:[#allocation2 + $0x48] sm:$0xff] }
 0x146   : > { %v844_v54 = vpop.f32.mrf.mxu1 }
 0x147   : > { %v1307_v62 = vpack.c.bf16 %v1295_v23, %v1295_v23  ;;  %v1139_v55 = vadd.f32 %v1116_v30, %v998_v52  ;;  %v865_v5 = vadd.f32 %v844_v54, %v2008_v53 }
 0x148   : > { %v1121_v3 = vpop.f32.mrf.mxu3 }
 0x149   : > { %1320 = vst.msk [vmem:[%s2052_s20 + $0xc] sm:$0xf] %vm1316_vm8, %v1307_v62  ;;  %v1230_v59 = vadd.f32 %v1207_v13, %v1139_v55  ;;  %v1215_v31 = vpop.f32.mrf.mxu0 }
 0x14b   : > { %v1254_v61 = vadd.f32 %v1242_v56, %v1230_v59  ;;  %v1247_v59 = vld [vmem:[#allocation2 + $0x50] sm:$0xff] }
 0x14c   : > { %v1280_v12 = vld [vmem:[#allocation2 + $0x20] sm:$0xff]  ;;  %v978_v63 = vpop.f32.mrf.mxu2 }
 0x14d   : > { %v1296_v17 = vadd.f32 %v2043_v1, %v1280_v12  ;;  %1266 = vst.msk [vmem:[#allocation2 + $0x28] sm:$0xff] %vm256_vm2, %v1254_v61  ;;  %v999_v0 = vadd.f32 %v978_v63, %v865_v5 }
 0x14e   : > { %v846_v46 = vpop.f32.mrf.mxu1 }
 0x14f   : > { %v1308_v4 = vpack.c.bf16 %v1296_v17, %v1296_v17  ;;  %v1140_v58 = vadd.f32 %v1119_v43, %v999_v0  ;;  %v866_v53 = vadd.f32 %v846_v46, %v2013_v50 }
 0x150   : > { %v1124_v28 = vpop.f32.mrf.mxu3 }
 0x151   : > { %1321 = vst.msk [vmem:[%s2052_s20 + $0x10] sm:$0xf] %vm1316_vm8, %v1308_v4  ;;  %v1231_v8 = vadd.f32 %v1210_v18, %v1140_v58  ;;  %v1217_v19 = vpop.f32.mrf.mxu0 }
 0x153   : > { %v1255_v21 = vadd.f32 %v1243_v6, %v1231_v8 }
 0x154   : > { %v1281_v57 = vld [vmem:[#allocation2 + $0x28] sm:$0xff]  ;;  %v980_v14 = vpop.f32.mrf.mxu2 }
 0x155   : > { %v1297_v24 = vadd.f32 %v2043_v1, %v1281_v57  ;;  %1267 = vst.msk [vmem:[#allocation2 + $0x30] sm:$0xff] %vm256_vm2, %v1255_v21  ;;  %v1000_v9 = vadd.f32 %v980_v14, %v866_v53 }
 0x156   : > { %v849_v25 = vpop.f32.mrf.mxu1 }
 0x157   : > { %v1309_v16 = vpack.c.bf16 %v1297_v24, %v1297_v24  ;;  %v1141_v26 = vadd.f32 %v1121_v3, %v1000_v9  ;;  %v867_v50 = vadd.f32 %v849_v25, %v2024_v2 }
 0x158   : > { %v1126_v40 = vpop.f32.mrf.mxu3 }
 0x159   : > { %1322 = vst.msk [vmem:[%s2052_s20 + $0x14] sm:$0xf] %vm1316_vm8, %v1309_v16  ;;  %v1232_v29 = vadd.f32 %v1212_v7, %v1141_v26  ;;  %v1220_v62 = vpop.f32.mrf.mxu0  ;;  %v1248_v7 = vld [vmem:[#allocation2 + $0x58] sm:$0xff] }
 0x15b   : > { %v1256_v32 = vadd.f32 %v1244_v27, %v1232_v29 }
 0x15c   : > { %v1282_v22 = vld [vmem:[#allocation2 + $0x30] sm:$0xff]  ;;  %v983_v35 = vpop.f32.mrf.mxu2 }
 0x15d   : > { %v1298_v37 = vadd.f32 %v2043_v1, %v1282_v22  ;;  %1268 = vst.msk [vmem:[#allocation2 + $0x38] sm:$0xff] %vm256_vm2, %v1256_v32  ;;  %v1001_v15 = vadd.f32 %v983_v35, %v867_v50 }
 0x15e   : > { %v851_v33 = vpop.f32.mrf.mxu1 }
 0x15f   : > { %v1310_v30 = vpack.c.bf16 %v1298_v37, %v1298_v37  ;;  %v1142_v38 = vadd.f32 %v1124_v28, %v1001_v15  ;;  %v868_v41 = vadd.f32 %v851_v33, %v2029_v36 }
 0x160   : > { %v1129_v23 = vpop.f32.mrf.mxu3 }
 0x161   : > { %1323 = vst.msk [vmem:[%s2052_s20 + $0x18] sm:$0xf] %vm1316_vm8, %v1310_v30  ;;  %v1233_v34 = vadd.f32 %v1215_v31, %v1142_v38  ;;  %v1222_v6 = vpop.f32.mrf.mxu0 }
 0x163   : > { %v1257_v13 = vadd.f32 %v1245_v39, %v1233_v34 }
 0x164   : > { %v1283_v2 = vld [vmem:[#allocation2 + $0x38] sm:$0xff]  ;;  %v985_v42 = vpop.f32.mrf.mxu2 }
 0x165   : > { %v1299_v44 = vadd.f32 %v2043_v1, %v1283_v2  ;;  %1269 = vst.msk [vmem:[#allocation2 + $0x40] sm:$0xff] %vm256_vm2, %v1257_v13  ;;  %v1002_v45 = vadd.f32 %v985_v42, %v868_v41 }
 0x166   : > { %v854_v48 = vpop.f32.mrf.mxu1 }
 0x167   : > { %v1311_v11 = vpack.c.bf16 %v1299_v44, %v1299_v44  ;;  %v1143_v10 = vadd.f32 %v1126_v40, %v1002_v45  ;;  %v869_v43 = vadd.f32 %v854_v48, %v2032_v60 }
 0x168   : > { %v1131_v3 = vpop.f32.mrf.mxu3 }
 0x169   : > { %1324 = vst.msk [vmem:[%s2052_s20 + $0x1c] sm:$0xf] %vm1316_vm8, %v1311_v11  ;;  %v1234_v47 = vadd.f32 %v1217_v19, %v1143_v10 }
 0x16b   : > { %v1258_v51 = vadd.f32 %v1246_v20, %v1234_v47 }
 0x16c   : > { %v1284_v36 = vld [vmem:[#allocation2 + $0x40] sm:$0xff]  ;;  %v988_v52 = vpop.f32.mrf.mxu2 }
 0x16d   : > { %v1300_v54 = vadd.f32 %v2043_v1, %v1284_v36  ;;  %1270 = vst.msk [vmem:[#allocation2 + $0x48] sm:$0xff] %vm256_vm2, %v1258_v51  ;;  %v1003_v18 = vadd.f32 %v988_v52, %v869_v43 }
 0x16e   : > { %v856_v61 = vpop.f32.mrf.mxu1 }
 0x16f   : > { %v1312_v55 = vpack.c.bf16 %v1300_v54, %v1300_v54  ;;  %v1144_v56 = vadd.f32 %v1129_v23, %v1003_v18  ;;  %v870_v60 = vadd.f32 %v856_v61, %v2035_v49 }
 0x171   : > { %1325 = vst.msk [vmem:[%s2052_s20 + $0x20] sm:$0xf] %vm1316_vm8, %v1312_v55  ;;  %v1235_v5 = vadd.f32 %v1220_v62, %v1144_v56 }
 0x173   : > { %v1259_v12 = vadd.f32 %v1247_v59, %v1235_v5 }
 0x174   : > { %v1285_v63 = vld [vmem:[#allocation2 + $0x48] sm:$0xff]  ;;  %v990_v17 = vpop.f32.mrf.mxu2 }
 0x175   : > { %v1301_v0 = vadd.f32 %v2043_v1, %v1285_v63  ;;  %1271 = vst.msk [vmem:[#allocation2 + $0x50] sm:$0xff] %vm256_vm2, %v1259_v12  ;;  %v1004_v46 = vadd.f32 %v990_v17, %v870_v60 }
 0x177   : > { %v1313_v4 = vpack.c.bf16 %v1301_v0, %v1301_v0  ;;  %v1145_v58 = vadd.f32 %v1131_v3, %v1004_v46 }
 0x179   : > { %1326 = vst.msk [vmem:[%s2052_s20 + $0x24] sm:$0xf] %vm1316_vm8, %v1313_v4  ;;  %v1236_v8 = vadd.f32 %v1222_v6, %v1145_v58 }
 0x17b   : > { %v1260_v21 = vadd.f32 %v1248_v7, %v1236_v8 }
 0x17c   : > { %v1286_v53 = vld [vmem:[#allocation2 + $0x50] sm:$0xff] }
 0x17d   : > { %v1302_v49 = vadd.f32 %v2043_v1, %v1286_v53  ;;  %1272 = vst.msk [vmem:[#allocation2 + $0x58] sm:$0xff] %vm256_vm2, %v1260_v21 }
 0x17f   : > { %v1314_v57 = vpack.c.bf16 %v1302_v49, %v1302_v49 }
 0x181   : > { %1327 = vst.msk [vmem:[%s2052_s20 + $0x28] sm:$0xf] %vm1316_vm8, %v1314_v57 }
 0x184   : > { %v1287_v14 = vld [vmem:[#allocation2 + $0x58] sm:$0xff] }
 0x185   : > { %v1303_v24 = vadd.f32 %v2043_v1, %v1287_v14 }
 0x187   : > { %v1315_v9 = vpack.c.bf16 %v1303_v24, %v1303_v24 }
 0x189   : > { %1328 = vst.msk [vmem:[%s2052_s20 + $0x2c] sm:$0xf] %vm1316_vm8, %v1315_v9 }
 0x18a PF: > { %s13_s14 = sadd.s32 1, %s1654_s14   ;;  %s2121_s12 = smov %s1650_s13 }
 0x18b   : > { %p10_p5 = scmp.ge.s32.totalorder %s13_s14, 4   ;;  %s2122_s13 = smov %s2124_s15 }
 0x18d   :  { %12 = sbr.rel (!%p10_p5) target bundleno = 2 (0x2), region = 84 }

// kernel: _lambda_.63
= control target key start
LH: loop header
LB: loop body
LE: loop exit
PB: predicated region body
PF: predicated region fallthrough
CT: control target
= control target key end

     0   :  { %s1665_s12 = smov 0   ;;  %s1667_s13 = smov 0   ;;  %s2105_s0 = inlined_call_operand.vmem [shape: bf16[2,116,8], index: 0, kind: input, shape index: {}]   ;;  %s2106_s1 = inlined_call_operand.vmem [shape: bf16[9,8,4], index: 1, kind: input, shape index: {}]   ;;  %s2107_s2 = inlined_call_operand.vmem [shape: f32[1,4], index: 2, kind: input, shape index: {}]   ;;  %s2108_s3 = inlined_call_operand.vmem [shape: f32[2,96,4], index: 3, kind: output, shape index: {}]  }
   0x1   :  { %s1669_s14 = smov 0  }
   0x2 LB: > { %s32_s15 = sadd.s32 1, %s1638_s13  ;;  %p1440_p0 = scmp.ge.s32.totalorder %s1642_s14, 1  ;;  %s1642_s14 = sphi %s1669_s14, %s13_s14   ;;  %s1638_s13 = sphi %s1667_s13, %s2110_s13   ;;  %s1634_s12 = sphi %s1665_s12, %s2109_s12  }
   0x3   : > { %p34_p1 = scmp.ge.s32.totalorder %s32_s15, 2  ;;  %p185_p2 = scmp.lt.s32.totalorder %s1642_s14, 3 }
   0x5   : > { %s2112_s15 = smov (%p34_p1, %s32_s15), 0  ;;  %p186_p3 = pnand %p1440_p0, %p185_p2 }
   0x6   : > { %p225_p4 = scmp.lt.s32.totalorder (!%p186_p3), %s1634_s12, 1 }
   0x7   : > { %189 = sbr.rel (%p186_p3) target bundleno = 392 (0x188), region = 32 }
   0xc   : > { %v1443_v0 = vld [vmem:[%s2106_s1 + $0x4] sm:$0xf]  ;;  %vm390_vm0 = vcmask 1043456   ;;  %v1456_v2 = vld [vmem:[%s2106_s1 + $0x8] sm:$0xf]  ;;  %s2114_s12 = smov (!%p225_p4, %s1634_s12), 1 }
   0xd   : > { %v392_v1 = vsel %vm390_vm0, %v1443_v0, 0  ;;  %v281_v3 = vld [vmem:[%s2106_s1] sm:$0xf]  ;;  %v526_v4 = vsel %vm390_vm0, %v1456_v2, 0  ;;  %v1463_v6 = vld [vmem:[%s2106_s1 + $0xc] sm:$0xf] }
   0xe   : > { %1589 = vmatpush.bf16.msra.mxu1 %v392_v1  ;;  %1590 = vmatpush.bf16.msra.mxu2 %v392_v1  ;;  %v446_v5 = vsel %vm390_vm0, %v281_v3, 0  ;;  %v622_v7 = vsel %vm390_vm0, %v1463_v6, 0  ;;  %v1470_v8 = vld [vmem:[%s2106_s1 + $0x10] sm:$0xf]  ;;  %s1592_s26 = smul.u32 60, %s2114_s12  ;;  %vm371_vm2 = vcmask 64512  }
   0xf   : > { %1591 = vmatpush.bf16.msra.mxu3 %v392_v1  ;;  %401 = vmatpush.bf16.msra.mxu0 %v392_v1  ;;  %v738_v9 = vsel %vm390_vm0, %v1470_v8, 0  ;;  %vm318_vm1 = vsmask.f32 7424  ;;  %v1484_v41 = vld [vmem:[%s2106_s1 + $0x18] sm:$0xf]  ;;  %vm589_vm3 = vcmask 1044480  }
  0x10   : > { %s1709_s29 = scalar_lea.vmem %s2105_s0, %s1592_s26  ;;  %v952_v46 = vsel %vm390_vm0, %v1484_v41, 0  ;;  %v1511_v47 = vld [vmem:[%s2106_s1 + $0x1c] sm:$0xf]  ;;  %v1477_v48 = vld [vmem:[%s2106_s1 + $0x14] sm:$0xf]  ;;  %vm493_vm5 = vcmask 1046528  }
  0x11   : > { %v1712_v10 = vld [vmem:[%s1709_s29 + $0x8] sm:$0xff]   ;;  %v1715_v11 = vld [vmem:[%s1709_s29 + $0x10] sm:$0xff]   ;;  %v1718_v12 = vld [vmem:[%s1709_s29 + $0x18] sm:$0xff]   ;;  %v1093_v56 = vsel %vm390_vm0, %v1511_v47, 0  ;;  %v818_v57 = vsel %vm390_vm0, %v1477_v48, 0  ;;  %vm919_vm7 = vcmask 1045504  }
  0x12   : > { %535 = vmatpush.bf16.msrb.mxu2 %v526_v4  ;;  %455 = vmatpush.bf16.msrb.mxu1 %v446_v5  ;;  %v327_v13 = vshll.u32 %v1712_v10, 16  ;;  %v331_v14 = vshrl.u32 %v1712_v10, 16  ;;  %v335_v15 = vshll.u32 %v1715_v11, 16  ;;  %v1724_v16 = vld [vmem:[%s1709_s29 + $0x20] sm:$0xff]   ;;  %v343_v17 = vshll.u32 %v1718_v12, 16  ;;  %v1728_v18 = vld [vmem:[%s1709_s29 + $0x28] sm:$0xff]  }
  0x13   : > { %631 = vmatpush.bf16.msrb.mxu3 %v622_v7  ;;  %747 = vmatpush.bf16.msrb.mxu0 %v738_v9  ;;  %v347_v19 = vshrl.u32 %v1718_v12, 16  ;;  %v351_v20 = vshll.u32 %v1724_v16, 16  ;;  %v282_v21 = vld [vmem:[%s1709_s29 + $0x30] sm:$0x1]  ;;  %v359_v22 = vshll.u32 %v1728_v18, 16  ;;  %v363_v23 = vshrl.u32 %v1728_v18, 16 }
  0x14   : > { %v329_v24 = vrot.slane %v327_v13, 1  ;;  %v337_v25 = vrot.slane %v335_v15, 1  ;;  %v345_v26 = vrot.slane %v343_v17, 1  ;;  %v310_v27 = vunpack.c.l.b16 %v282_v21  ;;  %v1744_v30 = vld [vmem:[%s1709_s29] sm:$0xff]   ;;  %s1593_s11 = smul.u32 96, %s2114_s12 }
  0x15   : > { %v353_v28 = vrot.slane %v351_v20, 1  ;;  %v361_v29 = vrot.slane %v359_v22, 1  ;;  %v320_v35 = vshrl.u32 %v1744_v30, 16  ;;  %v579_v36 = vld [vmem:[%s1709_s29] sm:$0x8]  ;;  %v322_v40 = vshll.u32 %v1744_v30, 16 }
  0x16   : > { %v333_v31 = vor.u32 %v331_v14, %v329_v24  ;;  %v349_v32 = vor.u32 %v347_v19, %v345_v26  ;;  %v1748_v33 = vpack.c.b16 %v310_v27, %v310_v27  ;;  %v1764_v43 = vunpack.c.h.b16 %v1744_v30  ;;  %v1518_v53 = vld [vmem:[%s2106_s1 + $0x20] sm:$0xf]  ;;  %s2038_s20 = scalar_lea.vmem %s2108_s3, %s1593_s11 }
  0x17   : > { %v365_v34 = vor.u32 %v363_v23, %v361_v29  ;;  %v324_v44 = vrot.slane %v322_v40, 1  ;;  %v585_v45 = vunpack.c.l.b16 %v579_v36  ;;  %v339_v51 = vshrl.u32 %v1715_v11, 16  ;;  %v487_v7 = vld [vmem:[%s1709_s29] sm:$0xe] }
  0x18   : > { %v338_v37 = vsel %vm318_vm1, %v333_v31, %v337_v25  ;;  %v354_v38 = vsel %vm318_vm1, %v349_v32, %v353_v28  ;;  %v367_v39 = vshll.u32 %v1748_v33, 16  ;;  %v355_v52 = vshrl.u32 %v1724_v16, 16 }
  0x19   : > { %1445 = vmatmul.msk.bf16.vlgmr.msra.gmra.mxu1 %vm371_vm2, %v338_v37  ;;  %1447 = vmatmul.msk.bf16.vlgmr.msra.gmra.mxu2 %vm371_vm2, %v354_v38  ;;  %v325_v50 = vor.u32 %v324_v44, %v320_v35  ;;  %v587_v55 = vpack.c.b16 %v1764_v43, %v585_v45  ;;  %v1184_v60 = vsel %vm390_vm0, %v1518_v53, 0  ;;  %v341_v61 = vor.u32 %v339_v51, %v337_v25 }
  0x1a   : > { %v369_v42 = vrot.slane %v367_v39, 1  ;;  %961 = vmatpush.bf16.msra.mxu2 %v952_v46  ;;  %827 = vmatpush.bf16.msra.mxu1 %v818_v57  ;;  %v357_v62 = vor.u32 %v355_v52, %v353_v28  ;;  %v690_v1 = vrot.slane %v331_v14, 3  ;;  %v691_v2 = vrot.slane %v327_v13, 4 }
  0x1b   : > { %v330_v54 = vsel %vm318_vm1, %v325_v50, %v329_v24  ;;  %v683_v58 = vshrl.u32 %v587_v55, 16  ;;  %v686_v59 = vshll.u32 %v587_v55, 16  ;;  %v346_v3 = vsel %vm318_vm1, %v341_v61, %v345_v26 }
  0x1c   : > { %v370_v49 = vsel %vm318_vm1, %v365_v34, %v369_v42  ;;  %1444 = vmatmul.msk.bf16.vlgmr.msra.gmra.mxu0 %vm371_vm2, %v330_v54  ;;  %v362_v4 = vsel %vm318_vm1, %v357_v62, %v361_v29  ;;  %v590_v5 = vrot.slane %v587_v55, 3  ;;  %v591_v6 = vrot.slane %v1712_v10, 3  ;;  %v580_v55 = vld [vmem:[%s1709_s29 + $0x30] sm:$0x7]  ;;  %v872_v62 = vld [vmem:[%s1709_s29 + $0x8] sm:$0xf] }
  0x1d   : > { %1449 = vmatmul.msk.bf16.vlgmr.msra.gmra.mxu3 %vm371_vm2, %v370_v49  ;;  %1193 = vmatpush.bf16.msra.mxu0 %v1184_v60  ;;  %v685_v63 = vrot.slane %v683_v58, 3  ;;  %v688_v0 = vrot.slane %v686_v59, 4  ;;  %v692_v9 = vor.u32 %v691_v2, %v690_v1  ;;  %vm681_vm4 = vsmask.f32 4352 }
  0x1e   : > { %1102 = vmatpush.bf16.msra.mxu3 %v1093_v56  ;;  %v592_v21 = vsel %vm589_vm3, %v590_v5, %v591_v6  ;;  %v491_v14 = vunpack.c.l.b16 %v487_v7  ;;  %v495_v26 = vrot.slane %v1712_v10, 1  ;;  %v694_v27 = vrot.slane %v339_v51, 3  ;;  %v1864_v7 = vld [vmem:[%s1709_s29 + $0xc] sm:$0xff] }
  0x1f   : > { %v689_v8 = vor.u32 %v688_v0, %v685_v63  ;;  %v695_v28 = vrot.slane %v335_v15, 4  ;;  %v593_v31 = vrot.slane %v1715_v11, 3  ;;  %v497_v15 = vrot.slane %v1715_v11, 1 }
  0x20   : > { %v492_v24 = vpack.c.b16 %v1764_v43, %v491_v14  ;;  %v698_v36 = vrot.slane %v347_v19, 3  ;;  %v699_v37 = vrot.slane %v343_v17, 4  ;;  %v595_v38 = vrot.slane %v1718_v12, 3 }
  0x21   : > { %v693_v13 = vsel %vm681_vm4, %v689_v8, %v692_v9  ;;  %v696_v32 = vor.u32 %v695_v28, %v694_v27  ;;  %v594_v34 = vsel %vm589_vm3, %v591_v6, %v593_v31  ;;  %v499_v17 = vrot.slane %v1718_v12, 1 }
  0x22   : > { %v494_v25 = vrot.slane %v492_v24, 1  ;;  %v700_v39 = vor.u32 %v699_v37, %v698_v36  ;;  %v596_v40 = vsel %vm589_vm3, %v593_v31, %v595_v38  ;;  %v702_v19 = vrot.slane %v355_v52, 3 }
  0x23   : > { %v697_v35 = vsel %vm681_vm4, %v692_v9, %v696_v32  ;;  %v703_v42 = vrot.slane %v351_v20, 4  ;;  %v500_v44 = vsel %vm493_vm5, %v497_v15, %v499_v17  ;;  %v597_v45 = vrot.slane %v1724_v16, 3 }
  0x24   : > { %v496_v29 = vsel %vm493_vm5, %v494_v25, %v495_v26  ;;  %v701_v41 = vsel %vm681_vm4, %v696_v32, %v700_v39  ;;  %v706_v46 = vrot.slane %v363_v23, 3  ;;  %v707_v47 = vrot.slane %v359_v22, 4  ;;  %v675_v23 = vld [vmem:[%s1709_s29 + $0x30] sm:$0xf] }
  0x25   : > { %v704_v48 = vor.u32 %v703_v42, %v702_v19  ;;  %v598_v20 = vsel %vm589_vm3, %v595_v38, %v597_v45  ;;  %v501_v22 = vrot.slane %v1724_v16, 1  ;;  %v1844_v53 = vunpack.c.l.b16 %v675_v23 }
  0x26   : > { %v708_v49 = vor.u32 %v707_v47, %v706_v46  ;;  %v586_v57 = vunpack.c.l.b16 %v580_v55  ;;  %v503_v60 = vrot.slane %v1728_v18, 1  ;;  %v1021_v24 = vshrl.u32 %v1864_v7, 16 }
  0x27   : > { %v705_v51 = vsel %vm681_vm4, %v700_v39, %v704_v48  ;;  %v502_v52 = vsel %vm493_vm5, %v499_v17, %v501_v22  ;;  %v680_v56 = vpack.c.b16 %v1844_v53, %v1844_v53  ;;  %v1024_v25 = vshll.u32 %v1864_v7, 16 }
  0x28   : > { %v709_v50 = vsel %vm681_vm4, %v704_v48, %v708_v49  ;;  %v588_v61 = vpack.c.b16 %v586_v57, %v586_v57  ;;  %v504_v1 = vsel %vm493_vm5, %v501_v22, %v503_v60  ;;  %vm1011_vm6 = vsmask.f32 5376 }
  0x29   : > { %1446 = vmatmul.msk.bf16.gmra.mxu1 %vm371_vm2, %v346_v3  ;;  %1448 = vmatmul.msk.bf16.gmra.mxu2 %vm371_vm2, %v362_v4  ;;  %v711_v58 = vshrl.u32 %v680_v56, 16  ;;  %v714_v59 = vshll.u32 %v680_v56, 16  ;;  %v900_v4 = vunpack.c.l.b16 %v872_v62  ;;  %v1026_v31 = vrot.slane %v1024_v25, 3  ;;  %v1585_v25 = vld [vmem:[%s1709_s29 + $0x14] sm:$0xff]  }
  0x2a   : > { %v601_v2 = vrot.slane %v588_v61, 3  ;;  %v1153_v37 = vrot.slane %v1864_v7, 3  ;;  %v921_v19 = vrot.slane %v1864_v7, 2  ;;  %vm256_vm8 = vcmask 31744  }
  0x2b   : > { %v713_v63 = vrot.slane %v711_v58, 3  ;;  %v716_v0 = vrot.slane %v714_v59, 4  ;;  %v1583_v59 = vld [vmem:[%s1709_s29 + $0xc] sm:$0xff]  }
  0x2c   : > { %1471 = vmatmul.msk.bf16.vlgmr.msrb.gmra.mxu0 %vm371_vm2, %v693_v13 }
  0x2d   : > { %1464 = vmatmul.msk.bf16.vlgmr.msrb.gmra.mxu3 %vm371_vm2, %v592_v21  ;;  %v717_v5 = vor.u32 %v716_v0, %v713_v63  ;;  %v1146_v21 = vld [vmem:[%s1709_s29 + $0x4] sm:$0x8] }
  0x2f   : > { %v718_v9 = vsel %vm681_vm4, %v708_v49, %v717_v5 }
  0x39   : > { %1450 = vmatmul.msk.bf16.vlgmr.msrb.gmra.mxu1 %vm371_vm2, %v1744_v30  ;;  %1457 = vmatmul.msk.bf16.vlgmr.msrb.gmra.mxu2 %vm371_vm2, %v496_v29  ;;  %v498_v30 = vsel %vm493_vm5, %v495_v26, %v497_v15  ;;  %v505_v26 = vrot.slane %v1748_v33, 1  ;;  %v1023_v29 = vrot.slane %v1021_v24, 2 }
  0x3b   : > { %v1027_v15 = vor.u32 %v1026_v31, %v1023_v29 }
  0x3c   : > { %1472 = vmatmul.msk.bf16.gmra.mxu0 %vm371_vm2, %v697_v35 }
  0x3d   : > { %1465 = vmatmul.msk.bf16.gmra.mxu3 %vm371_vm2, %v594_v34  ;;  %v506_v34 = vsel %vm493_vm5, %v503_v60, %v505_v26 }
  0x49   : > { %1451 = vmatmul.msk.bf16.gmra.mxu1 %vm371_vm2, %v1712_v10  ;;  %1458 = vmatmul.msk.bf16.gmra.mxu2 %vm371_vm2, %v498_v30  ;;  %v1880_v30 = vld [vmem:[%s1709_s29 + $0x14] sm:$0xff] }
  0x4a   : > { %v1030_v39 = vshrl.u32 %v1880_v30, 16  ;;  %v1155_v49 = vrot.slane %v1880_v30, 3 }
  0x4c   : > { %1473 = vmatmul.msk.bf16.gmra.mxu0 %vm371_vm2, %v701_v41  ;;  %v1538_v41 = vunpack.c.l.b16 %v1712_v10  ;;  %v1032_v42 = vrot.slane %v1030_v39, 2 }
  0x4d   : > { %1466 = vmatmul.msk.bf16.gmra.mxu3 %vm371_vm2, %v596_v40  ;;  %v1033_v40 = vshll.u32 %v1880_v30, 16 }
  0x59   : > { %1452 = vmatmul.msk.bf16.gmra.mxu1 %vm371_vm2, %v1715_v11  ;;  %1459 = vmatmul.msk.bf16.gmra.mxu2 %vm371_vm2, %v500_v44  ;;  %v599_v11 = vrot.slane %v1728_v18, 3  ;;  %v1035_v44 = vrot.slane %v1033_v40, 3 }
  0x5b   : > { %v600_v54 = vsel %vm589_vm3, %v597_v45, %v599_v11  ;;  %v602_v6 = vsel %vm589_vm3, %v599_v11, %v601_v2  ;;  %v793_v45 = vpack.c.b16 %v1538_v41, %v1764_v43  ;;  %v1036_v48 = vor.u32 %v1035_v44, %v1032_v42 }
  0x5c   : > { %1474 = vmatmul.msk.bf16.gmra.mxu0 %vm371_vm2, %v705_v51  ;;  %v1156_v43 = vsel %vm589_vm3, %v1153_v37, %v1155_v49 }
  0x5d   : > { %1467 = vmatmul.msk.bf16.gmra.mxu3 %vm371_vm2, %v598_v20  ;;  %v1037_v10 = vsel %vm1011_vm6, %v1027_v15, %v1036_v48  ;;  %v1898_v20 = vld [vmem:[%s1709_s29 + $0x1c] sm:$0xff] }
  0x5e   : > { %v1039_v23 = vshrl.u32 %v1898_v20, 16  ;;  %v1157_v63 = vrot.slane %v1898_v20, 3 }
  0x60   : > { %v1041_v55 = vrot.slane %v1039_v23, 2 }
  0x69   : > { %1453 = vmatmul.msk.bf16.gmra.mxu1 %vm371_vm2, %v1718_v12  ;;  %1460 = vmatmul.msk.bf16.gmra.mxu2 %vm371_vm2, %v502_v52  ;;  %v871_v12 = vld [vmem:[%s1709_s29 + $0x4] sm:$0xc]  ;;  %v1042_v52 = vshll.u32 %v1898_v20, 16 }
  0x6a   : > { %v899_v3 = vunpack.c.l.b16 %v871_v12 }
  0x6b   : > { %v1044_v56 = vrot.slane %v1042_v52, 3 }
  0x6c   : > { %1475 = vmatmul.msk.bf16.gmra.mxu0 %vm371_vm2, %v709_v50  ;;  %v912_v8 = vpack.c.b16 %v900_v4, %v899_v3 }
  0x6d   : > { %1468 = vmatmul.msk.bf16.gmra.mxu3 %vm371_vm2, %v600_v54  ;;  %v923_v54 = vrot.slane %v1880_v30, 2  ;;  %v1045_v12 = vor.u32 %v1044_v56, %v1041_v55 }
  0x6e   : > { %v1013_v14 = vshrl.u32 %v912_v8, 16  ;;  %v1016_v13 = vshll.u32 %v912_v8, 16  ;;  %v920_v17 = vrot.slane %v912_v8, 2 }
  0x6f   : > { %v924_v61 = vsel %vm919_vm7, %v921_v19, %v923_v54  ;;  %v1046_v0 = vsel %vm1011_vm6, %v1036_v48, %v1045_v12 }
  0x70   : > { %v1015_v27 = vrot.slane %v1013_v14, 2  ;;  %v1018_v28 = vrot.slane %v1016_v13, 3  ;;  %v922_v47 = vsel %vm919_vm7, %v920_v17, %v921_v19 }
  0x72   : > { %v1019_v35 = vor.u32 %v1018_v28, %v1015_v27 }
  0x74   : > { %v1028_v33 = vsel %vm1011_vm6, %v1019_v35, %v1027_v15 }
  0x79   : > { %1454 = vmatmul.msk.bf16.gmra.mxu1 %vm371_vm2, %v1724_v16  ;;  %1461 = vmatmul.msk.bf16.gmra.mxu2 %vm371_vm2, %v504_v1  ;;  %v1150_v16 = vunpack.c.l.b16 %v1146_v21  ;;  %v1925_v1 = vld [vmem:[%s1709_s29 + $0x24] sm:$0xff] }
  0x7a   : > { %v1051_v7 = vshll.u32 %v1925_v1, 16  ;;  %v1159_v31 = vrot.slane %v1925_v1, 3  ;;  %v927_v19 = vrot.slane %v1925_v1, 2 }
  0x7b   : > { %v1151_v32 = vpack.c.b16 %v900_v4, %v1150_v16  ;;  %v1158_v4 = vsel %vm589_vm3, %v1155_v49, %v1157_v63 }
  0x7c   : > { %1476 = vmatmul.msk.bf16.gmra.mxu0 %vm371_vm2, %v718_v9  ;;  %v925_v9 = vrot.slane %v1898_v20, 2  ;;  %v1053_v14 = vrot.slane %v1051_v7, 3 }
  0x7d   : > { %1469 = vmatmul.msk.bf16.gmra.mxu3 %vm371_vm2, %v602_v6  ;;  %v1152_v36 = vrot.slane %v1151_v32, 3  ;;  %v1048_v6 = vshrl.u32 %v1925_v1, 16 }
  0x7e   : > { %v926_v26 = vsel %vm919_vm7, %v923_v54, %v925_v9 }
  0x7f   : > { %v1154_v38 = vsel %vm589_vm3, %v1152_v36, %v1153_v37  ;;  %v1050_v21 = vrot.slane %v1048_v6, 2  ;;  %v1160_v36 = vsel %vm589_vm3, %v1157_v63, %v1159_v31 }
  0x81   : > { %v1054_v27 = vor.u32 %v1053_v14, %v1050_v21 }
  0x83   : > { %v1055_v32 = vsel %vm1011_vm6, %v1045_v12, %v1054_v27 }
  0x89   : > { %1455 = vmatmul.msk.bf16.gmra.mxu1 %vm371_vm2, %v1728_v18  ;;  %1462 = vmatmul.msk.bf16.gmra.mxu2 %vm371_vm2, %v506_v34  ;;  %v1946_v34 = vld [vmem:[%s1709_s29 + $0x2c] sm:$0xff] }
  0x8a   : > { %v1057_v30 = vshrl.u32 %v1946_v34, 16  ;;  %v1161_v56 = vrot.slane %v1946_v34, 3  ;;  %v929_v21 = vrot.slane %v1946_v34, 2 }
  0x8c   : > { %1519 = vmatmul.msk.bf16.vlgmr.msra.gmra.mxu0 %vm371_vm2, %v1154_v38  ;;  %v1060_v38 = vshll.u32 %v1946_v34, 16  ;;  %v1059_v42 = vrot.slane %v1057_v30, 2 }
  0x8d   : > { %1512 = vmatmul.msk.bf16.vlgmr.msra.gmra.mxu3 %vm371_vm2, %v1028_v33 }
  0x8e   : > { %v1062_v44 = vrot.slane %v1060_v38, 3 }
  0x96   : > { %v1890_v46 = vpop.f32.mrf.mxu1 }
  0x99   : > { %1478 = vmatmul.msk.bf16.vlgmr.msra.gmra.mxu1 %vm371_vm2, %v793_v45  ;;  %1505 = vmatmul.msk.bf16.vlgmr.msra.gmra.mxu2 %vm371_vm2, %v922_v47  ;;  %v403_v51 = vpop.f32.mrf.mxu0  ;;  %v1005_v45 = vld [vmem:[%s1709_s29 + $0x34] sm:$0x7] }
  0x9a   : > { %v1009_v23 = vunpack.c.l.b16 %v1005_v45  ;;  %v1555_v45 = vunpack.c.h.b16 %v1728_v18 }
  0x9c   : > { %v1900_v50 = vpop.f32.mrf.mxu2  ;;  %1520 = vmatmul.msk.bf16.gmra.mxu0 %vm371_vm2, %v1156_v43  ;;  %v1063_v43 = vor.u32 %v1062_v44, %v1059_v42 }
  0x9d   : > { %1513 = vmatmul.msk.bf16.gmra.mxu3 %vm371_vm2, %v1037_v10  ;;  %v1587_v10 = vld [vmem:[%s1709_s29 + $0x1c] sm:$0xff]  }
  0x9e   : > { %v1904_v22 = vpop.f32.mrf.mxu1 }
  0xa0   : > { %v1909_v11 = vpop.f32.mrf.mxu3 }
  0xa1   : > { %v405_v58 = vpop.f32.mrf.mxu0 }
  0xa4   : > { %v1912_v57 = vpop.f32.mrf.mxu2 }
  0xa6   : > { %v1915_v60 = vpop.f32.mrf.mxu1 }
  0xa8   : > { %v1918_v62 = vpop.f32.mrf.mxu3 }
  0xa9   : > { %1479 = vmatmul.msk.bf16.gmra.mxu1 %vm371_vm2, %v1583_v59  ;;  %1506 = vmatmul.msk.bf16.gmra.mxu2 %vm371_vm2, %v924_v61  ;;  %v749_v3 = vpop.f32.mrf.mxu0  ;;  %v1064_v59 = vsel %vm1011_vm6, %v1054_v27, %v1063_v43  ;;  %v1010_v61 = vpack.c.b16 %v1009_v23, %v1009_v23  ;;  %v1588_v27 = vld [vmem:[%s1709_s29 + $0x24] sm:$0xff]  }
  0xac   : > { %v1927_v2 = vpop.f32.mrf.mxu2  ;;  %1521 = vmatmul.msk.bf16.gmra.mxu0 %vm371_vm2, %v1158_v4  ;;  %v1069_v4 = vshll.u32 %v1010_v61, 16 }
  0xad   : > { %1514 = vmatmul.msk.bf16.gmra.mxu3 %vm371_vm2, %v1046_v0  ;;  %v1162_v0 = vsel %vm589_vm3, %v1159_v31, %v1161_v56 }
  0xae   : > { %v1931_v5 = vpop.f32.mrf.mxu1 }
  0xb0   : > { %v633_v8 = vpop.f32.mrf.mxu3 }
  0xb1   : > { %v751_v24 = vpop.f32.mrf.mxu0 }
  0xb4   : > { %v1937_v13 = vpop.f32.mrf.mxu2 }
  0xb6   : > { %v457_v16 = vpop.f32.mrf.mxu1 }
  0xb7   : > { %v458_v28 = vadd.f32 %v457_v16, %v403_v51  ;;  %v928_v51 = vsel %vm919_vm7, %v925_v9, %v927_v19 }
  0xb8   : > { %v635_v29 = vpop.f32.mrf.mxu3 }
  0xb9   : > { %1480 = vmatmul.msk.bf16.gmra.mxu1 %vm371_vm2, %v1585_v25  ;;  %1507 = vmatmul.msk.bf16.gmra.mxu2 %vm371_vm2, %v926_v26  ;;  %v754_v15 = vpop.f32.mrf.mxu0 }
  0xbc   : > { %v537_v35 = vpop.f32.mrf.mxu2  ;;  %1522 = vmatmul.msk.bf16.gmra.mxu0 %vm371_vm2, %v1160_v36 }
  0xbd   : > { %v567_v37 = vadd.f32 %v537_v35, %v458_v28  ;;  %1515 = vmatmul.msk.bf16.gmra.mxu3 %vm371_vm2, %v1055_v32  ;;  %v883_v35 = vld [vmem:[%s1709_s29 + $0x34] sm:$0x3] }
  0xbe   : > { %v459_v33 = vpop.f32.mrf.mxu1 }
  0xbf   : > { %v663_v39 = vadd.f32 %v633_v8, %v567_v37  ;;  %v460_v40 = vadd.f32 %v459_v33, %v405_v58  ;;  %v1163_v37 = vrot.slane %v1010_v61, 3  ;;  %v911_v33 = vunpack.c.l.b16 %v883_v35 }
  0xc0   : > { %v638_v41 = vpop.f32.mrf.mxu3 }
  0xc1   : > { %v1953_v17 = vadd.f32 %v749_v3, %v663_v39  ;;  %v756_v48 = vpop.f32.mrf.mxu0  ;;  %v1066_v3 = vshrl.u32 %v1010_v61, 16  ;;  %v1164_v39 = vsel %vm589_vm3, %v1161_v56, %v1163_v37 }
  0xc3   : > { %v1068_v14 = vrot.slane %v1066_v3, 2 }
  0xc4   : > { %v539_v47 = vpop.f32.mrf.mxu2 }
  0xc5   : > { %v568_v49 = vadd.f32 %v539_v47, %v460_v40 }
  0xc6   : > { %v462_v20 = vpop.f32.mrf.mxu1 }
  0xc7   : > { %v664_v52 = vadd.f32 %v635_v29, %v568_v49  ;;  %v463_v54 = vadd.f32 %v462_v20, %v1890_v46  ;;  %v930_v29 = vsel %vm919_vm7, %v927_v19, %v929_v21 }
  0xc8   : > { %v640_v55 = vpop.f32.mrf.mxu3 }
  0xc9   : > { %1481 = vmatmul.msk.bf16.gmra.mxu1 %vm371_vm2, %v1587_v10  ;;  %1508 = vmatmul.msk.bf16.gmra.mxu2 %vm371_vm2, %v928_v51  ;;  %v1963_v58 = vadd.f32 %v751_v24, %v664_v52  ;;  %v759_v63 = vpop.f32.mrf.mxu0  ;;  %v1071_v24 = vrot.slane %v1069_v4, 3  ;;  %v798_v51 = vpack.c.b16 %v1844_v53, %v1555_v45 }
  0xcb   : > { %v1072_v31 = vor.u32 %v1071_v24, %v1068_v14 }
  0xcc   : > { %v542_v12 = vpop.f32.mrf.mxu2  ;;  %1523 = vmatmul.msk.bf16.gmra.mxu0 %vm371_vm2, %v1162_v0 }
  0xcd   : > { %v569_v1 = vadd.f32 %v542_v12, %v463_v54  ;;  %1516 = vmatmul.msk.bf16.gmra.mxu3 %vm371_vm2, %v1064_v59 }
  0xce   : > { %v464_v46 = vpop.f32.mrf.mxu1 }
  0xcf   : > { %v665_v6 = vadd.f32 %v638_v41, %v569_v1  ;;  %v465_v7 = vadd.f32 %v464_v46, %v1904_v22  ;;  %v918_v41 = vpack.c.b16 %v911_v33, %v911_v33 }
  0xd0   : > { %v643_v8 = vpop.f32.mrf.mxu3 }
  0xd1   : > { %v1970_v9 = vadd.f32 %v754_v15, %v665_v6  ;;  %v761_v16 = vpop.f32.mrf.mxu0  ;;  %v1073_v15 = vsel %vm1011_vm6, %v1063_v43, %v1072_v31 }
  0xd4   : > { %v544_v25 = vpop.f32.mrf.mxu2 }
  0xd5   : > { %v570_v26 = vadd.f32 %v544_v25, %v465_v7 }
  0xd6   : > { %v467_v28 = vpop.f32.mrf.mxu1 }
  0xd7   : > { %v666_v32 = vadd.f32 %v640_v55, %v570_v26  ;;  %v468_v22 = vadd.f32 %v467_v28, %v1915_v60 }
  0xd8   : > { %v645_v36 = vpop.f32.mrf.mxu3 }
  0xd9   : > { %1482 = vmatmul.msk.bf16.gmra.mxu1 %vm371_vm2, %v1588_v27  ;;  %1509 = vmatmul.msk.bf16.gmra.mxu2 %vm371_vm2, %v930_v29  ;;  %v1979_v34 = vadd.f32 %v756_v48, %v666_v32  ;;  %v764_v38 = vpop.f32.mrf.mxu0  ;;  %v931_v48 = vrot.slane %v918_v41, 2 }
  0xdb   : > { %v932_v23 = vsel %vm919_vm7, %v929_v21, %v931_v48 }
  0xdc   : > { %v547_v30 = vpop.f32.mrf.mxu2  ;;  %1524 = vmatmul.msk.bf16.gmra.mxu0 %vm371_vm2, %v1164_v39 }
  0xdd   : > { %v571_v40 = vadd.f32 %v547_v30, %v468_v22  ;;  %1517 = vmatmul.msk.bf16.gmra.mxu3 %vm371_vm2, %v1073_v15 }
  0xde   : > { %v469_v60 = vpop.f32.mrf.mxu1 }
  0xdf   : > { %v667_v19 = vadd.f32 %v643_v8, %v571_v40  ;;  %v470_v42 = vadd.f32 %v469_v60, %v1931_v5  ;;  %v1644_v8 = vmov 0.0  }
  0xe0   : > { %v648_v44 = vpop.f32.mrf.mxu3  ;;  %257 = vst.msk [vmem:[#allocation2] sm:$0xff] %vm256_vm8, %v1644_v8 }
  0xe1   : > { %v1987_v47 = vadd.f32 %v759_v63, %v667_v19  ;;  %v766_v10 = vpop.f32.mrf.mxu0  ;;  %258 = vst.msk [vmem:[#allocation2 + $0x8] sm:$0xff] %vm256_vm8, %v1644_v8 }
  0xe2   : > { %259 = vst.msk [vmem:[#allocation2 + $0x10] sm:$0xff] %vm256_vm8, %v1644_v8 }
  0xe3   : > { %260 = vst.msk [vmem:[#allocation2 + $0x18] sm:$0xff] %vm256_vm8, %v1644_v8 }
  0xe4   : > { %v549_v49 = vpop.f32.mrf.mxu2  ;;  %261 = vst.msk [vmem:[#allocation2 + $0x20] sm:$0xff] %vm256_vm8, %v1644_v8 }
  0xe5   : > { %v572_v20 = vadd.f32 %v549_v49, %v470_v42  ;;  %262 = vst.msk [vmem:[#allocation2 + $0x28] sm:$0xff] %vm256_vm8, %v1644_v8 }
  0xe6   : > { %v472_v43 = vpop.f32.mrf.mxu1  ;;  %263 = vst.msk [vmem:[#allocation2 + $0x30] sm:$0xff] %vm256_vm8, %v1644_v8 }
  0xe7   : > { %v668_v52 = vadd.f32 %v645_v36, %v572_v20  ;;  %v473_v18 = vadd.f32 %v472_v43, %v1900_v50  ;;  %264 = vst.msk [vmem:[#allocation2 + $0x38] sm:$0xff] %vm256_vm8, %v1644_v8 }
  0xe8   : > { %v650_v54 = vpop.f32.mrf.mxu3  ;;  %265 = vst.msk [vmem:[#allocation2 + $0x40] sm:$0xff] %vm256_vm8, %v1644_v8 }
  0xe9   : > { %1483 = vmatmul.msk.bf16.gmra.mxu1 %vm371_vm2, %v798_v51  ;;  %1510 = vmatmul.msk.bf16.gmra.mxu2 %vm371_vm2, %v932_v23  ;;  %v1993_v5 = vadd.f32 %v761_v16, %v668_v52  ;;  %v769_v56 = vpop.f32.mrf.mxu0  ;;  %266 = vst.msk [vmem:[#allocation2 + $0x48] sm:$0xff] %vm256_vm8, %v1644_v8  ;;  %v1237_v52 = vld [vmem:[#allocation2] sm:$0xff] }
  0xea   : > { %267 = vst.msk [vmem:[#allocation2 + $0x50] sm:$0xff] %vm256_vm8, %v1644_v8 }
  0xeb   : > { %268 = vst.msk [vmem:[#allocation2 + $0x58] sm:$0xff] %vm256_vm8, %v1644_v8 }
  0xec   : > { %v552_v55 = vpop.f32.mrf.mxu2 }
  0xed   : > { %v573_v59 = vadd.f32 %v552_v55, %v473_v18 }
  0xee   : > { %v474_v61 = vpop.f32.mrf.mxu1 }
  0xef   : > { %v669_v12 = vadd.f32 %v648_v44, %v573_v59  ;;  %v475_v0 = vadd.f32 %v474_v61, %v1912_v57 }
  0xf0   : > { %v653_v63 = vpop.f32.mrf.mxu3 }
  0xf1   : > { %v1996_v53 = vadd.f32 %v764_v38, %v669_v12  ;;  %v771_v46 = vpop.f32.mrf.mxu0 }
  0xf4   : > { %v554_v1 = vpop.f32.mrf.mxu2 }
  0xf5   : > { %v574_v3 = vadd.f32 %v554_v1, %v475_v0  ;;  %v2032_v1 = vld [vmem:[%s2107_s2] ss:$0 sm:$0xff] }
  0xf6   : > { %v477_v4 = vpop.f32.mrf.mxu1 }
  0xf7   : > { %v670_v6 = vadd.f32 %v650_v54, %v574_v3  ;;  %v478_v21 = vadd.f32 %v477_v4, %v1927_v2 }
  0xf8   : > { %v655_v7 = vpop.f32.mrf.mxu3 }
  0xf9   : > { %v2001_v50 = vadd.f32 %v766_v10, %v670_v6  ;;  %v774_v14 = vpop.f32.mrf.mxu0 }
  0xfc   : > { %v557_v57 = vpop.f32.mrf.mxu2 }
  0xfd   : > { %v575_v24 = vadd.f32 %v557_v57, %v478_v21 }
  0xfe   : > { %v479_v25 = vpop.f32.mrf.mxu1 }
  0xff   : > { %v671_v16 = vadd.f32 %v653_v63, %v575_v24  ;;  %v480_v27 = vadd.f32 %v479_v25, %v1937_v13 }
 0x100   : > { %v658_v26 = vpop.f32.mrf.mxu3 }
 0x101   : > { %v2012_v2 = vadd.f32 %v769_v56, %v671_v16  ;;  %v776_v29 = vpop.f32.mrf.mxu0 }
 0x104   : > { %v559_v28 = vpop.f32.mrf.mxu2 }
 0x105   : > { %v576_v31 = vadd.f32 %v559_v28, %v480_v27 }
 0x106   : > { %v482_v32 = vpop.f32.mrf.mxu1 }
 0x107   : > { %v672_v22 = vadd.f32 %v655_v7, %v576_v31  ;;  %v483_v37 = vadd.f32 %v482_v32, %v1909_v11 }
 0x108   : > { %v660_v35 = vpop.f32.mrf.mxu3 }
 0x109   : > { %v2017_v36 = vadd.f32 %v771_v46, %v672_v22  ;;  %v1195_v33 = vpop.f32.mrf.mxu0 }
 0x10c   : > { %v562_v15 = vpop.f32.mrf.mxu2 }
 0x10d   : > { %v577_v30 = vadd.f32 %v562_v15, %v483_v37 }
 0x10e   : > { %v484_v38 = vpop.f32.mrf.mxu1 }
 0x10f   : > { %v673_v39 = vadd.f32 %v658_v26, %v577_v30  ;;  %v485_v13 = vadd.f32 %v484_v38, %v1918_v62 }
 0x110   : > { %v1104_v40 = vpop.f32.mrf.mxu3 }
 0x111   : > { %v2020_v60 = vadd.f32 %v774_v14, %v673_v39  ;;  %v1197_v19 = vpop.f32.mrf.mxu0  ;;  %v1239_v14 = vld [vmem:[#allocation2 + $0x10] sm:$0xff] }
 0x114   : > { %v564_v41 = vpop.f32.mrf.mxu2 }
 0x115   : > { %v578_v42 = vadd.f32 %v564_v41, %v485_v13 }
 0x116   : > { %v829_v44 = vpop.f32.mrf.mxu1 }
 0x117   : > { %v674_v45 = vadd.f32 %v660_v35, %v578_v42  ;;  %v859_v11 = vadd.f32 %v829_v44, %v1953_v17  ;;  %v1238_v17 = vld [vmem:[#allocation2 + $0x8] sm:$0xff]  ;;  %v1240_v35 = vld [vmem:[#allocation2 + $0x18] sm:$0xff]  ;;  %v1241_v42 = vld [vmem:[#allocation2 + $0x20] sm:$0xff] }
 0x118   : > { %v1106_v48 = vpop.f32.mrf.mxu3 }
 0x119   : > { %v2023_v49 = vadd.f32 %v776_v29, %v674_v45  ;;  %v1200_v43 = vpop.f32.mrf.mxu0 }
 0x11c   : > { %v963_v10 = vpop.f32.mrf.mxu2 }
 0x11d   : > { %v993_v20 = vadd.f32 %v963_v10, %v859_v11 }
 0x11e   : > { %v831_v51 = vpop.f32.mrf.mxu1 }
 0x11f   : > { %v1134_v23 = vadd.f32 %v1104_v40, %v993_v20  ;;  %v860_v55 = vadd.f32 %v831_v51, %v1963_v58 }
 0x120   : > { %v1109_v54 = vpop.f32.mrf.mxu3 }
 0x121   : > { %v1225_v18 = vadd.f32 %v1195_v33, %v1134_v23  ;;  %v1202_v0 = vpop.f32.mrf.mxu0 }
 0x123   : > { %v1249_v62 = vadd.f32 %v1237_v52, %v1225_v18 }
 0x124   : > { %v965_v56 = vpop.f32.mrf.mxu2 }
 0x125   : > { %1262 = vst.msk [vmem:[#allocation2] sm:$0xff] %vm256_vm8, %v1249_v62  ;;  %v994_v59 = vadd.f32 %v965_v56, %v860_v55 }
 0x126   : > { %v834_v61 = vpop.f32.mrf.mxu1 }
 0x127   : > { %v1135_v12 = vadd.f32 %v1106_v48, %v994_v59  ;;  %v861_v4 = vadd.f32 %v834_v61, %v1970_v9 }
 0x128   : > { %v1111_v63 = vpop.f32.mrf.mxu3 }
 0x129   : > { %v1226_v46 = vadd.f32 %v1197_v19, %v1135_v12  ;;  %v1205_v25 = vpop.f32.mrf.mxu0 }
 0x12b   : > { %v1250_v3 = vadd.f32 %v1238_v17, %v1226_v46 }
 0x12c   : > { %v1277_v58 = vld [vmem:[#allocation2] sm:$0xff]  ;;  %v968_v6 = vpop.f32.mrf.mxu2 }
 0x12d   : > { %v1293_v7 = vadd.f32 %v2032_v1, %v1277_v58  ;;  %1263 = vst.msk [vmem:[#allocation2 + $0x8] sm:$0xff] %vm256_vm8, %v1250_v3  ;;  %v995_v8 = vadd.f32 %v968_v6, %v861_v4 }
 0x12e   : > { %v836_v21 = vpop.f32.mrf.mxu1 }
 0x12f   : > { %1305 = vst.msk [vmem:[%s2038_s20] sm:$0xff] %vm256_vm8, %v1293_v7  ;;  %v1136_v57 = vadd.f32 %v1109_v54, %v995_v8  ;;  %v862_v26 = vadd.f32 %v836_v21, %v1979_v34  ;;  %v1242_v54 = vld [vmem:[#allocation2 + $0x28] sm:$0xff] }
 0x130   : > { %v1114_v9 = vpop.f32.mrf.mxu3 }
 0x131   : > { %v1227_v24 = vadd.f32 %v1200_v43, %v1136_v57  ;;  %v1207_v39 = vpop.f32.mrf.mxu0 }
 0x133   : > { %v1251_v16 = vadd.f32 %v1239_v14, %v1227_v24  ;;  %v1244_v14 = vld [vmem:[#allocation2 + $0x38] sm:$0xff] }
 0x134   : > { %v1278_v27 = vld [vmem:[#allocation2 + $0x8] sm:$0xff]  ;;  %v970_v28 = vpop.f32.mrf.mxu2 }
 0x135   : > { %v1294_v29 = vadd.f32 %v2032_v1, %v1278_v27  ;;  %1264 = vst.msk [vmem:[#allocation2 + $0x10] sm:$0xff] %vm256_vm8, %v1251_v16  ;;  %v996_v31 = vadd.f32 %v970_v28, %v862_v26 }
 0x136   : > { %v839_v32 = vpop.f32.mrf.mxu1 }
 0x137   : > { %1306 = vst.msk [vmem:[%s2038_s20 + $0x8] sm:$0xff] %vm256_vm8, %v1294_v29  ;;  %v1137_v22 = vadd.f32 %v1111_v63, %v996_v31  ;;  %v863_v30 = vadd.f32 %v839_v32, %v1987_v47 }
 0x138   : > { %v1116_v15 = vpop.f32.mrf.mxu3 }
 0x139   : > { %v1228_v37 = vadd.f32 %v1202_v0, %v1137_v22  ;;  %v1210_v23 = vpop.f32.mrf.mxu0  ;;  %v1243_v0 = vld [vmem:[#allocation2 + $0x30] sm:$0xff]  ;;  %v1245_v22 = vld [vmem:[#allocation2 + $0x40] sm:$0xff] }
 0x13b   : > { %v1252_v33 = vadd.f32 %v1240_v35, %v1228_v37 }
 0x13c   : > { %v1279_v38 = vld [vmem:[#allocation2 + $0x10] sm:$0xff]  ;;  %v973_v34 = vpop.f32.mrf.mxu2 }
 0x13d   : > { %v1295_v40 = vadd.f32 %v2032_v1, %v1279_v38  ;;  %1265 = vst.msk [vmem:[#allocation2 + $0x18] sm:$0xff] %vm256_vm8, %v1252_v33  ;;  %v997_v13 = vadd.f32 %v973_v34, %v863_v30 }
 0x13e   : > { %v841_v41 = vpop.f32.mrf.mxu1 }
 0x13f   : > { %1307 = vst.msk [vmem:[%s2038_s20 + $0x10] sm:$0xff] %vm256_vm8, %v1295_v40  ;;  %v1138_v19 = vadd.f32 %v1114_v9, %v997_v13  ;;  %v864_v48 = vadd.f32 %v841_v41, %v1993_v5  ;;  %v1246_v41 = vld [vmem:[#allocation2 + $0x48] sm:$0xff] }
 0x140   : > { %v1119_v10 = vpop.f32.mrf.mxu3 }
 0x141   : > { %v1229_v44 = vadd.f32 %v1205_v25, %v1138_v19  ;;  %v1212_v46 = vpop.f32.mrf.mxu0 }
 0x143   : > { %v1253_v45 = vadd.f32 %v1241_v42, %v1229_v44 }
 0x144   : > { %v1280_v11 = vld [vmem:[#allocation2 + $0x18] sm:$0xff]  ;;  %v975_v47 = vpop.f32.mrf.mxu2 }
 0x145   : > { %v1296_v20 = vadd.f32 %v2032_v1, %v1280_v11  ;;  %1266 = vst.msk [vmem:[#allocation2 + $0x20] sm:$0xff] %vm256_vm8, %v1253_v45  ;;  %v998_v51 = vadd.f32 %v975_v47, %v864_v48 }
 0x146   : > { %v844_v43 = vpop.f32.mrf.mxu1 }
 0x147   : > { %1308 = vst.msk [vmem:[%s2038_s20 + $0x18] sm:$0xff] %vm256_vm8, %v1296_v20  ;;  %v1139_v52 = vadd.f32 %v1116_v15, %v998_v51  ;;  %v865_v55 = vadd.f32 %v844_v43, %v1996_v53  ;;  %v1247_v51 = vld [vmem:[#allocation2 + $0x50] sm:$0xff] }
 0x148   : > { %v1121_v17 = vpop.f32.mrf.mxu3 }
 0x149   : > { %v1230_v18 = vadd.f32 %v1207_v39, %v1139_v52  ;;  %v1215_v25 = vpop.f32.mrf.mxu0 }
 0x14b   : > { %v1254_v62 = vadd.f32 %v1242_v54, %v1230_v18 }
 0x14c   : > { %v1281_v5 = vld [vmem:[#allocation2 + $0x20] sm:$0xff]  ;;  %v978_v56 = vpop.f32.mrf.mxu2 }
 0x14d   : > { %v1297_v59 = vadd.f32 %v2032_v1, %v1281_v5  ;;  %1267 = vst.msk [vmem:[#allocation2 + $0x28] sm:$0xff] %vm256_vm8, %v1254_v62  ;;  %v999_v61 = vadd.f32 %v978_v56, %v865_v55 }
 0x14e   : > { %v846_v12 = vpop.f32.mrf.mxu1 }
 0x14f   : > { %1309 = vst.msk [vmem:[%s2038_s20 + $0x20] sm:$0xff] %vm256_vm8, %v1297_v59  ;;  %v1140_v63 = vadd.f32 %v1119_v10, %v999_v61  ;;  %v866_v58 = vadd.f32 %v846_v12, %v2001_v50  ;;  %v1248_v61 = vld [vmem:[#allocation2 + $0x58] sm:$0xff] }
 0x150   : > { %v1124_v9 = vpop.f32.mrf.mxu3 }
 0x151   : > { %v1231_v3 = vadd.f32 %v1210_v23, %v1140_v63 }
 0x153   : > { %v1255_v4 = vadd.f32 %v1243_v0, %v1231_v3 }
 0x154   : > { %v1282_v53 = vld [vmem:[#allocation2 + $0x28] sm:$0xff]  ;;  %v980_v6 = vpop.f32.mrf.mxu2 }
 0x155   : > { %v1298_v7 = vadd.f32 %v2032_v1, %v1282_v53  ;;  %1268 = vst.msk [vmem:[#allocation2 + $0x30] sm:$0xff] %vm256_vm8, %v1255_v4  ;;  %v1000_v8 = vadd.f32 %v980_v6, %v866_v58 }
 0x156   : > { %v849_v21 = vpop.f32.mrf.mxu1 }
 0x157   : > { %1310 = vst.msk [vmem:[%s2038_s20 + $0x28] sm:$0xff] %vm256_vm8, %v1298_v7  ;;  %v1141_v57 = vadd.f32 %v1121_v17, %v1000_v8  ;;  %v867_v26 = vadd.f32 %v849_v21, %v2012_v2  ;;  %v1217_v2 = vpop.f32.mrf.mxu0 }
 0x158   : > { %v1126_v37 = vpop.f32.mrf.mxu3 }
 0x159   : > { %v1232_v24 = vadd.f32 %v1212_v46, %v1141_v57 }
 0x15b   : > { %v1256_v16 = vadd.f32 %v1244_v14, %v1232_v24 }
 0x15c   : > { %v1283_v50 = vld [vmem:[#allocation2 + $0x30] sm:$0xff]  ;;  %v983_v27 = vpop.f32.mrf.mxu2 }
 0x15d   : > { %v1299_v28 = vadd.f32 %v2032_v1, %v1283_v50  ;;  %1269 = vst.msk [vmem:[#allocation2 + $0x38] sm:$0xff] %vm256_vm8, %v1256_v16  ;;  %v1001_v29 = vadd.f32 %v983_v27, %v867_v26 }
 0x15e   : > { %v851_v31 = vpop.f32.mrf.mxu1 }
 0x15f   : > { %1311 = vst.msk [vmem:[%s2038_s20 + $0x30] sm:$0xff] %vm256_vm8, %v1299_v28  ;;  %v1142_v32 = vadd.f32 %v1124_v9, %v1001_v29  ;;  %v868_v33 = vadd.f32 %v851_v31, %v2017_v36  ;;  %v1220_v10 = vpop.f32.mrf.mxu0 }
 0x160   : > { %v1129_v36 = vpop.f32.mrf.mxu3 }
 0x161   : > { %v1233_v35 = vadd.f32 %v1215_v25, %v1142_v32 }
 0x163   : > { %v1257_v15 = vadd.f32 %v1245_v22, %v1233_v35 }
 0x164   : > { %v1284_v30 = vld [vmem:[#allocation2 + $0x38] sm:$0xff]  ;;  %v985_v38 = vpop.f32.mrf.mxu2 }
 0x165   : > { %v1300_v34 = vadd.f32 %v2032_v1, %v1284_v30  ;;  %1270 = vst.msk [vmem:[#allocation2 + $0x40] sm:$0xff] %vm256_vm8, %v1257_v15  ;;  %v1002_v39 = vadd.f32 %v985_v38, %v868_v33 }
 0x166   : > { %v854_v40 = vpop.f32.mrf.mxu1 }
 0x167   : > { %1312 = vst.msk [vmem:[%s2038_s20 + $0x38] sm:$0xff] %vm256_vm8, %v1300_v34  ;;  %v1143_v13 = vadd.f32 %v1126_v37, %v1002_v39  ;;  %v869_v44 = vadd.f32 %v854_v40, %v2020_v60  ;;  %v1222_v59 = vpop.f32.mrf.mxu0 }
 0x168   : > { %v1131_v5 = vpop.f32.mrf.mxu3 }
 0x169   : > { %v1234_v19 = vadd.f32 %v1217_v2, %v1143_v13 }
 0x16b   : > { %v1258_v42 = vadd.f32 %v1246_v41, %v1234_v19 }
 0x16c   : > { %v1285_v45 = vld [vmem:[#allocation2 + $0x40] sm:$0xff]  ;;  %v988_v48 = vpop.f32.mrf.mxu2 }
 0x16d   : > { %v1301_v11 = vadd.f32 %v2032_v1, %v1285_v45  ;;  %1271 = vst.msk [vmem:[#allocation2 + $0x48] sm:$0xff] %vm256_vm8, %v1258_v42  ;;  %v1003_v47 = vadd.f32 %v988_v48, %v869_v44 }
 0x16e   : > { %v856_v43 = vpop.f32.mrf.mxu1 }
 0x16f   : > { %1313 = vst.msk [vmem:[%s2038_s20 + $0x40] sm:$0xff] %vm256_vm8, %v1301_v11  ;;  %v1144_v20 = vadd.f32 %v1129_v36, %v1003_v47  ;;  %v870_v54 = vadd.f32 %v856_v43, %v2023_v49 }
 0x171   : > { %v1235_v23 = vadd.f32 %v1220_v10, %v1144_v20 }
 0x173   : > { %v1259_v52 = vadd.f32 %v1247_v51, %v1235_v23 }
 0x174   : > { %v1286_v60 = vld [vmem:[#allocation2 + $0x48] sm:$0xff]  ;;  %v990_v18 = vpop.f32.mrf.mxu2 }
 0x175   : > { %v1302_v62 = vadd.f32 %v2032_v1, %v1286_v60  ;;  %1272 = vst.msk [vmem:[#allocation2 + $0x50] sm:$0xff] %vm256_vm8, %v1259_v52  ;;  %v1004_v55 = vadd.f32 %v990_v18, %v870_v54 }
 0x177   : > { %1314 = vst.msk [vmem:[%s2038_s20 + $0x48] sm:$0xff] %vm256_vm8, %v1302_v62  ;;  %v1145_v56 = vadd.f32 %v1131_v5, %v1004_v55 }
 0x179   : > { %v1236_v12 = vadd.f32 %v1222_v59, %v1145_v56 }
 0x17b   : > { %v1260_v17 = vadd.f32 %v1248_v61, %v1236_v12 }
 0x17c   : > { %v1287_v63 = vld [vmem:[#allocation2 + $0x50] sm:$0xff] }
 0x17d   : > { %v1303_v49 = vadd.f32 %v2032_v1, %v1287_v63  ;;  %1273 = vst.msk [vmem:[#allocation2 + $0x58] sm:$0xff] %vm256_vm8, %v1260_v17 }
 0x17f   : > { %1315 = vst.msk [vmem:[%s2038_s20 + $0x50] sm:$0xff] %vm256_vm8, %v1303_v49 }
 0x184   : > { %v1288_v0 = vld [vmem:[#allocation2 + $0x58] sm:$0xff] }
 0x185   : > { %v1304_v46 = vadd.f32 %v2032_v1, %v1288_v0 }
 0x187   : > { %1316 = vst.msk [vmem:[%s2038_s20 + $0x58] sm:$0xff] %vm256_vm8, %v1304_v46 }
 0x188 PF: > { %s13_s14 = sadd.s32 1, %s1642_s14   ;;  %s2109_s12 = smov %s1638_s13 }
 0x189   : > { %p10_p5 = scmp.ge.s32.totalorder %s13_s14, 4   ;;  %s2110_s13 = smov %s2112_s15 }
 0x18b   :  { %12 = sbr.rel (!%p10_p5) target bundleno = 2 (0x2), region = 84 }

</bundles_post_ra>
